<compile_context>
chip_gen: v6e
topology: v6e:2x2x1
jax: 0.10.0
libtpu: 0.0.40
codegen_flags: <defaults>
</compile_context>

<pallas_src>
import jax
import jax.numpy as jnp
from jax.experimental import pallas as pl
from jax.experimental.pallas import tpu as pltpu


def _vmem_limit_bytes():
    """Generation-aware scoped-VMEM limit (~3/4 of physical VMEM)."""
    cap = 128 * 1024 * 1024
    try:
        cap = int(getattr(pltpu.get_tpu_info(), "vmem_capacity_bytes", cap))
    except Exception:
        pass
    return min(cap * 3 // 4, 96 * 1024 * 1024)


def _make_cnet_kernel(ch, n_feat, stem_ch, H, W):
    """Builds the fused conv_in -> conv_out(+residual) -> Focus -> stem kernel."""
    assert H % 2 == 0 and W % 2 == 0, "Focus needs even spatial dims"
    Wp = W + 2                     # padded row stride (flat coordinates)
    La = H * Wp                    # flat accumulator length (2 junk cols per row)
    Lp = (H + 2) * Wp + 2          # flat padded length (+2 so the last tap slice fits)
    OFF = Wp + 1                   # flat index of interior pixel (0, 0)
    H2, W2 = H // 2, W // 2

    def kernel(xflat_ref, w_in_ref, w_out_ref, w_stem_ref, b_ref,
               o_ref, fpad_ref, ppad_ref):
        # xflat_ref : (1, ch, Lp)        f32   zero-padded input, flat spatial on lanes
        # w_in_ref  : (9, n_feat, ch)    bf16  conv_in taps
        # w_out_ref : (9, ch, n_feat)    bf16  conv_out taps
        # w_stem_ref: (9, 4*ch, Cs)      bf16  stem taps (BN folded into weights)
        # b_ref     : (1, Cs)            f32   folded BN bias
        # o_ref     : (1, Cs, H2*W2)     f32   lane-dense output
        # fpad_ref  : (n_feat, Lp)       bf16  zero-padded conv_in output (VMEM scratch)
        # ppad_ref  : (H2+2, W2+2, 4*ch) bf16  zero-padded Focus output  (VMEM scratch)
        xflat = xflat_ref[0]                               # (ch, Lp) f32
        xbf = xflat.astype(jnp.bfloat16)                   # MXU operand copy

        # Flat column a = h*Wp + w is valid iff w < W.  The junk columns of the
        # accumulator land exactly on the pad columns of the next stage's
        # padded buffer, so masking them to zero both discards them and
        # re-establishes SAME zero padding every grid step.
        col = jax.lax.broadcasted_iota(jnp.int32, (1, La), 1) % Wp
        valid = col < W

        # ---- MIRNet conv_in (3x3, ch -> n_feat), tap-accumulated ------------
        acc1 = jnp.zeros((n_feat, La), jnp.float32)
        for kh in range(3):
            for kw in range(3):
                d = kh * Wp + kw
                acc1 += jnp.dot(w_in_ref[kh * 3 + kw], xbf[:, d:d + La],
                                preferred_element_type=jnp.float32)

        # Re-zero the flat border slabs each step (megacore-safe; the interior
        # below is always fully rewritten, and interleaved pad columns are
        # covered by the mask).
        fpad_ref[:, 0:OFF] = jnp.zeros((n_feat, OFF), fpad_ref.dtype)
        fpad_ref[:, OFF + La:Lp] = jnp.zeros((n_feat, Lp - OFF - La), fpad_ref.dtype)
        fpad_ref[:, OFF:OFF + La] = jnp.where(valid, acc1, 0.0).astype(fpad_ref.dtype)

        # ---- MIRNet conv_out (3x3, n_feat -> ch) + global residual (f32) ----
        acc2 = xflat[:, OFF:OFF + La]                      # residual in f32, flat-aligned
        for kh in range(3):
            for kw in range(3):
                d = kh * Wp + kw
                acc2 += jnp.dot(w_out_ref[kh * 3 + kw], fpad_ref[:, d:d + La],
                                preferred_element_type=jnp.float32)

        # ---- YOLOv5 Focus: write the four (h, w) parities of sr straight ----
        # ---- into the padded stem input (no concat / intermediate tensor) ---
        sr = acc2.T.reshape(H, W2 + 1, 2, ch)              # junk column sits at q == W2
        ec = sr[:, 0:W2, 0:1, :].reshape(H2, 2, W2, ch)    # even image columns
        oc = sr[:, 0:W2, 1:2, :].reshape(H2, 2, W2, ch)    # odd  image columns
        pd = ppad_ref.dtype
        ppad_ref[0:1, :, :] = jnp.zeros((1, W2 + 2, 4 * ch), pd)          # border ring
        ppad_ref[H2 + 1:H2 + 2, :, :] = jnp.zeros((1, W2 + 2, 4 * ch), pd)
        ppad_ref[:, 0:1, :] = jnp.zeros((H2 + 2, 1, 4 * ch), pd)
        ppad_ref[:, W2 + 1:W2 + 2, :] = jnp.zeros((H2 + 2, 1, 4 * ch), pd)
        # channel group order matches torch.cat in Focus: (eh,ew),(oh,ew),(eh,ow),(oh,ow)
        ppad_ref[1:H2 + 1, 1:W2 + 1, 0 * ch:1 * ch] = ec[:, 0:1].reshape(H2, W2, ch).astype(pd)
        ppad_ref[1:H2 + 1, 1:W2 + 1, 1 * ch:2 * ch] = ec[:, 1:2].reshape(H2, W2, ch).astype(pd)
        ppad_ref[1:H2 + 1, 1:W2 + 1, 2 * ch:3 * ch] = oc[:, 0:1].reshape(H2, W2, ch).astype(pd)
        ppad_ref[1:H2 + 1, 1:W2 + 1, 3 * ch:4 * ch] = oc[:, 1:2].reshape(H2, W2, ch).astype(pd)

        # ---- YOLO stem Conv (3x3, 4*ch -> Cs, folded-BN bias, SiLU) ---------
        acc3 = jnp.zeros((H2 * W2, stem_ch), jnp.float32)
        for kh in range(3):
            for kw in range(3):
                p_tap = ppad_ref[kh:kh + H2, kw:kw + W2, :].reshape(H2 * W2, 4 * ch)
                acc3 += jnp.dot(p_tap, w_stem_ref[kh * 3 + kw],
                                preferred_element_type=jnp.float32)
        acc3 = acc3 + b_ref[...]                           # folded BatchNorm bias (f32)
        acc3 = acc3 * jax.nn.sigmoid(acc3)                 # SiLU epilogue in f32
        o_ref[0] = acc3.T.astype(o_ref.dtype)              # lane-dense (Cs, H2*W2) store

    return kernel, Lp


def cnet_forward(xflat, w_in_taps, w_out_taps, w_stem_taps, b_stem, *,
                 ch, n_feat, stem_ch, H, W):
    N = xflat.shape[0]
    H2, W2 = H // 2, W // 2
    kernel, Lp = _make_cnet_kernel(ch, n_feat, stem_ch, H, W)
    assert xflat.shape == (N, ch, Lp), xflat.shape
    return pl.pallas_call(
        kernel,
        out_shape=jax.ShapeDtypeStruct((N, stem_ch, H2 * W2), jnp.float32),
        grid=(N,),
        in_specs=[
            pl.BlockSpec((1, ch, Lp), lambda n: (n, 0, 0)),
            pl.BlockSpec((9, n_feat, ch), lambda n: (0, 0, 0)),
            pl.BlockSpec((9, ch, n_feat), lambda n: (0, 0, 0)),
            pl.BlockSpec((9, 4 * ch, stem_ch), lambda n: (0, 0, 0)),
            pl.BlockSpec((1, stem_ch), lambda n: (0, 0)),
        ],
        out_specs=pl.BlockSpec((1, stem_ch, H2 * W2), lambda n: (n, 0, 0)),
        scratch_shapes=[
            pltpu.VMEM((n_feat, Lp), jnp.bfloat16),               # padded conv_in output
            pltpu.VMEM((H2 + 2, W2 + 2, 4 * ch), jnp.bfloat16),   # padded Focus output
        ],
        compiler_params=pltpu.CompilerParams(
            dimension_semantics=("parallel",),
            vmem_limit_bytes=_vmem_limit_bytes()),
    )(xflat, w_in_taps, w_out_taps, w_stem_taps, b_stem)


class CnetPallas:
    """Pallas stand-in for Cnet: MIRNet conv_in/conv_out + global residual,
    then the YOLOv5 Focus stem (space-to-depth + Conv(BN, SiLU))."""

    def __init__(self, key, ch=3, n_feat=64, stem_ch=16):
        self.ch, self.n_feat, self.stem_ch = ch, n_feat, stem_ch
        k1, k2, k3, k4, k5 = jax.random.split(key, 5)
        w_in = jax.random.normal(k1, (n_feat, ch, 3, 3), jnp.float32) / (9 * ch) ** 0.5
        w_out = jax.random.normal(k2, (ch, n_feat, 3, 3), jnp.float32) / (9 * n_feat) ** 0.5
        w_stem = jax.random.normal(k3, (stem_ch, 4 * ch, 3, 3), jnp.float32) / (36 * ch) ** 0.5
        # YOLOv5 Conv = conv -> BatchNorm -> SiLU; fold the inference BN into a
        # per-output-channel weight scale plus a bias vector.
        gamma = 1.0 + 0.1 * jax.random.normal(k4, (stem_ch,), jnp.float32)
        beta = 0.1 * jax.random.normal(k5, (stem_ch,), jnp.float32)
        mean = jnp.zeros((stem_ch,), jnp.float32)
        var = jnp.ones((stem_ch,), jnp.float32)
        scale = gamma * jax.lax.rsqrt(var + 1e-3)
        w_stem_f = w_stem * scale[:, None, None, None]
        self.b_stem = (beta - mean * scale).reshape(1, stem_ch)

        # Tap-major bf16 weights for the MXU (accumulation stays f32 in-kernel).
        self.w_in_taps = jnp.transpose(w_in, (2, 3, 0, 1)).reshape(9, n_feat, ch).astype(jnp.bfloat16)
        self.w_out_taps = jnp.transpose(w_out, (2, 3, 0, 1)).reshape(9, ch, n_feat).astype(jnp.bfloat16)
        self.w_stem_taps = jnp.transpose(w_stem_f, (2, 3, 1, 0)).reshape(9, 4 * ch, stem_ch).astype(jnp.bfloat16)

        # f32 OIHW copies of the same (bf16-rounded) values, used only by the
        # pure-JAX reference check in __main__.
        self.w_in_oihw = jnp.transpose(
            self.w_in_taps.astype(jnp.float32).reshape(3, 3, n_feat, ch), (2, 3, 0, 1))
        self.w_out_oihw = jnp.transpose(
            self.w_out_taps.astype(jnp.float32).reshape(3, 3, ch, n_feat), (2, 3, 0, 1))
        self.w_stem_oihw = jnp.transpose(
            self.w_stem_taps.astype(jnp.float32).reshape(3, 3, 4 * ch, stem_ch), (3, 2, 0, 1))

        # TODO(synk): the MIRNet body (n_RRG=3 residual groups of MSRB/SKFF/DAU)
        # and YOLOv5l past the Focus stem (backbone/neck/Detect) are external,
        # cfg-driven modules and are not translated here.

    def __call__(self, image_nchw):
        N, ch, H, W = image_nchw.shape
        assert ch == self.ch
        H2, W2 = H // 2, W // 2
        # out1 = self.downsample(image) is dead (immediately overwritten) -> dropped.
        # Flat zero-padded input (tiny, ch=3): one cheap XLA pad/reshape so every
        # conv tap inside the kernel is a contiguous lane slice.
        xpad = jnp.pad(image_nchw, ((0, 0), (0, 0), (1, 1), (1, 1)))
        xflat = jnp.pad(xpad.reshape(N, ch, (H + 2) * (W + 2)), ((0, 0), (0, 0), (0, 2)))
        out = cnet_forward(xflat, self.w_in_taps, self.w_out_taps,
                           self.w_stem_taps, self.b_stem,
                           ch=ch, n_feat=self.n_feat, stem_ch=self.stem_ch, H=H, W=W)
        return out.reshape(N, self.stem_ch, H2, W2)        # already NCHW, no transpose


# ----------------------------------------------------------------------------
# Pure-JAX reference (loose-tolerance numerical check only).
# ----------------------------------------------------------------------------
def _conv3x3_nchw(x, w_oihw):
    return jax.lax.conv_general_dilated(
        x, w_oihw, window_strides=(1, 1), padding="SAME",
        dimension_numbers=("NCHW", "OIHW", "NCHW"))


def _reference_forward(model, image):
    feat = _conv3x3_nchw(image, model.w_in_oihw)
    sr = _conv3x3_nchw(feat, model.w_out_oihw) + image
    p = jnp.concatenate([sr[:, :, 0::2, 0::2], sr[:, :, 1::2, 0::2],
                         sr[:, :, 0::2, 1::2], sr[:, :, 1::2, 1::2]], axis=1)
    acc = _conv3x3_nchw(p, model.w_stem_oihw) + model.b_stem.reshape(1, -1, 1, 1)
    return acc * jax.nn.sigmoid(acc)


if __name__ == "__main__":
    key = jax.random.PRNGKey(0)
    k_img, k_params = jax.random.split(key)
    image = jax.random.normal(k_img, (2, 3, 16, 16), jnp.float32)      # NCHW

    model = CnetPallas(k_params, ch=3, n_feat=64, stem_ch=16)
    out = model(image)
    jax.block_until_ready(out)
    assert out.shape == (2, 16, 8, 8), out.shape

    # Loose-tolerance check vs. pure-JAX reference (bf16 MXU operands, f32 acc).
    ref = _reference_forward(model, image)
    err = float(jnp.max(jnp.abs(out - ref)))
    assert err < 0.1, f"max abs error vs reference: {err}"
    print("KERNEL_OK")
</pallas_src>

<mosaic_0001>
module attributes {stable_mosaic.version = 11 : i64} {
  func.func @kernel(%arg0: i32, %arg1: memref<1x3x326xf32, #tpu.memory_space<vmem>>, %arg2: memref<9x64x3xbf16, #tpu.memory_space<vmem>>, %arg3: memref<9x3x64xbf16, #tpu.memory_space<vmem>>, %arg4: memref<9x12x16xbf16, #tpu.memory_space<vmem>>, %arg5: memref<1x16xf32, #tpu.memory_space<vmem>>, %arg6: memref<1x16x64xf32, #tpu.memory_space<vmem>>, %arg7: memref<64x326xbf16, #tpu.memory_space<vmem>>, %arg8: memref<10x10x12xbf16, #tpu.memory_space<vmem>>) attributes {dimension_semantics = [#tpu.dimension_semantics<parallel>], iteration_bounds = array<i64: 2>, scalar_prefetch = 0 : i64, scratch_operands = 2 : i64, tpu.core_type = #tpu.core_type<tc>, window_params = [{transform_indices = @transform_0, window_bounds = array<i64: 1, 3, 326>}, {pipeline_mode = #tpu.pipeline_mode<synchronous>, transform_indices = @transform_1, window_bounds = array<i64: 9, 64, 3>}, {pipeline_mode = #tpu.pipeline_mode<synchronous>, transform_indices = @transform_2, window_bounds = array<i64: 9, 3, 64>}, {pipeline_mode = #tpu.pipeline_mode<synchronous>, transform_indices = @transform_3, window_bounds = array<i64: 9, 12, 16>}, {pipeline_mode = #tpu.pipeline_mode<synchronous>, transform_indices = @transform_4, window_bounds = array<i64: 1, 16>}, {transform_indices = @transform_5, window_bounds = array<i64: 1, 16, 64>}]} {
    %c0 = arith.constant 0 : index
    %c0_0 = arith.constant 0 : index
    %c0_1 = arith.constant 0 : index
    %0 = vector.load %arg1[%c0, %c0_0, %c0_1] : memref<1x3x326xf32, #tpu.memory_space<vmem>>, vector<1x3x326xf32>
    %1 = vector.shape_cast %0 : vector<1x3x326xf32> to vector<3x326xf32>
    %2 = arith.truncf %1 : vector<3x326xf32> to vector<3x326xbf16>
    %3 = tpu.iota {dimensions = array<i32: 1>} : vector<1x288xi32>
    %c18_i32 = arith.constant 18 : i32
    %c0_i32 = arith.constant 0 : i32
    %4 = arith.cmpi eq, %c18_i32, %c0_i32 : i32
    %c1_i32 = arith.constant 1 : i32
    %5 = arith.select %4, %c1_i32, %c18_i32 : i32
    %6 = vector.broadcast %5 : i32 to vector<1x288xi32>
    %7 = arith.remsi %3, %6 : vector<1x288xi32>
    %c0_i32_2 = arith.constant 0 : i32
    %8 = vector.broadcast %c0_i32_2 : i32 to vector<1x288xi32>
    %9 = arith.cmpi ne, %7, %8 : vector<1x288xi32>
    %c0_i32_3 = arith.constant 0 : i32
    %10 = vector.broadcast %c0_i32_3 : i32 to vector<1x288xi32>
    %11 = arith.cmpi slt, %7, %10 : vector<1x288xi32>
    %c0_i32_4 = arith.constant 0 : i32
    %12 = arith.cmpi slt, %5, %c0_i32_4 : i32
    %13 = vector.broadcast %12 : i1 to vector<1x288xi1>
    %14 = vector.broadcast %13 : vector<1x288xi1> to vector<1x288xi1>
    %15 = arith.xori %11, %14 : vector<1x288xi1>
    %16 = arith.andi %15, %9 : vector<1x288xi1>
    %17 = vector.broadcast %5 : i32 to vector<1x288xi32>
    %18 = arith.addi %7, %17 : vector<1x288xi32>
    %19 = arith.select %16, %18, %7 : vector<1x288xi1>, vector<1x288xi32>
    %c16_i32 = arith.constant 16 : i32
    %20 = vector.broadcast %c16_i32 : i32 to vector<1x288xi32>
    %21 = arith.cmpi slt, %19, %20 : vector<1x288xi32>
    %cst = arith.constant 0.000000e+00 : f32
    %22 = vector.broadcast %cst : f32 to vector<64x288xf32>
    %c0_5 = arith.constant 0 : index
    %c0_6 = arith.constant 0 : index
    %c0_7 = arith.constant 0 : index
    %23 = vector.load %arg2[%c0_5, %c0_6, %c0_7] : memref<9x64x3xbf16, #tpu.memory_space<vmem>>, vector<1x64x3xbf16>
    %24 = vector.shape_cast %23 : vector<1x64x3xbf16> to vector<64x3xbf16>
    %25 = vector.extract_strided_slice %2 {offsets = [0, 0], sizes = [3, 288], strides = [1, 1]} : vector<3x326xbf16> to vector<3x288xbf16>
    %cst_8 = arith.constant dense<0.000000e+00> : vector<64x288xf32>
    %26 = tpu.matmul %24, %25, %cst_8 {dimension_numbers = #tpu.dot_dimension_numbers<[1], [0], [0], [1], [0, 0, 1, 1], [], []>} : vector<64x3xbf16>, vector<3x288xbf16>, vector<64x288xf32> -> vector<64x288xf32>
    %27 = arith.addf %22, %26 : vector<64x288xf32>
    %c1 = arith.constant 1 : index
    %c0_9 = arith.constant 0 : index
    %c0_10 = arith.constant 0 : index
    %28 = vector.load %arg2[%c1, %c0_9, %c0_10] : memref<9x64x3xbf16, #tpu.memory_space<vmem>>, vector<1x64x3xbf16>
    %29 = vector.shape_cast %28 : vector<1x64x3xbf16> to vector<64x3xbf16>
    %30 = vector.extract_strided_slice %2 {offsets = [0, 1], sizes = [3, 288], strides = [1, 1]} : vector<3x326xbf16> to vector<3x288xbf16>
    %cst_11 = arith.constant dense<0.000000e+00> : vector<64x288xf32>
    %31 = tpu.matmul %29, %30, %cst_11 {dimension_numbers = #tpu.dot_dimension_numbers<[1], [0], [0], [1], [0, 0, 1, 1], [], []>} : vector<64x3xbf16>, vector<3x288xbf16>, vector<64x288xf32> -> vector<64x288xf32>
    %32 = arith.addf %27, %31 : vector<64x288xf32>
    %c2 = arith.constant 2 : index
    %c0_12 = arith.constant 0 : index
    %c0_13 = arith.constant 0 : index
    %33 = vector.load %arg2[%c2, %c0_12, %c0_13] : memref<9x64x3xbf16, #tpu.memory_space<vmem>>, vector<1x64x3xbf16>
    %34 = vector.shape_cast %33 : vector<1x64x3xbf16> to vector<64x3xbf16>
    %35 = vector.extract_strided_slice %2 {offsets = [0, 2], sizes = [3, 288], strides = [1, 1]} : vector<3x326xbf16> to vector<3x288xbf16>
    %cst_14 = arith.constant dense<0.000000e+00> : vector<64x288xf32>
    %36 = tpu.matmul %34, %35, %cst_14 {dimension_numbers = #tpu.dot_dimension_numbers<[1], [0], [0], [1], [0, 0, 1, 1], [], []>} : vector<64x3xbf16>, vector<3x288xbf16>, vector<64x288xf32> -> vector<64x288xf32>
    %37 = arith.addf %32, %36 : vector<64x288xf32>
    %c3 = arith.constant 3 : index
    %c0_15 = arith.constant 0 : index
    %c0_16 = arith.constant 0 : index
    %38 = vector.load %arg2[%c3, %c0_15, %c0_16] : memref<9x64x3xbf16, #tpu.memory_space<vmem>>, vector<1x64x3xbf16>
    %39 = vector.shape_cast %38 : vector<1x64x3xbf16> to vector<64x3xbf16>
    %40 = vector.extract_strided_slice %2 {offsets = [0, 18], sizes = [3, 288], strides = [1, 1]} : vector<3x326xbf16> to vector<3x288xbf16>
    %cst_17 = arith.constant dense<0.000000e+00> : vector<64x288xf32>
    %41 = tpu.matmul %39, %40, %cst_17 {dimension_numbers = #tpu.dot_dimension_numbers<[1], [0], [0], [1], [0, 0, 1, 1], [], []>} : vector<64x3xbf16>, vector<3x288xbf16>, vector<64x288xf32> -> vector<64x288xf32>
    %42 = arith.addf %37, %41 : vector<64x288xf32>
    %c4 = arith.constant 4 : index
    %c0_18 = arith.constant 0 : index
    %c0_19 = arith.constant 0 : index
    %43 = vector.load %arg2[%c4, %c0_18, %c0_19] : memref<9x64x3xbf16, #tpu.memory_space<vmem>>, vector<1x64x3xbf16>
    %44 = vector.shape_cast %43 : vector<1x64x3xbf16> to vector<64x3xbf16>
    %45 = vector.extract_strided_slice %2 {offsets = [0, 19], sizes = [3, 288], strides = [1, 1]} : vector<3x326xbf16> to vector<3x288xbf16>
    %cst_20 = arith.constant dense<0.000000e+00> : vector<64x288xf32>
    %46 = tpu.matmul %44, %45, %cst_20 {dimension_numbers = #tpu.dot_dimension_numbers<[1], [0], [0], [1], [0, 0, 1, 1], [], []>} : vector<64x3xbf16>, vector<3x288xbf16>, vector<64x288xf32> -> vector<64x288xf32>
    %47 = arith.addf %42, %46 : vector<64x288xf32>
    %c5 = arith.constant 5 : index
    %c0_21 = arith.constant 0 : index
    %c0_22 = arith.constant 0 : index
    %48 = vector.load %arg2[%c5, %c0_21, %c0_22] : memref<9x64x3xbf16, #tpu.memory_space<vmem>>, vector<1x64x3xbf16>
    %49 = vector.shape_cast %48 : vector<1x64x3xbf16> to vector<64x3xbf16>
    %50 = vector.extract_strided_slice %2 {offsets = [0, 20], sizes = [3, 288], strides = [1, 1]} : vector<3x326xbf16> to vector<3x288xbf16>
    %cst_23 = arith.constant dense<0.000000e+00> : vector<64x288xf32>
    %51 = tpu.matmul %49, %50, %cst_23 {dimension_numbers = #tpu.dot_dimension_numbers<[1], [0], [0], [1], [0, 0, 1, 1], [], []>} : vector<64x3xbf16>, vector<3x288xbf16>, vector<64x288xf32> -> vector<64x288xf32>
    %52 = arith.addf %47, %51 : vector<64x288xf32>
    %c6 = arith.constant 6 : index
    %c0_24 = arith.constant 0 : index
    %c0_25 = arith.constant 0 : index
    %53 = vector.load %arg2[%c6, %c0_24, %c0_25] : memref<9x64x3xbf16, #tpu.memory_space<vmem>>, vector<1x64x3xbf16>
    %54 = vector.shape_cast %53 : vector<1x64x3xbf16> to vector<64x3xbf16>
    %55 = vector.extract_strided_slice %2 {offsets = [0, 36], sizes = [3, 288], strides = [1, 1]} : vector<3x326xbf16> to vector<3x288xbf16>
    %cst_26 = arith.constant dense<0.000000e+00> : vector<64x288xf32>
    %56 = tpu.matmul %54, %55, %cst_26 {dimension_numbers = #tpu.dot_dimension_numbers<[1], [0], [0], [1], [0, 0, 1, 1], [], []>} : vector<64x3xbf16>, vector<3x288xbf16>, vector<64x288xf32> -> vector<64x288xf32>
    %57 = arith.addf %52, %56 : vector<64x288xf32>
    %c7 = arith.constant 7 : index
    %c0_27 = arith.constant 0 : index
    %c0_28 = arith.constant 0 : index
    %58 = vector.load %arg2[%c7, %c0_27, %c0_28] : memref<9x64x3xbf16, #tpu.memory_space<vmem>>, vector<1x64x3xbf16>
    %59 = vector.shape_cast %58 : vector<1x64x3xbf16> to vector<64x3xbf16>
    %60 = vector.extract_strided_slice %2 {offsets = [0, 37], sizes = [3, 288], strides = [1, 1]} : vector<3x326xbf16> to vector<3x288xbf16>
    %cst_29 = arith.constant dense<0.000000e+00> : vector<64x288xf32>
    %61 = tpu.matmul %59, %60, %cst_29 {dimension_numbers = #tpu.dot_dimension_numbers<[1], [0], [0], [1], [0, 0, 1, 1], [], []>} : vector<64x3xbf16>, vector<3x288xbf16>, vector<64x288xf32> -> vector<64x288xf32>
    %62 = arith.addf %57, %61 : vector<64x288xf32>
    %c8 = arith.constant 8 : index
    %c0_30 = arith.constant 0 : index
    %c0_31 = arith.constant 0 : index
    %63 = vector.load %arg2[%c8, %c0_30, %c0_31] : memref<9x64x3xbf16, #tpu.memory_space<vmem>>, vector<1x64x3xbf16>
    %64 = vector.shape_cast %63 : vector<1x64x3xbf16> to vector<64x3xbf16>
    %65 = vector.extract_strided_slice %2 {offsets = [0, 38], sizes = [3, 288], strides = [1, 1]} : vector<3x326xbf16> to vector<3x288xbf16>
    %cst_32 = arith.constant dense<0.000000e+00> : vector<64x288xf32>
    %66 = tpu.matmul %64, %65, %cst_32 {dimension_numbers = #tpu.dot_dimension_numbers<[1], [0], [0], [1], [0, 0, 1, 1], [], []>} : vector<64x3xbf16>, vector<3x288xbf16>, vector<64x288xf32> -> vector<64x288xf32>
    %67 = arith.addf %62, %66 : vector<64x288xf32>
    %cst_33 = arith.constant 0.000000e+00 : bf16
    %68 = vector.broadcast %cst_33 : bf16 to vector<64x19xbf16>
    %c0_34 = arith.constant 0 : index
    %c0_35 = arith.constant 0 : index
    %69 = vector.load %arg7[%c0_34, %c0_35] : memref<64x326xbf16, #tpu.memory_space<vmem>>, vector<64x19xbf16>
    tpu.vector_store %arg7[%c0_34, %c0_35], %68 {strides = array<i32>} : memref<64x326xbf16, #tpu.memory_space<vmem>>, vector<64x19xbf16>,
    %cst_36 = arith.constant 0.000000e+00 : bf16
    %70 = vector.broadcast %cst_36 : bf16 to vector<64x19xbf16>
    %c0_37 = arith.constant 0 : index
    %c307 = arith.constant 307 : index
    %71 = vector.load %arg7[%c0_37, %c307] : memref<64x326xbf16, #tpu.memory_space<vmem>>, vector<64x19xbf16>
    tpu.vector_store %arg7[%c0_37, %c307], %70 {strides = array<i32>} : memref<64x326xbf16, #tpu.memory_space<vmem>>, vector<64x19xbf16>,
    %cst_38 = arith.constant 0.000000e+00 : f32
    %72 = vector.shape_cast %21 : vector<1x288xi1> to vector<1x288xi1>
    %73 = vector.broadcast %72 : vector<1x288xi1> to vector<64x288xi1>
    %74 = vector.broadcast %cst_38 : f32 to vector<64x288xf32>
    %75 = arith.select %73, %67, %74 : vector<64x288xi1>, vector<64x288xf32>
    %76 = arith.truncf %75 : vector<64x288xf32> to vector<64x288xbf16>
    %c0_39 = arith.constant 0 : index
    %c19 = arith.constant 19 : index
    %77 = vector.load %arg7[%c0_39, %c19] : memref<64x326xbf16, #tpu.memory_space<vmem>>, vector<64x288xbf16>
    tpu.vector_store %arg7[%c0_39, %c19], %76 {strides = array<i32>} : memref<64x326xbf16, #tpu.memory_space<vmem>>, vector<64x288xbf16>,
    %78 = vector.extract_strided_slice %1 {offsets = [0, 19], sizes = [3, 288], strides = [1, 1]} : vector<3x326xf32> to vector<3x288xf32>
    %c0_40 = arith.constant 0 : index
    %c0_41 = arith.constant 0 : index
    %c0_42 = arith.constant 0 : index
    %79 = vector.load %arg3[%c0_40, %c0_41, %c0_42] : memref<9x3x64xbf16, #tpu.memory_space<vmem>>, vector<1x3x64xbf16>
    %80 = vector.shape_cast %79 : vector<1x3x64xbf16> to vector<3x64xbf16>
    %c0_43 = arith.constant 0 : index
    %c0_44 = arith.constant 0 : index
    %81 = vector.load %arg7[%c0_43, %c0_44] : memref<64x326xbf16, #tpu.memory_space<vmem>>, vector<64x288xbf16>
    %cst_45 = arith.constant dense<0.000000e+00> : vector<3x288xf32>
    %82 = tpu.matmul %80, %81, %cst_45 {dimension_numbers = #tpu.dot_dimension_numbers<[1], [0], [0], [1], [0, 0, 1, 1], [], []>} : vector<3x64xbf16>, vector<64x288xbf16>, vector<3x288xf32> -> vector<3x288xf32>
    %83 = arith.addf %78, %82 : vector<3x288xf32>
    %c1_46 = arith.constant 1 : index
    %c0_47 = arith.constant 0 : index
    %c0_48 = arith.constant 0 : index
    %84 = vector.load %arg3[%c1_46, %c0_47, %c0_48] : memref<9x3x64xbf16, #tpu.memory_space<vmem>>, vector<1x3x64xbf16>
    %85 = vector.shape_cast %84 : vector<1x3x64xbf16> to vector<3x64xbf16>
    %c0_49 = arith.constant 0 : index
    %c1_50 = arith.constant 1 : index
    %86 = vector.load %arg7[%c0_49, %c1_50] : memref<64x326xbf16, #tpu.memory_space<vmem>>, vector<64x288xbf16>
    %cst_51 = arith.constant dense<0.000000e+00> : vector<3x288xf32>
    %87 = tpu.matmul %85, %86, %cst_51 {dimension_numbers = #tpu.dot_dimension_numbers<[1], [0], [0], [1], [0, 0, 1, 1], [], []>} : vector<3x64xbf16>, vector<64x288xbf16>, vector<3x288xf32> -> vector<3x288xf32>
    %88 = arith.addf %83, %87 : vector<3x288xf32>
    %c2_52 = arith.constant 2 : index
    %c0_53 = arith.constant 0 : index
    %c0_54 = arith.constant 0 : index
    %89 = vector.load %arg3[%c2_52, %c0_53, %c0_54] : memref<9x3x64xbf16, #tpu.memory_space<vmem>>, vector<1x3x64xbf16>
    %90 = vector.shape_cast %89 : vector<1x3x64xbf16> to vector<3x64xbf16>
    %c0_55 = arith.constant 0 : index
    %c2_56 = arith.constant 2 : index
    %91 = vector.load %arg7[%c0_55, %c2_56] : memref<64x326xbf16, #tpu.memory_space<vmem>>, vector<64x288xbf16>
    %cst_57 = arith.constant dense<0.000000e+00> : vector<3x288xf32>
    %92 = tpu.matmul %90, %91, %cst_57 {dimension_numbers = #tpu.dot_dimension_numbers<[1], [0], [0], [1], [0, 0, 1, 1], [], []>} : vector<3x64xbf16>, vector<64x288xbf16>, vector<3x288xf32> -> vector<3x288xf32>
    %93 = arith.addf %88, %92 : vector<3x288xf32>
    %c3_58 = arith.constant 3 : index
    %c0_59 = arith.constant 0 : index
    %c0_60 = arith.constant 0 : index
    %94 = vector.load %arg3[%c3_58, %c0_59, %c0_60] : memref<9x3x64xbf16, #tpu.memory_space<vmem>>, vector<1x3x64xbf16>
    %95 = vector.shape_cast %94 : vector<1x3x64xbf16> to vector<3x64xbf16>
    %c0_61 = arith.constant 0 : index
    %c18 = arith.constant 18 : index
    %96 = vector.load %arg7[%c0_61, %c18] : memref<64x326xbf16, #tpu.memory_space<vmem>>, vector<64x288xbf16>
    %cst_62 = arith.constant dense<0.000000e+00> : vector<3x288xf32>
    %97 = tpu.matmul %95, %96, %cst_62 {dimension_numbers = #tpu.dot_dimension_numbers<[1], [0], [0], [1], [0, 0, 1, 1], [], []>} : vector<3x64xbf16>, vector<64x288xbf16>, vector<3x288xf32> -> vector<3x288xf32>
    %98 = arith.addf %93, %97 : vector<3x288xf32>
    %c4_63 = arith.constant 4 : index
    %c0_64 = arith.constant 0 : index
    %c0_65 = arith.constant 0 : index
    %99 = vector.load %arg3[%c4_63, %c0_64, %c0_65] : memref<9x3x64xbf16, #tpu.memory_space<vmem>>, vector<1x3x64xbf16>
    %100 = vector.shape_cast %99 : vector<1x3x64xbf16> to vector<3x64xbf16>
    %c0_66 = arith.constant 0 : index
    %c19_67 = arith.constant 19 : index
    %101 = vector.load %arg7[%c0_66, %c19_67] : memref<64x326xbf16, #tpu.memory_space<vmem>>, vector<64x288xbf16>
    %cst_68 = arith.constant dense<0.000000e+00> : vector<3x288xf32>
    %102 = tpu.matmul %100, %101, %cst_68 {dimension_numbers = #tpu.dot_dimension_numbers<[1], [0], [0], [1], [0, 0, 1, 1], [], []>} : vector<3x64xbf16>, vector<64x288xbf16>, vector<3x288xf32> -> vector<3x288xf32>
    %103 = arith.addf %98, %102 : vector<3x288xf32>
    %c5_69 = arith.constant 5 : index
    %c0_70 = arith.constant 0 : index
    %c0_71 = arith.constant 0 : index
    %104 = vector.load %arg3[%c5_69, %c0_70, %c0_71] : memref<9x3x64xbf16, #tpu.memory_space<vmem>>, vector<1x3x64xbf16>
    %105 = vector.shape_cast %104 : vector<1x3x64xbf16> to vector<3x64xbf16>
    %c0_72 = arith.constant 0 : index
    %c20 = arith.constant 20 : index
    %106 = vector.load %arg7[%c0_72, %c20] : memref<64x326xbf16, #tpu.memory_space<vmem>>, vector<64x288xbf16>
    %cst_73 = arith.constant dense<0.000000e+00> : vector<3x288xf32>
    %107 = tpu.matmul %105, %106, %cst_73 {dimension_numbers = #tpu.dot_dimension_numbers<[1], [0], [0], [1], [0, 0, 1, 1], [], []>} : vector<3x64xbf16>, vector<64x288xbf16>, vector<3x288xf32> -> vector<3x288xf32>
    %108 = arith.addf %103, %107 : vector<3x288xf32>
    %c6_74 = arith.constant 6 : index
    %c0_75 = arith.constant 0 : index
    %c0_76 = arith.constant 0 : index
    %109 = vector.load %arg3[%c6_74, %c0_75, %c0_76] : memref<9x3x64xbf16, #tpu.memory_space<vmem>>, vector<1x3x64xbf16>
    %110 = vector.shape_cast %109 : vector<1x3x64xbf16> to vector<3x64xbf16>
    %c0_77 = arith.constant 0 : index
    %c36 = arith.constant 36 : index
    %111 = vector.load %arg7[%c0_77, %c36] : memref<64x326xbf16, #tpu.memory_space<vmem>>, vector<64x288xbf16>
    %cst_78 = arith.constant dense<0.000000e+00> : vector<3x288xf32>
    %112 = tpu.matmul %110, %111, %cst_78 {dimension_numbers = #tpu.dot_dimension_numbers<[1], [0], [0], [1], [0, 0, 1, 1], [], []>} : vector<3x64xbf16>, vector<64x288xbf16>, vector<3x288xf32> -> vector<3x288xf32>
    %113 = arith.addf %108, %112 : vector<3x288xf32>
    %c7_79 = arith.constant 7 : index
    %c0_80 = arith.constant 0 : index
    %c0_81 = arith.constant 0 : index
    %114 = vector.load %arg3[%c7_79, %c0_80, %c0_81] : memref<9x3x64xbf16, #tpu.memory_space<vmem>>, vector<1x3x64xbf16>
    %115 = vector.shape_cast %114 : vector<1x3x64xbf16> to vector<3x64xbf16>
    %c0_82 = arith.constant 0 : index
    %c37 = arith.constant 37 : index
    %116 = vector.load %arg7[%c0_82, %c37] : memref<64x326xbf16, #tpu.memory_space<vmem>>, vector<64x288xbf16>
    %cst_83 = arith.constant dense<0.000000e+00> : vector<3x288xf32>
    %117 = tpu.matmul %115, %116, %cst_83 {dimension_numbers = #tpu.dot_dimension_numbers<[1], [0], [0], [1], [0, 0, 1, 1], [], []>} : vector<3x64xbf16>, vector<64x288xbf16>, vector<3x288xf32> -> vector<3x288xf32>
    %118 = arith.addf %113, %117 : vector<3x288xf32>
    %c8_84 = arith.constant 8 : index
    %c0_85 = arith.constant 0 : index
    %c0_86 = arith.constant 0 : index
    %119 = vector.load %arg3[%c8_84, %c0_85, %c0_86] : memref<9x3x64xbf16, #tpu.memory_space<vmem>>, vector<1x3x64xbf16>
    %120 = vector.shape_cast %119 : vector<1x3x64xbf16> to vector<3x64xbf16>
    %c0_87 = arith.constant 0 : index
    %c38 = arith.constant 38 : index
    %121 = vector.load %arg7[%c0_87, %c38] : memref<64x326xbf16, #tpu.memory_space<vmem>>, vector<64x288xbf16>
    %cst_88 = arith.constant dense<0.000000e+00> : vector<3x288xf32>
    %122 = tpu.matmul %120, %121, %cst_88 {dimension_numbers = #tpu.dot_dimension_numbers<[1], [0], [0], [1], [0, 0, 1, 1], [], []>} : vector<3x64xbf16>, vector<64x288xbf16>, vector<3x288xf32> -> vector<3x288xf32>
    %123 = arith.addf %118, %122 : vector<3x288xf32>
    %124 = tpu.transpose %123, [1, 0] : vector<3x288xf32> -> vector<288x3xf32>
    %125 = vector.shape_cast %124 : vector<288x3xf32> to vector<16x9x2x3xf32>
    %126 = vector.extract_strided_slice %125 {offsets = [0, 0, 0, 0], sizes = [16, 8, 1, 3], strides = [1, 1, 1, 1]} : vector<16x9x2x3xf32> to vector<16x8x1x3xf32>
    %127 = vector.shape_cast %126 : vector<16x8x1x3xf32> to vector<8x2x8x3xf32>
    %128 = vector.extract_strided_slice %125 {offsets = [0, 0, 1, 0], sizes = [16, 8, 1, 3], strides = [1, 1, 1, 1]} : vector<16x9x2x3xf32> to vector<16x8x1x3xf32>
    %129 = vector.shape_cast %128 : vector<16x8x1x3xf32> to vector<8x2x8x3xf32>
    %cst_89 = arith.constant 0.000000e+00 : bf16
    %130 = vector.broadcast %cst_89 : bf16 to vector<1x10x12xbf16>
    %c0_90 = arith.constant 0 : index
    %c0_91 = arith.constant 0 : index
    %c0_92 = arith.constant 0 : index
    %131 = vector.load %arg8[%c0_90, %c0_91, %c0_92] : memref<10x10x12xbf16, #tpu.memory_space<vmem>>, vector<1x10x12xbf16>
    tpu.vector_store %arg8[%c0_90, %c0_91, %c0_92], %130 {strides = array<i32>} : memref<10x10x12xbf16, #tpu.memory_space<vmem>>, vector<1x10x12xbf16>,
    %cst_93 = arith.constant 0.000000e+00 : bf16
    %132 = vector.broadcast %cst_93 : bf16 to vector<1x10x12xbf16>
    %c9 = arith.constant 9 : index
    %c0_94 = arith.constant 0 : index
    %c0_95 = arith.constant 0 : index
    %133 = vector.load %arg8[%c9, %c0_94, %c0_95] : memref<10x10x12xbf16, #tpu.memory_space<vmem>>, vector<1x10x12xbf16>
    tpu.vector_store %arg8[%c9, %c0_94, %c0_95], %132 {strides = array<i32>} : memref<10x10x12xbf16, #tpu.memory_space<vmem>>, vector<1x10x12xbf16>,
    %cst_96 = arith.constant 0.000000e+00 : bf16
    %134 = vector.broadcast %cst_96 : bf16 to vector<10x1x12xbf16>
    %c0_97 = arith.constant 0 : index
    %c0_98 = arith.constant 0 : index
    %c0_99 = arith.constant 0 : index
    %135 = vector.load %arg8[%c0_97, %c0_98, %c0_99] : memref<10x10x12xbf16, #tpu.memory_space<vmem>>, vector<10x1x12xbf16>
    tpu.vector_store %arg8[%c0_97, %c0_98, %c0_99], %134 {strides = array<i32>} : memref<10x10x12xbf16, #tpu.memory_space<vmem>>, vector<10x1x12xbf16>,
    %cst_100 = arith.constant 0.000000e+00 : bf16
    %136 = vector.broadcast %cst_100 : bf16 to vector<10x1x12xbf16>
    %c0_101 = arith.constant 0 : index
    %c9_102 = arith.constant 9 : index
    %c0_103 = arith.constant 0 : index
    %137 = vector.load %arg8[%c0_101, %c9_102, %c0_103] : memref<10x10x12xbf16, #tpu.memory_space<vmem>>, vector<10x1x12xbf16>
    tpu.vector_store %arg8[%c0_101, %c9_102, %c0_103], %136 {strides = array<i32>} : memref<10x10x12xbf16, #tpu.memory_space<vmem>>, vector<10x1x12xbf16>,
    %138 = vector.extract_strided_slice %127 {offsets = [0, 0, 0, 0], sizes = [8, 1, 8, 3], strides = [1, 1, 1, 1]} : vector<8x2x8x3xf32> to vector<8x1x8x3xf32>
    %139 = vector.shape_cast %138 : vector<8x1x8x3xf32> to vector<8x8x3xf32>
    %140 = arith.truncf %139 : vector<8x8x3xf32> to vector<8x8x3xbf16>
    %c1_104 = arith.constant 1 : index
    %c1_105 = arith.constant 1 : index
    %c0_106 = arith.constant 0 : index
    %141 = vector.load %arg8[%c1_104, %c1_105, %c0_106] : memref<10x10x12xbf16, #tpu.memory_space<vmem>>, vector<8x8x3xbf16>
    tpu.vector_store %arg8[%c1_104, %c1_105, %c0_106], %140 {strides = array<i32>} : memref<10x10x12xbf16, #tpu.memory_space<vmem>>, vector<8x8x3xbf16>,
    %142 = vector.extract_strided_slice %127 {offsets = [0, 1, 0, 0], sizes = [8, 1, 8, 3], strides = [1, 1, 1, 1]} : vector<8x2x8x3xf32> to vector<8x1x8x3xf32>
    %143 = vector.shape_cast %142 : vector<8x1x8x3xf32> to vector<8x8x3xf32>
    %144 = arith.truncf %143 : vector<8x8x3xf32> to vector<8x8x3xbf16>
    %c1_107 = arith.constant 1 : index
    %c1_108 = arith.constant 1 : index
    %c3_109 = arith.constant 3 : index
    %145 = vector.load %arg8[%c1_107, %c1_108, %c3_109] : memref<10x10x12xbf16, #tpu.memory_space<vmem>>, vector<8x8x3xbf16>
    tpu.vector_store %arg8[%c1_107, %c1_108, %c3_109], %144 {strides = array<i32>} : memref<10x10x12xbf16, #tpu.memory_space<vmem>>, vector<8x8x3xbf16>,
    %146 = vector.extract_strided_slice %129 {offsets = [0, 0, 0, 0], sizes = [8, 1, 8, 3], strides = [1, 1, 1, 1]} : vector<8x2x8x3xf32> to vector<8x1x8x3xf32>
    %147 = vector.shape_cast %146 : vector<8x1x8x3xf32> to vector<8x8x3xf32>
    %148 = arith.truncf %147 : vector<8x8x3xf32> to vector<8x8x3xbf16>
    %c1_110 = arith.constant 1 : index
    %c1_111 = arith.constant 1 : index
    %c6_112 = arith.constant 6 : index
    %149 = vector.load %arg8[%c1_110, %c1_111, %c6_112] : memref<10x10x12xbf16, #tpu.memory_space<vmem>>, vector<8x8x3xbf16>
    tpu.vector_store %arg8[%c1_110, %c1_111, %c6_112], %148 {strides = array<i32>} : memref<10x10x12xbf16, #tpu.memory_space<vmem>>, vector<8x8x3xbf16>,
    %150 = vector.extract_strided_slice %129 {offsets = [0, 1, 0, 0], sizes = [8, 1, 8, 3], strides = [1, 1, 1, 1]} : vector<8x2x8x3xf32> to vector<8x1x8x3xf32>
    %151 = vector.shape_cast %150 : vector<8x1x8x3xf32> to vector<8x8x3xf32>
    %152 = arith.truncf %151 : vector<8x8x3xf32> to vector<8x8x3xbf16>
    %c1_113 = arith.constant 1 : index
    %c1_114 = arith.constant 1 : index
    %c9_115 = arith.constant 9 : index
    %153 = vector.load %arg8[%c1_113, %c1_114, %c9_115] : memref<10x10x12xbf16, #tpu.memory_space<vmem>>, vector<8x8x3xbf16>
    tpu.vector_store %arg8[%c1_113, %c1_114, %c9_115], %152 {strides = array<i32>} : memref<10x10x12xbf16, #tpu.memory_space<vmem>>, vector<8x8x3xbf16>,
    %cst_116 = arith.constant 0.000000e+00 : f32
    %154 = vector.broadcast %cst_116 : f32 to vector<64x16xf32>
    %c0_117 = arith.constant 0 : index
    %c0_118 = arith.constant 0 : index
    %c0_119 = arith.constant 0 : index
    %155 = vector.load %arg8[%c0_117, %c0_118, %c0_119] : memref<10x10x12xbf16, #tpu.memory_space<vmem>>, vector<8x8x12xbf16>
    %156 = vector.shape_cast %155 : vector<8x8x12xbf16> to vector<64x12xbf16>
    %c0_120 = arith.constant 0 : index
    %c0_121 = arith.constant 0 : index
    %c0_122 = arith.constant 0 : index
    %157 = vector.load %arg4[%c0_120, %c0_121, %c0_122] : memref<9x12x16xbf16, #tpu.memory_space<vmem>>, vector<1x12x16xbf16>
    %158 = vector.shape_cast %157 : vector<1x12x16xbf16> to vector<12x16xbf16>
    %cst_123 = arith.constant dense<0.000000e+00> : vector<64x16xf32>
    %159 = tpu.matmul %156, %158, %cst_123 {dimension_numbers = #tpu.dot_dimension_numbers<[1], [0], [0], [1], [0, 0, 1, 1], [], []>} : vector<64x12xbf16>, vector<12x16xbf16>, vector<64x16xf32> -> vector<64x16xf32>
    %160 = arith.addf %154, %159 : vector<64x16xf32>
    %c0_124 = arith.constant 0 : index
    %c1_125 = arith.constant 1 : index
    %c0_126 = arith.constant 0 : index
    %161 = vector.load %arg8[%c0_124, %c1_125, %c0_126] : memref<10x10x12xbf16, #tpu.memory_space<vmem>>, vector<8x8x12xbf16>
    %162 = vector.shape_cast %161 : vector<8x8x12xbf16> to vector<64x12xbf16>
    %c1_127 = arith.constant 1 : index
    %c0_128 = arith.constant 0 : index
    %c0_129 = arith.constant 0 : index
    %163 = vector.load %arg4[%c1_127, %c0_128, %c0_129] : memref<9x12x16xbf16, #tpu.memory_space<vmem>>, vector<1x12x16xbf16>
    %164 = vector.shape_cast %163 : vector<1x12x16xbf16> to vector<12x16xbf16>
    %cst_130 = arith.constant dense<0.000000e+00> : vector<64x16xf32>
    %165 = tpu.matmul %162, %164, %cst_130 {dimension_numbers = #tpu.dot_dimension_numbers<[1], [0], [0], [1], [0, 0, 1, 1], [], []>} : vector<64x12xbf16>, vector<12x16xbf16>, vector<64x16xf32> -> vector<64x16xf32>
    %166 = arith.addf %160, %165 : vector<64x16xf32>
    %c0_131 = arith.constant 0 : index
    %c2_132 = arith.constant 2 : index
    %c0_133 = arith.constant 0 : index
    %167 = vector.load %arg8[%c0_131, %c2_132, %c0_133] : memref<10x10x12xbf16, #tpu.memory_space<vmem>>, vector<8x8x12xbf16>
    %168 = vector.shape_cast %167 : vector<8x8x12xbf16> to vector<64x12xbf16>
    %c2_134 = arith.constant 2 : index
    %c0_135 = arith.constant 0 : index
    %c0_136 = arith.constant 0 : index
    %169 = vector.load %arg4[%c2_134, %c0_135, %c0_136] : memref<9x12x16xbf16, #tpu.memory_space<vmem>>, vector<1x12x16xbf16>
    %170 = vector.shape_cast %169 : vector<1x12x16xbf16> to vector<12x16xbf16>
    %cst_137 = arith.constant dense<0.000000e+00> : vector<64x16xf32>
    %171 = tpu.matmul %168, %170, %cst_137 {dimension_numbers = #tpu.dot_dimension_numbers<[1], [0], [0], [1], [0, 0, 1, 1], [], []>} : vector<64x12xbf16>, vector<12x16xbf16>, vector<64x16xf32> -> vector<64x16xf32>
    %172 = arith.addf %166, %171 : vector<64x16xf32>
    %c1_138 = arith.constant 1 : index
    %c0_139 = arith.constant 0 : index
    %c0_140 = arith.constant 0 : index
    %173 = vector.load %arg8[%c1_138, %c0_139, %c0_140] : memref<10x10x12xbf16, #tpu.memory_space<vmem>>, vector<8x8x12xbf16>
    %174 = vector.shape_cast %173 : vector<8x8x12xbf16> to vector<64x12xbf16>
    %c3_141 = arith.constant 3 : index
    %c0_142 = arith.constant 0 : index
    %c0_143 = arith.constant 0 : index
    %175 = vector.load %arg4[%c3_141, %c0_142, %c0_143] : memref<9x12x16xbf16, #tpu.memory_space<vmem>>, vector<1x12x16xbf16>
    %176 = vector.shape_cast %175 : vector<1x12x16xbf16> to vector<12x16xbf16>
    %cst_144 = arith.constant dense<0.000000e+00> : vector<64x16xf32>
    %177 = tpu.matmul %174, %176, %cst_144 {dimension_numbers = #tpu.dot_dimension_numbers<[1], [0], [0], [1], [0, 0, 1, 1], [], []>} : vector<64x12xbf16>, vector<12x16xbf16>, vector<64x16xf32> -> vector<64x16xf32>
    %178 = arith.addf %172, %177 : vector<64x16xf32>
    %c1_145 = arith.constant 1 : index
    %c1_146 = arith.constant 1 : index
    %c0_147 = arith.constant 0 : index
    %179 = vector.load %arg8[%c1_145, %c1_146, %c0_147] : memref<10x10x12xbf16, #tpu.memory_space<vmem>>, vector<8x8x12xbf16>
    %180 = vector.shape_cast %179 : vector<8x8x12xbf16> to vector<64x12xbf16>
    %c4_148 = arith.constant 4 : index
    %c0_149 = arith.constant 0 : index
    %c0_150 = arith.constant 0 : index
    %181 = vector.load %arg4[%c4_148, %c0_149, %c0_150] : memref<9x12x16xbf16, #tpu.memory_space<vmem>>, vector<1x12x16xbf16>
    %182 = vector.shape_cast %181 : vector<1x12x16xbf16> to vector<12x16xbf16>
    %cst_151 = arith.constant dense<0.000000e+00> : vector<64x16xf32>
    %183 = tpu.matmul %180, %182, %cst_151 {dimension_numbers = #tpu.dot_dimension_numbers<[1], [0], [0], [1], [0, 0, 1, 1], [], []>} : vector<64x12xbf16>, vector<12x16xbf16>, vector<64x16xf32> -> vector<64x16xf32>
    %184 = arith.addf %178, %183 : vector<64x16xf32>
    %c1_152 = arith.constant 1 : index
    %c2_153 = arith.constant 2 : index
    %c0_154 = arith.constant 0 : index
    %185 = vector.load %arg8[%c1_152, %c2_153, %c0_154] : memref<10x10x12xbf16, #tpu.memory_space<vmem>>, vector<8x8x12xbf16>
    %186 = vector.shape_cast %185 : vector<8x8x12xbf16> to vector<64x12xbf16>
    %c5_155 = arith.constant 5 : index
    %c0_156 = arith.constant 0 : index
    %c0_157 = arith.constant 0 : index
    %187 = vector.load %arg4[%c5_155, %c0_156, %c0_157] : memref<9x12x16xbf16, #tpu.memory_space<vmem>>, vector<1x12x16xbf16>
    %188 = vector.shape_cast %187 : vector<1x12x16xbf16> to vector<12x16xbf16>
    %cst_158 = arith.constant dense<0.000000e+00> : vector<64x16xf32>
    %189 = tpu.matmul %186, %188, %cst_158 {dimension_numbers = #tpu.dot_dimension_numbers<[1], [0], [0], [1], [0, 0, 1, 1], [], []>} : vector<64x12xbf16>, vector<12x16xbf16>, vector<64x16xf32> -> vector<64x16xf32>
    %190 = arith.addf %184, %189 : vector<64x16xf32>
    %c2_159 = arith.constant 2 : index
    %c0_160 = arith.constant 0 : index
    %c0_161 = arith.constant 0 : index
    %191 = vector.load %arg8[%c2_159, %c0_160, %c0_161] : memref<10x10x12xbf16, #tpu.memory_space<vmem>>, vector<8x8x12xbf16>
    %192 = vector.shape_cast %191 : vector<8x8x12xbf16> to vector<64x12xbf16>
    %c6_162 = arith.constant 6 : index
    %c0_163 = arith.constant 0 : index
    %c0_164 = arith.constant 0 : index
    %193 = vector.load %arg4[%c6_162, %c0_163, %c0_164] : memref<9x12x16xbf16, #tpu.memory_space<vmem>>, vector<1x12x16xbf16>
    %194 = vector.shape_cast %193 : vector<1x12x16xbf16> to vector<12x16xbf16>
    %cst_165 = arith.constant dense<0.000000e+00> : vector<64x16xf32>
    %195 = tpu.matmul %192, %194, %cst_165 {dimension_numbers = #tpu.dot_dimension_numbers<[1], [0], [0], [1], [0, 0, 1, 1], [], []>} : vector<64x12xbf16>, vector<12x16xbf16>, vector<64x16xf32> -> vector<64x16xf32>
    %196 = arith.addf %190, %195 : vector<64x16xf32>
    %c2_166 = arith.constant 2 : index
    %c1_167 = arith.constant 1 : index
    %c0_168 = arith.constant 0 : index
    %197 = vector.load %arg8[%c2_166, %c1_167, %c0_168] : memref<10x10x12xbf16, #tpu.memory_space<vmem>>, vector<8x8x12xbf16>
    %198 = vector.shape_cast %197 : vector<8x8x12xbf16> to vector<64x12xbf16>
    %c7_169 = arith.constant 7 : index
    %c0_170 = arith.constant 0 : index
    %c0_171 = arith.constant 0 : index
    %199 = vector.load %arg4[%c7_169, %c0_170, %c0_171] : memref<9x12x16xbf16, #tpu.memory_space<vmem>>, vector<1x12x16xbf16>
    %200 = vector.shape_cast %199 : vector<1x12x16xbf16> to vector<12x16xbf16>
    %cst_172 = arith.constant dense<0.000000e+00> : vector<64x16xf32>
    %201 = tpu.matmul %198, %200, %cst_172 {dimension_numbers = #tpu.dot_dimension_numbers<[1], [0], [0], [1], [0, 0, 1, 1], [], []>} : vector<64x12xbf16>, vector<12x16xbf16>, vector<64x16xf32> -> vector<64x16xf32>
    %202 = arith.addf %196, %201 : vector<64x16xf32>
    %c2_173 = arith.constant 2 : index
    %c2_174 = arith.constant 2 : index
    %c0_175 = arith.constant 0 : index
    %203 = vector.load %arg8[%c2_173, %c2_174, %c0_175] : memref<10x10x12xbf16, #tpu.memory_space<vmem>>, vector<8x8x12xbf16>
    %204 = vector.shape_cast %203 : vector<8x8x12xbf16> to vector<64x12xbf16>
    %c8_176 = arith.constant 8 : index
    %c0_177 = arith.constant 0 : index
    %c0_178 = arith.constant 0 : index
    %205 = vector.load %arg4[%c8_176, %c0_177, %c0_178] : memref<9x12x16xbf16, #tpu.memory_space<vmem>>, vector<1x12x16xbf16>
    %206 = vector.shape_cast %205 : vector<1x12x16xbf16> to vector<12x16xbf16>
    %cst_179 = arith.constant dense<0.000000e+00> : vector<64x16xf32>
    %207 = tpu.matmul %204, %206, %cst_179 {dimension_numbers = #tpu.dot_dimension_numbers<[1], [0], [0], [1], [0, 0, 1, 1], [], []>} : vector<64x12xbf16>, vector<12x16xbf16>, vector<64x16xf32> -> vector<64x16xf32>
    %208 = arith.addf %202, %207 : vector<64x16xf32>
    %c0_180 = arith.constant 0 : index
    %c0_181 = arith.constant 0 : index
    %209 = vector.load %arg5[%c0_180, %c0_181] : memref<1x16xf32, #tpu.memory_space<vmem>>, vector<1x16xf32>
    %210 = vector.broadcast %209 : vector<1x16xf32> to vector<64x16xf32>
    %211 = arith.addf %208, %210 : vector<64x16xf32>
    %212 = arith.negf %211 : vector<64x16xf32>
    %213 = math.exp %212 : vector<64x16xf32>
    %cst_182 = arith.constant 1.000000e+00 : f32
    %214 = vector.broadcast %cst_182 : f32 to vector<64x16xf32>
    %215 = arith.addf %214, %213 : vector<64x16xf32>
    %216 = arith.divf %214, %215 : vector<64x16xf32>
    %217 = arith.mulf %211, %216 : vector<64x16xf32>
    %218 = tpu.transpose %217, [1, 0] : vector<64x16xf32> -> vector<16x64xf32>
    %c0_183 = arith.constant 0 : index
    %c0_184 = arith.constant 0 : index
    %c0_185 = arith.constant 0 : index
    %219 = vector.load %arg6[%c0_183, %c0_184, %c0_185] : memref<1x16x64xf32, #tpu.memory_space<vmem>>, vector<1x16x64xf32>
    %220 = vector.shape_cast %219 : vector<1x16x64xf32> to vector<16x64xf32>
    %221 = vector.shape_cast %218 : vector<16x64xf32> to vector<1x16x64xf32>
    tpu.vector_store %arg6[%c0_183, %c0_184, %c0_185], %221 {strides = array<i32>} : memref<1x16x64xf32, #tpu.memory_space<vmem>>, vector<1x16x64xf32>,
    return
  }
  func.func @transform_0(%arg0: i32) -> (i32, i32, i32) {
    %c0_i32 = arith.constant 0 : i32
    %c0_i32_0 = arith.constant 0 : i32
    %c0_i32_1 = arith.constant 0 : i32
    return %arg0, %c0_i32, %c0_i32_0 : i32, i32, i32
  }
  func.func @transform_1(%arg0: i32) -> (i32, i32, i32) {
    %c0_i32 = arith.constant 0 : i32
    %c0_i32_0 = arith.constant 0 : i32
    %c0_i32_1 = arith.constant 0 : i32
    %c0_i32_2 = arith.constant 0 : i32
    return %c0_i32, %c0_i32_0, %c0_i32_1 : i32, i32, i32
  }
  func.func @transform_2(%arg0: i32) -> (i32, i32, i32) {
    %c0_i32 = arith.constant 0 : i32
    %c0_i32_0 = arith.constant 0 : i32
    %c0_i32_1 = arith.constant 0 : i32
    %c0_i32_2 = arith.constant 0 : i32
    return %c0_i32, %c0_i32_0, %c0_i32_1 : i32, i32, i32
  }
  func.func @transform_3(%arg0: i32) -> (i32, i32, i32) {
    %c0_i32 = arith.constant 0 : i32
    %c0_i32_0 = arith.constant 0 : i32
    %c0_i32_1 = arith.constant 0 : i32
    %c0_i32_2 = arith.constant 0 : i32
    return %c0_i32, %c0_i32_0, %c0_i32_1 : i32, i32, i32
  }
  func.func @transform_4(%arg0: i32) -> (i32, i32) {
    %c0_i32 = arith.constant 0 : i32
    %c0_i32_0 = arith.constant 0 : i32
    %c0_i32_1 = arith.constant 0 : i32
    return %c0_i32, %c0_i32_0 : i32, i32
  }
  func.func @transform_5(%arg0: i32) -> (i32, i32, i32) {
    %c0_i32 = arith.constant 0 : i32
    %c0_i32_0 = arith.constant 0 : i32
    %c0_i32_1 = arith.constant 0 : i32
    return %arg0, %c0_i32, %c0_i32_0 : i32, i32, i32
  }
}

</mosaic_0001>

<bundles_post_ra>
// kernel: tpu_custom_call.1
= control target key start
LH: loop header
LB: loop body
LE: loop exit
PB: predicated region body
PF: predicated region fallthrough
CT: control target
= control target key end

     0   :  { %10 = vsyncpa [#allocation5], 0  ;;  %s13335_s0 = inlined_call_operand.vmem [shape: f32[2,3,326], index: 0, kind: input, shape index: {}]   ;;  %s13336_s1 = inlined_call_operand.vmem [shape: bf16[9,64,3], index: 1, kind: input, shape index: {}]   ;;  %s13337_s2 = inlined_call_operand.vmem [shape: bf16[9,3,64], index: 2, kind: input, shape index: {}]   ;;  %s13338_s3 = inlined_call_operand.vmem [shape: bf16[9,12,16], index: 3, kind: input, shape index: {}]   ;;  %s13339_s4 = inlined_call_operand.vmem [shape: f32[1,16], index: 4, kind: input, shape index: {}]   ;;  %s13340_s5 = inlined_call_operand.hbm [shape: f32[2,16,64], index: 5, kind: output, shape index: {}]  }
   0x1   :  { %12 = vsyncpa [#allocation5 + $0x1], 0  ;;  %s10016_s18 = smov 0   ;;  %s10018_s19 = smov 0  }
   0x2   :  { %s10020_s20 = smov 0   ;;  %s10022_s21 = smov 0  }
   0x3 LB: > { %s10037_s22 = sadd.s32 4294967295, %s9964_s21   ;;  %s8500_s23 = sadd.s32 4294967294, %s9964_s21   ;;  %s9964_s21 = sphi %s10022_s21, %s13677_s21   ;;  %s9960_s20 = sphi %s10020_s20, %s13676_s20   ;;  %s9956_s19 = sphi %s10018_s19, %s13675_s19   ;;  %s9952_s18 = sphi %s10016_s18, %s13674_s18  }
   0x4   : > { %s10041_s24 = sadd.s32 1, %s9964_s21   ;;  %s135_s25 = sadd.s32 1, %s9960_s20 }
   0x5   : > { %s132_s26 = ssub.s32 %s9964_s21, %s10041_s24  ;;  %p145_p0 = scmp.ne.s32.totalorder %s9960_s20, %s9956_s19 }
   0x6   : > { %p133_p1 = scmp.eq.s32.totalorder %s132_s26, 0  ;;  %p146_p2 = scmp.eq.s32.totalorder %s10037_s22, 1 }
   0x7   : > { %p151_p3 = scmp.ne.s32.totalorder %s9956_s19, %s9952_s18  ;;  %p152_p4 = scmp.eq.s32.totalorder %s8500_s23, 1 }
   0x8   : > { %s10052_s27 = scalar_select %p133_p1, %s9960_s20, %s135_s25  }
   0x9   : > { %p10054_p5 = por %p146_p2, %p145_p0  ;;  %p10058_p6 = por %p152_p4, %p151_p3 }
   0xa   : > { %p8503_p7 = scmp.ge.s32.totalorder %s9964_s21, 1  ;;  %p190_p8 = scmp.lt.s32.totalorder %s9964_s21, 3 }
   0xc   : > { %p191_p9 = pnand %p8503_p7, %p190_p8 }
   0xe   : > { %194 = sbr.rel (%p191_p9) target bundleno = 2384 (0x950), region = 40 }
  0x13   : > { %p218_p10 = scmp.lt.s32.totalorder %s10037_s22, 1  ;;  %v10074_v0 = vld [vmem:[%s13336_s1 + $0x20] sm:$0xff]   ;;  %vm336_vm0 = vcmask 23552   ;;  %v13343_v5 = vmov 0   ;;  %s9967_s12 = smov 127   ;;  %vm349_vm1 = vcmask 1040384  }
  0x14   : > { %9405 = vmatprep.mubr.msk.bf16.mxu1 %vm336_vm0, %v10074_v0  ;;  %394 = vmatprep.mubr.bf16.mxu0 %v13343_v5  ;;  %s9968_s13 = smov 126   ;;  %s9969_s14 = smov 110   ;;  %vm350_vm2 = vcmask 1041408   ;;  %v9975_v10 = vmov 65535   ;;  %vm333_vm3 = vcmask 1039360   ;;  %vm714_vm4 = vcmask 1031168  }
  0x15   : > { %s219_s30 = scalar_select %p218_p10, %s10037_s22, 1  ;;  %v351_v11 = vsel %vm349_vm1, 4294967295, %v9975_v10  ;;  %v9767_v21 = vld [vmem:[%s13336_s1 + $0x28] sm:$0xff]   ;;  %v9768_v25 = vld [vmem:[%s13336_s1 + $0x30] sm:$0xff]   ;;  %v9769_v29 = vld [vmem:[%s13336_s1 + $0x38] sm:$0xff]   ;;  %vm935_vm5 = vcmask 900096  }
  0x16   : > { %s9970_s15 = smov 109   ;;  %s9971_s16 = smov 108   ;;  %v10115_v13 = vsel %vm350_vm2, %v351_v11, 0  ;;  %v9770_v33 = vld [vmem:[%s13336_s1] sm:$0xff]   ;;  %v9771_v36 = vld [vmem:[%s13336_s1 + $0x8] sm:$0xff]   ;;  %v9772_v38 = vld [vmem:[%s13336_s1 + $0x10] sm:$0xff]  }
  0x17   : > { %s9700_s6 = smul.u32 12, %s219_s30  ;;  %s9972_s17 = smov 92   ;;  %v9773_v41 = vld [vmem:[%s13336_s1 + $0x18] sm:$0xff]   ;;  %v9774_v42 = vld [vmem:[%s13336_s1 + $0x40] sm:$0xff]   ;;  %vm1156_vm6 = vcmask 891904   ;;  %v9775_v46 = vld [vmem:[%s13336_s1 + $0x48] sm:$0xff]  }
  0x18   : > { %s9973_s23 = smov 91   ;;  %s13341_s25 = smov 90   ;;  %v9776_v50 = vld [vmem:[%s13336_s1 + $0x50] sm:$0xff]   ;;  %v9777_v53 = vld [vmem:[%s13336_s1 + $0x58] sm:$0xff]   ;;  %vm1377_vm7 = vcmask 883712   ;;  %v9778_v57 = vld [vmem:[%s13336_s1 + $0x60] sm:$0xff]  }
  0x19   : > { %s10069_s9 = scalar_lea.vmem %s13335_s0, %s9700_s6  ;;  %v9779_v60 = vld [vmem:[%s13336_s1 + $0x68] sm:$0xff]   ;;  %v9780_v62 = vld [vmem:[%s13336_s1 + $0x70] sm:$0xff]   ;;  %vm1598_vm8 = vcmask 752640   ;;  %vm1819_vm9 = vcmask 744448   ;;  %vm13346_vm10 = vcmask 736256   ;;  %s215_s7 = sand.u32 1, %s9956_s19  }
  0x1a   : > { %v224_v1 = vld [vmem:[%s10069_s9] sm:$0x77]  ;;  %v225_v4 = vld [vmem:[%s10069_s9 + $0x8] sm:$0x7]  ;;  %v9784_v11 = vld [vmem:[%s13336_s1 + $0x90] sm:$0xff]   ;;  %s8504_s8 = sshll.u32 %s215_s7, 4 }
  0x1b   : > { %v10077_v2 = vpack.c.bf16 %v224_v1, %v224_v1  ;;  %v227_v3 = vcombine.high %v224_v1, %v224_v1  ;;  %v231_v7 = vpack.c.bf16 %v225_v4, %v225_v4  ;;  %v9781_v1 = vld [vmem:[%s13336_s1 + $0x78] sm:$0xff]   ;;  %s217_s10 = scalar_lea.vmem [#allocation4], %s8504_s8  ;;  %s9267_s26 = sshll.u32 %s10037_s22, 8 }
  0x1c   : > { %s8438_s11 = sshll.u32 %s217_s10, 4  ;;  %s9983_s22 = smov [#allocation4]   ;;  %s13287_s11 = int_to_ptr.vmem [resolvable:$true] %s8438_s11 }
  0x1d   : > { %327 = vrot.lane.b32.xlu1 %v10077_v2, %s9967_s12  ;;  %v230_v6 = vpack.c.bf16 %v227_v3, %v227_v3  ;;  %v539_v19 = vand.u32 %v10115_v13, %v231_v7  ;;  %v533_v22 = vand.u32 %v10115_v13, %v10077_v2 }
  0x1f   : > { %329 = vrot.lane.b32.xlu0 %v230_v6, %s9967_s12  ;;  %v536_v17 = vand.u32 %v10115_v13, %v230_v6 }
  0x21   : > { %710 = vrot.lane.b32.xlu1 %v230_v6, %s9968_s13 }
  0x23   : > { %331 = vrot.lane.b32.xlu0 %v231_v7, %s9967_s12 }
  0x25   : > { %708 = vrot.lane.b32.xlu1 %v10077_v2, %s9968_s13 }
  0x27   : > { %712 = vrot.lane.b32.xlu0 %v231_v7, %s9968_s13 }
  0x29   : > { %931 = vrot.lane.b32.xlu1 %v230_v6, %s9969_s14 }
  0x2b   : > { %933 = vrot.lane.b32.xlu0 %v231_v7, %s9969_s14 }
  0x2d   : > { %1152 = vrot.lane.b32.xlu1 %v230_v6, %s9970_s15 }
  0x2f   : > { %929 = vrot.lane.b32.xlu0 %v10077_v2, %s9969_s14 }
  0x31   : > { %1150 = vrot.lane.b32.xlu1 %v10077_v2, %s9970_s15 }
  0x33   : > { %1154 = vrot.lane.b32.xlu0 %v231_v7, %s9970_s15 }
  0x35   : > { %1373 = vrot.lane.b32.xlu1 %v230_v6, %s9971_s16 }
  0x37   : > { %1375 = vrot.lane.b32.xlu0 %v231_v7, %s9971_s16 }
  0x39   : > { %1594 = vrot.lane.b32.xlu1 %v230_v6, %s9972_s17 }
  0x3b   : > { %1371 = vrot.lane.b32.xlu0 %v10077_v2, %s9971_s16 }
  0x3d   : > { %1592 = vrot.lane.b32.xlu1 %v10077_v2, %s9972_s17 }
  0x3f   : > { %1596 = vrot.lane.b32.xlu0 %v231_v7, %s9972_s17 }
  0x41   : > { %1815 = vrot.lane.b32.xlu1 %v230_v6, %s9973_s23 }
  0x43   : > { %1817 = vrot.lane.b32.xlu0 %v231_v7, %s9973_s23 }
  0x45   : > { %2036 = vrot.lane.b32.xlu1 %v230_v6, %s13341_s25 }
  0x47   : > { %1813 = vrot.lane.b32.xlu0 %v10077_v2, %s9973_s23 }
  0x49   : > { %2034 = vrot.lane.b32.xlu1 %v10077_v2, %s13341_s25  ;;  %v9782_v2 = vld [vmem:[%s13336_s1 + $0x80] sm:$0xff]  }
  0x4b   : > { %2038 = vrot.lane.b32.xlu0 %v231_v7, %s13341_s25  ;;  %v9783_v7 = vld [vmem:[%s13336_s1 + $0x88] sm:$0xff]   ;;  %s9976_s25 = smov 19  }
  0x8f   : > { %v328_v9 = vpop.permute.xlu1 %327 }
  0x91   : > { %v330_v8 = vpop.permute.xlu0 %329 }
  0x92   : > { %v334_v14 = vsel %vm333_vm3, %v328_v9, %v330_v8 }
  0x93   : > { %v354_v20 = vand.u32 %v10115_v13, %v334_v14  ;;  %v711_v24 = vpop.permute.xlu1 %710 }
  0x95   : > { %v332_v12 = vpop.permute.xlu0 %331 }
  0x96   : > { %v360_v15 = vand.u32 %v10115_v13, %v332_v12  ;;  %v335_v16 = vsel %vm333_vm3, %v330_v8, %v332_v12 }
  0x97   : > { %v357_v18 = vand.u32 %v10115_v13, %v335_v16  ;;  %v709_v30 = vpop.permute.xlu1 %708 }
  0x98   : > { %9403 = vmatprep.subr.bf16.mxu1 %v360_v15  ;;  %v715_v37 = vsel %vm714_vm4, %v709_v30, %v711_v24 }
  0x99   : > { %376 = vmatprep.subr.bf16.mxu0 %v357_v18  ;;  %9404 = vmatpush3.bf16.msra.mxu1 %v360_v15  ;;  %v713_v23 = vpop.permute.xlu0 %712  ;;  %v730_v39 = vand.u32 %v715_v37, %v10115_v13  ;;  %v9785_v15 = vld [vmem:[%s13336_s1 + $0x98] sm:$0xff]  }
  0x9a   : > { %377 = vmatpush1.bf16.msra.mxu0 %v354_v20  ;;  %555 = vmatprep.subr.bf16.mxu1 %v536_v17  ;;  %v716_v26 = vsel %vm714_vm4, %v711_v24, %v713_v23  ;;  %v736_v27 = vand.u32 %v713_v23, %v10115_v13  ;;  %v9788_v24 = vld [vmem:[%s13336_s1 + $0xb0] sm:$0xff]  }
  0x9b   : > { %9413 = vmatprep.subr.bf16.mxu0 %v539_v19  ;;  %v733_v28 = vand.u32 %v716_v26, %v10115_v13  ;;  %v932_v31 = vpop.permute.xlu1 %931 }
  0x9c   : > { %9406 = vmatmul.mubr.msk.bf16.vlgmr.msra.gmra.mxu1 %vm336_vm0, %v9767_v21 }
  0x9d   : > { %8518 = vmatmul.mubr.msk.bf16.vlgmr.msra.gmra.mxu0 %vm336_vm0, %v10074_v0  ;;  %556 = vmatpush1.bf16.msra.mxu1 %v533_v22  ;;  %v934_v32 = vpop.permute.xlu0 %933  ;;  %v9787_v22 = vld [vmem:[%s13336_s1 + $0xa8] sm:$0xff]  }
  0x9e   : > { %9414 = vmatpush3.bf16.msra.mxu0 %v539_v19  ;;  %9409 = vmatprep.mubr.msk.bf16.mxu1 %vm336_vm0, %v9768_v25  ;;  %v937_v34 = vsel %vm935_vm5, %v932_v31, %v934_v32  ;;  %v957_v40 = vand.u32 %v934_v32, %v10115_v13  ;;  %v9786_v19 = vld [vmem:[%s13336_s1 + $0xa0] sm:$0xff]   ;;  %v9791_v32 = vld [vmem:[%s13336_s1 + $0xc8] sm:$0xff]  }
  0x9f   : > { %404 = vmatprep.mubr.bf16.mxu0 %v13343_v5  ;;  %9423 = vmatprep.subr.bf16.mxu1 %v736_v27  ;;  %v954_v35 = vand.u32 %v937_v34, %v10115_v13  ;;  %v1153_v47 = vpop.permute.xlu1 %1152 }
  0xa0   : > { %752 = vmatprep.subr.bf16.mxu0 %v733_v28  ;;  %v9790_v28 = vld [vmem:[%s13336_s1 + $0xc0] sm:$0xff]  }
  0xa1   : > { %v930_v43 = vpop.permute.xlu0 %929 }
  0xa2   : > { %v936_v44 = vsel %vm935_vm5, %v930_v43, %v932_v31 }
  0xa3   : > { %v951_v48 = vand.u32 %v936_v44, %v10115_v13  ;;  %v1151_v54 = vpop.permute.xlu1 %1150  ;;  %v9796_v44 = vld [vmem:[%s13336_s1 + $0xf0] sm:$0xff]  }
  0xa4   : > { %9410 = vmatmul.mubr.msk.bf16.gmra.mxu1 %vm336_vm0, %v9769_v29  ;;  %v1157_v61 = vsel %vm1156_vm6, %v1151_v54, %v1153_v47  ;;  %v9801_v54 = vld [vmem:[%s13336_s1 + $0x118] sm:$0xff]  }
  0xa5   : > { %8519 = vmatmul.mubr.msk.bf16.gmra.mxu0 %vm336_vm0, %v9767_v21  ;;  %573 = vmatprep.mubr.bf16.mxu1 %v13343_v5  ;;  %v1155_v45 = vpop.permute.xlu0 %1154  ;;  %v1172_v63 = vand.u32 %v1157_v61, %v10115_v13 }
  0xa6   : > { %414 = vmatprep.mubr.bf16.mxu0 %v13343_v5  ;;  %v1158_v49 = vsel %vm1156_vm6, %v1153_v47, %v1155_v45  ;;  %v1178_v51 = vand.u32 %v1155_v45, %v10115_v13  ;;  %v9798_v47 = vld [vmem:[%s13336_s1 + $0x100] sm:$0xff]  }
  0xa7   : > { %v1175_v52 = vand.u32 %v1158_v49, %v10115_v13  ;;  %v1374_v55 = vpop.permute.xlu1 %1373 }
  0xa9   : > { %v1376_v56 = vpop.permute.xlu0 %1375 }
  0xaa   : > { %v1379_v58 = vsel %vm1377_vm7, %v1374_v55, %v1376_v56  ;;  %v1399_v0 = vand.u32 %v1376_v56, %v10115_v13 }
  0xab   : > { %v1396_v59 = vand.u32 %v1379_v58, %v10115_v13  ;;  %v1595_v8 = vpop.permute.xlu1 %1594 }
  0xac   : > { %8530 = vmatmul.mubr.msk.bf16.vlgmr.msra.gmra.mxu1 %vm336_vm0, %v9770_v33 }
  0xad   : > { %8520 = vmatmul.mubr.msk.bf16.gmra.mxu0 %vm336_vm0, %v9768_v25  ;;  %9424 = vmatpush3.bf16.msra.mxu1 %v736_v27  ;;  %v1372_v3 = vpop.permute.xlu0 %1371  ;;  %v9789_v27 = vld [vmem:[%s13336_s1 + $0xb8] sm:$0xff]  }
  0xae   : > { %583 = vmatprep.mubr.bf16.mxu1 %v13343_v5  ;;  %424 = vmatprep.mubr.bf16.mxu0 %v13343_v5  ;;  %v1378_v4 = vsel %vm1377_vm7, %v1372_v3, %v1374_v55 }
  0xaf   : > { %973 = vmatprep.subr.bf16.mxu1 %v954_v35  ;;  %v1393_v9 = vand.u32 %v1378_v4, %v10115_v13  ;;  %v1593_v16 = vpop.permute.xlu1 %1592 }
  0xb0   : > { %v1599_v23 = vsel %vm1598_vm8, %v1593_v16, %v1595_v8 }
  0xb1   : > { %v1597_v6 = vpop.permute.xlu0 %1596  ;;  %v1614_v25 = vand.u32 %v1599_v23, %v10115_v13 }
  0xb2   : > { %v1600_v10 = vsel %vm1598_vm8, %v1595_v8, %v1597_v6  ;;  %v1620_v12 = vand.u32 %v1597_v6, %v10115_v13 }
  0xb3   : > { %v1617_v14 = vand.u32 %v1600_v10, %v10115_v13  ;;  %v1816_v17 = vpop.permute.xlu1 %1815 }
  0xb4   : > { %8531 = vmatmul.mubr.msk.bf16.gmra.mxu1 %vm336_vm0, %v9771_v36 }
  0xb5   : > { %8521 = vmatmul.mubr.msk.bf16.gmra.mxu0 %vm336_vm0, %v9769_v29  ;;  %593 = vmatprep.mubr.bf16.mxu1 %v13343_v5  ;;  %v1818_v18 = vpop.permute.xlu0 %1817 }
  0xb6   : > { %9415 = vmatprep.mubr.msk.bf16.mxu0 %vm336_vm0, %v9770_v33  ;;  %v1821_v20 = vsel %vm1819_vm9, %v1816_v17, %v1818_v18  ;;  %v1841_v26 = vand.u32 %v1818_v18, %v10115_v13 }
  0xb7   : > { %v1838_v21 = vand.u32 %v1821_v20, %v10115_v13  ;;  %v2037_v33 = vpop.permute.xlu1 %2036 }
  0xb9   : > { %v1814_v29 = vpop.permute.xlu0 %1813 }
  0xba   : > { %v1820_v30 = vsel %vm1819_vm9, %v1814_v29, %v1816_v17 }
  0xbb   : > { %v1835_v34 = vand.u32 %v1820_v30, %v10115_v13 }
  0xbc   : > { %8532 = vmatmul.mubr.msk.bf16.gmra.mxu1 %vm336_vm0, %v9772_v38 }
  0xbd   : > { %9416 = vmatmul.mubr.msk.bf16.vlgmr.msra.gmra.mxu0 %vm336_vm0, %v9771_v36  ;;  %603 = vmatprep.mubr.bf16.mxu1 %v13343_v5  ;;  %v2039_v31 = vpop.permute.xlu0 %2038  ;;  %v9792_v36 = vld [vmem:[%s13336_s1 + $0xd0] sm:$0xff]  }
  0xbe   : > { %753 = vmatpush1.bf16.msra.mxu0 %v730_v39  ;;  %9419 = vmatprep.mubr.msk.bf16.mxu0 %vm336_vm0, %v9772_v38  ;;  %v2042_v35 = vsel %vm13346_vm10, %v2037_v33, %v2039_v31  ;;  %v2062_v37 = vand.u32 %v2039_v31, %v10115_v13  ;;  %v9793_v39 = vld [vmem:[%s13336_s1 + $0xd8] sm:$0xff]  }
  0xbf   : > { %9433 = vmatprep.subr.bf16.mxu0 %v957_v40  ;;  %v2059_v38 = vand.u32 %v2042_v35, %v10115_v13 }
  0xc4   : > { %8533 = vmatmul.mubr.msk.bf16.gmra.mxu1 %vm336_vm0, %v9773_v41 }
  0xc5   : > { %9420 = vmatmul.mubr.msk.bf16.gmra.mxu0 %vm336_vm0, %v9773_v41  ;;  %9425 = vmatprep.mubr.msk.bf16.mxu1 %vm336_vm0, %v9774_v42  ;;  %v9795_v41 = vld [vmem:[%s13336_s1 + $0xe8] sm:$0xff]  }
  0xc6   : > { %770 = vmatprep.mubr.bf16.mxu0 %v13343_v5 }
  0xcc   : > { %9426 = vmatmul.mubr.msk.bf16.vlgmr.msra.gmra.mxu1 %vm336_vm0, %v9775_v46 }
  0xcd   : > { %8550 = vmatmul.mubr.msk.bf16.vlgmr.msra.gmra.mxu0 %vm336_vm0, %v9774_v42  ;;  %974 = vmatpush1.bf16.msra.mxu1 %v951_v48  ;;  %v2035_v42 = vpop.permute.xlu1 %2034  ;;  %v9800_v48 = vld [vmem:[%s13336_s1 + $0x110] sm:$0xff]  }
  0xce   : > { %9434 = vmatpush3.bf16.msra.mxu0 %v957_v40  ;;  %9429 = vmatprep.mubr.msk.bf16.mxu1 %vm336_vm0, %v9776_v50  ;;  %v9794_v40 = vld [vmem:[%s13336_s1 + $0xe0] sm:$0xff]   ;;  %v2041_v43 = vsel %vm13346_vm10, %v2035_v42, %v2037_v33 }
  0xcf   : > { %780 = vmatprep.mubr.bf16.mxu0 %v13343_v5  ;;  %9443 = vmatprep.subr.bf16.mxu1 %v1178_v51  ;;  %v2056_v45 = vand.u32 %v2041_v43, %v10115_v13  ;;  %v9799_v13 = vld [vmem:[%s13336_s1 + $0x108] sm:$0xff]  }
  0xd0   : > { %1194 = vmatprep.subr.bf16.mxu0 %v1175_v52 }
  0xd4   : > { %9430 = vmatmul.mubr.msk.bf16.gmra.mxu1 %vm336_vm0, %v9777_v53 }
  0xd5   : > { %8551 = vmatmul.mubr.msk.bf16.gmra.mxu0 %vm336_vm0, %v9775_v46  ;;  %991 = vmatprep.mubr.bf16.mxu1 %v13343_v5  ;;  %v9797_v46 = vld [vmem:[%s13336_s1 + $0xf8] sm:$0xff]  }
  0xd6   : > { %790 = vmatprep.mubr.bf16.mxu0 %v13343_v5 }
  0xdc   : > { %8570 = vmatmul.mubr.msk.bf16.vlgmr.msra.gmra.mxu1 %vm336_vm0, %v9778_v57 }
  0xdd   : > { %8552 = vmatmul.mubr.msk.bf16.gmra.mxu0 %vm336_vm0, %v9776_v50  ;;  %9444 = vmatpush3.bf16.msra.mxu1 %v1178_v51 }
  0xde   : > { %1001 = vmatprep.mubr.bf16.mxu1 %v13343_v5  ;;  %800 = vmatprep.mubr.bf16.mxu0 %v13343_v5 }
  0xdf   : > { %1415 = vmatprep.subr.bf16.mxu1 %v1396_v59 }
  0xe4   : > { %8571 = vmatmul.mubr.msk.bf16.gmra.mxu1 %vm336_vm0, %v9779_v60 }
  0xe5   : > { %8553 = vmatmul.mubr.msk.bf16.gmra.mxu0 %vm336_vm0, %v9777_v53  ;;  %1011 = vmatprep.mubr.bf16.mxu1 %v13343_v5 }
  0xe6   : > { %9435 = vmatprep.mubr.msk.bf16.mxu0 %vm336_vm0, %v9778_v57 }
  0xec   : > { %8572 = vmatmul.mubr.msk.bf16.gmra.mxu1 %vm336_vm0, %v9780_v62 }
  0xed   : > { %9436 = vmatmul.mubr.msk.bf16.vlgmr.msra.gmra.mxu0 %vm336_vm0, %v9779_v60  ;;  %1021 = vmatprep.mubr.bf16.mxu1 %v13343_v5 }
  0xee   : > { %1195 = vmatpush1.bf16.msra.mxu0 %v1172_v63  ;;  %9439 = vmatprep.mubr.msk.bf16.mxu0 %vm336_vm0, %v9780_v62 }
  0xef   : > { %9453 = vmatprep.subr.bf16.mxu0 %v1399_v0 }
  0xf4   : > { %8573 = vmatmul.mubr.msk.bf16.gmra.mxu1 %vm336_vm0, %v9781_v1 }
  0xf5   : > { %9440 = vmatmul.mubr.msk.bf16.gmra.mxu0 %vm336_vm0, %v9781_v1  ;;  %9445 = vmatprep.mubr.msk.bf16.mxu1 %vm336_vm0, %v9782_v2 }
  0xf6   : > { %1212 = vmatprep.mubr.bf16.mxu0 %v13343_v5 }
  0xfc   : > { %9446 = vmatmul.mubr.msk.bf16.vlgmr.msra.gmra.mxu1 %vm336_vm0, %v9783_v7 }
  0xfd   : > { %8590 = vmatmul.mubr.msk.bf16.vlgmr.msra.gmra.mxu0 %vm336_vm0, %v9782_v2  ;;  %1416 = vmatpush1.bf16.msra.mxu1 %v1393_v9 }
  0xfe   : > { %9454 = vmatpush3.bf16.msra.mxu0 %v1399_v0  ;;  %9449 = vmatprep.mubr.msk.bf16.mxu1 %vm336_vm0, %v9784_v11 }
  0xff   : > { %1222 = vmatprep.mubr.bf16.mxu0 %v13343_v5  ;;  %9463 = vmatprep.subr.bf16.mxu1 %v1620_v12 }
 0x100   : > { %1636 = vmatprep.subr.bf16.mxu0 %v1617_v14 }
 0x104   : > { %9450 = vmatmul.mubr.msk.bf16.gmra.mxu1 %vm336_vm0, %v9785_v15 }
 0x105   : > { %8591 = vmatmul.mubr.msk.bf16.gmra.mxu0 %vm336_vm0, %v9783_v7  ;;  %1433 = vmatprep.mubr.bf16.mxu1 %v13343_v5 }
 0x106   : > { %1232 = vmatprep.mubr.bf16.mxu0 %v13343_v5 }
 0x10c   : > { %8610 = vmatmul.mubr.msk.bf16.vlgmr.msra.gmra.mxu1 %vm336_vm0, %v9786_v19 }
 0x10d   : > { %8592 = vmatmul.mubr.msk.bf16.gmra.mxu0 %vm336_vm0, %v9784_v11  ;;  %9464 = vmatpush3.bf16.msra.mxu1 %v1620_v12 }
 0x10e   : > { %1443 = vmatprep.mubr.bf16.mxu1 %v13343_v5  ;;  %1242 = vmatprep.mubr.bf16.mxu0 %v13343_v5 }
 0x10f   : > { %1857 = vmatprep.subr.bf16.mxu1 %v1838_v21 }
 0x114   : > { %8611 = vmatmul.mubr.msk.bf16.gmra.mxu1 %vm336_vm0, %v9787_v22 }
 0x115   : > { %8593 = vmatmul.mubr.msk.bf16.gmra.mxu0 %vm336_vm0, %v9785_v15  ;;  %1453 = vmatprep.mubr.bf16.mxu1 %v13343_v5 }
 0x116   : > { %9455 = vmatprep.mubr.msk.bf16.mxu0 %vm336_vm0, %v9786_v19 }
 0x11c   : > { %8612 = vmatmul.mubr.msk.bf16.gmra.mxu1 %vm336_vm0, %v9788_v24 }
 0x11d   : > { %9456 = vmatmul.mubr.msk.bf16.vlgmr.msra.gmra.mxu0 %vm336_vm0, %v9787_v22  ;;  %1463 = vmatprep.mubr.bf16.mxu1 %v13343_v5 }
 0x11e   : > { %1637 = vmatpush1.bf16.msra.mxu0 %v1614_v25  ;;  %9459 = vmatprep.mubr.msk.bf16.mxu0 %vm336_vm0, %v9788_v24 }
 0x11f   : > { %9473 = vmatprep.subr.bf16.mxu0 %v1841_v26 }
 0x124   : > { %8613 = vmatmul.mubr.msk.bf16.gmra.mxu1 %vm336_vm0, %v9789_v27 }
 0x125   : > { %9460 = vmatmul.mubr.msk.bf16.gmra.mxu0 %vm336_vm0, %v9789_v27  ;;  %9465 = vmatprep.mubr.msk.bf16.mxu1 %vm336_vm0, %v9790_v28 }
 0x126   : > { %1654 = vmatprep.mubr.bf16.mxu0 %v13343_v5 }
 0x12c   : > { %9466 = vmatmul.mubr.msk.bf16.vlgmr.msra.gmra.mxu1 %vm336_vm0, %v9791_v32 }
 0x12d   : > { %8630 = vmatmul.mubr.msk.bf16.vlgmr.msra.gmra.mxu0 %vm336_vm0, %v9790_v28  ;;  %1858 = vmatpush1.bf16.msra.mxu1 %v1835_v34 }
 0x12e   : > { %9474 = vmatpush3.bf16.msra.mxu0 %v1841_v26  ;;  %9469 = vmatprep.mubr.msk.bf16.mxu1 %vm336_vm0, %v9792_v36 }
 0x12f   : > { %1664 = vmatprep.mubr.bf16.mxu0 %v13343_v5  ;;  %9483 = vmatprep.subr.bf16.mxu1 %v2062_v37 }
 0x130   : > { %2078 = vmatprep.subr.bf16.mxu0 %v2059_v38 }
 0x134   : > { %9470 = vmatmul.mubr.msk.bf16.gmra.mxu1 %vm336_vm0, %v9793_v39 }
 0x135   : > { %8631 = vmatmul.mubr.msk.bf16.gmra.mxu0 %vm336_vm0, %v9791_v32  ;;  %1875 = vmatprep.mubr.bf16.mxu1 %v13343_v5 }
 0x136   : > { %1674 = vmatprep.mubr.bf16.mxu0 %v13343_v5 }
 0x13c   : > { %8650 = vmatmul.mubr.msk.bf16.vlgmr.msra.gmra.mxu1 %vm336_vm0, %v9794_v40 }
 0x13d   : > { %8632 = vmatmul.mubr.msk.bf16.gmra.mxu0 %vm336_vm0, %v9792_v36  ;;  %9484 = vmatpush3.bf16.msra.mxu1 %v2062_v37 }
 0x13e   : > { %1885 = vmatprep.mubr.bf16.mxu1 %v13343_v5  ;;  %1684 = vmatprep.mubr.bf16.mxu0 %v13343_v5 }
 0x144   : > { %8651 = vmatmul.mubr.msk.bf16.gmra.mxu1 %vm336_vm0, %v9795_v41 }
 0x145   : > { %8633 = vmatmul.mubr.msk.bf16.gmra.mxu0 %vm336_vm0, %v9793_v39  ;;  %1895 = vmatprep.mubr.bf16.mxu1 %v13343_v5 }
 0x146   : > { %9475 = vmatprep.mubr.msk.bf16.mxu0 %vm336_vm0, %v9794_v40 }
 0x14c   : > { %8652 = vmatmul.mubr.msk.bf16.gmra.mxu1 %vm336_vm0, %v9796_v44 }
 0x14d   : > { %9476 = vmatmul.mubr.msk.bf16.vlgmr.msra.gmra.mxu0 %vm336_vm0, %v9795_v41  ;;  %1905 = vmatprep.mubr.bf16.mxu1 %v13343_v5 }
 0x14e   : > { %2079 = vmatpush1.bf16.msra.mxu0 %v2056_v45  ;;  %9479 = vmatprep.mubr.msk.bf16.mxu0 %vm336_vm0, %v9796_v44 }
 0x154   : > { %8653 = vmatmul.mubr.msk.bf16.gmra.mxu1 %vm336_vm0, %v9797_v46 }
 0x155   : > { %9480 = vmatmul.mubr.msk.bf16.gmra.mxu0 %vm336_vm0, %v9797_v46  ;;  %9485 = vmatprep.mubr.msk.bf16.mxu1 %vm336_vm0, %v9798_v47 }
 0x156   : > { %2096 = vmatprep.mubr.bf16.mxu0 %v13343_v5 }
 0x15c   : > { %v9407_v49 = vpop.f32.mrf.mxu1  ;;  %9486 = vmatmul.mubr.msk.bf16.vlgmr.msra.gmra.mxu1 %vm336_vm0, %v9799_v13 }
 0x15d   : > { %v396_v50 = vpop.f32.mrf.mxu0  ;;  %8670 = vmatmul.mubr.msk.bf16.vlgmr.msra.gmra.mxu0 %vm336_vm0, %v9798_v47  ;;  %9489 = vmatprep.mubr.msk.bf16.mxu1 %vm336_vm0, %v9800_v48 }
 0x15e   : > { %v469_v51 = vpop.f32.mrf.mxu1  ;;  %2106 = vmatprep.mubr.bf16.mxu0 %v13343_v5 }
 0x15f   : > { %v398_v52 = vpop.f32.mrf.mxu0 }
 0x160   : > { %v9408_v53 = vpop.f32.mrf.mxu1 }
 0x161   : > { %v400_v55 = vpop.f32.mrf.mxu0 }
 0x162   : > { %v10367_v56 = vpop.f32.mrf.mxu1 }
 0x163   : > { %v10369_v57 = vpop.f32.mrf.mxu0 }
 0x164   : > { %v9411_v58 = vpop.f32.mrf.mxu1  ;;  %9490 = vmatmul.mubr.msk.bf16.gmra.mxu1 %vm336_vm0, %v9801_v54 }
 0x165   : > { %v406_v59 = vpop.f32.mrf.mxu0  ;;  %8671 = vmatmul.mubr.msk.bf16.gmra.mxu0 %vm336_vm0, %v9799_v13  ;;  %2548 = vmatprep.mubr.bf16.mxu1 %v13343_v5 }
 0x166   : > { %v485_v60 = vpop.f32.mrf.mxu1  ;;  %2116 = vmatprep.mubr.bf16.mxu0 %v13343_v5 }
 0x167   : > { %v408_v61 = vpop.f32.mrf.mxu0 }
 0x168   : > { %v9412_v62 = vpop.f32.mrf.mxu1 }
 0x169   : > { %v410_v63 = vpop.f32.mrf.mxu0 }
 0x16a   : > { %v10375_v0 = vpop.f32.mrf.mxu1 }
 0x16b   : > { %v10377_v1 = vpop.f32.mrf.mxu0 }
 0x16c   : > { %v575_v2 = vpop.f32.mrf.mxu1 }
 0x16d   : > { %v576_v3 = vadd.f32 %v575_v2, %v396_v50  ;;  %v416_v4 = vpop.f32.mrf.mxu0  ;;  %8672 = vmatmul.mubr.msk.bf16.gmra.mxu0 %vm336_vm0, %v9800_v48 }
 0x16e   : > { %v577_v6 = vpop.f32.mrf.mxu1  ;;  %2126 = vmatprep.mubr.bf16.mxu0 %v13343_v5 }
 0x16f   : > { %v578_v7 = vadd.f32 %v577_v6, %v398_v52  ;;  %v418_v8 = vpop.f32.mrf.mxu0 }
 0x170   : > { %v579_v9 = vpop.f32.mrf.mxu1 }
 0x171   : > { %v580_v10 = vadd.f32 %v579_v9, %v400_v55  ;;  %v420_v11 = vpop.f32.mrf.mxu0 }
 0x172   : > { %v10381_v12 = vpop.f32.mrf.mxu1 }
 0x173   : > { %v10383_v14 = vpop.f32.mrf.mxu0 }
 0x174   : > { %v585_v15 = vpop.f32.mrf.mxu1 }
 0x175   : > { %v586_v16 = vadd.f32 %v585_v15, %v406_v59  ;;  %v426_v17 = vpop.f32.mrf.mxu0  ;;  %8673 = vmatmul.mubr.msk.bf16.gmra.mxu0 %vm336_vm0, %v9801_v54 }
 0x176   : > { %v587_v18 = vpop.f32.mrf.mxu1 }
 0x177   : > { %v588_v19 = vadd.f32 %v587_v18, %v408_v61  ;;  %v428_v20 = vpop.f32.mrf.mxu0 }
 0x178   : > { %v589_v21 = vpop.f32.mrf.mxu1 }
 0x179   : > { %v590_v22 = vadd.f32 %v589_v21, %v410_v63  ;;  %v430_v23 = vpop.f32.mrf.mxu0 }
 0x17a   : > { %v10386_v24 = vpop.f32.mrf.mxu1 }
 0x17b   : > { %v10388_v25 = vpop.f32.mrf.mxu0 }
 0x17c   : > { %13389 = vst [vmem:[#allocation7_spill] sm:$0xff] %v10388_v25  ;;  %v595_v26 = vpop.f32.mrf.mxu1 }
 0x17d   : > { %v596_v27 = vadd.f32 %v595_v26, %v416_v4  ;;  %v9417_v28 = vpop.f32.mrf.mxu0 }
 0x17e   : > { %v657_v29 = vadd.f32 %v9417_v28, %v9407_v49  ;;  %v597_v30 = vpop.f32.mrf.mxu1 }
 0x17f   : > { %v598_v31 = vadd.f32 %v597_v30, %v418_v8  ;;  %v648_v32 = vpop.f32.mrf.mxu0 }
 0x180   : > { %v649_v33 = vadd.f32 %v648_v32, %v469_v51  ;;  %v599_v34 = vpop.f32.mrf.mxu1 }
 0x181   : > { %v600_v35 = vadd.f32 %v599_v34, %v420_v11  ;;  %v9418_v36 = vpop.f32.mrf.mxu0 }
 0x182   : > { %v660_v37 = vadd.f32 %v9418_v36, %v9408_v53  ;;  %v10390_v38 = vpop.f32.mrf.mxu1 }
 0x183   : > { %v10392_v39 = vpop.f32.mrf.mxu0 }
 0x184   : > { %v605_v40 = vpop.f32.mrf.mxu1 }
 0x185   : > { %v606_v41 = vadd.f32 %v605_v40, %v426_v17  ;;  %v9421_v42 = vpop.f32.mrf.mxu0 }
 0x186   : > { %v673_v43 = vadd.f32 %v9421_v42, %v9411_v58  ;;  %v607_v44 = vpop.f32.mrf.mxu1 }
 0x187   : > { %v608_v45 = vadd.f32 %v607_v44, %v428_v20  ;;  %v664_v46 = vpop.f32.mrf.mxu0 }
 0x188   : > { %v665_v47 = vadd.f32 %v664_v46, %v485_v60  ;;  %v609_v13 = vpop.f32.mrf.mxu1 }
 0x189   : > { %v610_v48 = vadd.f32 %v609_v13, %v430_v23  ;;  %v9422_v49 = vpop.f32.mrf.mxu0 }
 0x18a   : > { %v676_v50 = vadd.f32 %v9422_v49, %v9412_v62  ;;  %v10394_v51 = vpop.f32.mrf.mxu1 }
 0x18b   : > { %13390 = vst [vmem:[#allocation8_spill] sm:$0xff] %v10394_v51  ;;  %v10396_v52 = vpop.f32.mrf.mxu0 }
 0x18c   : > { %v9427_v53 = vpop.f32.mrf.mxu1 }
 0x18d   : > { %v884_v54 = vadd.f32 %v9427_v53, %v657_v29  ;;  %v772_v55 = vpop.f32.mrf.mxu0 }
 0x18e   : > { %v876_v59 = vadd.f32 %v772_v55, %v576_v3  ;;  %v845_v61 = vpop.f32.mrf.mxu1 }
 0x18f   : > { %v878_v63 = vadd.f32 %v845_v61, %v649_v33  ;;  %v774_v2 = vpop.f32.mrf.mxu0 }
 0x190   : > { %v877_v58 = vadd.f32 %v774_v2, %v578_v7  ;;  %v9428_v4 = vpop.f32.mrf.mxu1 }
 0x191   : > { %v887_v6 = vadd.f32 %v9428_v4, %v660_v37  ;;  %v776_v8 = vpop.f32.mrf.mxu0 }
 0x192   : > { %v879_v60 = vadd.f32 %v776_v8, %v580_v10  ;;  %v10398_v9 = vpop.f32.mrf.mxu1 }
 0x193   : > { %13391 = vst [vmem:[#allocation9_spill] sm:$0xff] %v10398_v9  ;;  %v10400_v11 = vpop.f32.mrf.mxu0 }
 0x194   : > { %v9431_v62 = vpop.f32.mrf.mxu1 }
 0x195   : > { %v896_v15 = vadd.f32 %v9431_v62, %v673_v43  ;;  %v782_v17 = vpop.f32.mrf.mxu0 }
 0x196   : > { %v882_v18 = vadd.f32 %v782_v17, %v586_v16  ;;  %v861_v20 = vpop.f32.mrf.mxu1 }
 0x197   : > { %v890_v21 = vadd.f32 %v861_v20, %v665_v47  ;;  %v784_v23 = vpop.f32.mrf.mxu0 }
 0x198   : > { %v883_v3 = vadd.f32 %v784_v23, %v588_v19  ;;  %v9432_v26 = vpop.f32.mrf.mxu1 }
 0x199   : > { %v899_v28 = vadd.f32 %v9432_v26, %v676_v50  ;;  %v786_v29 = vpop.f32.mrf.mxu0 }
 0x19a   : > { %v885_v7 = vadd.f32 %v786_v29, %v590_v22  ;;  %v10402_v30 = vpop.f32.mrf.mxu1 }
 0x19b   : > { %v10404_v32 = vpop.f32.mrf.mxu0 }
 0x19c   : > { %v993_v10 = vpop.f32.mrf.mxu1 }
 0x19d   : > { %v1097_v33 = vadd.f32 %v993_v10, %v876_v59  ;;  %v792_v34 = vpop.f32.mrf.mxu0 }
 0x19e   : > { %v888_v36 = vadd.f32 %v792_v34, %v596_v27  ;;  %v995_v37 = vpop.f32.mrf.mxu1 }
 0x19f   : > { %v1098_v40 = vadd.f32 %v995_v37, %v877_v58  ;;  %v794_v42 = vpop.f32.mrf.mxu0 }
 0x1a0   : > { %v889_v16 = vadd.f32 %v794_v42, %v598_v31  ;;  %v997_v43 = vpop.f32.mrf.mxu1 }
 0x1a1   : > { %v1100_v44 = vadd.f32 %v997_v43, %v879_v60  ;;  %v796_v46 = vpop.f32.mrf.mxu0 }
 0x1a2   : > { %v891_v19 = vadd.f32 %v796_v46, %v600_v35  ;;  %v10406_v47 = vpop.f32.mrf.mxu1 }
 0x1a3   : > { %v10408_v13 = vpop.f32.mrf.mxu0 }
 0x1a4   : > { %v1003_v22 = vpop.f32.mrf.mxu1 }
 0x1a5   : > { %v1103_v49 = vadd.f32 %v1003_v22, %v882_v18  ;;  %v802_v50 = vpop.f32.mrf.mxu0 }
 0x1a6   : > { %v894_v53 = vadd.f32 %v802_v50, %v606_v41  ;;  %v1005_v55 = vpop.f32.mrf.mxu1 }
 0x1a7   : > { %v1104_v59 = vadd.f32 %v1005_v55, %v883_v3  ;;  %v804_v61 = vpop.f32.mrf.mxu0 }
 0x1a8   : > { %v895_v27 = vadd.f32 %v804_v61, %v608_v45  ;;  %v1007_v2 = vpop.f32.mrf.mxu1 }
 0x1a9   : > { %v1106_v58 = vadd.f32 %v1007_v2, %v885_v7  ;;  %v806_v4 = vpop.f32.mrf.mxu0 }
 0x1aa   : > { %v897_v31 = vadd.f32 %v806_v4, %v610_v48  ;;  %v10410_v8 = vpop.f32.mrf.mxu1 }
 0x1ab   : > { %v10412_v60 = vpop.f32.mrf.mxu0 }
 0x1ac   : > { %13392 = vst [vmem:[#allocation10_spill] sm:$0xff] %v10412_v60  ;;  %v1013_v35 = vpop.f32.mrf.mxu1 }
 0x1ad   : > { %v1109_v62 = vadd.f32 %v1013_v35, %v888_v36  ;;  %v9437_v17 = vpop.f32.mrf.mxu0 }
 0x1ae   : > { %v1105_v20 = vadd.f32 %v9437_v17, %v884_v54  ;;  %v1015_v23 = vpop.f32.mrf.mxu1 }
 0x1af   : > { %v1110_v18 = vadd.f32 %v1015_v23, %v889_v16  ;;  %v1066_v26 = vpop.f32.mrf.mxu0 }
 0x1b0   : > { %v1099_v41 = vadd.f32 %v1066_v26, %v878_v63  ;;  %v1017_v29 = vpop.f32.mrf.mxu1 }
 0x1b1   : > { %v1112_v3 = vadd.f32 %v1017_v29, %v891_v19  ;;  %v9438_v10 = vpop.f32.mrf.mxu0 }
 0x1b2   : > { %v1108_v45 = vadd.f32 %v9438_v10, %v887_v6  ;;  %v10414_v34 = vpop.f32.mrf.mxu1 }
 0x1b3   : > { %v10416_v7 = vpop.f32.mrf.mxu0 }
 0x1b4   : > { %13393 = vst [vmem:[#allocation11_spill] sm:$0xff] %v10416_v7  ;;  %v1023_v48 = vpop.f32.mrf.mxu1 }
 0x1b5   : > { %v1115_v37 = vadd.f32 %v1023_v48, %v894_v53  ;;  %v9441_v42 = vpop.f32.mrf.mxu0 }
 0x1b6   : > { %v1117_v43 = vadd.f32 %v9441_v42, %v896_v15  ;;  %v1025_v46 = vpop.f32.mrf.mxu1 }
 0x1b7   : > { %v1116_v36 = vadd.f32 %v1025_v46, %v895_v27  ;;  %v1082_v22 = vpop.f32.mrf.mxu0 }
 0x1b8   : > { %v1111_v54 = vadd.f32 %v1082_v22, %v890_v21  ;;  %v1027_v50 = vpop.f32.mrf.mxu1 }
 0x1b9   : > { %v1118_v16 = vadd.f32 %v1027_v50, %v897_v31  ;;  %v9442_v55 = vpop.f32.mrf.mxu0 }
 0x1ba   : > { %v1120_v63 = vadd.f32 %v9442_v55, %v899_v28  ;;  %v10418_v61 = vpop.f32.mrf.mxu1 }
 0x1bb   : > { %13394 = vst [vmem:[#allocation12_spill] sm:$0xff] %v10418_v61  ;;  %v10420_v19 = vpop.f32.mrf.mxu0 }
 0x1bc   : > { %v9447_v6 = vpop.f32.mrf.mxu1 }
 0x1bd   : > { %v10422_v2 = vadd.f32 %v9447_v6, %v1105_v20  ;;  %v1214_v4 = vpop.f32.mrf.mxu0 }
 0x1be   : > { %v1318_v35 = vadd.f32 %v1214_v4, %v1097_v33  ;;  %v1287_v53 = vpop.f32.mrf.mxu1 }
 0x1bf   : > { %v1320_v17 = vadd.f32 %v1287_v53, %v1099_v41  ;;  %v1216_v15 = vpop.f32.mrf.mxu0 }
 0x1c0   : > { %v1319_v23 = vadd.f32 %v1216_v15, %v1098_v40  ;;  %v9448_v27 = vpop.f32.mrf.mxu1 }
 0x1c1   : > { %v10424_v26 = vadd.f32 %v9448_v27, %v1108_v45  ;;  %v1218_v21 = vpop.f32.mrf.mxu0 }
 0x1c2   : > { %v1321_v31 = vadd.f32 %v1218_v21, %v1100_v44  ;;  %v10426_v29 = vpop.f32.mrf.mxu1 }
 0x1c3   : > { %13395 = vst [vmem:[#allocation13_spill] sm:$0xff] %v10426_v29  ;;  %v10428_v28 = vpop.f32.mrf.mxu0 }
 0x1c4   : > { %v9451_v10 = vpop.f32.mrf.mxu1 }
 0x1c5   : > { %v10430_v48 = vadd.f32 %v9451_v10, %v1117_v43  ;;  %v1224_v20 = vpop.f32.mrf.mxu0 }
 0x1c6   : > { %v1324_v42 = vadd.f32 %v1224_v20, %v1103_v49  ;;  %v1303_v46 = vpop.f32.mrf.mxu1 }
 0x1c7   : > { %v10432_v33 = vadd.f32 %v1303_v46, %v1111_v54  ;;  %v1226_v41 = vpop.f32.mrf.mxu0 }
 0x1c8   : > { %v1325_v22 = vadd.f32 %v1226_v41, %v1104_v59  ;;  %v9452_v40 = vpop.f32.mrf.mxu1 }
 0x1c9   : > { %v10434_v50 = vadd.f32 %v9452_v40, %v1120_v63  ;;  %v1228_v45 = vpop.f32.mrf.mxu0 }
 0x1ca   : > { %v1327_v55 = vadd.f32 %v1228_v45, %v1106_v58  ;;  %v10436_v44 = vpop.f32.mrf.mxu1 }
 0x1cb   : > { %v10438_v6 = vpop.f32.mrf.mxu0 }
 0x1cc   : > { %v1435_v4 = vpop.f32.mrf.mxu1 }
 0x1cd   : > { %v10440_v53 = vadd.f32 %v1435_v4, %v1318_v35  ;;  %v1234_v43 = vpop.f32.mrf.mxu0 }
 0x1ce   : > { %v1330_v15 = vadd.f32 %v1234_v43, %v1109_v62  ;;  %v1437_v49 = vpop.f32.mrf.mxu1 }
 0x1cf   : > { %v10442_v27 = vadd.f32 %v1437_v49, %v1319_v23  ;;  %v1236_v54 = vpop.f32.mrf.mxu0 }
 0x1d0   : > { %v1331_v21 = vadd.f32 %v1236_v54, %v1110_v18  ;;  %v1439_v59 = vpop.f32.mrf.mxu1 }
 0x1d1   : > { %v10444_v10 = vadd.f32 %v1439_v59, %v1321_v31  ;;  %v1238_v63 = vpop.f32.mrf.mxu0 }
 0x1d2   : > { %v1333_v20 = vadd.f32 %v1238_v63, %v1112_v3  ;;  %v10446_v58 = vpop.f32.mrf.mxu1 }
 0x1d3   : > { %v10448_v46 = vpop.f32.mrf.mxu0 }
 0x1d4   : > { %13396 = vst [vmem:[#allocation14_spill] sm:$0xff] %v10448_v46  ;;  %v1445_v41 = vpop.f32.mrf.mxu1 }
 0x1d5   : > { %v10450_v40 = vadd.f32 %v1445_v41, %v1324_v42  ;;  %v1244_v35 = vpop.f32.mrf.mxu0 }
 0x1d6   : > { %v1336_v45 = vadd.f32 %v1244_v35, %v1115_v37  ;;  %v1447_v62 = vpop.f32.mrf.mxu1 }
 0x1d7   : > { %13397 = vst [vmem:[#allocation15_spill] sm:$0xff] %v10450_v40  ;;  %v10452_v4 = vadd.f32 %v1447_v62, %v1325_v22  ;;  %v1246_v23 = vpop.f32.mrf.mxu0 }
 0x1d8   : > { %v1337_v43 = vadd.f32 %v1246_v23, %v1116_v36  ;;  %v1449_v18 = vpop.f32.mrf.mxu1 }
 0x1d9   : > { %13398 = vst [vmem:[#allocation16_spill] sm:$0xff] %v10452_v4  ;;  %v10454_v49 = vadd.f32 %v1449_v18, %v1327_v55  ;;  %v1248_v31 = vpop.f32.mrf.mxu0 }
 0x1da   : > { %v1339_v54 = vadd.f32 %v1248_v31, %v1118_v16  ;;  %v10456_v3 = vpop.f32.mrf.mxu1 }
 0x1db   : > { %13399 = vst [vmem:[#allocation17_spill] sm:$0xff] %v10454_v49  ;;  %v10458_v59 = vpop.f32.mrf.mxu0 }
 0x1dc   : > { %13400 = vst [vmem:[#allocation18_spill] sm:$0xff] %v10458_v59  ;;  %v1455_v63 = vpop.f32.mrf.mxu1 }
 0x1dd   : > { %v10460_v5 = vadd.f32 %v1455_v63, %v1330_v15  ;;  %v10462_v42 = vpop.f32.mrf.mxu0 }
 0x1de   : > { %v1457_v37 = vpop.f32.mrf.mxu1 }
 0x1df   : > { %13401 = vst [vmem:[#allocation19_spill] sm:$0xff] %v10460_v5  ;;  %v10464_v41 = vadd.f32 %v1457_v37, %v1331_v21  ;;  %v1508_v22 = vpop.f32.mrf.mxu0 }
 0x1e0   : > { %v1541_v35 = vadd.f32 %v1508_v22, %v1320_v17  ;;  %v1459_v36 = vpop.f32.mrf.mxu1 }
 0x1e1   : > { %13402 = vst [vmem:[#allocation20_spill] sm:$0xff] %v10464_v41  ;;  %v10466_v62 = vadd.f32 %v1459_v36, %v1333_v20  ;;  %v10468_v55 = vpop.f32.mrf.mxu0 }
 0x1e2   : > { %v10470_v16 = vpop.f32.mrf.mxu1 }
 0x1e3   : > { %13403 = vst [vmem:[#allocation21_spill] sm:$0xff] %v10466_v62  ;;  %13404 = vst [vmem:[#allocation22_spill] sm:$0xff] %v10470_v16  ;;  %v10472_v23 = vpop.f32.mrf.mxu0 }
 0x1e4   : > { %13405 = vst [vmem:[#allocation23_spill] sm:$0xff] %v10472_v23  ;;  %v1465_v18 = vpop.f32.mrf.mxu1 }
 0x1e5   : > { %v10474_v31 = vadd.f32 %v1465_v18, %v1336_v45  ;;  %v10476_v15 = vpop.f32.mrf.mxu0 }
 0x1e6   : > { %v1467_v63 = vpop.f32.mrf.mxu1 }
 0x1e7   : > { %13406 = vst [vmem:[#allocation24_spill] sm:$0xff] %v10474_v31  ;;  %v10478_v59 = vadd.f32 %v1467_v63, %v1337_v43  ;;  %v10480_v21 = vpop.f32.mrf.mxu0  ;;  %v13345_v63 = vlaneseq }
 0x1e8   : > { %v1469_v17 = vpop.f32.mrf.mxu1 }
 0x1e9   : > { %13407 = vst [vmem:[#allocation25_spill] sm:$0xff] %v10478_v59  ;;  %v10482_v37 = vadd.f32 %v1469_v17, %v1339_v54  ;;  %v10484_v20 = vpop.f32.mrf.mxu0 }
 0x1ea   : > { %v10486_v22 = vpop.f32.mrf.mxu1 }
 0x1eb   : > { %13408 = vst [vmem:[#allocation26_spill] sm:$0xff] %v10482_v37  ;;  %13409 = vst [vmem:[#allocation27_spill] sm:$0xff] %v10486_v22  ;;  %v10488_v36 = vpop.f32.mrf.mxu0  ;;  %v233_v22 = vand.u32 127, %v13345_v63 }
 0x1ec   : > { %v10490_v23 = vpop.f32.mrf.mxu1 }
 0x1ed   : > { %v10492_v45 = vpop.f32.mrf.mxu0  ;;  %v234_v9 = vadd.s32 128, %v233_v22  ;;  %v10528_v5 = vmul.u32.u64.low 3817748708, %v233_v22  ;;  %v10529_v49 = vmul.u32.u64.high 3817748708, %v233_v22, %v10528_v5 }
 0x1ee   : > { %v1729_v18 = vpop.f32.mrf.mxu1 }
 0x1ef   : > { %v10494_v29 = vadd.f32 %v1729_v18, %v1541_v35  ;;  %v10496_v43 = vpop.f32.mrf.mxu0  ;;  %v235_v18 = vadd.s32 256, %v233_v22  ;;  %v10533_v51 = vmul.u32.u64.low 3817748708, %v234_v9  ;;  %v10534_v25 = vmul.u32.u64.high 3817748708, %v234_v9, %v10533_v51 }
 0x1f0   : > { %v10498_v59 = vpop.f32.mrf.mxu1 }
 0x1f1   : > { %13410 = vst [vmem:[#allocation28_spill] sm:$0xff] %v10494_v29  ;;  %v10500_v54 = vpop.f32.mrf.mxu0  ;;  %v10523_v16 = vmul.u32.u64.low 3817748708, %v235_v18  ;;  %v10524_v63 = vmul.u32.u64.high 3817748708, %v235_v18, %v10523_v16  ;;  %v253_v51 = vshrl.u32 %v10534_v25, 4 }
 0x1f2   : > { %v10502_v17 = vpop.f32.mrf.mxu1 }
 0x1f3   : > { %13411 = vst [vmem:[#allocation29_spill] sm:$0xff] %v10502_v17  ;;  %v10504_v37 = vpop.f32.mrf.mxu0  ;;  %v264_v4 = vshrl.u32 %v10524_v63, 4 }
 0x1f4   : > { %13412 = vst [vmem:[#allocation30_spill] sm:$0xff] %v10504_v37  ;;  %v10507_v31 = vpop.f32.mrf.mxu1 }
 0x1f5   : > { %13413 = vst [vmem:[#allocation31_spill] sm:$0xff] %v10507_v31  ;;  %v10509_v61 = vpop.f32.mrf.mxu0  ;;  %v265_v40 = vmul.u32 18, %v264_v4 }
 0x1f6   : > { %13414 = vst [vmem:[#allocation32_spill] sm:$0xff] %v10509_v61  ;;  %v10511_v7 = vpop.f32.mrf.mxu1 }
 0x1f7   : > { %13415 = vst [vmem:[#allocation33_spill] sm:$0xff] %v10511_v7  ;;  %v10513_v35 = vpop.f32.mrf.mxu0 }
 0x1f8   : > { %13416 = vst [vmem:[#allocation34_spill] sm:$0xff] %v10513_v35  ;;  %v10515_v29 = vpop.f32.mrf.mxu1 }
 0x1f9   : > { %13417 = vst [vmem:[#allocation35_spill] sm:$0xff] %v10515_v29  ;;  %v10517_v60 = vpop.f32.mrf.mxu0 }
 0x1fa   : > { %13418 = vst [vmem:[#allocation36_spill] sm:$0xff] %v10517_v60  ;;  %v10519_v62 = vpop.f32.mrf.mxu1 }
 0x1fb   : > { %13419 = vst [vmem:[#allocation37_spill] sm:$0xff] %v10519_v62  ;;  %v10521_v17 = vpop.f32.mrf.mxu0 }
 0x1fc   : > { %13420 = vst [vmem:[#allocation38_spill] sm:$0xff] %v10521_v17  ;;  %v10526_v41 = vpop.f32.mrf.mxu1 }
 0x1fd   : > { %v10531_v46 = vpop.f32.mrf.mxu0 }
 0x1fe   : > { %13421 = vst [vmem:[#allocation39_spill] sm:$0xff] %v10531_v46  ;;  %v10536_v29 = vpop.f32.mrf.mxu1  ;;  %v242_v46 = vshrl.u32 %v10529_v49, 4  ;;  %v266_v49 = vsub.s32 %v235_v18, %v265_v40  ;;  %v13455_v18 = vld [vmem:[#allocation31_spill] sm:$0xff] }
 0x1ff   : > { %v10538_v60 = vpop.f32.mrf.mxu0 }
 0x200   : > { %13422 = vst [vmem:[#allocation40_spill] sm:$0xff] %v10538_v60  ;;  %v10540_v62 = vpop.f32.mrf.mxu1  ;;  %vm271_vm11 = vcmp.ne.s32.totalorder %v266_v49, 0  ;;  %vm274_vm12 = vcmp.lt.s32.totalorder %v266_v49, 0 }
 0x201   : > { %13423 = vst [vmem:[#allocation41_spill] sm:$0xff] %v10540_v62  ;;  %v10542_v17 = vpop.f32.mrf.mxu0  ;;  %vm10579_vm1 = vmand %vm274_vm12, %vm271_vm11  ;;  %vm2226_vm12 = vcmask 150528  }
 0x202   : > { %13424 = vst [vmem:[#allocation42_spill] sm:$0xff] %v10542_v17  ;;  %v10544_v35 = vpop.f32.mrf.mxu1 }
 0x203   : > { %13425 = vst [vmem:[#allocation43_spill] sm:$0xff] %v10544_v35  ;;  %v10546_v16 = vpop.f32.mrf.mxu0  ;;  %v243_v35 = vmul.u32 18, %v242_v46 }
 0x204   : > { %13426 = vst [vmem:[#allocation44_spill] sm:$0xff] %v10546_v16  ;;  %v10549_v5 = vpop.f32.mrf.mxu1  ;;  %v254_v16 = vmul.u32 18, %v253_v51  ;;  %v280_v51 = vadd.s32 18, %v266_v49 }
 0x205   : > { %13427 = vst [vmem:[#allocation45_spill] sm:$0xff] %v10549_v5  ;;  %v10552_v7 = vpop.f32.mrf.mxu0 }
 0x206   : > { %13428 = vst [vmem:[#allocation46_spill] sm:$0xff] %v10552_v7  ;;  %v10555_v61 = vpop.f32.mrf.mxu1  ;;  %v244_v7 = vsub.s32 %v233_v22, %v243_v35  ;;  %v255_v37 = vsub.s32 %v234_v9, %v254_v16 }
 0x207   : > { %13429 = vst [vmem:[#allocation47_spill] sm:$0xff] %v10555_v61  ;;  %v10557_v60 = vpop.f32.mrf.mxu0 }
 0x208   : > { %13430 = vst [vmem:[#allocation48_spill] sm:$0xff] %v10557_v60  ;;  %v10559_v17 = vpop.f32.mrf.mxu1  ;;  %vm269_vm13 = vcmp.ne.s32.totalorder %v244_v7, 0  ;;  %vm272_vm14 = vcmp.lt.s32.totalorder %v244_v7, 0  ;;  %vm270_vm15 = vcmp.ne.s32.totalorder %v255_v37, 0  ;;  %vm273_vm0 = vcmp.lt.s32.totalorder %v255_v37, 0 }
 0x209   : > { %13431 = vst [vmem:[#allocation49_spill] sm:$0xff] %v10559_v17  ;;  %v10561_v31 = vpop.f32.mrf.mxu0  ;;  %v278_v9 = vadd.s32 18, %v244_v7  ;;  %vm10585_vm2 = vmand %vm272_vm14, %vm269_vm13  ;;  %v279_v16 = vadd.s32 18, %v255_v37  ;;  %vm2235_vm14 = vcmask 568728  }
 0x20a   : > { %13432 = vst [vmem:[#allocation50_spill] sm:$0xff] %v10561_v31  ;;  %v10563_v63 = vpop.f32.mrf.mxu1  ;;  %vm10593_vm10 = vmand %vm273_vm0, %vm270_vm15  ;;  %vm2411_vm15 = vcmask 1043608   ;;  %vm2412_vm0 = vcmask 1047556  }
 0x20b   : > { %v10565_v5 = vpop.f32.mrf.mxu0  ;;  %v281_v17 = vsel %vm10585_vm2, %v278_v9, %v244_v7  ;;  %v13454_v9 = vld [vmem:[#allocation41_spill] sm:$0xff]  ;;  %vm10828_vm2 = vmor %vm2412_vm0, %vm2411_vm15  ;;  %vm5198_vm15 = vcmask 90112   ;;  %vm5236_vm0 = vsmask.f32 7938 }
 0x20c   : > { %13433 = vst [vmem:[#allocation51_spill] sm:$0xff] %v10565_v5  ;;  %v10567_v62 = vpop.f32.mrf.mxu1  ;;  %v582_v5 = vadd.f32 %v10381_v12, %v10369_v57  ;;  %v668_v57 = vadd.f32 %v10396_v52, %v10375_v0  ;;  %v282_v0 = vsel %vm10593_vm10, %v279_v16, %v255_v37  ;;  %vm10636_vm10 = vcmp.lt.s32.totalorder %v281_v17, 16 }
 0x20d   : > { %v9477_v25 = vpop.f32.mrf.mxu0  ;;  %vm10654_vm13 = vcmp.lt.s32.totalorder %v282_v0, 16  ;;  %v1550_v17 = vadd.f32 %v10468_v55, %v10424_v26 }
 0x20e   : > { %v10569_v61 = vpop.f32.mrf.mxu1  ;;  %v880_v12 = vadd.f32 %v10400_v11, %v582_v5 }
 0x20f   : > { %13434 = vst [vmem:[#allocation52_spill] sm:$0xff] %v10569_v61  ;;  %v10571_v60 = vpop.f32.mrf.mxu0  ;;  %v602_v61 = vadd.f32 %v10390_v38, %v10383_v14  ;;  %v893_v38 = vadd.f32 %v10402_v30, %v668_v57  ;;  %v13450_v30 = vmov 0   ;;  %v1771_v26 = vadd.f32 %v10498_v59, %v1550_v17  ;;  %v13456_v57 = vld [vmem:[#allocation15_spill] sm:$0xff] }
 0x210   : > { %13435 = vst [vmem:[#allocation53_spill] sm:$0xff] %v10571_v60  ;;  %v10573_v46 = vpop.f32.mrf.mxu1  ;;  %v1101_v52 = vadd.f32 %v10406_v47, %v880_v12  ;;  %2227 = vst.msk [vmem:[#allocation2] sm:$0xf] %vm2226_vm12, %v13450_v30  ;;  %v13457_v12 = vld [vmem:[#allocation32_spill] sm:$0xff] }
 0x211   : > { %13436 = vst [vmem:[#allocation54_spill] sm:$0xff] %v10573_v46  ;;  %v10575_v4 = vpop.f32.mrf.mxu0  ;;  %2228 = vst.msk [vmem:[#allocation2 + $0xc] sm:$0xf] %vm2226_vm12, %v13450_v30  ;;  %v1114_v47 = vadd.f32 %v10420_v19, %v893_v38 }
 0x212   : > { %v10577_v40 = vpop.f32.mrf.mxu1  ;;  %2229 = vst.msk [vmem:[#allocation2 + $0x18] sm:$0xf] %vm2226_vm12, %v13450_v30  ;;  %2230 = vst.msk [vmem:[#allocation2 + $0x24] sm:$0xf] %vm2226_vm12, %v13450_v30  ;;  %v1992_v59 = vadd.f32 %v10575_v4, %v1771_v26 }
 0x213   : > { %13437 = vst [vmem:[#allocation55_spill] sm:$0xff] %v10577_v40  ;;  %v10583_v35 = vpop.f32.mrf.mxu0  ;;  %v592_v40 = vadd.f32 %v10386_v24, %v10377_v1  ;;  %v10614_v1 = vadd.f32 %v10392_v39, %v10367_v56  ;;  %v892_v56 = vadd.f32 %v10408_v13, %v602_v61  ;;  %2231 = vst.msk [vmem:[#allocation2 + $0x30] sm:$0xf] %vm2226_vm12, %v13450_v30 }
 0x214   : > { %13440 = vst [vmem:[#allocation56_spill] sm:$0xff] %v10583_v35  ;;  %v10591_v60 = vpop.f32.mrf.mxu1  ;;  %v283_v35 = vsel %vm10579_vm1, %v280_v51, %v266_v49  ;;  %v1547_v49 = vadd.f32 %v10462_v42, %v10422_v2  ;;  %2232 = vst.msk [vmem:[#allocation2 + $0x3c] sm:$0xf] %vm2226_vm12, %v13450_v30  ;;  %v1322_v13 = vadd.f32 %v10428_v28, %v1101_v52  ;;  %vm2378_vm1 = vcmask 154624  }
 0x215   : > { %13443 = vst [vmem:[#allocation57_spill] sm:$0xff] %v10591_v60  ;;  %v10599_v46 = vpop.f32.mrf.mxu0  ;;  %v886_v24 = vadd.f32 %v10404_v32, %v592_v40  ;;  %vm10627_vm11 = vcmp.lt.s32.totalorder %v283_v35, 16  ;;  %2233 = vst.msk [vmem:[#allocation2 + $0x48] sm:$0xf] %vm2226_vm12, %v13450_v30  ;;  %v10659_v31 = vadd.f32 %v10414_v34, %v892_v56  ;;  %v1335_v28 = vadd.f32 %v10436_v44, %v1114_v47  ;;  %v13461_v47 = vld [vmem:[#allocation34_spill] sm:$0xff] }
 0x216   : > { %v10608_v60 = vpop.f32.mrf.mxu1  ;;  %v1768_v32 = vadd.f32 %v10490_v23, %v1547_v49  ;;  %2234 = vst.msk [vmem:[#allocation2 + $0x54] sm:$0xf] %vm2226_vm12, %v13450_v30  ;;  %v1553_v44 = vadd.f32 %v10480_v21, %v10432_v33  ;;  %v13453_v33 = vld [vmem:[#allocation30_spill] sm:$0xff]  ;;  %v13459_v49 = vld [vmem:[#allocation43_spill] sm:$0xff]  ;;  %vm9978_vm12 = vmmov 0  }
 0x217   : > { %v10619_v14 = vpop.f32.mrf.mxu0  ;;  %v1107_v39 = vadd.f32 %v10410_v8, %v886_v24  ;;  %v1760_v8 = vadd.f32 %v10492_v45, %v10440_v53  ;;  %v1543_v53 = vadd.f32 %v10446_v58, %v1322_v13  ;;  %v1761_v45 = vadd.f32 %v10496_v43, %v10442_v27  ;;  %2238 = vst.msk [vmem:[#allocation2 + $0x20] sm:$0xf] %vm2235_vm14, %v13450_v30 }
 0x218   : > { %v10625_v11 = vpop.f32.mrf.mxu1  ;;  %v1989_v19 = vadd.f32 %v9477_v25, %v1768_v32  ;;  %v1763_v58 = vadd.f32 %v10500_v54, %v10444_v10  ;;  %v13460_v32 = vld [vmem:[#allocation16_spill] sm:$0xff]  ;;  %2236 = vst.msk [vmem:[#allocation2 + $0x8] sm:$0xf] %vm2235_vm14, %v13450_v30  ;;  %2237 = vst.msk [vmem:[#allocation2 + $0x14] sm:$0xf] %vm2235_vm14, %v13450_v30 }
 0x219   : > { %v10634_v2 = vpop.f32.mrf.mxu0  ;;  %v1328_v37 = vadd.f32 %v10438_v6, %v1107_v39  ;;  %v1981_v51 = vadd.f32 %v10526_v41, %v1760_v8  ;;  %v1559_v6 = vadd.f32 %v10476_v15, %v10430_v48  ;;  %v1982_v27 = vadd.f32 %v10536_v29, %v1761_v45  ;;  %2239 = vst.msk [vmem:[#allocation2 + $0x2c] sm:$0xf] %vm2235_vm14, %v13450_v30 }
 0x21a   : > { %v10652_v61 = vpop.f32.mrf.mxu1  ;;  %v1556_v48 = vadd.f32 %v10488_v36, %v1335_v28  ;;  %v1764_v21 = vadd.f32 %v13453_v33, %v1543_v53  ;;  %v1984_v10 = vadd.f32 %v13454_v9, %v1763_v58  ;;  %v1767_v13 = vadd.f32 %v13461_v47, %v13460_v32  ;;  %v13462_v28 = vld [vmem:[#allocation45_spill] sm:$0xff]  ;;  %2240 = vst.msk [vmem:[#allocation2 + $0x38] sm:$0xf] %vm2235_vm14, %v13450_v30 }
 0x21b   : > { %v10664_v5 = vpop.f32.mrf.mxu0  ;;  %v10672_v34 = vadd.f32 %v10456_v3, %v1328_v37  ;;  %v1562_v3 = vadd.f32 %v10484_v20, %v10434_v50  ;;  %v1780_v16 = vadd.f32 %v13455_v18, %v1559_v6  ;;  %v1766_v50 = vadd.f32 %v13457_v12, %v13456_v57  ;;  %v13458_v20 = vld [vmem:[#allocation33_spill] sm:$0xff]  ;;  %v13463_v6 = vld [vmem:[#allocation35_spill] sm:$0xff]  ;;  %2241 = vst.msk [vmem:[#allocation2 + $0x44] sm:$0xf] %vm2235_vm14, %v13450_v30 }
 0x21c   : > { %v9487_v40 = vpop.f32.mrf.mxu1  ;;  %v1774_v36 = vadd.f32 %v13458_v20, %v1553_v44  ;;  %v1985_v0 = vadd.f32 %v13459_v49, %v1764_v21  ;;  %2242 = vst.msk [vmem:[#allocation2 + $0x50] sm:$0xf] %vm2235_vm14, %v13450_v30  ;;  %2243 = vst.msk [vmem:[#allocation2 + $0x5c] sm:$0xf] %vm2235_vm14, %v13450_v30  ;;  %v13470_v49 = vld [vmem:[#allocation17_spill] sm:$0xff] }
 0x21d   : > { %v2210_v55 = vadd.f32 %v9487_v40, %v1989_v19  ;;  %v2098_v25 = vpop.f32.mrf.mxu0  ;;  %v2001_v8 = vadd.f32 %v10599_v46, %v1780_v16  ;;  %v1987_v53 = vadd.f32 %v13462_v28, %v1766_v50  ;;  %v1783_v26 = vadd.f32 %v13463_v6, %v1562_v3  ;;  %v13465_v46 = vld [vmem:[#allocation47_spill] sm:$0xff]  ;;  %v13469_v50 = vld [vmem:[#allocation38_spill] sm:$0xff]  ;;  %v13475_v28 = vld [vmem:[#allocation40_spill] sm:$0xff]  ;;  %5199 = vst.msk [vmem:[#allocation3 + $0x4] sm:$0x1] %vm5198_vm15, %v13450_v30 }
 0x21e   : > { %v2202_v41 = vadd.f32 %v2098_v25, %v1981_v51  ;;  %v10682_v43 = vpop.f32.mrf.mxu1  ;;  %v1995_v44 = vadd.f32 %v10619_v14, %v1774_v36  ;;  %v1988_v14 = vadd.f32 %v13465_v46, %v1767_v13  ;;  %v1770_v20 = vadd.f32 %v13469_v50, %v10672_v34  ;;  %v13476_v6 = vld [vmem:[#allocation22_spill] sm:$0xff]  ;;  %v13486_v50 = vld [vmem:[#allocation12_spill] sm:$0xff]  ;;  %5202 = vst.msk [vmem:[#allocation3 + $0x4c] sm:$0x1] %vm5198_vm15, %v13450_v30 }
 0x21f   : > { %v2258_v15 = vsel %vm10627_vm11, %v2210_v55, 0.0  ;;  %v2100_v22 = vpop.f32.mrf.mxu0  ;;  %v13464_v55 = vld [vmem:[#allocation37_spill] sm:$0xff]  ;;  %v13479_v46 = vld [vmem:[#allocation42_spill] sm:$0xff] }
 0x220   : > { %v9112_v54 = vpack.c.bf16 %v2258_v15, %v2258_v15  ;;  %v2203_v29 = vadd.f32 %v2100_v22, %v1982_v27  ;;  %v9488_v35 = vpop.f32.mrf.mxu1  ;;  %v2250_v38 = vsel %vm10636_vm10, %v2202_v41, 0.0  ;;  %v1777_v25 = vadd.f32 %v13464_v55, %v1556_v48  ;;  %v13477_v55 = vld [vmem:[#allocation49_spill] sm:$0xff] }
 0x221   : > { %v2213_v24 = vadd.f32 %v9488_v35, %v1992_v59  ;;  %v2102_v4 = vpop.f32.mrf.mxu0  ;;  %v2004_v15 = vadd.f32 %v10634_v2, %v1783_v26  ;;  %v13468_v35 = vld [vmem:[#allocation14_spill] sm:$0xff] }
 0x222   : > { %v2251_v52 = vsel %vm10654_vm13, %v2203_v29, 0.0  ;;  %v2205_v56 = vadd.f32 %v2102_v4, %v1984_v10  ;;  %2348 = vrot.lane.b32.xlu0 %v9112_v54, %s9976_s25  ;;  %v10702_v39 = vpop.f32.mrf.mxu1  ;;  %v13466_v10 = vld [vmem:[#allocation7_spill] sm:$0xff]  ;;  %v13467_v54 = vld [vmem:[#allocation8_spill] sm:$0xff]  ;;  %v1334_v18 = vadd.f32 %v13468_v35, %v10659_v31  ;;  %v1998_v2 = vadd.f32 %v10664_v5, %v1777_v25 }
 0x223   : > { %v9107_v37 = vpack.c.bf16 %v2251_v52, %v2250_v38  ;;  %v2261_v17 = vsel %vm10627_vm11, %v2213_v24, 0.0  ;;  %v2104_v19 = vpop.f32.mrf.mxu0  ;;  %v612_v29 = vadd.f32 %v13467_v54, %v13466_v10  ;;  %v13472_v52 = vld [vmem:[#allocation19_spill] sm:$0xff]  ;;  %v1991_v5 = vadd.f32 %v10563_v63, %v1770_v20  ;;  %v13484_v54 = vld [vmem:[#allocation54_spill] sm:$0xff] }
 0x224   : > { %v9114_v45 = vpack.c.bf16 %v2261_v17, %v2261_v17  ;;  %v2206_v51 = vadd.f32 %v2104_v19, %v1985_v0  ;;  %v9491_v40 = vpop.f32.mrf.mxu1  ;;  %v2253_v41 = vsel %vm10636_vm10, %v2205_v56, 0.0  ;;  %v13471_v0 = vld [vmem:[#allocation36_spill] sm:$0xff]  ;;  %v13473_v56 = vld [vmem:[#allocation39_spill] sm:$0xff]  ;;  %v1555_v26 = vadd.f32 %v13476_v6, %v1334_v18 }
 0x225   : > { %v2222_v58 = vadd.f32 %v9491_v40, %v2001_v8  ;;  %v2108_v27 = vpop.f32.mrf.mxu0  ;;  %v1769_v38 = vadd.f32 %v13471_v0, %v13470_v49  ;;  %v1772_v32 = vadd.f32 %v13473_v56, %v13472_v52  ;;  %v13474_v19 = vld [vmem:[#allocation20_spill] sm:$0xff]  ;;  %v13490_v56 = vld [vmem:[#allocation13_spill] sm:$0xff] }
 0x226   : > { %v2254_v3 = vsel %vm10654_vm13, %v2206_v51, 0.0  ;;  %v2208_v48 = vadd.f32 %v2108_v27, %v1987_v53  ;;  %2352 = vrot.lane.b32.xlu1 %v9114_v45, %s9976_s25  ;;  %v2187_v59 = vpop.f32.mrf.mxu1  ;;  %2338 = vrot.lane.b32.xlu0 %v9107_v37, %s9976_s25  ;;  %v1773_v53 = vadd.f32 %v13475_v28, %v13474_v19  ;;  %v13478_v27 = vld [vmem:[#allocation21_spill] sm:$0xff] }
 0x227   : > { %v9109_v22 = vpack.c.bf16 %v2254_v3, %v2253_v41  ;;  %v2270_v33 = vsel %vm10627_vm11, %v2222_v58, 0.0  ;;  %v2216_v21 = vadd.f32 %v2187_v59, %v1995_v44  ;;  %v2110_v9 = vpop.f32.mrf.mxu0  ;;  %v1993_v45 = vadd.f32 %v10567_v62, %v1772_v32  ;;  %v13480_v41 = vld [vmem:[#allocation52_spill] sm:$0xff]  ;;  %v13481_v62 = vld [vmem:[#allocation9_spill] sm:$0xff] }
 0x228   : > { %v9120_v16 = vpack.c.bf16 %v2270_v33, %v2270_v33  ;;  %v2209_v57 = vadd.f32 %v2110_v9, %v1988_v14  ;;  %v9492_v12 = vpop.f32.mrf.mxu1  ;;  %v2256_v31 = vsel %vm10636_vm10, %v2208_v48, 0.0  ;;  %v1990_v25 = vadd.f32 %v13477_v55, %v1769_v38  ;;  %v13483_v9 = vld [vmem:[#allocation44_spill] sm:$0xff]  ;;  %v13494_v28 = vld [vmem:[#allocation57_spill] sm:$0xff]  ;;  %v13497_v55 = vld [vmem:[#allocation26_spill] sm:$0xff] }
 0x229   : > { %v2264_v36 = vsel %vm10627_vm11, %v2216_v21, 0.0  ;;  %v2225_v24 = vadd.f32 %v9492_v12, %v2004_v15  ;;  %v2112_v4 = vpop.f32.mrf.mxu0  ;;  %v1775_v14 = vadd.f32 %v13479_v46, %v13478_v27  ;;  %v1994_v3 = vadd.f32 %v13480_v41, %v1773_v53  ;;  %v13482_v15 = vld [vmem:[#allocation10_spill] sm:$0xff] }
 0x22a   : > { %v2257_v47 = vsel %vm10654_vm13, %v2209_v57, 0.0  ;;  %v2190_v34 = vpop.f32.mrf.mxu1  ;;  %2342 = vrot.lane.b32.xlu1 %v9109_v22, %s9976_s25  ;;  %2364 = vrot.lane.b32.xlu0 %v9120_v16, %s9976_s25  ;;  %v9116_v51 = vpack.c.bf16 %v2264_v36, %v2264_v36  ;;  %v881_v59 = vadd.f32 %v13481_v62, %v10614_v1  ;;  %v898_v22 = vadd.f32 %v13482_v15, %v612_v29  ;;  %v13485_v57 = vld [vmem:[#allocation11_spill] sm:$0xff]  ;;  %v13488_v36 = vld [vmem:[#allocation46_spill] sm:$0xff]  ;;  %v13501_v62 = vld [vmem:[#allocation29_spill] sm:$0xff] }
 0x22b   : > { %v9111_v13 = vpack.c.bf16 %v2257_v47, %v2256_v31  ;;  %v2273_v8 = vsel %vm10627_vm11, %v2225_v24, 0.0  ;;  %v2219_v37 = vadd.f32 %v2190_v34, %v1998_v2  ;;  %v2114_v17 = vpop.f32.mrf.mxu0  ;;  %v2211_v33 = vadd.f32 %v2112_v4, %v1990_v25  ;;  %v13487_v2 = vld [vmem:[#allocation24_spill] sm:$0xff]  ;;  %v13489_v29 = vld [vmem:[#allocation55_spill] sm:$0xff]  ;;  %v13491_v31 = vld [vmem:[#allocation18_spill] sm:$0xff] }
 0x22c   : > { %v9122_v40 = vpack.c.bf16 %v2273_v8, %v2273_v8  ;;  %v2212_v44 = vadd.f32 %v2114_v17, %v1991_v5  ;;  %v1776_v10 = vadd.f32 %v13483_v9, %v1555_v26  ;;  %v1996_v35 = vadd.f32 %v13484_v54, %v1775_v14  ;;  %v13493_v17 = vld [vmem:[#allocation48_spill] sm:$0xff]  ;;  %v13496_v26 = vld [vmem:[#allocation27_spill] sm:$0xff]  ;;  %v13498_v25 = vld [vmem:[#allocation50_spill] sm:$0xff] }
 0x22d   : > { %v2267_v63 = vsel %vm10627_vm11, %v2219_v37, 0.0  ;;  %v2118_v58 = vpop.f32.mrf.mxu0  ;;  %v1102_v12 = vadd.f32 %v13485_v57, %v881_v59  ;;  %v1119_v20 = vadd.f32 %v13486_v50, %v898_v22  ;;  %v1778_v24 = vadd.f32 %v13488_v36, %v13487_v2  ;;  %v13492_v37 = vld [vmem:[#allocation25_spill] sm:$0xff]  ;;  %v13503_v54 = vld [vmem:[#allocation56_spill] sm:$0xff] }
 0x22e   : > { %v2214_v48 = vadd.f32 %v2118_v58, %v1993_v45  ;;  %2368 = vrot.lane.b32.xlu1 %v9122_v40, %s9976_s25  ;;  %2356 = vrot.lane.b32.xlu0 %v9116_v51, %s9976_s25  ;;  %v9118_v18 = vpack.c.bf16 %v2267_v63, %v2267_v63  ;;  %v2260_v1 = vsel %vm10654_vm13, %v2212_v44, 0.0  ;;  %v1997_v4 = vadd.f32 %v13489_v29, %v1776_v10  ;;  %v13495_v40 = vld [vmem:[#allocation23_spill] sm:$0xff]  ;;  %v13499_v44 = vld [vmem:[#allocation28_spill] sm:$0xff]  ;;  %v13500_v58 = vld [vmem:[#allocation53_spill] sm:$0xff] }
 0x22f   : > { %v2120_v21 = vpop.f32.mrf.mxu0  ;;  %v1323_v32 = vadd.f32 %v13490_v56, %v1102_v12  ;;  %v1340_v47 = vadd.f32 %v13491_v31, %v1119_v20  ;;  %v2259_v34 = vsel %vm10636_vm10, %v2211_v33, 0.0  ;;  %v1779_v19 = vadd.f32 %v13493_v17, %v13492_v37  ;;  %v13502_v33 = vld [vmem:[#allocation51_spill] sm:$0xff] }
 0x230   : > { %v2215_v16 = vadd.f32 %v2120_v21, %v1994_v3  ;;  %v2262_v0 = vsel %vm10636_vm10, %v2214_v48, 0.0  ;;  %v1999_v53 = vadd.f32 %v13494_v28, %v1778_v24  ;;  %v9113_v45 = vpack.c.bf16 %v2260_v1, %v2259_v34 }
 0x231   : > { %v2122_v49 = vpop.f32.mrf.mxu0  ;;  %v1544_v6 = vadd.f32 %v13495_v40, %v1323_v32  ;;  %v1781_v63 = vadd.f32 %v13498_v25, %v13497_v55  ;;  %v1983_v27 = vadd.f32 %v13500_v58, %v13499_v44  ;;  %v2000_v14 = vadd.f32 %v10608_v60, %v1779_v19 }
 0x232   : > { %v2263_v38 = vsel %vm10654_vm13, %v2215_v16, 0.0  ;;  %v2217_v52 = vadd.f32 %v2122_v49, %v1996_v35  ;;  %2360 = vrot.lane.b32.xlu1 %v9118_v18, %s9976_s25  ;;  %2346 = vrot.lane.b32.xlu0 %v9111_v13, %s9976_s25  ;;  %v1561_v13 = vadd.f32 %v13496_v26, %v1340_v47  ;;  %v9977_v1 = vmov 0.0  }
 0x233   : > { %v9115_v5 = vpack.c.bf16 %v2263_v38, %v2262_v0  ;;  %v2124_v8 = vpop.f32.mrf.mxu0  ;;  %v1765_v59 = vadd.f32 %v13501_v62, %v1544_v6  ;;  %v2002_v9 = vadd.f32 %v10625_v11, %v1781_v63  ;;  %v2204_v60 = vadd.f32 %v10682_v43, %v1983_v27  ;;  %9493 = vmatprep.subr.bf16.mxu0 %v9977_v1 }
 0x234   : > { %v2218_v51 = vadd.f32 %v2124_v8, %v1997_v4  ;;  %v2265_v41 = vsel %vm10636_vm10, %v2217_v52, 0.0  ;;  %v1782_v21 = vadd.f32 %v13502_v33, %v1561_v13  ;;  %9501 = vmatprep.mubr.msk.bf16.mxu0 %vm9978_vm12, %v9977_v1 }
 0x235   : > { %v2128_v46 = vpop.f32.mrf.mxu0  ;;  %v1986_v35 = vadd.f32 %v13503_v54, %v1765_v59  ;;  %v2252_v11 = vsel %vm10627_vm11, %v2204_v60, 0.0 }
 0x236   : > { %v2266_v3 = vsel %vm10654_vm13, %v2218_v51, 0.0  ;;  %v2220_v48 = vadd.f32 %v2128_v46, %v1999_v53  ;;  %2350 = vrot.lane.b32.xlu1 %v9113_v45, %s9976_s25  ;;  %2354 = vrot.lane.b32.xlu0 %v9115_v5, %s9976_s25  ;;  %v2003_v16 = vadd.f32 %v10652_v61, %v1782_v21  ;;  %v9108_v49 = vpack.c.bf16 %v2252_v11, %v2252_v11 }
 0x237   : > { %v9117_v15 = vpack.c.bf16 %v2266_v3, %v2265_v41  ;;  %v2130_v22 = vpop.f32.mrf.mxu0  ;;  %v2207_v43 = vadd.f32 %v10702_v39, %v1986_v35 }
 0x238   : > { %v2221_v10 = vadd.f32 %v2130_v22, %v2000_v14  ;;  %v2268_v57 = vsel %vm10636_vm10, %v2220_v48, 0.0 }
 0x239   : > { %v2132_v18 = vpop.f32.mrf.mxu0  ;;  %v2255_v4 = vsel %vm10627_vm11, %v2207_v43, 0.0  ;;  %vm2415_vm11 = vcmask 412672  }
 0x23a   : > { %v2269_v12 = vsel %vm10654_vm13, %v2221_v10, 0.0  ;;  %v2223_v50 = vadd.f32 %v2132_v18, %v2002_v9  ;;  %2358 = vrot.lane.b32.xlu1 %v9117_v15, %s9976_s25  ;;  %v9110_v39 = vpack.c.bf16 %v2255_v4, %v2255_v4 }
 0x23b   : > { %v9119_v20 = vpack.c.bf16 %v2269_v12, %v2268_v57  ;;  %v2134_v2 = vpop.f32.mrf.mxu0 }
 0x23c   : > { %v2224_v36 = vadd.f32 %v2134_v2, %v2003_v16  ;;  %v2271_v61 = vsel %vm10636_vm10, %v2223_v50, 0.0  ;;  %vm2512_vm10 = vcmask 523264  }
 0x23d   : > { %2362 = vrot.lane.b32.xlu0 %v9119_v20, %s9976_s25 }
 0x23e   : > { %v2272_v24 = vsel %vm10654_vm13, %v2224_v36, 0.0 }
 0x23f   : > { %v9121_v29 = vpack.c.bf16 %v2272_v24, %v2271_v61 }
 0x241   : > { %2366 = vrot.lane.b32.xlu1 %v9121_v29, %s9976_s25  ;;  %2340 = vrot.lane.b32.xlu0 %v9108_v49, %s9976_s25 }
 0x245   : > { %2344 = vrot.lane.b32.xlu1 %v9110_v39, %s9976_s25  ;;  %v2431_v39 = vld [vmem:[%s13337_s2] sm:$0x3] }
 0x294   : > { %v2349_v42 = vpop.permute.xlu0 %2348 }
 0x298   : > { %v2353_v23 = vpop.permute.xlu1 %2352  ;;  %v2339_v0 = vpop.permute.xlu0 %2338 }
 0x299   : > { %v2370_v52 = vrot.slane %v2339_v0, 4 }
 0x29b   : > { %v2379_v7 = vsel %vm2378_vm1, %v2370_v52, %v2339_v0 }
 0x29c   : > { %2414 = vst.msk [vmem:[#allocation2] sm:$0xff] %vm10828_vm2, %v2379_v7  ;;  %v2343_v56 = vpop.permute.xlu1 %2342  ;;  %v2365_v32 = vpop.permute.xlu0 %2364 }
 0x29d   : > { %v2371_v31 = vrot.slane %v2343_v56, 4 }
 0x29f   : > { %v2381_v47 = vsel %vm2378_vm1, %v2371_v31, %v2343_v56 }
 0x2a0   : > { %2417 = vst.msk [vmem:[#allocation2 + $0xc] sm:$0xff] %vm10828_vm2, %v2381_v47  ;;  %v2369_v34 = vpop.permute.xlu1 %2368  ;;  %v2357_v5 = vpop.permute.xlu0 %2356 }
 0x2a3   : > { %v2615_v13 = vld [vmem:[#allocation2] sm:$0xff] }
 0x2a4   : > { %v2361_v8 = vpop.permute.xlu1 %2360  ;;  %v2347_v37 = vpop.permute.xlu0 %2346 }
 0x2a5   : > { %v2372_v17 = vrot.slane %v2347_v37, 4 }
 0x2a7   : > { %v2383_v19 = vsel %vm2378_vm1, %v2372_v17, %v2347_v37  ;;  %v2384_v28 = vsel %vm2378_vm1, %v2372_v17, %v2349_v42  ;;  %v2617_v53 = vld [vmem:[#allocation2 + $0xc] sm:$0xff] }
 0x2a8   : > { %v10840_v45 = vld [vmem:[#allocation2 + $0x4] ss:$12 sps:$4 sm:$0xff]   ;;  %2419 = vst.msk [vmem:[#allocation2 + $0x18] sm:$0xff] %vm10828_vm2, %v2383_v19  ;;  %v2351_v51 = vpop.permute.xlu1 %2350  ;;  %v2355_v40 = vpop.permute.xlu0 %2354  ;;  %v10847_v55 = vcombine.low %v2615_v13, %v2617_v53 }
 0x2a9   : > { %2420 = vst.msk [vmem:[#allocation2 + $0x20] sm:$0xf] %vm2415_vm11, %v2384_v28  ;;  %v2373_v6 = vrot.slane %v2351_v51, 4  ;;  %v2374_v26 = vrot.slane %v2355_v40, 4  ;;  %2685 = vrot.lane.b32.xlu1 %v10840_v45, %s9967_s12 }
 0x2ab   : > { %v2385_v25 = vsel %vm2378_vm1, %v2373_v6, %v2351_v51  ;;  %v2386_v63 = vsel %vm2378_vm1, %v2373_v6, %v2353_v23  ;;  %v2387_v44 = vsel %vm2378_vm1, %v2374_v26, %v2355_v40  ;;  %v2388_v58 = vsel %vm2378_vm1, %v2374_v26, %v2357_v5 }
 0x2ac   : > { %2421 = vst.msk [vmem:[#allocation2 + $0x24] sm:$0xff] %vm10828_vm2, %v2385_v25  ;;  %2423 = vst.msk [vmem:[#allocation2 + $0x30] sm:$0xff] %vm10828_vm2, %v2387_v44  ;;  %v2359_v27 = vpop.permute.xlu1 %2358 }
 0x2ad   : > { %2422 = vst.msk [vmem:[#allocation2 + $0x2c] sm:$0xf] %vm2415_vm11, %v2386_v63  ;;  %2424 = vst.msk [vmem:[#allocation2 + $0x38] sm:$0xf] %vm2415_vm11, %v2388_v58  ;;  %v2375_v46 = vrot.slane %v2359_v27, 4  ;;  %2683 = vrot.lane.b32.xlu1 %v10847_v55, %s9967_s12 }
 0x2af   : > { %v2389_v14 = vsel %vm2378_vm1, %v2375_v46, %v2359_v27  ;;  %v2390_v41 = vsel %vm2378_vm1, %v2375_v46, %v2361_v8  ;;  %v2363_v3 = vpop.permute.xlu0 %2362 }
 0x2b0   : > { %2425 = vst.msk [vmem:[#allocation2 + $0x3c] sm:$0xff] %vm10828_vm2, %v2389_v14  ;;  %v2376_v48 = vrot.slane %v2363_v3, 4 }
 0x2b1   : > { %2426 = vst.msk [vmem:[#allocation2 + $0x44] sm:$0xf] %vm2415_vm11, %v2390_v41  ;;  %2898 = vrot.lane.b32.xlu1 %v10840_v45, %s9968_s13 }
 0x2b2   : > { %v2391_v62 = vsel %vm2378_vm1, %v2376_v48, %v2363_v3  ;;  %v2392_v59 = vsel %vm2378_vm1, %v2376_v48, %v2365_v32 }
 0x2b3   : > { %2427 = vst.msk [vmem:[#allocation2 + $0x48] sm:$0xff] %vm10828_vm2, %v2391_v62  ;;  %v2367_v15 = vpop.permute.xlu1 %2366  ;;  %v2341_v22 = vpop.permute.xlu0 %2340  ;;  %v10903_v36 = vld [vmem:[#allocation2 + $0x1c] ss:$12 sps:$4 sm:$0xff]   ;;  %v10906_v61 = vld [vmem:[#allocation2 + $0x18] ss:$12 sps:$4 sm:$0xff]  }
 0x2b4   : > { %2428 = vst.msk [vmem:[#allocation2 + $0x50] sm:$0xf] %vm2415_vm11, %v2392_v59  ;;  %v2377_v33 = vrot.slane %v2367_v15, 4  ;;  %v2380_v21 = vsel %vm2378_vm1, %v2370_v52, %v2341_v22  ;;  %v9808_v35 = vld [vmem:[#allocation2 + $0x20] ss:$12 sps:$4 sm:$0xff]  }
 0x2b5   : > { %2416 = vst.msk [vmem:[#allocation2 + $0x8] sm:$0xf] %vm2415_vm11, %v2380_v21  ;;  %2896 = vrot.lane.b32.xlu1 %v10847_v55, %s9968_s13  ;;  %v9814_v20 = vld [vmem:[#allocation2 + $0x20] ss:$12 sps:$4 sm:$0xff]  }
 0x2b6   : > { %v2393_v9 = vsel %vm2378_vm1, %v2377_v33, %v2367_v15  ;;  %v2394_v60 = vsel %vm2378_vm1, %v2377_v33, %v2369_v34  ;;  %v9819_v24 = vld [vmem:[#allocation2 + $0x20] ss:$12 sps:$4 sm:$0xff]  }
 0x2b7   : > { %2429 = vst.msk [vmem:[#allocation2 + $0x54] sm:$0xff] %vm10828_vm2, %v2393_v9  ;;  %v2345_v10 = vpop.permute.xlu1 %2344  ;;  %v10894_v50 = vld [vmem:[#allocation2 + $0x34] ss:$12 sps:$4 sm:$0xff]   ;;  %v10898_v2 = vld [vmem:[#allocation2 + $0x30] ss:$12 sps:$4 sm:$0xff]   ;;  %vm11500_vm2 = vmand %vm5198_vm15, %vm5236_vm0 }
 0x2b8   : > { %2430 = vst.msk [vmem:[#allocation2 + $0x5c] sm:$0xf] %vm2415_vm11, %v2394_v60  ;;  %v2382_v54 = vsel %vm2378_vm1, %v2371_v31, %v2345_v10  ;;  %v9813_v11 = vld [vmem:[#allocation2 + $0x38] ss:$12 sps:$4 sm:$0xff]   ;;  %v9820_v49 = vld [vmem:[#allocation2 + $0x20] ss:$12 sps:$4 sm:$0xff]  }
 0x2b9   : > { %2418 = vst.msk [vmem:[#allocation2 + $0x14] sm:$0xf] %vm2415_vm11, %v2382_v54  ;;  %3111 = vrot.lane.b32.xlu1 %v10840_v45, %s9969_s14  ;;  %v9824_v23 = vld [vmem:[#allocation2 + $0x38] ss:$12 sps:$4 sm:$0xff]   ;;  %v9827_v52 = vld [vmem:[#allocation2 + $0x20] ss:$12 sps:$4 sm:$0xff]  }
 0x2ba   : > { %v9825_v0 = vld [vmem:[#allocation2 + $0x38] ss:$12 sps:$4 sm:$0xff]   ;;  %v9832_v47 = vld [vmem:[#allocation2 + $0x20] ss:$12 sps:$4 sm:$0xff]   ;;  %vm5736_vm11 = vcmask 16384  }
 0x2bb   : > { %v9826_v38 = vld [vmem:[#allocation2 + $0x38] ss:$12 sps:$4 sm:$0xff]   ;;  %v9837_v51 = vld [vmem:[#allocation2 + $0x20] ss:$12 sps:$4 sm:$0xff]  }
 0x2bc   : > { %v9829_v56 = vld [vmem:[#allocation2 + $0x38] ss:$12 sps:$4 sm:$0xff]   ;;  %v9840_v41 = vld [vmem:[#allocation2 + $0x20] ss:$12 sps:$4 sm:$0xff]  }
 0x2bd   : > { %3109 = vrot.lane.b32.xlu1 %v10847_v55, %s9969_s14  ;;  %v9833_v34 = vld [vmem:[#allocation2 + $0x38] ss:$12 sps:$4 sm:$0xff]  }
 0x2be   : > { %v10888_v18 = vld [vmem:[#allocation2 + $0x48] ss:$12 sps:$4 sm:$0xff]   ;;  %v10890_v16 = vld [vmem:[#allocation2 + $0x4c] ss:$12 sps:$4 sm:$0xff]  }
 0x2bf   : > { %v9807_v57 = vld [vmem:[#allocation2 + $0x50] ss:$12 sps:$4 sm:$0xff]   ;;  %2524 = vmatprep.subr.bf16.mxu1 %v10890_v16  ;;  %v9838_v6 = vld [vmem:[#allocation2 + $0x38] ss:$12 sps:$4 sm:$0xff]  }
 0x2c0   : > { %v9812_v12 = vld [vmem:[#allocation2 + $0x8] ss:$12 sps:$4 sm:$0xff]   ;;  %9494 = vmatpush3.bf16.msra.mxu0 %v9807_v57  ;;  %2525 = vmatpush1.bf16.msra.mxu1 %v10888_v18  ;;  %v9823_v42 = vld [vmem:[#allocation2 + $0x50] ss:$12 sps:$4 sm:$0xff]   ;;  %v9843_v60 = vld [vmem:[#allocation2 + $0x38] ss:$12 sps:$4 sm:$0xff]  }
 0x2c1   : > { %2693 = vrot.lane.b32.xlu1 %v9808_v35, %s9967_s12  ;;  %2687 = vrot.lane.b32.xlu0 %v9812_v12, %s9967_s12  ;;  %v9818_v43 = vld [vmem:[#allocation2 + $0x8] ss:$12 sps:$4 sm:$0xff]   ;;  %v9828_v7 = vld [vmem:[#allocation2 + $0x50] ss:$12 sps:$4 sm:$0xff]  }
 0x2c2   : > { %2526 = vmatprep.subr.bf16.mxu1 %v10894_v50  ;;  %9495 = vmatprep.subr.bf16.mxu0 %v9977_v1  ;;  %v9821_v29 = vld [vmem:[#allocation2 + $0x8] ss:$12 sps:$4 sm:$0xff]   ;;  %v9830_v32 = vld [vmem:[#allocation2 + $0x50] ss:$12 sps:$4 sm:$0xff]  }
 0x2c3   : > { %v9822_v4 = vld [vmem:[#allocation2 + $0x8] ss:$12 sps:$4 sm:$0xff]   ;;  %v9834_v5 = vld [vmem:[#allocation2 + $0x50] ss:$12 sps:$4 sm:$0xff]  }
 0x2c4   : > { %9496 = vmatpush3.bf16.msra.mxu0 %v9813_v11  ;;  %2527 = vmatpush1.bf16.msra.mxu1 %v10898_v2  ;;  %v9831_v31 = vld [vmem:[#allocation2 + $0x8] ss:$12 sps:$4 sm:$0xff]   ;;  %v9835_v19 = vld [vmem:[#allocation2 + $0x50] ss:$12 sps:$4 sm:$0xff]  }
 0x2c5   : > { %2906 = vrot.lane.b32.xlu1 %v9814_v20, %s9968_s13  ;;  %2900 = vrot.lane.b32.xlu0 %v9818_v43, %s9968_s13  ;;  %v9836_v28 = vld [vmem:[#allocation2 + $0x8] ss:$12 sps:$4 sm:$0xff]   ;;  %v9839_v25 = vld [vmem:[#allocation2 + $0x50] ss:$12 sps:$4 sm:$0xff]  }
 0x2c6   : > { %2528 = vmatprep.subr.bf16.mxu1 %v10903_v36  ;;  %9497 = vmatprep.subr.bf16.mxu0 %v9977_v1  ;;  %v9841_v62 = vld [vmem:[#allocation2 + $0x50] ss:$12 sps:$4 sm:$0xff]   ;;  %v9842_v15 = vld [vmem:[#allocation2 + $0x8] ss:$12 sps:$4 sm:$0xff]  }
 0x2c7   : > { %v9844_v57 = vld [vmem:[#allocation2 + $0x50] ss:$12 sps:$4 sm:$0xff]  }
 0x2c8   : > { %9498 = vmatpush3.bf16.msra.mxu0 %v9819_v24  ;;  %2529 = vmatpush1.bf16.msra.mxu1 %v10906_v61  ;;  %v9845_v24 = vld [vmem:[#allocation2 + $0x20] ss:$12 sps:$4 sm:$0xff]  }
 0x2c9   : > { %3119 = vrot.lane.b32.xlu1 %v9820_v49, %s9969_s14  ;;  %3113 = vrot.lane.b32.xlu0 %v9821_v29, %s9969_s14 }
 0x2ca   : > { %2530 = vmatprep.subr.bf16.mxu1 %v10840_v45  ;;  %9499 = vmatprep.subr.bf16.mxu0 %v9977_v1 }
 0x2cc   : > { %9500 = vmatpush3.bf16.msra.mxu0 %v9822_v4  ;;  %2531 = vmatpush1.bf16.msra.mxu1 %v10847_v55 }
 0x2cd   : > { %2697 = vrot.lane.b32.xlu1 %v10894_v50, %s9967_s12  ;;  %2691 = vrot.lane.b32.xlu0 %v10903_v36, %s9967_s12 }
 0x2ce   : > { %9505 = vmatprep.subr.bf16.mxu0 %v9977_v1 }
 0x2cf   : > { %9502 = vmatmul.mubr.msk.bf16.vlgmr.msra.gmra.mxu0 %vm2512_vm10, %v2431_v39  ;;  %8706 = vmatmul.mubr.msk.bf16.vlgmr.msra.gmra.mxu1 %vm2512_vm10, %v2431_v39 }
 0x2d0   : > { %9513 = vmatprep.mubr.msk.bf16.mxu0 %vm9978_vm12, %v9977_v1  ;;  %2762 = vmatprep.mubr.bf16.mxu1 %v13450_v30 }
 0x2d1   : > { %2695 = vrot.lane.b32.xlu1 %v10898_v2, %s9967_s12  ;;  %2689 = vrot.lane.b32.xlu0 %v10906_v61, %s9967_s12 }
 0x2d5   : > { %2910 = vrot.lane.b32.xlu1 %v10894_v50, %s9968_s13  ;;  %2904 = vrot.lane.b32.xlu0 %v10903_v36, %s9968_s13 }
 0x2d9   : > { %2908 = vrot.lane.b32.xlu1 %v10898_v2, %s9968_s13  ;;  %2902 = vrot.lane.b32.xlu0 %v10906_v61, %s9968_s13 }
 0x2dd   : > { %3123 = vrot.lane.b32.xlu1 %v10894_v50, %s9969_s14  ;;  %3117 = vrot.lane.b32.xlu0 %v10903_v36, %s9969_s14 }
 0x2e1   : > { %3121 = vrot.lane.b32.xlu1 %v10898_v2, %s9969_s14  ;;  %3115 = vrot.lane.b32.xlu0 %v10906_v61, %s9969_s14 }
 0x2e5   : > { %2705 = vrot.lane.b32.xlu1 %v9823_v42, %s9967_s12  ;;  %2699 = vrot.lane.b32.xlu0 %v9824_v23, %s9967_s12  ;;  %v9846_v23 = vld [vmem:[#allocation2 + $0x8] ss:$12 sps:$4 sm:$0xff]  }
 0x2e9   : > { %3336 = vrot.lane.b32.xlu1 %v10894_v50, %s9970_s15  ;;  %2912 = vrot.lane.b32.xlu0 %v9825_v0, %s9968_s13  ;;  %v11127_v0 = vld [vmem:[%s13337_s2 + $0x2] sm:$0x3] }
 0x2ed   : > { %3334 = vrot.lane.b32.xlu1 %v10898_v2, %s9970_s15  ;;  %3125 = vrot.lane.b32.xlu0 %v9826_v38, %s9969_s14 }
 0x2f1   : > { %3332 = vrot.lane.b32.xlu1 %v9827_v52, %s9970_s15  ;;  %2703 = vrot.lane.b32.xlu0 %v10890_v16, %s9967_s12 }
 0x2f5   : > { %2918 = vrot.lane.b32.xlu1 %v9828_v7, %s9968_s13  ;;  %3338 = vrot.lane.b32.xlu0 %v9829_v56, %s9970_s15  ;;  %v9847_v7 = vld [vmem:[#allocation2 + $0x38] ss:$12 sps:$4 sm:$0xff]  }
 0x2f9   : > { %3324 = vrot.lane.b32.xlu1 %v10840_v45, %s9970_s15  ;;  %3330 = vrot.lane.b32.xlu0 %v10903_v36, %s9970_s15 }
 0x2fd   : > { %3322 = vrot.lane.b32.xlu1 %v10847_v55, %s9970_s15  ;;  %3328 = vrot.lane.b32.xlu0 %v10906_v61, %s9970_s15 }
 0x301   : > { %3549 = vrot.lane.b32.xlu1 %v10894_v50, %s9971_s16  ;;  %2701 = vrot.lane.b32.xlu0 %v10888_v18, %s9967_s12  ;;  %s13506_s12 = smov 90  }
 0x305   : > { %3131 = vrot.lane.b32.xlu1 %v9830_v32, %s9969_s14  ;;  %2916 = vrot.lane.b32.xlu0 %v10890_v16, %s9968_s13 }
 0x309   : > { %3547 = vrot.lane.b32.xlu1 %v10898_v2, %s9971_s16  ;;  %3326 = vrot.lane.b32.xlu0 %v9831_v31, %s9970_s15 }
 0x30d   : > { %3545 = vrot.lane.b32.xlu1 %v9832_v47, %s9971_s16  ;;  %3551 = vrot.lane.b32.xlu0 %v9833_v34, %s9971_s16 }
 0x311   : > { %3537 = vrot.lane.b32.xlu1 %v10840_v45, %s9971_s16  ;;  %2914 = vrot.lane.b32.xlu0 %v10888_v18, %s9968_s13 }
 0x315   : > { %3344 = vrot.lane.b32.xlu1 %v9834_v5, %s9970_s15  ;;  %3129 = vrot.lane.b32.xlu0 %v10890_v16, %s9969_s14 }
 0x319   : > { %3535 = vrot.lane.b32.xlu1 %v10847_v55, %s9971_s16  ;;  %3543 = vrot.lane.b32.xlu0 %v10903_v36, %s9971_s16 }
 0x31b   : > { %v10996_v8 = vpop.permute.xlu1 %2685 }
 0x31d   : > { %3762 = vrot.lane.b32.xlu1 %v10894_v50, %s9972_s17  ;;  %3541 = vrot.lane.b32.xlu0 %v10906_v61, %s9971_s16 }
 0x31f   : > { %v11002_v37 = vpop.permute.xlu1 %2683 }
 0x321   : > { %3760 = vrot.lane.b32.xlu1 %v10898_v2, %s9972_s17  ;;  %3127 = vrot.lane.b32.xlu0 %v10888_v18, %s9969_s14  ;;  %s13292_s14 = scalar_lea.hbm %s13340_s5, %s9267_s26 }
 0x323   : > { %v11008_v17 = vpop.permute.xlu1 %2898 }
 0x325   : > { %3557 = vrot.lane.b32.xlu1 %v9835_v19, %s9971_s16  ;;  %3539 = vrot.lane.b32.xlu0 %v9836_v28, %s9971_s16 }
 0x327   : > { %v11012_v53 = vpop.permute.xlu1 %2896 }
 0x329   : > { %3758 = vrot.lane.b32.xlu1 %v9837_v51, %s9972_s17  ;;  %3342 = vrot.lane.b32.xlu0 %v10890_v16, %s9970_s15 }
 0x32b   : > { %v11017_v40 = vpop.permute.xlu1 %3111 }
 0x32d   : > { %3750 = vrot.lane.b32.xlu1 %v10840_v45, %s9972_s17  ;;  %3764 = vrot.lane.b32.xlu0 %v9838_v6, %s9972_s17 }
 0x32f   : > { %v11022_v26 = vpop.permute.xlu1 %3109 }
 0x331   : > { %3748 = vrot.lane.b32.xlu1 %v10847_v55, %s9972_s17  ;;  %3340 = vrot.lane.b32.xlu0 %v10888_v18, %s9970_s15 }
 0x333   : > { %v11028_v13 = vpop.permute.xlu1 %2693  ;;  %v11030_v63 = vpop.permute.xlu0 %2687 }
 0x335   : > { %3770 = vrot.lane.b32.xlu1 %v9839_v25, %s9972_s17  ;;  %3756 = vrot.lane.b32.xlu0 %v10903_v36, %s9972_s17 }
 0x337   : > { %v11035_v44 = vpop.permute.xlu1 %2906  ;;  %v11037_v58 = vpop.permute.xlu0 %2900 }
 0x339   : > { %3975 = vrot.lane.b32.xlu1 %v10894_v50, %s9973_s23  ;;  %3555 = vrot.lane.b32.xlu0 %v10890_v16, %s9971_s16 }
 0x33b   : > { %v11043_v27 = vpop.permute.xlu1 %3119  ;;  %v11045_v46 = vpop.permute.xlu0 %3113 }
 0x33d   : > { %3973 = vrot.lane.b32.xlu1 %v10898_v2, %s9973_s23  ;;  %3754 = vrot.lane.b32.xlu0 %v10906_v61, %s9972_s17 }
 0x33f   : > { %v11051_v14 = vpop.permute.xlu1 %2697  ;;  %v11053_v3 = vpop.permute.xlu0 %2691 }
 0x340   : > { %v2710_v6 = vsel %vm333_vm3, %v11053_v3, %v11028_v13 }
 0x341   : > { %3971 = vrot.lane.b32.xlu1 %v9840_v41, %s9973_s23  ;;  %3553 = vrot.lane.b32.xlu0 %v10888_v18, %s9971_s16  ;;  %s13295_s16 = scalar_lea.sflag [#allocation5], %s215_s7 }
 0x343   : > { %v11058_v48 = vpop.permute.xlu1 %2695  ;;  %v11060_v59 = vpop.permute.xlu0 %2689 }
 0x345   : > { %3983 = vrot.lane.b32.xlu1 %v9841_v62, %s9973_s23  ;;  %3752 = vrot.lane.b32.xlu0 %v9842_v15, %s9972_s17  ;;  %v9848_v62 = vld [vmem:[#allocation2 + $0x8] ss:$12 sps:$4 sm:$0xff]  }
 0x347   : > { %v11064_v22 = vpop.permute.xlu1 %2910  ;;  %v11066_v33 = vpop.permute.xlu0 %2904 }
 0x349   : > { %3963 = vrot.lane.b32.xlu1 %v10840_v45, %s9973_s23  ;;  %3768 = vrot.lane.b32.xlu0 %v10890_v16, %s9972_s17 }
 0x34b   : > { %v11072_v21 = vpop.permute.xlu1 %2908  ;;  %v11074_v9 = vpop.permute.xlu0 %2902 }
 0x34d   : > { %3961 = vrot.lane.b32.xlu1 %v10847_v55, %s9973_s23  ;;  %3977 = vrot.lane.b32.xlu0 %v9843_v60, %s9973_s23  ;;  %v11219_v60 = vld [vmem:[%s13337_s2 + $0x6] sm:$0x3] }
 0x34f   : > { %v11079_v10 = vpop.permute.xlu1 %3123  ;;  %v11081_v54 = vpop.permute.xlu0 %3117 }
 0x351   : > { %4188 = vrot.lane.b32.xlu1 %v10894_v50, %s13506_s12  ;;  %3766 = vrot.lane.b32.xlu0 %v10888_v18, %s9972_s17 }
 0x353   : > { %v3122_v35 = vpop.permute.xlu1 %3121  ;;  %v11091_v20 = vpop.permute.xlu0 %3115 }
 0x354   : > { %v11089_v12 = vsel %vm935_vm5, %v3122_v35, %v11079_v10 }
 0x355   : > { %4196 = vrot.lane.b32.xlu1 %v9844_v57, %s13506_s12  ;;  %3969 = vrot.lane.b32.xlu0 %v10903_v36, %s9973_s23 }
 0x357   : > { %v2706_v11 = vpop.permute.xlu1 %2705  ;;  %v2700_v43 = vpop.permute.xlu0 %2699 }
 0x358   : > { %9506 = vmatpush3.bf16.msra.mxu0 %v2706_v11 }
 0x359   : > { %4186 = vrot.lane.b32.xlu1 %v10898_v2, %s13506_s12  ;;  %9507 = vmatprep.subr.bf16.mxu0 %v9977_v1 }
 0x35a   : > { %3967 = vrot.lane.b32.xlu0 %v10906_v61, %s9973_s23 }
 0x35b   : > { %v11101_v50 = vpop.permute.xlu1 %3336  ;;  %v11103_v49 = vpop.permute.xlu0 %2912 }
 0x35c   : > { %9508 = vmatpush3.bf16.msra.mxu0 %v2700_v43 }
 0x35d   : > { %4184 = vrot.lane.b32.xlu1 %v9845_v24, %s13506_s12  ;;  %9509 = vmatprep.subr.bf16.mxu0 %v9977_v1 }
 0x35e   : > { %3981 = vrot.lane.b32.xlu0 %v10890_v16, %s9973_s23 }
 0x35f   : > { %v3335_v29 = vpop.permute.xlu1 %3334  ;;  %v11113_v4 = vpop.permute.xlu0 %3125 }
 0x360   : > { %v11111_v2 = vsel %vm1156_vm6, %v3335_v29, %v11101_v50  ;;  %9510 = vmatpush3.bf16.msra.mxu0 %v11028_v13  ;;  %v2922_v29 = vsel %vm714_vm4, %v11074_v9, %v11066_v33 }
 0x361   : > { %4176 = vrot.lane.b32.xlu1 %v10840_v45, %s13506_s12  ;;  %9511 = vmatprep.subr.bf16.mxu0 %v9977_v1 }
 0x362   : > { %3979 = vrot.lane.b32.xlu0 %v10888_v18, %s9973_s23 }
 0x363   : > { %v11121_v39 = vpop.permute.xlu1 %3332  ;;  %v2704_v42 = vpop.permute.xlu0 %2703 }
 0x364   : > { %9512 = vmatpush3.bf16.msra.mxu0 %v11030_v63  ;;  %v2714_v45 = vsel %vm333_vm3, %v2704_v42, %v2706_v11  ;;  %v2924_v11 = vsel %vm714_vm4, %v11072_v21, %v11064_v22 }
 0x365   : > { %4174 = vrot.lane.b32.xlu1 %v10847_v55, %s13506_s12  ;;  %9517 = vmatprep.subr.bf16.mxu0 %v9977_v1 }
 0x366   : > { %3965 = vrot.lane.b32.xlu0 %v9846_v23, %s9973_s23  ;;  %2738 = vmatprep.subr.bf16.mxu1 %v2714_v45  ;;  %v11272_v23 = vld [vmem:[%s13337_s2 + $0x8] sm:$0x3] }
 0x367   : > { %v2919_v38 = vpop.permute.xlu1 %2918  ;;  %9514 = vmatmul.mubr.msk.bf16.vlgmr.msra.gmra.mxu0 %vm2512_vm10, %v11127_v0  ;;  %v11136_v52 = vpop.permute.xlu0 %3338 }
 0x368   : > { %9518 = vmatpush3.bf16.msra.mxu0 %v2919_v38  ;;  %9525 = vmatprep.mubr.msk.bf16.mxu0 %vm9978_vm12, %v9977_v1 }
 0x369   : > { %9519 = vmatprep.subr.bf16.mxu0 %v9977_v1 }
 0x36a   : > { %4190 = vrot.lane.b32.xlu0 %v9847_v7, %s13506_s12 }
 0x36b   : > { %v11142_v55 = vpop.permute.xlu1 %3324  ;;  %v11144_v56 = vpop.permute.xlu0 %3330 }
 0x36c   : > { %9520 = vmatpush3.bf16.msra.mxu0 %v11103_v49 }
 0x36d   : > { %9521 = vmatprep.subr.bf16.mxu0 %v9977_v1 }
 0x36e   : > { %4194 = vrot.lane.b32.xlu0 %v10890_v16, %s13506_s12  ;;  %v11166_v16 = vld [vmem:[%s13337_s2 + $0x4] sm:$0x3] }
 0x36f   : > { %v3323_v32 = vpop.permute.xlu1 %3322  ;;  %v11154_v47 = vpop.permute.xlu0 %3328 }
 0x370   : > { %v11152_v31 = vsel %vm1156_vm6, %v3323_v32, %v11142_v55  ;;  %9522 = vmatpush3.bf16.msra.mxu0 %v11035_v44 }
 0x371   : > { %9523 = vmatprep.subr.bf16.mxu0 %v9977_v1 }
 0x372   : > { %4192 = vrot.lane.b32.xlu0 %v10888_v18, %s13506_s12  ;;  %v2712_v18 = vsel %vm333_vm3, %v11051_v14, %v2700_v43  ;;  %v2923_v43 = vsel %vm714_vm4, %v11066_v33, %v11035_v44 }
 0x373   : > { %v11160_v34 = vpop.permute.xlu1 %3549  ;;  %v2702_v5 = vpop.permute.xlu0 %2701 }
 0x374   : > { %9524 = vmatpush3.bf16.msra.mxu0 %v11037_v58  ;;  %v2713_v19 = vsel %vm333_vm3, %v2702_v5, %v2704_v42  ;;  %v2920_v42 = vsel %vm714_vm4, %v11012_v53, %v11008_v17 }
 0x375   : > { %9529 = vmatprep.subr.bf16.mxu0 %v9977_v1  ;;  %2739 = vmatpush1.bf16.msra.mxu1 %v2713_v19 }
 0x376   : > { %4182 = vrot.lane.b32.xlu0 %v10903_v36, %s13506_s12  ;;  %2740 = vmatprep.subr.bf16.mxu1 %v2712_v18  ;;  %v2711_v36 = vsel %vm333_vm3, %v11058_v48, %v11051_v14  ;;  %v2709_v14 = vsel %vm333_vm3, %v11060_v59, %v11053_v3  ;;  %v2707_v3 = vsel %vm333_vm3, %v11002_v37, %v10996_v8 }
 0x377   : > { %v11174_v28 = vpop.permute.xlu1 %3131  ;;  %9526 = vmatmul.mubr.msk.bf16.vlgmr.msra.gmra.mxu0 %vm2512_vm10, %v11166_v16  ;;  %v2917_v51 = vpop.permute.xlu0 %2916 }
 0x378   : > { %9530 = vmatpush3.bf16.msra.mxu0 %v11174_v28  ;;  %9537 = vmatprep.mubr.msk.bf16.mxu0 %vm9978_vm12, %v9977_v1  ;;  %v2927_v59 = vsel %vm714_vm4, %v2917_v51, %v2919_v38 }
 0x379   : > { %9531 = vmatprep.subr.bf16.mxu0 %v9977_v1  ;;  %2741 = vmatpush1.bf16.msra.mxu1 %v2711_v36 }
 0x37a   : > { %4180 = vrot.lane.b32.xlu0 %v10906_v61, %s13506_s12  ;;  %2742 = vmatprep.subr.bf16.mxu1 %v2710_v6  ;;  %v2708_v61 = vsel %vm333_vm3, %v10996_v8, %v11030_v63  ;;  %v2925_v8 = vsel %vm714_vm4, %v11064_v22, %v11103_v49  ;;  %v2921_v22 = vsel %vm714_vm4, %v11008_v17, %v11037_v58  ;;  %vm13507_vm3 = vcmask 736256  }
 0x37b   : > { %v11190_v25 = vpop.permute.xlu1 %3547  ;;  %v11192_v41 = vpop.permute.xlu0 %3326  ;;  %v3138_v17 = vsel %vm935_vm5, %v11079_v10, %v11113_v4  ;;  %v3136_v10 = vsel %vm935_vm5, %v11081_v54, %v11043_v27  ;;  %vm13513_vm13 = vmmov %vm13507_vm3 }
 0x37c   : > { %9532 = vmatpush3.bf16.msra.mxu0 %v11113_v4  ;;  %vm13514_vm14 = vmmov %vm13507_vm3 }
 0x37d   : > { %9533 = vmatprep.subr.bf16.mxu0 %v9977_v1  ;;  %2743 = vmatpush1.bf16.msra.mxu1 %v2709_v14 }
 0x37e   : > { %4178 = vrot.lane.b32.xlu0 %v9848_v62, %s13506_s12  ;;  %2744 = vmatprep.subr.bf16.mxu1 %v2708_v61  ;;  %v11325_v61 = vld [vmem:[%s13337_s2 + $0xa] sm:$0x3] }
 0x37f   : > { %v11203_v13 = vpop.permute.xlu1 %3545  ;;  %v11205_v48 = vpop.permute.xlu0 %3551 }
 0x380   : > { %9534 = vmatpush3.bf16.msra.mxu0 %v11043_v27  ;;  %v3134_v27 = vsel %vm935_vm5, %v11017_v40, %v11045_v46 }
 0x381   : > { %9535 = vmatprep.subr.bf16.mxu0 %v9977_v1  ;;  %2745 = vmatpush1.bf16.msra.mxu1 %v2707_v3 }
 0x382   : > { %2951 = vmatprep.subr.bf16.mxu1 %v2927_v59 }
 0x383   : > { %v11213_v15 = vpop.permute.xlu1 %3537  ;;  %v2915_v63 = vpop.permute.xlu0 %2914 }
 0x384   : > { %9536 = vmatpush3.bf16.msra.mxu0 %v11045_v46  ;;  %v2926_v35 = vsel %vm714_vm4, %v2915_v63, %v2917_v51  ;;  %8721 = vmatmul.mubr.msk.bf16.vlgmr.msra.gmra.mxu1 %vm2512_vm10, %v11127_v0  ;;  %vm13508_vm4 = vmmov %vm13507_vm3 }
 0x385   : > { %9541 = vmatprep.subr.bf16.mxu0 %v9977_v1  ;;  %2952 = vmatpush1.bf16.msra.mxu1 %v2926_v35 }
 0x386   : > { %2975 = vmatprep.mubr.bf16.mxu1 %v13450_v30  ;;  %2953 = vmatprep.subr.bf16.mxu1 %v2925_v8 }
 0x387   : > { %v11229_v37 = vpop.permute.xlu1 %3344  ;;  %9538 = vmatmul.mubr.msk.bf16.vlgmr.msra.gmra.mxu0 %vm2512_vm10, %v11219_v60  ;;  %v3130_v57 = vpop.permute.xlu0 %3129 }
 0x388   : > { %9542 = vmatpush3.bf16.msra.mxu0 %v11229_v37  ;;  %9549 = vmatprep.mubr.msk.bf16.mxu0 %vm9978_vm12, %v9977_v1  ;;  %v3140_v33 = vsel %vm935_vm5, %v3130_v57, %v11174_v28 }
 0x389   : > { %9543 = vmatprep.subr.bf16.mxu0 %v9977_v1  ;;  %2954 = vmatpush1.bf16.msra.mxu1 %v2924_v11 }
 0x38a   : > { %2955 = vmatprep.subr.bf16.mxu1 %v2923_v43 }
 0x38b   : > { %v11243_v24 = vpop.permute.xlu1 %3535  ;;  %v11245_v49 = vpop.permute.xlu0 %3543 }
 0x38c   : > { %9544 = vmatpush3.bf16.msra.mxu0 %v11136_v52  ;;  %v3562_v11 = vsel %vm1377_vm7, %v11245_v49, %v11203_v13 }
 0x38d   : > { %9545 = vmatprep.subr.bf16.mxu0 %v9977_v1  ;;  %2956 = vmatpush1.bf16.msra.mxu1 %v2922_v29  ;;  %v3559_v29 = vsel %vm1377_vm7, %v11243_v24, %v11213_v15 }
 0x38e   : > { %2957 = vmatprep.subr.bf16.mxu1 %v2921_v22 }
 0x38f   : > { %v11255_v21 = vpop.permute.xlu1 %3762  ;;  %v11257_v44 = vpop.permute.xlu0 %3541 }
 0x390   : > { %9546 = vmatpush3.bf16.msra.mxu0 %v11121_v39  ;;  %v2591_v38 = vpop.f32.mrf.mxu0  ;;  %v2550_v7 = vpop.f32.mrf.mxu1 }
 0x391   : > { %9547 = vmatprep.subr.bf16.mxu0 %v9977_v1  ;;  %2958 = vmatpush1.bf16.msra.mxu1 %v2920_v42 }
 0x392   : > { %3164 = vmatprep.subr.bf16.mxu1 %v3140_v33  ;;  %2603 = vrot.lane.b32.xlu1 %v2591_v38, %s9976_s25  ;;  %v9503_v5 = vpop.f32.mrf.mxu0 }
 0x393   : > { %v11266_v9 = vpop.permute.xlu1 %3760  ;;  %v3128_v58 = vpop.permute.xlu0 %3127 }
 0x394   : > { %9548 = vmatpush3.bf16.msra.mxu0 %v11192_v41  ;;  %v3139_v0 = vsel %vm935_vm5, %v3128_v58, %v3130_v57  ;;  %8736 = vmatmul.mubr.msk.bf16.vlgmr.msra.gmra.mxu1 %vm2512_vm10, %v11166_v16  ;;  %v3135_v16 = vsel %vm935_vm5, %v11091_v20, %v11081_v54  ;;  %v2594_v18 = vpop.f32.mrf.mxu0  ;;  %v3133_v20 = vsel %vm935_vm5, %v11022_v26, %v11017_v40  ;;  %v8783_v57 = vld [vmem:[%s13337_s2 + $0xc] sm:$0x3]  ;;  %vm13509_vm5 = vmmov %vm13507_vm3 }
 0x395   : > { %9553 = vmatprep.subr.bf16.mxu0 %v9977_v1  ;;  %3165 = vmatpush1.bf16.msra.mxu1 %v3139_v0  ;;  %v3351_v26 = vsel %vm1156_vm6, %v11101_v50, %v11136_v52  ;;  %v3349_v50 = vsel %vm1156_vm6, %v11144_v56, %v11121_v39  ;;  %v3776_v33 = vsel %vm1598_vm8, %v11266_v9, %v11255_v21 }
 0x396   : > { %3188 = vmatprep.mubr.bf16.mxu1 %v13450_v30  ;;  %3166 = vmatprep.subr.bf16.mxu1 %v3138_v17  ;;  %v9504_v54 = vpop.f32.mrf.mxu0 }
 0x397   : > { %v11282_v53 = vpop.permute.xlu1 %3557  ;;  %9550 = vmatmul.mubr.msk.bf16.vlgmr.msra.gmra.mxu0 %vm2512_vm10, %v11272_v23  ;;  %v11286_v45 = vpop.permute.xlu0 %3539 }
 0x398   : > { %9554 = vmatpush3.bf16.msra.mxu0 %v11282_v53  ;;  %9561 = vmatprep.mubr.msk.bf16.mxu0 %vm9978_vm12, %v9977_v1 }
 0x399   : > { %9555 = vmatprep.subr.bf16.mxu0 %v9977_v1  ;;  %3167 = vmatpush1.bf16.msra.mxu1 %v11089_v12  ;;  %v2552_v12 = vpop.f32.mrf.mxu1 }
 0x39a   : > { %3168 = vmatprep.subr.bf16.mxu1 %v3136_v10  ;;  %v2600_v19 = vcombine.low %v2550_v7, %v2552_v12  ;;  %v8798_v12 = vld [vmem:[%s13337_s2 + $0xe] sm:$0x3] }
 0x39b   : > { %v11297_v4 = vpop.permute.xlu1 %3758  ;;  %v3343_v32 = vpop.permute.xlu0 %3342 }
 0x39c   : > { %9556 = vmatpush3.bf16.msra.mxu0 %v11205_v48  ;;  %v2554_v51 = vpop.f32.mrf.mxu1  ;;  %2601 = vrot.lane.b32.xlu0 %v2600_v19, %s9976_s25  ;;  %v3353_v6 = vsel %vm1156_vm6, %v3343_v32, %v11229_v37  ;;  %v3563_v37 = vsel %vm1377_vm7, %v11190_v25, %v11160_v34  ;;  %v3560_v25 = vsel %vm1377_vm7, %v11213_v15, %v11286_v45 }
 0x39d   : > { %9557 = vmatprep.subr.bf16.mxu0 %v9977_v1  ;;  %3169 = vmatpush1.bf16.msra.mxu1 %v3135_v16 }
 0x39e   : > { %3170 = vmatprep.subr.bf16.mxu1 %v3134_v27  ;;  %v2555_v46 = vpop.f32.mrf.mxu1 }
 0x39f   : > { %v11307_v28 = vpop.permute.xlu1 %3750  ;;  %v11309_v36 = vpop.permute.xlu0 %3764 }
 0x3a0   : > { %9558 = vmatpush3.bf16.msra.mxu0 %v11203_v13  ;;  %v3777_v15 = vsel %vm1598_vm8, %v11255_v21, %v11309_v36 }
 0x3a1   : > { %9559 = vmatprep.subr.bf16.mxu0 %v9977_v1  ;;  %3171 = vmatpush1.bf16.msra.mxu1 %v3133_v20 }
 0x3a2   : > { %3377 = vmatprep.subr.bf16.mxu1 %v3353_v6 }
 0x3a3   : > { %v11319_v62 = vpop.permute.xlu1 %3748  ;;  %v3341_v14 = vpop.permute.xlu0 %3340 }
 0x3a4   : > { %9560 = vmatpush3.bf16.msra.mxu0 %v11286_v45  ;;  %v3352_v40 = vsel %vm1156_vm6, %v3341_v14, %v3343_v32  ;;  %8751 = vmatmul.mubr.msk.bf16.vlgmr.msra.gmra.mxu1 %vm2512_vm10, %v11219_v60  ;;  %v3348_v60 = vsel %vm1156_vm6, %v11154_v47, %v11144_v56  ;;  %v3772_v21 = vsel %vm1598_vm8, %v11319_v62, %v11307_v28 }
 0x3a5   : > { %9565 = vmatprep.subr.bf16.mxu0 %v9977_v1  ;;  %3378 = vmatpush1.bf16.msra.mxu1 %v3352_v40 }
 0x3a6   : > { %3401 = vmatprep.mubr.bf16.mxu1 %v13450_v30  ;;  %3379 = vmatprep.subr.bf16.mxu1 %v3351_v26 }
 0x3a7   : > { %v3771_v3 = vpop.permute.xlu1 %3770  ;;  %9562 = vmatmul.mubr.msk.bf16.vlgmr.msra.gmra.mxu0 %vm2512_vm10, %v11325_v61  ;;  %v11337_v59 = vpop.permute.xlu0 %3756 }
 0x3a8   : > { %9566 = vmatpush3.bf16.msra.mxu0 %v3771_v3  ;;  %9573 = vmatprep.mubr.msk.bf16.mxu0 %vm9978_vm12, %v9977_v1  ;;  %v3775_v58 = vsel %vm1598_vm8, %v11337_v59, %v11297_v4 }
 0x3a9   : > { %9567 = vmatprep.subr.bf16.mxu0 %v9977_v1  ;;  %3380 = vmatpush1.bf16.msra.mxu1 %v11111_v2  ;;  %v3347_v2 = vsel %vm1156_vm6, %v11142_v55, %v11192_v41  ;;  %v3564_v41 = vsel %vm1377_vm7, %v11160_v34, %v11205_v48  ;;  %v3561_v34 = vsel %vm1377_vm7, %v11257_v44, %v11245_v49 }
 0x3aa   : > { %3381 = vmatprep.subr.bf16.mxu1 %v3349_v50 }
 0x3ab   : > { %v11346_v52 = vpop.permute.xlu1 %3975  ;;  %v3556_v63 = vpop.permute.xlu0 %3555 }
 0x3ac   : > { %9568 = vmatpush3.bf16.msra.mxu0 %v11309_v36  ;;  %v3566_v56 = vsel %vm1377_vm7, %v3556_v63, %v11282_v53 }
 0x3ad   : > { %9569 = vmatprep.subr.bf16.mxu0 %v9977_v1  ;;  %3382 = vmatpush1.bf16.msra.mxu1 %v3348_v60 }
 0x3ae   : > { %3383 = vmatprep.subr.bf16.mxu1 %v3347_v2  ;;  %v8813_v2 = vld [vmem:[%s13337_s2 + $0x10] sm:$0x3] }
 0x3af   : > { %v11356_v35 = vpop.permute.xlu1 %3973  ;;  %v3755_v39 = vpop.permute.xlu0 %3754 }
 0x3b0   : > { %9570 = vmatpush3.bf16.msra.mxu0 %v11297_v4  ;;  %v3774_v17 = vsel %vm1598_vm8, %v3755_v39, %v11337_v59  ;;  %v3989_v16 = vsel %vm1819_vm9, %v11356_v35, %v11346_v52 }
 0x3b1   : > { %9571 = vmatprep.subr.bf16.mxu0 %v9977_v1  ;;  %3384 = vmatpush1.bf16.msra.mxu1 %v11152_v31 }
 0x3b2   : > { %3590 = vmatprep.subr.bf16.mxu1 %v3566_v56 }
 0x3b3   : > { %v3554_v47 = vpop.permute.xlu0 %3553  ;;  %v11366_v55 = vpop.permute.xlu1 %3971 }
 0x3b4   : > { %v3565_v8 = vsel %vm1377_vm7, %v3554_v47, %v3556_v63  ;;  %8766 = vmatmul.mubr.msk.bf16.vlgmr.msra.gmra.mxu1 %vm2512_vm10, %v11272_v23  ;;  %vm13510_vm7 = vmmov %vm13507_vm3 }
 0x3b5   : > { %3591 = vmatpush1.bf16.msra.mxu1 %v3565_v8  ;;  %3614 = vmatprep.mubr.bf16.mxu1 %v13450_v30 }
 0x3b6   : > { %3592 = vmatprep.subr.bf16.mxu1 %v3564_v41 }
 0x3b7   : > { %v3753_v31 = vpop.permute.xlu0 %3752  ;;  %v3984_v48 = vpop.permute.xlu1 %3983 }
 0x3b8   : > { %9572 = vmatpush3.bf16.msra.mxu0 %v3753_v31  ;;  %v3773_v53 = vsel %vm1598_vm8, %v11307_v28, %v3753_v31 }
 0x3b9   : > { %3593 = vmatpush1.bf16.msra.mxu1 %v3563_v37  ;;  %9577 = vmatprep.subr.bf16.mxu0 %v9977_v1 }
 0x3ba   : > { %3594 = vmatprep.subr.bf16.mxu1 %v3562_v11 }
 0x3bb   : > { %v3769_v43 = vpop.permute.xlu0 %3768  ;;  %9574 = vmatmul.mubr.msk.bf16.vlgmr.msra.gmra.mxu0 %vm2512_vm10, %v8783_v57  ;;  %v3964_v44 = vpop.permute.xlu1 %3963 }
 0x3bc   : > { %9578 = vmatpush3.bf16.msra.mxu0 %v3984_v48  ;;  %9585 = vmatprep.mubr.msk.bf16.mxu0 %vm9978_vm12, %v9977_v1  ;;  %v3779_v49 = vsel %vm1598_vm8, %v3769_v43, %v3771_v3 }
 0x3bd   : > { %3595 = vmatpush1.bf16.msra.mxu1 %v3561_v34  ;;  %9579 = vmatprep.subr.bf16.mxu0 %v9977_v1 }
 0x3be   : > { %3596 = vmatprep.subr.bf16.mxu1 %v3560_v25 }
 0x3bf   : > { %v3978_v13 = vpop.permute.xlu0 %3977  ;;  %v3962_v23 = vpop.permute.xlu1 %3961 }
 0x3c0   : > { %9580 = vmatpush3.bf16.msra.mxu0 %v3978_v13  ;;  %v3990_v7 = vsel %vm1819_vm9, %v11346_v52, %v3978_v13  ;;  %v3985_v54 = vsel %vm1819_vm9, %v3962_v23, %v3964_v44 }
 0x3c1   : > { %3597 = vmatpush1.bf16.msra.mxu1 %v3559_v29  ;;  %9581 = vmatprep.subr.bf16.mxu0 %v9977_v1 }
 0x3c2   : > { %3803 = vmatprep.subr.bf16.mxu1 %v3779_v49 }
 0x3c3   : > { %v3767_v22 = vpop.permute.xlu0 %3766  ;;  %v4189_v9 = vpop.permute.xlu1 %4188 }
 0x3c4   : > { %v3778_v42 = vsel %vm1598_vm8, %v3767_v22, %v3769_v43  ;;  %8781 = vmatmul.mubr.msk.bf16.vlgmr.msra.gmra.mxu1 %vm2512_vm10, %v11325_v61  ;;  %9582 = vmatpush3.bf16.msra.mxu0 %v11366_v55  ;;  %vm13511_vm8 = vmmov %vm13507_vm3 }
 0x3c5   : > { %3804 = vmatpush1.bf16.msra.mxu1 %v3778_v42  ;;  %3827 = vmatprep.mubr.bf16.mxu1 %v13450_v30 }
 0x3c6   : > { %3805 = vmatprep.subr.bf16.mxu1 %v3777_v15  ;;  %9583 = vmatprep.subr.bf16.mxu0 %v9977_v1 }
 0x3c7   : > { %v3970_v24 = vpop.permute.xlu0 %3969  ;;  %v4197_v32 = vpop.permute.xlu1 %4196 }
 0x3c8   : > { %v3988_v27 = vsel %vm1819_vm9, %v3970_v24, %v11366_v55 }
 0x3c9   : > { %3806 = vmatpush1.bf16.msra.mxu1 %v3776_v33 }
 0x3ca   : > { %3807 = vmatprep.subr.bf16.mxu1 %v3775_v58 }
 0x3cb   : > { %v4187_v18 = vpop.permute.xlu1 %4186 }
 0x3cc   : > { %v3968_v0 = vpop.permute.xlu0 %3967  ;;  %v4202_v40 = vsel %vm13510_vm7, %v4187_v18, %v4189_v9  ;;  %vm5602_vm7 = vcmask 1046534  }
 0x3cd   : > { %3808 = vmatpush1.bf16.msra.mxu1 %v3774_v17  ;;  %v3987_v28 = vsel %vm1819_vm9, %v3968_v0, %v3970_v24 }
 0x3ce   : > { %3809 = vmatprep.subr.bf16.mxu1 %v3773_v53 }
 0x3cf   : > { %v4185_v46 = vpop.permute.xlu1 %4184 }
 0x3d0   : > { %v3982_v45 = vpop.permute.xlu0 %3981 }
 0x3d1   : > { %v3992_v38 = vsel %vm1819_vm9, %v3982_v45, %v3984_v48  ;;  %3810 = vmatpush1.bf16.msra.mxu1 %v3772_v21 }
 0x3d2   : > { %4016 = vmatprep.subr.bf16.mxu1 %v3992_v38 }
 0x3d3   : > { %v4177_v26 = vpop.permute.xlu1 %4176 }
 0x3d4   : > { %v3980_v10 = vpop.permute.xlu0 %3979  ;;  %8796 = vmatmul.mubr.msk.bf16.vlgmr.msra.gmra.mxu1 %vm2512_vm10, %v8783_v57 }
 0x3d5   : > { %v3991_v4 = vsel %vm1819_vm9, %v3980_v10, %v3982_v45  ;;  %4040 = vmatprep.mubr.bf16.mxu1 %v13450_v30 }
 0x3d6   : > { %4017 = vmatpush1.bf16.msra.mxu1 %v3991_v4 }
 0x3d7   : > { %4018 = vmatprep.subr.bf16.mxu1 %v3990_v7  ;;  %v4175_v52 = vpop.permute.xlu1 %4174 }
 0x3d8   : > { %v3966_v5 = vpop.permute.xlu0 %3965  ;;  %v4198_v60 = vsel %vm13514_vm14, %v4175_v52, %v4177_v26 }
 0x3d9   : > { %9584 = vmatpush3.bf16.msra.mxu0 %v3966_v5  ;;  %v3986_v51 = vsel %vm1819_vm9, %v3964_v44, %v3966_v5  ;;  %vm13512_vm9 = vmmov %vm13507_vm3 }
 0x3da   : > { %4019 = vmatpush1.bf16.msra.mxu1 %v3989_v16  ;;  %9589 = vmatprep.subr.bf16.mxu0 %v9977_v1 }
 0x3db   : > { %4020 = vmatprep.subr.bf16.mxu1 %v3988_v27 }
 0x3dc   : > { %v4191_v19 = vpop.permute.xlu0 %4190  ;;  %9586 = vmatmul.mubr.msk.bf16.vlgmr.msra.gmra.mxu0 %vm2512_vm10, %v8798_v12 }
 0x3dd   : > { %9590 = vmatpush3.bf16.msra.mxu0 %v4197_v32  ;;  %9597 = vmatprep.mubr.msk.bf16.mxu0 %vm9978_vm12, %v9977_v1  ;;  %v4203_v14 = vsel %vm13509_vm5, %v4189_v9, %v4191_v19  ;;  %vm5593_vm12 = vcmask 1043459   ;;  %vm5599_vm5 = vcmask 1045509  }
 0x3de   : > { %4021 = vmatpush1.bf16.msra.mxu1 %v3987_v28  ;;  %9591 = vmatprep.subr.bf16.mxu0 %v9977_v1 }
 0x3df   : > { %4022 = vmatprep.subr.bf16.mxu1 %v3986_v51 }
 0x3e0   : > { %v4195_v36 = vpop.permute.xlu0 %4194 }
 0x3e1   : > { %9592 = vmatpush3.bf16.msra.mxu0 %v4191_v19  ;;  %v4205_v20 = vsel %vm13507_vm3, %v4195_v36, %v4197_v32  ;;  %vm5596_vm3 = vcmask 1044484  }
 0x3e2   : > { %4023 = vmatpush1.bf16.msra.mxu1 %v3985_v54  ;;  %9593 = vmatprep.subr.bf16.mxu0 %v9977_v1 }
 0x3e3   : > { %4229 = vmatprep.subr.bf16.mxu1 %v4205_v20 }
 0x3e4   : > { %v4193_v6 = vpop.permute.xlu0 %4192 }
 0x3e5   : > { %v4204_v62 = vsel %vm13508_vm4, %v4193_v6, %v4195_v36  ;;  %8811 = vmatmul.mubr.msk.bf16.vlgmr.msra.gmra.mxu1 %vm2512_vm10, %v8798_v12  ;;  %9594 = vmatpush3.bf16.msra.mxu0 %v4185_v46 }
 0x3e6   : > { %4230 = vmatpush1.bf16.msra.mxu1 %v4204_v62  ;;  %9595 = vmatprep.subr.bf16.mxu0 %v9977_v1 }
 0x3e7   : > { %4231 = vmatprep.subr.bf16.mxu1 %v4203_v14  ;;  %4253 = vmatprep.mubr.bf16.mxu1 %v13450_v30 }
 0x3e8   : > { %v4183_v61 = vpop.permute.xlu0 %4182 }
 0x3e9   : > { %v4201_v3 = vsel %vm13511_vm8, %v4183_v61, %v4185_v46  ;;  %vm5605_vm8 = vcmask 1047559  }
 0x3ea   : > { %4232 = vmatpush1.bf16.msra.mxu1 %v4202_v40 }
 0x3eb   : > { %4233 = vmatprep.subr.bf16.mxu1 %v4201_v3 }
 0x3ec   : > { %v4181_v59 = vpop.permute.xlu0 %4180 }
 0x3ed   : > { %v4200_v50 = vsel %vm13512_vm9, %v4181_v59, %v4183_v61 }
 0x3ee   : > { %4234 = vmatpush1.bf16.msra.mxu1 %v4200_v50 }
 0x3f0   : > { %v4179_v63 = vpop.permute.xlu0 %4178 }
 0x3f1   : > { %9596 = vmatpush3.bf16.msra.mxu0 %v4179_v63  ;;  %v4199_v1 = vsel %vm13513_vm13, %v4177_v26, %v4179_v63  ;;  %vm6276_vm13 = vcmask 40984  }
 0x3f2   : > { %4235 = vmatprep.subr.bf16.mxu1 %v4199_v1 }
 0x3f3   : > { %4236 = vmatpush1.bf16.msra.mxu1 %v4198_v60 }
 0x3f4   : > { %9598 = vmatmul.mubr.msk.bf16.vlgmr.msra.gmra.mxu0 %vm2512_vm10, %v8813_v2 }
 0x3f6   : > { %8826 = vmatmul.mubr.msk.bf16.vlgmr.msra.gmra.mxu1 %vm2512_vm10, %v8813_v2 }
 0x427   : > { %v2805_v35 = vpop.f32.mrf.mxu0 }
 0x428   : > { %2817 = vrot.lane.b32.xlu1 %v2805_v35, %s9976_s25 }
 0x429   : > { %v9515_v39 = vpop.f32.mrf.mxu0 }
 0x42b   : > { %v2808_v56 = vpop.f32.mrf.mxu0 }
 0x42d   : > { %v9516_v47 = vpop.f32.mrf.mxu0 }
 0x437   : > { %v3018_v8 = vpop.f32.mrf.mxu0 }
 0x439   : > { %v9527_v55 = vpop.f32.mrf.mxu0 }
 0x43b   : > { %v3021_v41 = vpop.f32.mrf.mxu0 }
 0x43d   : > { %v9528_v31 = vpop.f32.mrf.mxu0 }
 0x444   : > { %v2764_v37 = vpop.f32.mrf.mxu1 }
 0x446   : > { %v2766_v57 = vpop.f32.mrf.mxu1 }
 0x447   : > { %v3231_v11 = vpop.f32.mrf.mxu0  ;;  %v2814_v48 = vcombine.low %v2764_v37, %v2766_v57  ;;  %v2604_v57 = vpop.permute.xlu1 %2603 }
 0x448   : > { %v2768_v43 = vpop.f32.mrf.mxu1 }
 0x449   : > { %v9539_v34 = vpop.f32.mrf.mxu0  ;;  %2815 = vrot.lane.b32.xlu1 %v2814_v48, %s9976_s25 }
 0x44a   : > { %v2769_v25 = vpop.f32.mrf.mxu1 }
 0x44b   : > { %v3234_v13 = vpop.f32.mrf.mxu0 }
 0x44d   : > { %v9540_v29 = vpop.f32.mrf.mxu0 }
 0x454   : > { %v2977_v49 = vpop.f32.mrf.mxu1 }
 0x456   : > { %v2979_v22 = vpop.f32.mrf.mxu1 }
 0x457   : > { %v3444_v44 = vpop.f32.mrf.mxu0  ;;  %v3027_v42 = vcombine.low %v2977_v49, %v2979_v22 }
 0x458   : > { %v2981_v15 = vpop.f32.mrf.mxu1 }
 0x459   : > { %v9551_v24 = vpop.f32.mrf.mxu0  ;;  %3028 = vrot.lane.b32.xlu0 %v3027_v42, %s9976_s25 }
 0x45a   : > { %v2982_v33 = vpop.f32.mrf.mxu1 }
 0x45b   : > { %v3447_v58 = vpop.f32.mrf.mxu0  ;;  %v9902_v33 = vld [vmem:[%s10069_s9] sm:$0x77] }
 0x45d   : > { %v9552_v23 = vpop.f32.mrf.mxu0 }
 0x464   : > { %v3190_v0 = vpop.f32.mrf.mxu1 }
 0x466   : > { %v3192_v17 = vpop.f32.mrf.mxu1 }
 0x467   : > { %v3657_v53 = vpop.f32.mrf.mxu0  ;;  %v3240_v45 = vcombine.low %v3190_v0, %v3192_v17 }
 0x468   : > { %v3194_v21 = vpop.f32.mrf.mxu1 }
 0x469   : > { %v9563_v9 = vpop.f32.mrf.mxu0  ;;  %3241 = vrot.lane.b32.xlu1 %v3240_v45, %s9976_s25 }
 0x46a   : > { %v3195_v38 = vpop.f32.mrf.mxu1 }
 0x46b   : > { %v3660_v10 = vpop.f32.mrf.mxu0 }
 0x46d   : > { %v9564_v4 = vpop.f32.mrf.mxu0  ;;  %3030 = vrot.lane.b32.xlu1 %v3018_v8, %s9976_s25 }
 0x471   : > { %3243 = vrot.lane.b32.xlu1 %v3231_v11, %s9976_s25  ;;  %v2602_v11 = vpop.permute.xlu0 %2601 }
 0x472   : > { %v2605_v13 = vrot.slane %v2602_v11, 4 }
 0x474   : > { %v3403_v7 = vpop.f32.mrf.mxu1  ;;  %v2608_v4 = vsel %vm2378_vm1, %v2605_v13, %v2604_v57 }
 0x475   : > { %3456 = vrot.lane.b32.xlu1 %v3444_v44, %s9976_s25  ;;  %v2607_v44 = vsel %vm2378_vm1, %v2605_v13, %v2602_v11 }
 0x476   : > { %v3405_v32 = vpop.f32.mrf.mxu1  ;;  %v2611_v58 = vadd.f32 %v9902_v33, %v2607_v44 }
 0x477   : > { %v3453_v5 = vcombine.low %v3403_v7, %v3405_v32 }
 0x478   : > { %v3407_v16 = vpop.f32.mrf.mxu1 }
 0x479   : > { %3454 = vrot.lane.b32.xlu0 %v3453_v5, %s9976_s25 }
 0x47a   : > { %v3408_v12 = vpop.f32.mrf.mxu1 }
 0x47b   : > { %v3870_v27 = vpop.f32.mrf.mxu0 }
 0x47c   : > { %3882 = vrot.lane.b32.xlu1 %v3870_v27, %s9976_s25 }
 0x47d   : > { %v9575_v19 = vpop.f32.mrf.mxu0 }
 0x47f   : > { %v3873_v18 = vpop.f32.mrf.mxu0 }
 0x480   : > { %v9903_v18 = vld [vmem:[%s10069_s9 + $0x8] sm:$0x7]  ;;  %s9980_s9 = smov 6  }
 0x481   : > { %v9576_v28 = vpop.f32.mrf.mxu0 }
 0x482   : > { %v2612_v28 = vadd.f32 %v9903_v18, %v2608_v4 }
 0x484   : > { %v3616_v51 = vpop.f32.mrf.mxu1 }
 0x486   : > { %v3618_v36 = vpop.f32.mrf.mxu1 }
 0x487   : > { %v3666_v54 = vcombine.low %v3616_v51, %v3618_v36 }
 0x488   : > { %v3620_v20 = vpop.f32.mrf.mxu1 }
 0x489   : > { %3667 = vrot.lane.b32.xlu0 %v3666_v54, %s9976_s25 }
 0x48a   : > { %v3621_v46 = vpop.f32.mrf.mxu1 }
 0x494   : > { %v3829_v6 = vpop.f32.mrf.mxu1 }
 0x496   : > { %v3831_v62 = vpop.f32.mrf.mxu1 }
 0x497   : > { %v3879_v14 = vcombine.low %v3829_v6, %v3831_v62 }
 0x498   : > { %v3833_v61 = vpop.f32.mrf.mxu1 }
 0x499   : > { %3880 = vrot.lane.b32.xlu0 %v3879_v14, %s9976_s25 }
 0x49a   : > { %v3834_v40 = vpop.f32.mrf.mxu1  ;;  %v2818_v48 = vpop.permute.xlu1 %2817 }
 0x49c   : > { %v4083_v26 = vpop.f32.mrf.mxu0 }
 0x49e   : > { %v9587_v3 = vpop.f32.mrf.mxu0 }
 0x4a0   : > { %v4086_v59 = vpop.f32.mrf.mxu0 }
 0x4a2   : > { %v9588_v50 = vpop.f32.mrf.mxu0 }
 0x4a5   : > { %v4042_v52 = vpop.f32.mrf.mxu1 }
 0x4a7   : > { %v4044_v63 = vpop.f32.mrf.mxu1 }
 0x4a8   : > { %v4092_v1 = vcombine.low %v4042_v52, %v4044_v63 }
 0x4a9   : > { %v4046_v60 = vpop.f32.mrf.mxu1 }
 0x4aa   : > { %4093 = vrot.lane.b32.xlu0 %v4092_v1, %s9976_s25 }
 0x4ab   : > { %v4047_v2 = vpop.f32.mrf.mxu1 }
 0x4b4   : > { %v4296_v35 = vpop.f32.mrf.mxu0 }
 0x4b5   : > { %4308 = vrot.lane.b32.xlu1 %v4296_v35, %s9976_s25 }
 0x4b6   : > { %v4255_v39 = vpop.f32.mrf.mxu1  ;;  %v9599_v56 = vpop.f32.mrf.mxu0 }
 0x4b8   : > { %v4257_v47 = vpop.f32.mrf.mxu1  ;;  %v4299_v8 = vpop.f32.mrf.mxu0 }
 0x4b9   : > { %v4305_v55 = vcombine.low %v4255_v39, %v4257_v47 }
 0x4ba   : > { %v4259_v41 = vpop.f32.mrf.mxu1  ;;  %v9600_v31 = vpop.f32.mrf.mxu0 }
 0x4bb   : > { %4306 = vrot.lane.b32.xlu0 %v4305_v55, %s9976_s25  ;;  %v2816_v34 = vpop.permute.xlu1 %2815 }
 0x4bc   : > { %v4260_v37 = vpop.f32.mrf.mxu1  ;;  %v2819_v49 = vrot.slane %v2816_v34, 4 }
 0x4be   : > { %v2820_v15 = vsel %vm2378_vm1, %v2819_v49, %v2816_v34  ;;  %v2821_v12 = vsel %vm2378_vm1, %v2819_v49, %v2818_v48  ;;  %v5241_v49 = vld [vmem:[#allocation3 + $0xc] sm:$0x1] }
 0x4bf   : > { %3669 = vrot.lane.b32.xlu0 %v3657_v53, %s9976_s25  ;;  %v2824_v45 = vadd.f32 %v2820_v15, %v2611_v58  ;;  %v2825_v20 = vadd.f32 %v2821_v12, %v2612_v28  ;;  %v5253_v58 = vld [vmem:[#allocation3 + $0x2c] sm:$0x1] }
 0x4c3   : > { %4095 = vrot.lane.b32.xlu0 %v4083_v26, %s9976_s25  ;;  %s9982_s25 = smov 9  }
 0x4cb   : > { %v3029_v43 = vpop.permute.xlu0 %3028 }
 0x4cc   : > { %v3032_v42 = vrot.slane %v3029_v43, 4 }
 0x4ce   : > { %v3033_v17 = vsel %vm2378_vm1, %v3032_v42, %v3029_v43 }
 0x4cf   : > { %v3037_v38 = vadd.f32 %v3033_v17, %v2824_v45 }
 0x4db   : > { %v3242_v29 = vpop.permute.xlu1 %3241 }
 0x4dc   : > { %v3245_v24 = vrot.slane %v3242_v29, 4 }
 0x4de   : > { %v3246_v21 = vsel %vm2378_vm1, %v3245_v24, %v3242_v29  ;;  %v13515_v29 = vmov 0 }
 0x4df   : > { %v3031_v23 = vpop.permute.xlu1 %3030  ;;  %v3250_v5 = vadd.f32 %v3246_v21, %v3037_v38  ;;  %v13516_v29 = vsel %vm11500_vm2, 4294967295, %v13515_v29 }
 0x4e0   : > { %v3034_v36 = vsel %vm2378_vm1, %v3032_v42, %v3031_v23  ;;  %13517 = vst [vmem:[#allocation30_spill] sm:$0xff] %v13516_v29  ;;  %v5262_v42 = vld [vmem:[#allocation3 + $0x44] sm:$0x1]  ;;  %v5254_v23 = vsel %vm11500_vm2, 0, %v5253_v58 }
 0x4e1   : > { %v3038_v61 = vadd.f32 %v3034_v36, %v2825_v20  ;;  %v5263_v15 = vsel %vm11500_vm2, 0, %v5262_v42  ;;  %5255 = vst [vmem:[#allocation3 + $0x2c] sm:$0x1] %v5254_v23 }
 0x4e2   : > { %5264 = vst [vmem:[#allocation3 + $0x44] sm:$0x1] %v5263_v15 }
 0x4e3   : > { %v3244_v16 = vpop.permute.xlu1 %3243 }
 0x4e4   : > { %v3247_v62 = vsel %vm2378_vm1, %v3245_v24, %v3244_v16  ;;  %v5244_v24 = vld [vmem:[#allocation3 + $0x14] sm:$0x1] }
 0x4e5   : > { %v3251_v50 = vadd.f32 %v3247_v62, %v3038_v61  ;;  %v5245_v33 = vsel %vm11500_vm2, 0, %v5244_v24 }
 0x4e6   : > { %5246 = vst [vmem:[#allocation3 + $0x14] sm:$0x1] %v5245_v33 }
 0x4e7   : > { %v3457_v46 = vpop.permute.xlu1 %3456 }
 0x4eb   : > { %v3455_v25 = vpop.permute.xlu0 %3454 }
 0x4ec   : > { %v3458_v53 = vrot.slane %v3455_v25, 4 }
 0x4ee   : > { %v3459_v7 = vsel %vm2378_vm1, %v3458_v53, %v3455_v25  ;;  %v3460_v3 = vsel %vm2378_vm1, %v3458_v53, %v3457_v46  ;;  %v3883_v60 = vpop.permute.xlu1 %3882  ;;  %v9979_v53 = vmov 1983009808  }
 0x4ef   : > { %v3463_v51 = vadd.f32 %v3459_v7, %v3250_v5  ;;  %v3464_v1 = vadd.f32 %v3460_v3, %v3251_v50  ;;  %v4466_v45 = vunpack.c.l.s4 %v9979_v53 }
 0x4f1   : > { %v4467_v21 = vunpack.c.0.s8 %v4466_v45 }
 0x4fb   : > { %v3668_v22 = vpop.permute.xlu0 %3667 }
 0x4fc   : > { %v3671_v9 = vrot.slane %v3668_v22, 4 }
 0x4fe   : > { %v3672_v27 = vsel %vm2378_vm1, %v3671_v9, %v3668_v22  ;;  %v5242_v22 = vsel %vm11500_vm2, 0, %v5241_v49 }
 0x4ff   : > { %v3676_v6 = vadd.f32 %v3672_v27, %v3463_v51  ;;  %5243 = vst [vmem:[#allocation3 + $0xc] sm:$0x1] %v5242_v22 }
 0x50b   : > { %v3881_v0 = vpop.permute.xlu0 %3880 }
 0x50c   : > { %v3884_v32 = vrot.slane %v3881_v0, 4 }
 0x50e   : > { %v3885_v54 = vsel %vm2378_vm1, %v3884_v32, %v3881_v0  ;;  %v3886_v8 = vsel %vm2378_vm1, %v3884_v32, %v3883_v60  ;;  %v5247_v0 = vld [vmem:[#allocation3 + $0x1c] sm:$0x1] }
 0x50f   : > { %v3889_v40 = vadd.f32 %v3885_v54, %v3676_v6  ;;  %v5248_v17 = vsel %vm11500_vm2, 0, %v5247_v0 }
 0x510   : > { %5249 = vst [vmem:[#allocation3 + $0x1c] sm:$0x1] %v5248_v17 }
 0x51c   : > { %v4094_v10 = vpop.permute.xlu0 %4093 }
 0x51d   : > { %v4097_v19 = vrot.slane %v4094_v10, 4 }
 0x51f   : > { %v4098_v14 = vsel %vm2378_vm1, %v4097_v19, %v4094_v10 }
 0x520   : > { %v4102_v52 = vadd.f32 %v4098_v14, %v3889_v40 }
 0x527   : > { %v4309_v55 = vpop.permute.xlu1 %4308 }
 0x52d   : > { %v4307_v26 = vpop.permute.xlu0 %4306 }
 0x52e   : > { %v4310_v59 = vrot.slane %v4307_v26, 4 }
 0x530   : > { %v4311_v63 = vsel %vm2378_vm1, %v4310_v59, %v4307_v26  ;;  %v4312_v11 = vsel %vm2378_vm1, %v4310_v59, %v4309_v55 }
 0x531   : > { %v4315_v2 = vadd.f32 %v4311_v63, %v4102_v52  ;;  %v3670_v35 = vpop.permute.xlu0 %3669 }
 0x532   : > { %v3673_v39 = vsel %vm2378_vm1, %v3671_v9, %v3670_v35  ;;  %v13518_v9 = vlaneseq }
 0x533   : > { %v4319_v56 = vcombine.high %v4315_v2, %v4315_v2  ;;  %v3677_v47 = vadd.f32 %v3673_v39, %v3464_v1  ;;  %4320 = vrot.lane.b32.xlu0 %v4315_v2, %s9970_s15  ;;  %v5738_v2 = vld [vmem:[#allocation3 + $0xc] sm:$0x1] }
 0x534   : > { %v4469_v38 = vshrl.u32 %v13518_v9, 7 }
 0x535   : > { %v3890_v41 = vadd.f32 %v3886_v8, %v3677_v47  ;;  %v4096_v31 = vpop.permute.xlu0 %4095  ;;  %4322 = vrot.lane.b32.xlu1 %v4319_v56, %s9970_s15 }
 0x536   : > { %v4099_v37 = vsel %vm2378_vm1, %v4097_v19, %v4096_v31  ;;  %v11520_v10 = vsub.s32 %v4467_v21, %v4469_v38  ;;  %vm5204_vm1 = vsmask.f32 256 }
 0x537   : > { %v4103_v57 = vadd.f32 %v4099_v37, %v3890_v41  ;;  %vm11548_vm4 = vmand %vm5736_vm11, %vm5204_vm1  ;;  %vm5196_vm11 = vcmask 93184  }
 0x538   : > { %vm12467_vm9 = vmand %vm5198_vm15, %vm5204_vm1  ;;  %vm6496_vm15 = vcmask 65584  }
 0x539   : > { %v4316_v48 = vadd.f32 %v4312_v11, %v4103_v57  ;;  %vm12481_vm14 = vmand %vm6276_vm13, %vm5204_vm1  ;;  %vm6929_vm13 = vcmask 1045504  }
 0x53b   : > { %4324 = vrot.lane.b32.xlu0 %v4316_v48, %s9970_s15  ;;  %s9981_s15 = smov 3  }
 0x5a5   : > { %v4321_v43 = vpop.permute.xlu0 %4320 }
 0x5a7   : > { %v4323_v34 = vpop.permute.xlu1 %4322 }
 0x5a8   : > { %v4327_v25 = vsel %vm1156_vm6, %v4321_v43, %v4323_v34 }
 0x5a9   : > { %4332 = vxpose.xlu1.b32.start.end [1/1] (short) %v4327_v25, 128 }
 0x5ad   : > { %v4325_v13 = vpop.permute.xlu0 %4324 }
 0x5ae   : > { %4396 = vxpose.xlu0.b32.start.end [1/1] (short) (narrow) %v4325_v13, 32  ;;  %v4328_v44 = vsel %vm1156_vm6, %v4323_v34, %v4325_v13  ;;  %vm5590_vm6 = vcmask 1042434  }
 0x5bb   : > { %4364 = vxpose.xlu0.b32.start.end [1/1] (short) %v4328_v44, 128 }
 0x625   : > { %v4348_v4 = vpop.trf.xlu1 }
 0x626   : > { %v4464_v7 = vcombine.high %v4348_v4, %v4348_v4  ;;  %v4471_v32 = vrot.slane %v4348_v4, %v11520_v10 }
 0x628   : > { %v4478_v5 = vrot.slane %v4464_v7, %v11520_v10  ;;  %v4479_v16 = vcombine.high %v4471_v32, %v4471_v32  ;;  %v9123_v12 = vpack.c.bf16 %v4471_v32, %v4471_v32 }
 0x629   : > { %v4349_v27 = vpop.trf.xlu1 }
 0x62a   : > { %v4480_v19 = vcombine.high %v4478_v5, %v4478_v5  ;;  %v9124_v18 = vpack.c.bf16 %v4479_v16, %v4479_v16  ;;  %v9125_v28 = vpack.c.bf16 %v4478_v5, %v4478_v5  ;;  %v11524_v51 = vunpack.c.l.b16 %v9123_v12  ;;  %v11539_v35 = vpop.trf.xlu0  ;;  %v5780_v12 = vld [vmem:[#allocation3 + $0x44] sm:$0x1] }
 0x62b   : > { %v4481_v36 = vcombine.high %v4349_v27, %v4349_v27  ;;  %v4488_v54 = vrot.slane %v4349_v27, %v11520_v10 }
 0x62c   : > { %v9126_v20 = vpack.c.bf16 %v4480_v19, %v4480_v19  ;;  %v11527_v46 = vunpack.c.l.b16 %v9124_v18  ;;  %v11529_v6 = vunpack.c.l.b16 %v9125_v28  ;;  %v5588_v62 = vrot.slane %v11524_v51, 7 }
 0x62d   : > { %v4495_v14 = vrot.slane %v4481_v36, %v11520_v10  ;;  %v4496_v61 = vcombine.high %v4488_v54, %v4488_v54  ;;  %v9127_v40 = vpack.c.bf16 %v4488_v54, %v4488_v54  ;;  %v4350_v34 = vpop.trf.xlu1 }
 0x62e   : > { %v11533_v26 = vunpack.c.l.b16 %v9126_v20  ;;  %v5589_v3 = vrot.slane %v11527_v46, 6  ;;  %v5592_v59 = vrot.slane %v11529_v6, 5  ;;  %v4498_v13 = vcombine.high %v4350_v34, %v4350_v34  ;;  %v4413_v49 = vpop.trf.xlu0 }
 0x62f   : > { %v4497_v50 = vcombine.high %v4495_v14, %v4495_v14  ;;  %v9128_v52 = vpack.c.bf16 %v4496_v61, %v4496_v61  ;;  %v9129_v63 = vpack.c.bf16 %v4495_v14, %v4495_v14  ;;  %v11544_v47 = vunpack.c.l.b16 %v9127_v40 }
 0x630   : > { %v5591_v1 = vsel %vm5590_vm6, %v5589_v3, %v5588_v62  ;;  %v5595_v60 = vrot.slane %v11533_v26, 4  ;;  %v4505_v44 = vrot.slane %v4350_v34, %v11520_v10  ;;  %v4512_v42 = vrot.slane %v4498_v13, %v11520_v10 }
 0x631   : > { %v5594_v39 = vsel %vm5593_vm12, %v5592_v59, %v5591_v1  ;;  %v11542_v56 = vpack.c.bf16 %v4497_v50, %v4497_v50  ;;  %v11552_v41 = vunpack.c.l.b16 %v9128_v52  ;;  %v11554_v31 = vunpack.c.l.b16 %v9129_v63  ;;  %v11572_v17 = vpop.trf.xlu1 }
 0x632   : > { %v5597_v8 = vsel %vm5596_vm3, %v5595_v60, %v5594_v39  ;;  %v5598_v37 = vrot.slane %v11544_v47, 3  ;;  %v4513_v15 = vcombine.high %v4505_v44, %v4505_v44  ;;  %v5018_v24 = vcombine.high %v4413_v49, %v4413_v49  ;;  %v4414_v27 = vpop.trf.xlu0 }
 0x633   : > { %v5739_v57 = vsel %vm11548_vm4, %v11542_v56, %v5738_v2  ;;  %v5601_v11 = vrot.slane %v11552_v41, 2  ;;  %v5604_v48 = vrot.slane %v11554_v31, 1  ;;  %v4514_v33 = vcombine.high %v4512_v42, %v4512_v42 }
 0x634   : > { %5740 = vst [vmem:[#allocation3 + $0xc] sm:$0x1] %v5739_v57  ;;  %v5600_v43 = vsel %vm5599_vm5, %v5598_v37, %v5597_v8  ;;  %v9195_v58 = vpack.c.bf16 %v4513_v15, %v4513_v15  ;;  %v9196_v23 = vpack.c.bf16 %v4512_v42, %v4512_v42  ;;  %v11570_v0 = vrot.slane %v4413_v49, %v11520_v10 }
 0x635   : > { %v5603_v25 = vsel %vm5602_vm7, %v5601_v11, %v5600_v43  ;;  %v5032_v53 = vrot.slane %v5018_v24, %v11520_v10  ;;  %v4522_v45 = vrot.slane %v11572_v17, %v11520_v10  ;;  %v9197_v21 = vpack.c.bf16 %v4514_v33, %v4514_v33  ;;  %v4352_v37 = vpop.trf.xlu1 }
 0x636   : > { %v11565_v22 = vsel %vm5605_vm8, %v5604_v48, %v5603_v25  ;;  %v6039_v9 = vunpack.c.l.b16 %v9195_v58  ;;  %v6040_v38 = vunpack.c.l.b16 %v9196_v23  ;;  %v5033_v4 = vcombine.high %v11570_v0, %v11570_v0 }
 0x637   : > { %13521 = vst [vmem:[#allocation41_spill] sm:$0xff] %v11565_v22  ;;  %v6041_v7 = vunpack.c.l.b16 %v9197_v21  ;;  %v5034_v19 = vcombine.high %v5032_v53, %v5032_v53  ;;  %v4530_v28 = vcombine.high %v4522_v45, %v4522_v45  ;;  %v6323_v36 = vrot.slane %v11527_v46, 7 }
 0x638   : > { %v6103_v32 = vrot.slane %v6039_v9, 7  ;;  %v6104_v5 = vrot.slane %v6040_v38, 6  ;;  %v6543_v16 = vrot.slane %v6040_v38, 7  ;;  %v11579_v18 = vpack.c.bf16 %v5033_v4, %v5033_v4 }
 0x639   : > { %v6106_v54 = vrot.slane %v6041_v7, 5  ;;  %v6545_v20 = vrot.slane %v6041_v7, 6  ;;  %v5035_v14 = vcombine.high %v4414_v27, %v4414_v27  ;;  %v9198_v3 = vpack.c.bf16 %v4522_v45, %v4522_v45 }
 0x63a   : > { %13522 = vst [vmem:[#allocation31_spill] sm:$0xff] %v11579_v18  ;;  %v5781_v62 = vsel %vm11548_vm4, %v11579_v18, %v5780_v12  ;;  %v6105_v61 = vsel %vm5590_vm6, %v6104_v5, %v6103_v32  ;;  %v6544_v40 = vsel %vm5590_vm6, %v6543_v16, %v6039_v9  ;;  %v9251_v59 = vpack.c.bf16 %v5034_v19, %v5034_v19 }
 0x63b   : > { %5782 = vst [vmem:[#allocation3 + $0x44] sm:$0x1] %v5781_v62  ;;  %v9199_v50 = vpack.c.bf16 %v4530_v28, %v4530_v28  ;;  %v6324_v52 = vsel %vm5590_vm6, %v6323_v36, %v11524_v51  ;;  %v6325_v46 = vrot.slane %v11529_v6, 6  ;;  %v6042_v63 = vunpack.c.l.b16 %v9198_v3 }
 0x63c   : > { %v5042_v1 = vrot.slane %v4414_v27, %v11520_v10  ;;  %v6107_v60 = vsel %vm5593_vm12, %v6106_v54, %v6105_v61  ;;  %v6546_v2 = vsel %vm5593_vm12, %v6545_v20, %v6544_v40  ;;  %v11594_v8 = vrot.slane %v5035_v14, %v11520_v10 }
 0x63d   : > { %v6043_v39 = vunpack.c.l.b16 %v9199_v50  ;;  %v6108_v57 = vrot.slane %v6042_v63, 4  ;;  %v6547_v11 = vrot.slane %v6042_v63, 5  ;;  %v4532_v43 = vcombine.high %v4352_v37, %v4352_v37 }
 0x63e   : > { %v5050_v48 = vcombine.high %v5042_v1, %v5042_v1  ;;  %v6327_v51 = vrot.slane %v11533_v26, 5  ;;  %v6095_v34 = vunpack.c.l.b16 %v9251_v59  ;;  %v6326_v13 = vsel %vm5593_vm12, %v6325_v46, %v6324_v52 }
 0x63f   : > { %v6110_v6 = vrot.slane %v6043_v39, 3  ;;  %v6549_v25 = vrot.slane %v6043_v39, 4  ;;  %v6109_v49 = vsel %vm5596_vm3, %v6108_v57, %v6107_v60  ;;  %v6548_v44 = vsel %vm5596_vm3, %v6547_v11, %v6546_v2 }
 0x640   : > { %v5001_v42 = vcombine.high %v11539_v35, %v11539_v35  ;;  %v9252_v33 = vpack.c.bf16 %v5042_v1, %v5042_v1  ;;  %v9253_v26 = vpack.c.bf16 %v5050_v48, %v5050_v48  ;;  %v9254_v58 = vpack.c.bf16 %v11594_v8, %v11594_v8  ;;  %v4353_v1 = vpop.trf.xlu1 }
 0x641   : > { %v11603_v15 = vsel %vm5599_vm5, %v6110_v6, %v6109_v49  ;;  %v11606_v24 = vsel %vm5599_vm5, %v6549_v25, %v6548_v44  ;;  %v4546_v23 = vrot.slane %v4532_v43, %v11520_v10  ;;  %v6328_v53 = vsel %vm5596_vm3, %v6327_v51, %v6326_v13  ;;  %v11637_v49 = vpop.trf.xlu0 }
 0x642   : > { %v6329_v45 = vrot.slane %v11544_v47, 4  ;;  %v6194_v21 = vrot.slane %v6095_v34, 7  ;;  %v6096_v9 = vunpack.c.l.b16 %v9252_v33  ;;  %v6097_v38 = vunpack.c.l.b16 %v9253_v26  ;;  %13525 = vst [vmem:[#allocation33_spill] sm:$0xff] %v11637_v49 }
 0x643   : > { %v6098_v4 = vunpack.c.l.b16 %v9254_v58  ;;  %v4547_v7 = vcombine.high %v4546_v23, %v4546_v23  ;;  %v9131_v32 = vpack.c.bf16 %v4546_v23, %v4546_v23  ;;  %v5008_v5 = vrot.slane %v11539_v35, %v11520_v10 }
 0x644   : > { %v5015_v16 = vrot.slane %v5001_v42, %v11520_v10  ;;  %v6195_v12 = vrot.slane %v6096_v9, 6  ;;  %v6634_v27 = vrot.slane %v6096_v9, 7  ;;  %v6197_v19 = vrot.slane %v6097_v38, 5 }
 0x645   : > { %v6199_v28 = vrot.slane %v6098_v4, 4  ;;  %v6636_v36 = vrot.slane %v6097_v38, 6  ;;  %v6638_v54 = vrot.slane %v6098_v4, 5  ;;  %v6330_v20 = vsel %vm5599_vm5, %v6329_v45, %v6328_v53 }
 0x646   : > { %v6331_v47 = vrot.slane %v11552_v41, 3  ;;  %v6196_v62 = vsel %vm5590_vm6, %v6195_v12, %v6194_v21  ;;  %v6635_v14 = vsel %vm5590_vm6, %v6634_v27, %v6095_v34  ;;  %v9132_v40 = vpack.c.bf16 %v4547_v7, %v4547_v7 }
 0x647   : > { %v6198_v61 = vsel %vm5593_vm12, %v6197_v19, %v6196_v62  ;;  %v6637_v35 = vsel %vm5593_vm12, %v6636_v36, %v6635_v14  ;;  %v5532_v3 = vunpack.c.l.b16 %v9131_v32  ;;  %v6333_v59 = vrot.slane %v11554_v31, 2 }
 0x648   : > { %v11624_v50 = vsel %vm5596_vm3, %v6199_v28, %v6198_v61  ;;  %v11627_v52 = vsel %vm5596_vm3, %v6638_v54, %v6637_v35  ;;  %v5016_v46 = vcombine.high %v5008_v5, %v5008_v5  ;;  %v5533_v41 = vunpack.c.l.b16 %v9132_v40 }
 0x649   : > { %13523 = vst [vmem:[#allocation15_spill] sm:$0xff] %v11624_v50  ;;  %13524 = vst [vmem:[#allocation32_spill] sm:$0xff] %v11627_v52  ;;  %v5607_v63 = vrot.slane %v5532_v3, 7  ;;  %v5017_v60 = vcombine.high %v5015_v16, %v5015_v16  ;;  %v6332_v2 = vsel %vm5602_vm7, %v6331_v47, %v6330_v20  ;;  %v4548_v39 = vcombine.high %v4353_v1, %v4353_v1  ;;  %v11659_v20 = vpop.trf.xlu0  ;;  %v4354_v47 = vpop.trf.xlu1 }
 0x64a   : > { %v9181_v57 = vpack.c.bf16 %v5008_v5, %v5008_v5  ;;  %v5608_v11 = vrot.slane %v5533_v41, 6  ;;  %v4515_v48 = vcombine.high %v11572_v17, %v11572_v17  ;;  %v4539_v31 = vrot.slane %v4352_v37, %v11520_v10 }
 0x64b   : > { %v6334_v43 = vsel %vm5605_vm8, %v6333_v59, %v6332_v2  ;;  %v4555_v51 = vrot.slane %v4353_v1, %v11520_v10  ;;  %v5531_v34 = vunpack.c.l.b16 %v11542_v56  ;;  %v9182_v6 = vpack.c.bf16 %v5016_v46, %v5016_v46 }
 0x64c   : > { %v9183_v25 = vpack.c.bf16 %v5015_v16, %v5015_v16  ;;  %v5609_v13 = vsel %vm5590_vm6, %v5608_v11, %v5607_v63  ;;  %v9184_v44 = vpack.c.bf16 %v5017_v60, %v5017_v60  ;;  %v6336_v42 = vrot.slane %v5533_v41, 7 }
 0x64d   : > { %v6427_v33 = vpack.c.b16 %v6334_v43, %v6334_v43  ;;  %v4562_v26 = vrot.slane %v4548_v39, %v11520_v10  ;;  %v11642_v37 = vunpack.c.l.b16 %v9181_v57  ;;  %v4563_v58 = vcombine.high %v4555_v51, %v4555_v51 }
 0x64e   : > { %v9133_v23 = vpack.c.bf16 %v4555_v51, %v4555_v51  ;;  %v4529_v53 = vrot.slane %v4515_v48, %v11520_v10  ;;  %v11645_v45 = vpack.c.bf16 %v4539_v31, %v4539_v31  ;;  %v11648_v38 = vunpack.c.l.b16 %v9182_v6 }
 0x64f   : > { %13526 = vst [vmem:[#allocation43_spill] sm:$0xff] %v11642_v37  ;;  %6443 = vrot.lane.b32.xlu1 %v6427_v33, %s9980_s9  ;;  %v4564_v21 = vcombine.high %v4562_v26, %v4562_v26  ;;  %v9135_v9 = vpack.c.bf16 %v4562_v26, %v4562_v26  ;;  %v11650_v4 = vunpack.c.l.b16 %v9183_v25  ;;  %v9134_v7 = vpack.c.bf16 %v4563_v58, %v4563_v58 }
 0x650   : > { %13527 = vst [vmem:[#allocation16_spill] sm:$0xff] %v11648_v38  ;;  %v5534_v32 = vunpack.c.l.b16 %v9133_v23  ;;  %v9185_v5 = vpack.c.bf16 %v11570_v0, %v11570_v0  ;;  %v6337_v16 = vsel %vm5590_vm6, %v6336_v42, %v5532_v3  ;;  %v11657_v19 = vunpack.c.l.b16 %v9184_v44 }
 0x651   : > { %13528 = vst [vmem:[#allocation34_spill] sm:$0xff] %v11650_v4  ;;  %v9136_v12 = vpack.c.bf16 %v4564_v21, %v4564_v21  ;;  %v11655_v27 = vunpack.c.l.b16 %v9135_v9  ;;  %v5535_v28 = vunpack.c.l.b16 %v9134_v7  ;;  %v4531_v62 = vcombine.high %v4529_v53, %v4529_v53  ;;  %v5744_v9 = vld [vmem:[#allocation3 + $0x14] sm:$0x1] }
 0x652   : > { %13529 = vst [vmem:[#allocation45_spill] sm:$0xff] %v11657_v19  ;;  %v5610_v36 = vrot.slane %v5534_v32, 5  ;;  %v6338_v54 = vrot.slane %v5534_v32, 6  ;;  %v4565_v0 = vcombine.high %v4354_v47, %v4354_v47  ;;  %v11669_v41 = vunpack.c.l.b16 %v9185_v5 }
 0x653   : > { %v11661_v14 = vunpack.c.l.b16 %v9136_v12  ;;  %v5614_v61 = vrot.slane %v11655_v27, 3  ;;  %6225 = vrot.lane.b32.xlu1 %v11645_v45, %s9981_s15  ;;  %v5612_v40 = vrot.slane %v5535_v28, 4  ;;  %v6340_v59 = vrot.slane %v5535_v28, 5  ;;  %v4355_v12 = vpop.trf.xlu1 }
 0x654   : > { %v5611_v35 = vsel %vm5593_vm12, %v5610_v36, %v5609_v13  ;;  %v6339_v3 = vsel %vm5593_vm12, %v6338_v54, %v6337_v16  ;;  %13530 = vst [vmem:[#allocation35_spill] sm:$0xff] %v11669_v41  ;;  %v9200_v63 = vpack.c.bf16 %v4529_v53, %v4529_v53  ;;  %v5051_v60 = vcombine.high %v11594_v8, %v11594_v8  ;;  %v11685_v13 = vpop.trf.xlu0 }
 0x655   : > { %v5616_v1 = vrot.slane %v11661_v14, 2  ;;  %v5613_v2 = vsel %vm5596_vm3, %v5612_v40, %v5611_v35  ;;  %v11676_v39 = vsel %vm5596_vm3, %v6340_v59, %v6339_v3  ;;  %v4572_v57 = vrot.slane %v4354_v47, %v11520_v10 }
 0x656   : > { %v5615_v31 = vsel %vm5599_vm5, %v5614_v61, %v5613_v2  ;;  %v4579_v43 = vrot.slane %v4565_v0, %v11520_v10  ;;  %v9201_v6 = vpack.c.bf16 %v4531_v62, %v4531_v62  ;;  %v11692_v23 = vunpack.c.l.b16 %v9200_v63 }
 0x657   : > { %v5617_v8 = vsel %vm5602_vm7, %v5616_v1, %v5615_v31  ;;  %v4580_v25 = vcombine.high %v4572_v57, %v4572_v57  ;;  %v9255_v53 = vpack.c.bf16 %v5051_v60, %v5051_v60  ;;  %v5059_v21 = vrot.slane %v11637_v49, %v11520_v10 }
 0x658   : > { %v4581_v7 = vcombine.high %v4579_v43, %v4579_v43  ;;  %v9137_v32 = vpack.c.bf16 %v4572_v57, %v4572_v57  ;;  %v4750_v16 = vcombine.high %v11685_v13, %v11685_v13  ;;  %v11701_v36 = vunpack.c.l.b16 %v9201_v6  ;;  %v4382_v31 = vpop.trf.xlu0 }
 0x659   : > { %v11696_v5 = vpack.c.bf16 %v4580_v25, %v4580_v25  ;;  %v4582_v54 = vcombine.high %v4355_v12, %v4355_v12  ;;  %v4589_v47 = vrot.slane %v4355_v12, %v11520_v10  ;;  %v6046_v40 = vunpack.c.l.b16 %v11645_v45 }
 0x65a   : > { %v11705_v61 = vunpack.c.l.b16 %v9137_v32  ;;  %v9203_v35 = vpack.c.bf16 %v4581_v7, %v4581_v7  ;;  %v5067_v3 = vcombine.high %v5059_v21, %v5059_v21  ;;  %v4733_v59 = vcombine.high %v11659_v20, %v11659_v20 }
 0x65b   : > { %v5745_v0 = vsel %vm11548_vm4, %v11696_v5, %v5744_v9  ;;  %v4764_v63 = vrot.slane %v4750_v16, %v11520_v10  ;;  %v11714_v1 = vunpack.c.l.b16 %v9255_v53  ;;  %v9256_v60 = vpack.c.bf16 %v5059_v21, %v5059_v21 }
 0x65c   : > { %5746 = vst [vmem:[#allocation3 + $0x14] sm:$0x1] %v5745_v0  ;;  %v5618_v2 = vrot.slane %v11705_v61, 1  ;;  %v11718_v57 = vrot.slane %v4582_v54, %v11520_v10  ;;  %v4740_v43 = vrot.slane %v11659_v20, %v11520_v10  ;;  %v6047_v45 = vunpack.c.l.b16 %v9203_v35  ;;  %v4383_v53 = vpop.trf.xlu0 }
 0x65d   : > { %13531 = vst [vmem:[#allocation37_spill] sm:$0xff] %v11714_v1  ;;  %v11722_v6 = vpack.c.bf16 %v4764_v63, %v4764_v63  ;;  %v4597_v25 = vcombine.high %v4589_v47, %v4589_v47  ;;  %v11730_v32 = vrot.slane %v6046_v40, 1  ;;  %v9257_v16 = vpack.c.bf16 %v5067_v3, %v5067_v3 }
 0x65e   : > { %v11728_v21 = vsel %vm5605_vm8, %v5618_v2, %v5617_v8  ;;  %v4747_v12 = vrot.slane %v4733_v59, %v11520_v10  ;;  %v4766_v54 = vcombine.high %v4382_v31, %v4382_v31  ;;  %v9204_v0 = vpack.c.bf16 %v4589_v47, %v4589_v47 }
 0x65f   : > { %13532 = vst [vmem:[#allocation47_spill] sm:$0xff] %v11722_v6  ;;  %13533 = vst [vmem:[#allocation7_spill] sm:$0xff] %v11728_v21  ;;  %6237 = vrot.lane.b32.xlu0 %v11722_v6, %s9981_s15  ;;  %v9205_v35 = vpack.c.bf16 %v4597_v25, %v4597_v25  ;;  %v9206_v63 = vpack.c.bf16 %v11718_v57, %v11718_v57  ;;  %v11739_v8 = vunpack.c.l.b16 %v9256_v60  ;;  %v6116_v2 = vrot.slane %v6047_v45, 7 }
 0x660   : > { %13534 = vst [vmem:[#allocation8_spill] sm:$0xff] %v11730_v32  ;;  %v4748_v40 = vcombine.high %v4740_v43, %v4740_v43  ;;  %v6048_v3 = vunpack.c.l.b16 %v9204_v0  ;;  %v4773_v42 = vrot.slane %v4382_v31, %v11520_v10  ;;  %v11744_v26 = vunpack.c.l.b16 %v9257_v16 }
 0x661   : > { %13535 = vst [vmem:[#allocation14_spill] sm:$0xff] %v11739_v8  ;;  %v6049_v58 = vunpack.c.l.b16 %v9205_v35  ;;  %v6050_v59 = vunpack.c.l.b16 %v9206_v63  ;;  %v4749_v47 = vcombine.high %v4747_v12, %v4747_v12  ;;  %v4780_v25 = vrot.slane %v4766_v54, %v11520_v10 }
 0x662   : > { %13536 = vst [vmem:[#allocation38_spill] sm:$0xff] %v11744_v26  ;;  %v6117_v51 = vrot.slane %v6048_v3, 6  ;;  %v6556_v60 = vrot.slane %v6048_v3, 7  ;;  %v9220_v33 = vpack.c.bf16 %v4740_v43, %v4740_v43  ;;  %v9221_v20 = vpack.c.bf16 %v4748_v40, %v4748_v40 }
 0x663   : > { %v6119_v11 = vrot.slane %v6049_v58, 5  ;;  %v6121_v17 = vrot.slane %v6050_v59, 4  ;;  %v6558_v44 = vrot.slane %v6049_v58, 6  ;;  %v6560_v0 = vrot.slane %v6050_v59, 5 }
 0x664   : > { %v6118_v35 = vsel %vm5590_vm6, %v6117_v51, %v6116_v2  ;;  %v6557_v31 = vsel %vm5590_vm6, %v6556_v60, %v6047_v45  ;;  %v4781_v63 = vcombine.high %v4773_v42, %v4773_v42  ;;  %v4782_v48 = vcombine.high %v4780_v25, %v4780_v25 }
 0x665   : > { %v6120_v16 = vsel %vm5593_vm12, %v6119_v11, %v6118_v35  ;;  %v6559_v28 = vsel %vm5593_vm12, %v6558_v44, %v6557_v31  ;;  %v9155_v46 = vpack.c.bf16 %v4773_v42, %v4773_v42  ;;  %v9157_v54 = vpack.c.bf16 %v4780_v25, %v4780_v25 }
 0x666   : > { %v11752_v7 = vsel %vm5596_vm3, %v6121_v17, %v6120_v16  ;;  %v11755_v43 = vsel %vm5596_vm3, %v6560_v0, %v6559_v28  ;;  %v9156_v58 = vpack.c.bf16 %v4781_v63, %v4781_v63  ;;  %v9158_v40 = vpack.c.bf16 %v4782_v48, %v4782_v48  ;;  %v11776_v0 = vpop.trf.xlu1 }
 0x667   : > { %v9222_v51 = vpack.c.bf16 %v4747_v12, %v4747_v12  ;;  %v9223_v2 = vpack.c.bf16 %v4749_v47, %v4749_v47  ;;  %v11757_v45 = vunpack.c.l.b16 %v9155_v46  ;;  %v11759_v3 = vunpack.c.l.b16 %v9157_v54 }
 0x668   : > { %v11761_v11 = vunpack.c.l.b16 %v9156_v58  ;;  %v11763_v44 = vunpack.c.l.b16 %v9158_v40  ;;  %v4783_v42 = vcombine.high %v4383_v53, %v4383_v53  ;;  %v4790_v59 = vrot.slane %v4383_v53, %v11520_v10 }
 0x669   : > { %v11768_v25 = vunpack.c.l.b16 %v9220_v33  ;;  %v5649_v48 = vrot.slane %v11759_v3, 5  ;;  %v11771_v12 = vunpack.c.l.b16 %v9221_v20  ;;  %v5646_v46 = vrot.slane %v11757_v45, 7 }
 0x66a   : > { %v5647_v47 = vrot.slane %v11761_v11, 6  ;;  %v5651_v60 = vrot.slane %v11763_v44, 4  ;;  %v11779_v35 = vunpack.c.l.b16 %v9222_v51  ;;  %v11781_v31 = vunpack.c.l.b16 %v9223_v2  ;;  %v4357_v2 = vpop.trf.xlu1 }
 0x66b   : > { %v4797_v33 = vrot.slane %v4783_v42, %v11520_v10  ;;  %v4798_v54 = vcombine.high %v4790_v59, %v4790_v59  ;;  %v9159_v53 = vpack.c.bf16 %v4790_v59, %v4790_v59  ;;  %v5539_v40 = vunpack.c.l.b16 %v11696_v5 }
 0x66c   : > { %v5648_v16 = vsel %vm5590_vm6, %v5647_v47, %v5646_v46  ;;  %v4757_v47 = vrot.slane %v11685_v13, %v11520_v10  ;;  %v4622_v20 = vrot.slane %v4357_v2, %v11520_v10 }
 0x66d   : > { %v5650_v28 = vsel %vm5593_vm12, %v5649_v48, %v5648_v16  ;;  %v4799_v17 = vcombine.high %v4797_v33, %v4797_v33  ;;  %v5762_v48 = vld [vmem:[#allocation3 + $0x2c] sm:$0x1]  ;;  %v9160_v59 = vpack.c.bf16 %v4798_v54, %v4798_v54  ;;  %v9161_v16 = vpack.c.bf16 %v4797_v33, %v4797_v33 }
 0x66e   : > { %v5652_v42 = vsel %vm5596_vm3, %v5651_v60, %v5650_v28  ;;  %v11801_v58 = vunpack.c.l.b16 %v9159_v53  ;;  %v6335_v28 = vrot.slane %v5531_v34, 1  ;;  %v4615_v60 = vcombine.high %v4357_v2, %v4357_v2  ;;  %v4384_v53 = vpop.trf.xlu0 }
 0x66f   : > { %v11799_v51 = vpack.c.bf16 %v4799_v17, %v4799_v17  ;;  %v11808_v46 = vunpack.c.l.b16 %v9160_v59  ;;  %v11810_v5 = vunpack.c.l.b16 %v9161_v16  ;;  %v11812_v33 = vcombine.high %v4757_v47, %v4757_v47 }
 0x670   : > { %v5653_v17 = vrot.slane %v11801_v58, 3  ;;  %v6428_v34 = vpack.c.b16 %v6335_v28, %v6335_v28  ;;  %v9224_v2 = vpack.c.bf16 %v4757_v47, %v4757_v47  ;;  %v11821_v16 = vrot.slane %v5539_v40, 1 }
 0x671   : > { %v5763_v56 = vsel %vm11548_vm4, %v11799_v51, %v5762_v48  ;;  %v5655_v63 = vrot.slane %v11808_v46, 2  ;;  %v5657_v59 = vrot.slane %v11810_v5, 1  ;;  %v4629_v9 = vrot.slane %v4615_v60, %v11520_v10 }
 0x672   : > { %5764 = vst [vmem:[#allocation3 + $0x2c] sm:$0x1] %v5763_v56  ;;  %v5654_v13 = vsel %vm5599_vm5, %v5653_v17, %v5652_v42  ;;  %6445 = vrot.lane.b32.xlu0 %v6428_v34, %s9980_s9  ;;  %v4630_v62 = vcombine.high %v4622_v20, %v4622_v20  ;;  %v9139_v28 = vpack.c.bf16 %v4622_v20, %v4622_v20  ;;  %v11836_v20 = vunpack.c.l.b16 %v9224_v2 }
 0x673   : > { %v5656_v48 = vsel %vm5602_vm7, %v5655_v63, %v5654_v13  ;;  %v4800_v18 = vcombine.high %v4384_v53, %v4384_v53  ;;  %v4807_v47 = vrot.slane %v4384_v53, %v11520_v10  ;;  %v4631_v6 = vcombine.high %v4629_v9, %v4629_v9 }
 0x674   : > { %v11829_v54 = vsel %vm5605_vm8, %v5657_v59, %v5656_v48  ;;  %v9140_v56 = vpack.c.bf16 %v4630_v62, %v4630_v62  ;;  %v9141_v40 = vpack.c.bf16 %v4629_v9, %v4629_v9  ;;  %v5540_v17 = vunpack.c.l.b16 %v9139_v28 }
 0x675   : > { %13537 = vst [vmem:[#allocation17_spill] sm:$0xff] %v11829_v54  ;;  %v4814_v34 = vrot.slane %v4800_v18, %v11520_v10  ;;  %v4815_v60 = vcombine.high %v4807_v47, %v4807_v47  ;;  %v9142_v13 = vpack.c.bf16 %v4631_v6, %v4631_v6  ;;  %v11840_v59 = vcombine.high %v11718_v57, %v11718_v57  ;;  %v4358_v47 = vpop.trf.xlu1 }
 0x676   : > { %v5541_v53 = vunpack.c.l.b16 %v9140_v56  ;;  %v6375_v42 = vrot.slane %v11761_v11, 7  ;;  %v5542_v28 = vunpack.c.l.b16 %v9141_v40  ;;  %v5620_v49 = vrot.slane %v5540_v17, 7 }
 0x677   : > { %v4816_v62 = vcombine.high %v4814_v34, %v4814_v34  ;;  %v9227_v9 = vpack.c.bf16 %v4815_v60, %v4815_v60  ;;  %v9228_v48 = vpack.c.bf16 %v4814_v34, %v4814_v34  ;;  %v4632_v2 = vcombine.high %v4358_v47, %v4358_v47 }
 0x678   : > { %v5621_v18 = vrot.slane %v5541_v53, 6  ;;  %v6349_v22 = vrot.slane %v5541_v53, 7  ;;  %v4599_v57 = vcombine.high %v11776_v0, %v11776_v0  ;;  %v5543_v56 = vunpack.c.l.b16 %v9142_v13 }
 0x679   : > { %v9229_v30 = vpack.c.bf16 %v4816_v62, %v4816_v62  ;;  %v11843_v63 = vunpack.c.l.b16 %v9228_v48  ;;  %v11849_v60 = vunpack.c.l.b16 %v9227_v9  ;;  %v6377_v11 = vrot.slane %v11759_v3, 6  ;;  %v11858_v62 = vpop.trf.xlu0 }
 0x67a   : > { %v11854_v40 = vrot.slane %v11776_v0, %v11520_v10  ;;  %v5623_v34 = vrot.slane %v5542_v28, 5  ;;  %v6376_v48 = vsel %vm5590_vm6, %v6375_v42, %v11757_v45  ;;  %v5622_v6 = vsel %vm5590_vm6, %v5621_v18, %v5620_v49  ;;  %v5750_v18 = vld [vmem:[#allocation3 + $0x1c] sm:$0x1] }
 0x67b   : > { %v11856_v53 = vunpack.c.l.b16 %v9229_v30  ;;  %v6351_v21 = vrot.slane %v5542_v28, 6  ;;  %v6595_v13 = vrot.slane %v11843_v63, 7  ;;  %v6350_v9 = vsel %vm5590_vm6, %v6349_v22, %v5540_v17 }
 0x67c   : > { %v4639_v0 = vrot.slane %v4358_v47, %v11520_v10  ;;  %v4646_v32 = vrot.slane %v4632_v2, %v11520_v10  ;;  %v5625_v30 = vrot.slane %v5543_v56, 4  ;;  %v6353_v41 = vrot.slane %v5543_v56, 5 }
 0x67d   : > { %v6597_v3 = vrot.slane %v11856_v53, 6  ;;  %v6596_v19 = vsel %vm5590_vm6, %v6595_v13, %v11849_v60  ;;  %v4824_v45 = vrot.slane %v11858_v62, %v11520_v10  ;;  %v5624_v49 = vsel %vm5593_vm12, %v5623_v34, %v5622_v6 }
 0x67e   : > { %v4647_v28 = vcombine.high %v4639_v0, %v4639_v0  ;;  %v4648_v22 = vcombine.high %v4646_v32, %v4646_v32  ;;  %v6352_v17 = vsel %vm5593_vm12, %v6351_v21, %v6350_v9  ;;  %v9143_v47 = vpack.c.bf16 %v4639_v0, %v4639_v0 }
 0x67f   : > { %v6598_v42 = vsel %vm5593_vm12, %v6597_v3, %v6596_v19  ;;  %v9145_v52 = vpack.c.bf16 %v4646_v32, %v4646_v32  ;;  %v4832_v2 = vcombine.high %v4824_v45, %v4824_v45  ;;  %v6379_v56 = vrot.slane %v11763_v44, 5 }
 0x680   : > { %v9144_v4 = vpack.c.bf16 %v4647_v28, %v4647_v28  ;;  %v11876_v26 = vpack.c.bf16 %v4648_v22, %v4648_v22  ;;  %v9230_v13 = vpack.c.bf16 %v4824_v45, %v4824_v45  ;;  %v6378_v8 = vsel %vm5593_vm12, %v6377_v11, %v6376_v48 }
 0x681   : > { %v5544_v1 = vunpack.c.l.b16 %v9143_v47  ;;  %v11879_v6 = vunpack.c.l.b16 %v9145_v52  ;;  %v9231_v19 = vpack.c.bf16 %v4832_v2, %v4832_v2  ;;  %v5626_v34 = vsel %vm5596_vm3, %v5625_v30, %v5624_v49  ;;  %v4359_v47 = vpop.trf.xlu1 }
 0x682   : > { %v6354_v21 = vsel %vm5596_vm3, %v6353_v41, %v6352_v17  ;;  %v11883_v9 = vunpack.c.l.b16 %v9144_v4  ;;  %v5751_v32 = vsel %vm11548_vm4, %v11876_v26, %v5750_v18  ;;  %v9207_v44 = vpack.c.bf16 %v11840_v59, %v11840_v59 }
 0x683   : > { %v5627_v3 = vrot.slane %v5544_v1, 3  ;;  %v5631_v11 = vrot.slane %v11879_v6, 1  ;;  %v6355_v48 = vrot.slane %v5544_v1, 4  ;;  %5752 = vst [vmem:[#allocation3 + $0x1c] sm:$0x1] %v5751_v32  ;;  %v4613_v52 = vrot.slane %v4599_v57, %v11520_v10 }
 0x684   : > { %v6381_v0 = vrot.slane %v11801_v58, 4  ;;  %v5629_v41 = vrot.slane %v11883_v9, 2  ;;  %v11894_v4 = vunpack.c.l.b16 %v9230_v13  ;;  %v6380_v30 = vsel %vm5596_vm3, %v6379_v56, %v6378_v8 }
 0x685   : > { %v5628_v45 = vsel %vm5599_vm5, %v5627_v3, %v5626_v34  ;;  %v11899_v49 = vsel %vm5599_vm5, %v6355_v48, %v6354_v21  ;;  %v11901_v59 = vunpack.c.l.b16 %v9231_v19  ;;  %v4614_v1 = vcombine.high %v11854_v40, %v11854_v40  ;;  %v4386_v34 = vpop.trf.xlu0 }
 0x686   : > { %v5630_v57 = vsel %vm5602_vm7, %v5629_v41, %v5628_v45  ;;  %v4817_v58 = vcombine.high %v11858_v62, %v11858_v62  ;;  %v6599_v28 = vrot.slane %v11894_v4, 5  ;;  %v5563_v22 = vunpack.c.l.b16 %v11799_v51 }
 0x687   : > { %v6383_v8 = vrot.slane %v11808_v46, 3  ;;  %v11912_v17 = vsel %vm5605_vm8, %v5631_v11, %v5630_v57  ;;  %v6601_v18 = vrot.slane %v11901_v59, 4  ;;  %v13539_v2 = vpack.c.bf16 %v11812_v33, %v11812_v33 }
 0x688   : > { %13538 = vst [vmem:[#allocation36_spill] sm:$0xff] %v11912_v17  ;;  %v6382_v13 = vsel %vm5599_vm5, %v6381_v0, %v6380_v30  ;;  %v6600_v62 = vsel %vm5596_vm3, %v6599_v28, %v6598_v42  ;;  %v4649_v19 = vcombine.high %v4359_v47, %v4359_v47  ;;  %v11923_v46 = vunpack.c.l.b16 %v9207_v44 }
 0x689   : > { %v11918_v56 = vunpack.c.l.b16 %v13539_v2  ;;  %v6385_v21 = vrot.slane %v11810_v5, 2  ;;  %v11927_v32 = vsel %vm5599_vm5, %v6601_v18, %v6600_v62  ;;  %v9208_v33 = vpack.c.bf16 %v11854_v40, %v11854_v40 }
 0x68a   : > { %v9209_v3 = vpack.c.bf16 %v4614_v1, %v4614_v1  ;;  %v4831_v11 = vrot.slane %v4817_v58, %v11520_v10  ;;  %v4656_v48 = vrot.slane %v4359_v47, %v11520_v10  ;;  %v11933_v42 = vpack.c.bf16 %v4613_v52, %v4613_v52 }
 0x68b   : > { %13540 = vst [vmem:[#allocation19_spill] sm:$0xff] %v11918_v56  ;;  %v4834_v0 = vcombine.high %v4386_v34, %v4386_v34  ;;  %v6384_v41 = vsel %vm5602_vm7, %v6383_v8, %v6382_v13  ;;  %v6387_v44 = vrot.slane %v5563_v22, 1  ;;  %v4663_v57 = vrot.slane %v4649_v19, %v11520_v10 }
 0x68c   : > { %v4664_v1 = vcombine.high %v4656_v48, %v4656_v48  ;;  %v6386_v58 = vsel %vm5605_vm8, %v6385_v21, %v6384_v41  ;;  %v11942_v52 = vunpack.c.l.b16 %v9208_v33  ;;  %v6155_v18 = vrot.slane %v11849_v60, 7 }
 0x68d   : > { %v6436_v28 = vpack.c.b16 %v6387_v44, %v6387_v44  ;;  %v6156_v22 = vrot.slane %v11843_v63, 6  ;;  %v4833_v8 = vcombine.high %v4831_v11, %v4831_v11  ;;  %v11946_v47 = vunpack.c.l.b16 %v9209_v3  ;;  %v4360_v44 = vpop.trf.xlu1 }
 0x68e   : > { %v6054_v2 = vunpack.c.l.b16 %v11933_v42  ;;  %v4848_v13 = vrot.slane %v4834_v0, %v11520_v10  ;;  %v6435_v62 = vpack.c.b16 %v6386_v58, %v6386_v58  ;;  %v9232_v21 = vpack.c.bf16 %v4831_v11, %v4831_v11 }
 0x68f   : > { %6461 = vrot.lane.b32.xlu1 %v6436_v28, %s9980_s9  ;;  %v4665_v48 = vcombine.high %v4663_v57, %v4663_v57  ;;  %v9212_v33 = vpack.c.bf16 %v4663_v57, %v4663_v57  ;;  %v6158_v63 = vrot.slane %v11856_v53, 5  ;;  %v9211_v3 = vpack.c.bf16 %v4664_v1, %v4664_v1 }
 0x690   : > { %6459 = vrot.lane.b32.xlu0 %v6435_v62, %s9980_s9  ;;  %v6157_v58 = vsel %vm5590_vm6, %v6156_v22, %v6155_v18  ;;  %v9233_v28 = vpack.c.bf16 %v4833_v8, %v4833_v8  ;;  %v4666_v45 = vcombine.high %v4360_v44, %v4360_v44  ;;  %v11959_v5 = vrot.slane %v6054_v2, 1 }
 0x691   : > { %v4849_v30 = vcombine.high %v4848_v13, %v4848_v13  ;;  %v11963_v51 = vunpack.c.l.b16 %v9232_v21  ;;  %v9213_v53 = vpack.c.bf16 %v4665_v48, %v4665_v48  ;;  %v6056_v1 = vunpack.c.l.b16 %v9212_v33  ;;  %v4387_v21 = vpop.trf.xlu0  ;;  %v4361_v37 = vpop.trf.xlu1 }
 0x692   : > { %13541 = vst [vmem:[#allocation39_spill] sm:$0xff] %v11959_v5  ;;  %v9163_v62 = vpack.c.bf16 %v4848_v13, %v4848_v13  ;;  %v6159_v19 = vsel %vm5593_vm12, %v6158_v63, %v6157_v58  ;;  %v6160_v18 = vrot.slane %v11894_v4, 4  ;;  %v6055_v22 = vunpack.c.l.b16 %v9211_v3  ;;  %v5256_v58 = vld [vmem:[#allocation3 + $0x34] sm:$0x1] }
 0x693   : > { %v11968_v8 = vunpack.c.l.b16 %v9233_v28  ;;  %v4841_v2 = vrot.slane %v4386_v34, %v11520_v10  ;;  %v4673_v11 = vrot.slane %v4360_v44, %v11520_v10  ;;  %v4680_v57 = vrot.slane %v4666_v45, %v11520_v10 }
 0x694   : > { %v6162_v33 = vrot.slane %v11901_v59, 3  ;;  %v9164_v63 = vpack.c.bf16 %v4849_v30, %v4849_v30  ;;  %v6057_v4 = vunpack.c.l.b16 %v9213_v53  ;;  %v6569_v3 = vrot.slane %v6056_v1, 7 }
 0x695   : > { %13542 = vst [vmem:[#allocation20_spill] sm:$0xff] %v11968_v8  ;;  %v5564_v28 = vunpack.c.l.b16 %v9163_v62  ;;  %v6161_v0 = vsel %vm5596_vm3, %v6160_v18, %v6159_v19  ;;  %v6129_v34 = vrot.slane %v6055_v22, 7  ;;  %v6130_v60 = vrot.slane %v6056_v1, 6 }
 0x696   : > { %v4857_v44 = vrot.slane %v4387_v21, %v11520_v10  ;;  %v11980_v41 = vpack.c.bf16 %v4841_v2, %v4841_v2  ;;  %v4681_v48 = vcombine.high %v4673_v11, %v4673_v11  ;;  %v4682_v13 = vcombine.high %v4680_v57, %v4680_v57 }
 0x697   : > { %v6132_v40 = vrot.slane %v6057_v4, 5  ;;  %v5565_v59 = vunpack.c.l.b16 %v9164_v63  ;;  %v4850_v30 = vcombine.high %v4387_v21, %v4387_v21  ;;  %v13544_v53 = vrot.slane %v11692_v23, 2 }
 0x698   : > { %13543 = vst [vmem:[#allocation40_spill] sm:$0xff] %v11980_v41  ;;  %v6570_v19 = vsel %vm5590_vm6, %v6569_v3, %v6055_v22  ;;  %v6571_v1 = vrot.slane %v6057_v4, 6  ;;  %v5659_v18 = vrot.slane %v5564_v28, 7  ;;  %v13545_v5 = vrot.slane %v11701_v36, 1 }
 0x699   : > { %v6113_v62 = vsel %vm5602_vm7, %v13544_v53, %v11603_v15  ;;  %v6131_v45 = vsel %vm5590_vm6, %v6130_v60, %v6129_v34  ;;  %v9214_v54 = vpack.c.bf16 %v4673_v11, %v4673_v11  ;;  %v4865_v17 = vcombine.high %v4857_v44, %v4857_v44 }
 0x69a   : > { %v6115_v2 = vsel %vm5605_vm8, %v13545_v5, %v6113_v62  ;;  %v9215_v21 = vpack.c.bf16 %v4681_v48, %v4681_v48  ;;  %v9216_v50 = vpack.c.bf16 %v4680_v57, %v4680_v57  ;;  %v9165_v38 = vpack.c.bf16 %v4857_v44, %v4857_v44 }
 0x69b   : > { %v6207_v63 = vpack.c.b16 %v6115_v2, %v6115_v2  ;;  %v5257_v15 = vsel %vm11500_vm2, 0, %v5256_v58  ;;  %v5660_v53 = vrot.slane %v5565_v59, 6  ;;  %v6388_v22 = vrot.slane %v5565_v59, 7  ;;  %v4388_v59 = vpop.trf.xlu0 }
 0x69c   : > { %v4864_v4 = vrot.slane %v4850_v30, %v11520_v10  ;;  %v4683_v3 = vcombine.high %v4361_v37, %v4361_v37  ;;  %5258 = vst [vmem:[#allocation3 + $0x34] sm:$0x1] %v5257_v15  ;;  %v11996_v5 = vsel %vm5599_vm5, %v6162_v33, %v6161_v0  ;;  %v9217_v57 = vpack.c.bf16 %v4682_v13, %v4682_v13 }
 0x69d   : > { %6223 = vrot.lane.b32.xlu1 %v6207_v63, %s9981_s15  ;;  %v6133_v48 = vsel %vm5593_vm12, %v6132_v40, %v6131_v45  ;;  %v6572_v58 = vsel %vm5593_vm12, %v6571_v1, %v6570_v19  ;;  %v9166_v44 = vpack.c.bf16 %v4865_v17, %v4865_v17  ;;  %v6058_v30 = vunpack.c.l.b16 %v9214_v54 }
 0x69e   : > { %v6059_v62 = vunpack.c.l.b16 %v9215_v21  ;;  %v12003_v2 = vunpack.c.l.b16 %v9216_v50  ;;  %v5566_v63 = vunpack.c.l.b16 %v9165_v38  ;;  %v5661_v0 = vsel %vm5590_vm6, %v5660_v53, %v5659_v18 }
 0x69f   : > { %v6389_v33 = vsel %vm5590_vm6, %v6388_v22, %v5564_v28  ;;  %v4866_v15 = vcombine.high %v4864_v4, %v4864_v4  ;;  %v4697_v13 = vrot.slane %v4683_v3, %v11520_v10  ;;  %v12008_v11 = vunpack.c.l.b16 %v9217_v57 }
 0x6a0   : > { %v9167_v40 = vpack.c.bf16 %v4864_v4, %v4864_v4  ;;  %v12011_v45 = vrot.slane %v4388_v59, %v11520_v10  ;;  %v13546_v54 = vrot.slane %v11692_v23, 3  ;;  %v6134_v17 = vrot.slane %v6058_v30, 4 }
 0x6a1   : > { %v5567_v38 = vunpack.c.l.b16 %v9166_v44  ;;  %v4867_v19 = vcombine.high %v4388_v59, %v4388_v59  ;;  %v13547_v1 = vrot.slane %v11701_v36, 2  ;;  %v5662_v18 = vrot.slane %v5566_v63, 5 }
 0x6a2   : > { %v6552_v50 = vsel %vm5602_vm7, %v13546_v54, %v11606_v24  ;;  %v4690_v21 = vrot.slane %v4361_v37, %v11520_v10  ;;  %v4882_v53 = vcombine.high %v12011_v45, %v12011_v45  ;;  %v6136_v4 = vrot.slane %v6059_v62, 3 }
 0x6a3   : > { %v6554_v28 = vsel %vm5605_vm8, %v13547_v1, %v6552_v50  ;;  %v9168_v23 = vpack.c.bf16 %v4866_v15, %v4866_v15  ;;  %v4698_v57 = vcombine.high %v4697_v13, %v4697_v13  ;;  %v5768_v24 = vld [vmem:[#allocation3 + $0x34] sm:$0x1]  ;;  %v6573_v59 = vrot.slane %v6058_v30, 5 }
 0x6a4   : > { %v6647_v22 = vpack.c.b16 %v6554_v28, %v6554_v28  ;;  %v12025_v54 = vunpack.c.l.b16 %v9167_v40  ;;  %v12027_v36 = vpack.c.bf16 %v4882_v53, %v4882_v53  ;;  %v6575_v37 = vrot.slane %v6059_v62, 4  ;;  %v4362_v40 = vpop.trf.xlu1 }
 0x6a5   : > { %v5664_v50 = vrot.slane %v5567_v38, 4  ;;  %v6390_v1 = vrot.slane %v5566_v63, 6  ;;  %v4881_v28 = vrot.slane %v4867_v19, %v11520_v10  ;;  %v5663_v34 = vsel %vm5593_vm12, %v5662_v18, %v5661_v0  ;;  %v4389_v18 = vpop.trf.xlu0 }
 0x6a6   : > { %6663 = vrot.lane.b32.xlu1 %v6647_v22, %s9982_s25  ;;  %v9147_v15 = vpack.c.bf16 %v4697_v13, %v4697_v13  ;;  %v12032_v60 = vpack.c.bf16 %v4690_v21, %v4690_v21  ;;  %v5769_v30 = vsel %vm11548_vm4, %v12027_v36, %v5768_v24  ;;  %v6135_v53 = vsel %vm5596_vm3, %v6134_v17, %v6133_v48 }
 0x6a7   : > { %v12038_v44 = vunpack.c.l.b16 %v9168_v23  ;;  %v9148_v22 = vpack.c.bf16 %v4698_v57, %v4698_v57  ;;  %5770 = vst [vmem:[#allocation3 + $0x34] sm:$0x1] %v5769_v30  ;;  %v4706_v62 = vrot.slane %v4362_v40, %v11520_v10  ;;  %v6574_v63 = vsel %vm5596_vm3, %v6573_v59, %v6572_v58 }
 0x6a8   : > { %v5666_v13 = vrot.slane %v12025_v54, 3  ;;  %v4699_v19 = vcombine.high %v4362_v40, %v4362_v40  ;;  %v5665_v48 = vsel %vm5596_vm3, %v5664_v50, %v5663_v34  ;;  %v6392_v17 = vrot.slane %v5567_v38, 5 }
 0x6a9   : > { %v4883_v21 = vcombine.high %v4881_v28, %v4881_v28  ;;  %v12049_v23 = vsel %vm5599_vm5, %v6136_v4, %v6135_v53  ;;  %v6391_v57 = vsel %vm5593_vm12, %v6390_v1, %v6389_v33  ;;  %v5548_v58 = vunpack.c.l.b16 %v9147_v15 }
 0x6aa   : > { %6241 = vrot.lane.b32.xlu1 %v11980_v41, %s9981_s15  ;;  %v6062_v24 = vunpack.c.l.b16 %v12032_v60  ;;  %v12054_v59 = vsel %vm5599_vm5, %v6575_v37, %v6574_v63  ;;  %v5668_v30 = vrot.slane %v12038_v44, 2  ;;  %v5549_v40 = vunpack.c.l.b16 %v9148_v22 }
 0x6ab   : > { %v4714_v0 = vcombine.high %v4706_v62, %v4706_v62  ;;  %v5667_v34 = vsel %vm5599_vm5, %v5666_v13, %v5665_v48  ;;  %v9169_v38 = vpack.c.bf16 %v12011_v45, %v12011_v45  ;;  %v4713_v4 = vrot.slane %v4699_v19, %v11520_v10 }
 0x6ac   : > { %v9149_v50 = vpack.c.bf16 %v4706_v62, %v4706_v62  ;;  %v13548_v33 = vpack.c.b16 %v11821_v16, %v11821_v16  ;;  %v12066_v37 = vsel %vm5596_vm3, %v6392_v17, %v6391_v57  ;;  %v9235_v15 = vpack.c.bf16 %v4883_v21, %v4883_v21  ;;  %v5250_v62 = vld [vmem:[#allocation3 + $0x24] sm:$0x1] }
 0x6ad   : > { %v5633_v53 = vrot.slane %v5548_v58, 7  ;;  %v5634_v22 = vrot.slane %v5549_v40, 6  ;;  %v12070_v63 = vrot.slane %v6062_v24, 1  ;;  %v4891_v45 = vrot.slane %v4389_v18, %v11520_v10 }
 0x6ae   : > { %6449 = vrot.lane.b32.xlu1 %v13548_v33, %s9980_s9  ;;  %v6362_v13 = vrot.slane %v5549_v40, 7  ;;  %v12074_v19 = vsel %vm5602_vm7, %v5668_v30, %v5667_v34  ;;  %v9150_v16 = vpack.c.bf16 %v4714_v0, %v4714_v0  ;;  %v4884_v48 = vcombine.high %v4389_v18, %v4389_v18 }
 0x6af   : > { %13549 = vst [vmem:[#allocation22_spill] sm:$0xff] %v12070_v63  ;;  %v12076_v17 = vunpack.c.l.b16 %v9169_v38  ;;  %v5571_v57 = vunpack.c.l.b16 %v12027_v36  ;;  %v4715_v33 = vcombine.high %v4713_v4, %v4713_v4  ;;  %v5550_v3 = vunpack.c.l.b16 %v9149_v50 }
 0x6b0   : > { %v12081_v21 = vunpack.c.l.b16 %v9235_v15  ;;  %v9151_v24 = vpack.c.bf16 %v4713_v4, %v4713_v4  ;;  %v13550_v40 = vrot.slane %v11963_v51, 2  ;;  %v5251_v0 = vsel %vm11500_vm2, 0, %v5250_v62 }
 0x6b1   : > { %v5635_v18 = vsel %vm5590_vm6, %v5634_v22, %v5633_v53  ;;  %v5636_v34 = vrot.slane %v5550_v3, 5  ;;  %v4899_v38 = vcombine.high %v4891_v45, %v4891_v45  ;;  %5252 = vst [vmem:[#allocation3 + $0x24] sm:$0x1] %v5251_v0  ;;  %v5551_v50 = vunpack.c.l.b16 %v9150_v16  ;;  %v12101_v16 = vpop.trf.xlu0 }
 0x6b2   : > { %6229 = vrot.lane.b32.xlu1 %v11933_v42, %s9981_s15  ;;  %v6165_v30 = vsel %vm5602_vm7, %v13550_v40, %v11996_v5  ;;  %v4363_v42 = vpop.trf.xlu1  ;;  %v4898_v4 = vrot.slane %v4884_v48, %v11520_v10  ;;  %v9236_v15 = vpack.c.bf16 %v4891_v45, %v4891_v45  ;;  %v13551_v28 = vrot.slane %v11968_v8, 1 }
 0x6b3   : > { %v6363_v40 = vsel %vm5590_vm6, %v6362_v13, %v5548_v58  ;;  %v5670_v62 = vrot.slane %v12076_v17, 1  ;;  %v6400_v53 = vrot.slane %v5571_v57, 1  ;;  %v9152_v22 = vpack.c.bf16 %v4715_v33, %v4715_v33 }
 0x6b4   : > { %v6167_v5 = vsel %vm5605_vm8, %v13551_v28, %v6165_v30  ;;  %v6168_v36 = vrot.slane %v12081_v21, 7  ;;  %v12099_v1 = vunpack.c.l.b16 %v9151_v24  ;;  %v5638_v0 = vrot.slane %v5551_v50, 4 }
 0x6b5   : > { %v4716_v41 = vcombine.high %v4363_v42, %v4363_v42  ;;  %v5637_v45 = vsel %vm5593_vm12, %v5636_v34, %v5635_v18  ;;  %v9237_v48 = vpack.c.bf16 %v4899_v38, %v4899_v38  ;;  %v6215_v63 = vpack.c.b16 %v6167_v5, %v6167_v5 }
 0x6b6   : > { %v12105_v28 = vrot.slane %v4363_v42, %v11520_v10  ;;  %v6364_v58 = vrot.slane %v5550_v3, 6  ;;  %v4900_v13 = vcombine.high %v4898_v4, %v4898_v4  ;;  %v12107_v30 = vunpack.c.l.b16 %v9236_v15 }
 0x6b7   : > { %v13552_v57 = vrot.slane %v11655_v27, 4  ;;  %v12113_v24 = vunpack.c.l.b16 %v9152_v22  ;;  %v5640_v8 = vrot.slane %v12099_v1, 3  ;;  %6239 = vrot.lane.b32.xlu0 %v6215_v63, %s9981_s15  ;;  %v13553_v34 = vrot.slane %v11661_v14, 3 }
 0x6b8   : > { %v4731_v18 = vcombine.high %v12105_v28, %v12105_v28  ;;  %v5639_v38 = vsel %vm5596_vm3, %v5638_v0, %v5637_v45  ;;  %v9238_v42 = vpack.c.bf16 %v4898_v4, %v4898_v4  ;;  %v5756_v15 = vld [vmem:[#allocation3 + $0x24] sm:$0x1]  ;;  %v4730_v27 = vrot.slane %v4716_v41, %v11520_v10  ;;  %v4391_v0 = vpop.trf.xlu0 }
 0x6b9   : > { %v6343_v33 = vsel %vm5599_vm5, %v13552_v57, %v11676_v39  ;;  %v13554_v39 = vrot.slane %v11705_v61, 2  ;;  %v6366_v22 = vrot.slane %v5551_v50, 5  ;;  %v12127_v57 = vunpack.c.l.b16 %v9237_v48 }
 0x6ba   : > { %v6345_v3 = vsel %vm5602_vm7, %v13553_v34, %v6343_v33  ;;  %v12129_v63 = vpack.c.bf16 %v4731_v18, %v4731_v18  ;;  %v5642_v14 = vrot.slane %v12113_v24, 2  ;;  %v6365_v33 = vsel %vm5593_vm12, %v6364_v58, %v6363_v40 }
 0x6bb   : > { %v6347_v5 = vsel %vm5605_vm8, %v13554_v39, %v6345_v3  ;;  %13555 = vst [vmem:[#allocation49_spill] sm:$0xff] %v12127_v57  ;;  %v9239_v34 = vpack.c.bf16 %v4900_v13, %v4900_v13  ;;  %v6169_v4 = vrot.slane %v12107_v30, 6  ;;  %v6438_v45 = vpack.c.b16 %v6400_v53, %v6400_v53 }
 0x6bc   : > { %v6429_v56 = vpack.c.b16 %v6347_v5, %v6347_v5  ;;  %v5641_v41 = vsel %vm5599_vm5, %v5640_v8, %v5639_v38  ;;  %v5757_v61 = vsel %vm11548_vm4, %v12129_v63, %v5756_v15  ;;  %v4908_v50 = vrot.slane %v12101_v16, %v11520_v10 }
 0x6bd   : > { %v12142_v18 = vunpack.c.l.b16 %v9238_v42  ;;  %v4732_v40 = vcombine.high %v4730_v27, %v4730_v27  ;;  %5758 = vst [vmem:[#allocation3 + $0x24] sm:$0x1] %v5757_v61  ;;  %v4917_v58 = vcombine.high %v4391_v0, %v4391_v0  ;;  %v12146_v53 = vsel %vm5605_vm8, %v5670_v62, %v12074_v19  ;;  %v5259_v27 = vld [vmem:[#allocation3 + $0x3c] sm:$0x1] }
 0x6be   : > { %6447 = vrot.lane.b32.xlu0 %v6429_v56, %s9980_s9  ;;  %v12149_v8 = vsel %vm5596_vm3, %v6366_v22, %v6365_v33  ;;  %v6171_v3 = vrot.slane %v12127_v57, 5  ;;  %v12154_v38 = vunpack.c.l.b16 %v9239_v34  ;;  %v6170_v42 = vsel %vm5590_vm6, %v6169_v4, %v6168_v36 }
 0x6bf   : > { %v12158_v15 = vsel %vm5602_vm7, %v5642_v14, %v5641_v41  ;;  %v6608_v19 = vrot.slane %v12107_v30, 7  ;;  %v4901_v39 = vcombine.high %v12101_v16, %v12101_v16  ;;  %v4916_v5 = vcombine.high %v4908_v50, %v4908_v50  ;;  %v4392_v14 = vpop.trf.xlu0 }
 0x6c0   : > { %13556 = vst [vmem:[#allocation21_spill] sm:$0xff] %v12154_v38  ;;  %v6173_v22 = vrot.slane %v12142_v18, 4  ;;  %v9219_v33 = vpack.c.bf16 %v4732_v40, %v4732_v40  ;;  %v4924_v34 = vrot.slane %v4391_v0, %v11520_v10  ;;  %v4931_v36 = vrot.slane %v4917_v58, %v11520_v10 }
 0x6c1   : > { %v6172_v4 = vsel %vm5593_vm12, %v6171_v3, %v6170_v42  ;;  %v5260_v30 = vsel %vm11500_vm2, 0, %v5259_v27  ;;  %v4934_v41 = vcombine.high %v4392_v14, %v4392_v14  ;;  %v13557_v16 = vrot.slane %v11923_v46, 3 }
 0x6c2   : > { %6465 = vrot.lane.b32.xlu0 %v6438_v45, %s9980_s9  ;;  %v9153_v45 = vpack.c.bf16 %v12105_v28, %v12105_v28  ;;  %v9240_v40 = vpack.c.bf16 %v4908_v50, %v4908_v50  ;;  %v4932_v62 = vcombine.high %v4924_v34, %v4924_v34  ;;  %5261 = vst [vmem:[#allocation3 + $0x3c] sm:$0x1] %v5260_v30  ;;  %v12182_v56 = vunpack.c.l.b16 %v9219_v33 }
 0x6c3   : > { %v6124_v61 = vsel %vm5599_vm5, %v13557_v16, %v11752_v7  ;;  %v4941_v0 = vrot.slane %v4392_v14, %v11520_v10  ;;  %v4915_v58 = vrot.slane %v4901_v39, %v11520_v10  ;;  %v9241_v3 = vpack.c.bf16 %v4916_v5, %v4916_v5 }
 0x6c4   : > { %v4933_v42 = vcombine.high %v4931_v36, %v4931_v36  ;;  %v12180_v27 = vrot.slane %v4934_v41, %v11520_v10  ;;  %v9172_v13 = vpack.c.bf16 %v4932_v62, %v4932_v62  ;;  %v9173_v48 = vpack.c.bf16 %v4931_v36, %v4931_v36 }
 0x6c5   : > { %v13558_v7 = vrot.slane %v11942_v52, 2  ;;  %v6175_v50 = vrot.slane %v12154_v38, 3  ;;  %v12190_v14 = vsel %vm5590_vm6, %v6608_v19, %v12081_v21  ;;  %v9171_v39 = vpack.c.bf16 %v4924_v34, %v4924_v34 }
 0x6c6   : > { %v4950_v5 = vcombine.high %v12180_v27, %v12180_v27  ;;  %v12194_v30 = vunpack.c.l.b16 %v9153_v45  ;;  %v12196_v33 = vunpack.c.l.b16 %v9240_v40  ;;  %v12198_v62 = vunpack.c.l.b16 %v9172_v13  ;;  %v4393_v13 = vpop.trf.xlu0 }
 0x6c7   : > { %v6126_v28 = vsel %vm5602_vm7, %v13558_v7, %v6124_v61  ;;  %v4949_v36 = vcombine.high %v4941_v0, %v4941_v0  ;;  %v6174_v41 = vsel %vm5596_vm3, %v6173_v22, %v6172_v4  ;;  %v5555_v16 = vunpack.c.l.b16 %v12129_v63 }
 0x6c8   : > { %13559 = vst [vmem:[#allocation42_spill] sm:$0xff] %v12196_v33  ;;  %v9174_v61 = vpack.c.bf16 %v4933_v42, %v4933_v42  ;;  %v12202_v7 = vpack.c.bf16 %v4950_v5, %v4950_v5  ;;  %v13560_v21 = vrot.slane %v11768_v25, 7  ;;  %v12208_v34 = vpack.c.bf16 %v4915_v58, %v4915_v58 }
 0x6c9   : > { %v12210_v45 = vunpack.c.l.b16 %v9241_v3  ;;  %v12212_v40 = vunpack.c.l.b16 %v9173_v48  ;;  %v12215_v22 = vunpack.c.l.b16 %v9171_v39  ;;  %v6401_v63 = vrot.slane %v12198_v62, 7  ;;  %v5774_v4 = vld [vmem:[#allocation3 + $0x3c] sm:$0x1] }
 0x6ca   : > { %v6583_v19 = vsel %vm5590_vm6, %v13560_v21, %v12182_v56  ;;  %v9175_v42 = vpack.c.bf16 %v4941_v0, %v4941_v0  ;;  %v6177_v38 = vrot.slane %v12196_v33, 2  ;;  %v9176_v21 = vpack.c.bf16 %v4949_v36, %v4949_v36 }
 0x6cb   : > { %13561 = vst [vmem:[#allocation52_spill] sm:$0xff] %v12210_v45  ;;  %v5775_v58 = vsel %vm11548_vm4, %v12202_v7, %v5774_v4  ;;  %v6142_v48 = vrot.slane %v12182_v56, 7  ;;  %v12224_v3 = vrot.slane %v5555_v16, 1  ;;  %v13562_v39 = vrot.slane %v11771_v12, 6  ;;  %vm12560_vm4 = vmand %vm6496_vm15, %vm5204_vm1 }
 0x6cc   : > { %v12231_v57 = vunpack.c.l.b16 %v9174_v61  ;;  %5776 = vst [vmem:[#allocation3 + $0x3c] sm:$0x1] %v5775_v58  ;;  %v6179_v0 = vrot.slane %v12210_v45, 1  ;;  %v6403_v36 = vrot.slane %v12212_v40, 6  ;;  %v9177_v55 = vpack.c.bf16 %v12180_v27, %v12180_v27 }
 0x6cd   : > { %v12229_v29 = vsel %vm5593_vm12, %v13562_v39, %v6583_v19  ;;  %v13563_v4 = vrot.slane %v11946_v47, 1  ;;  %v6402_v16 = vsel %vm5590_vm6, %v6401_v63, %v12215_v22  ;;  %v12242_v5 = vunpack.c.l.b16 %v9175_v42 }
 0x6ce   : > { %v13564_v61 = vrot.slane %v12025_v54, 4  ;;  %v12248_v39 = vunpack.c.l.b16 %v9176_v21  ;;  %v13565_v45 = vrot.slane %v12038_v44, 3  ;;  %v4951_v33 = vcombine.high %v4393_v13, %v4393_v13 }
 0x6cf   : > { %v6128_v56 = vsel %vm5605_vm8, %v13563_v4, %v6126_v28  ;;  %v4958_v28 = vrot.slane %v4393_v13, %v11520_v10  ;;  %v4394_v4 = vpop.trf.xlu0  ;;  %v6405_v63 = vrot.slane %v12231_v57, 5  ;;  %v13566_v42 = vrot.slane %v12076_v17, 2 }
 0x6d0   : > { %v6209_v19 = vpack.c.b16 %v6128_v56, %v6128_v56  ;;  %v6395_v58 = vsel %vm5599_vm5, %v13564_v61, %v12066_v37  ;;  %v13567_v37 = vrot.slane %v11923_v46, 4  ;;  %v6176_v44 = vsel %vm5599_vm5, %v6175_v50, %v6174_v41 }
 0x6d1   : > { %v6397_v27 = vsel %vm5602_vm7, %v13565_v45, %v6395_v58  ;;  %v6404_v45 = vsel %vm5593_vm12, %v6403_v36, %v6402_v16  ;;  %v4965_v13 = vrot.slane %v4951_v33, %v11520_v10  ;;  %v4966_v61 = vcombine.high %v4958_v28, %v4958_v28 }
 0x6d2   : > { %6227 = vrot.lane.b32.xlu0 %v6209_v19, %s9981_s15  ;;  %v6399_v54 = vsel %vm5605_vm8, %v13566_v42, %v6397_v27  ;;  %v6563_v21 = vsel %vm5599_vm5, %v13567_v37, %v11755_v43  ;;  %v13568_v58 = vrot.slane %v11942_v52, 3  ;;  %v6178_v17 = vsel %vm5602_vm7, %v6177_v38, %v6176_v44 }
 0x6d3   : > { %v6437_v56 = vpack.c.b16 %v6399_v54, %v6399_v54  ;;  %v4968_v27 = vcombine.high %v4394_v4, %v4394_v4  ;;  %v4975_v42 = vrot.slane %v4394_v4, %v11520_v10  ;;  %v4967_v43 = vcombine.high %v4965_v13, %v4965_v13 }
 0x6d4   : > { %v6565_v19 = vsel %vm5602_vm7, %v13568_v58, %v6563_v21  ;;  %v9243_v46 = vpack.c.bf16 %v4966_v61, %v4966_v61  ;;  %v9244_v50 = vpack.c.bf16 %v4965_v13, %v4965_v13  ;;  %v13569_v41 = vrot.slane %v11946_v47, 2 }
 0x6d5   : > { %6463 = vrot.lane.b32.xlu1 %v6437_v56, %s9980_s9  ;;  %v6180_v16 = vsel %vm5605_vm8, %v6179_v0, %v6178_v17  ;;  %v4982_v52 = vrot.slane %v4968_v27, %v11520_v10  ;;  %v4983_v28 = vcombine.high %v4975_v42, %v4975_v42  ;;  %v9245_v54 = vpack.c.bf16 %v4967_v43, %v4967_v43 }
 0x6d6   : > { %v6567_v36 = vsel %vm5605_vm8, %v13569_v41, %v6565_v19  ;;  %v12277_v38 = vunpack.c.l.b16 %v9243_v46  ;;  %v12279_v37 = vunpack.c.l.b16 %v9244_v50  ;;  %v6217_v4 = vpack.c.b16 %v6180_v16, %v6180_v16 }
 0x6d7   : > { %v6649_v33 = vpack.c.b16 %v6567_v36, %v6567_v36  ;;  %v4984_v21 = vcombine.high %v4982_v52, %v4982_v52  ;;  %v9246_v44 = vpack.c.bf16 %v4975_v42, %v4975_v42  ;;  %v9247_v56 = vpack.c.bf16 %v4983_v28, %v4983_v28 }
 0x6d8   : > { %v9248_v47 = vpack.c.bf16 %v4982_v52, %v4982_v52  ;;  %v12282_v13 = vunpack.c.l.b16 %v9177_v55  ;;  %v12284_v61 = vunpack.c.l.b16 %v9245_v54  ;;  %v6181_v0 = vrot.slane %v12277_v38, 7 }
 0x6d9   : > { %6667 = vrot.lane.b32.xlu0 %v6649_v33, %s9982_s25  ;;  %v6182_v58 = vrot.slane %v12279_v37, 6  ;;  %6243 = vrot.lane.b32.xlu1 %v6217_v4, %s9981_s15  ;;  %v6407_v19 = vrot.slane %v12242_v5, 4  ;;  %v9249_v17 = vpack.c.bf16 %v4984_v21, %v4984_v21  ;;  %v12290_v27 = vunpack.c.l.b16 %v9246_v44 }
 0x6da   : > { %v12292_v43 = vunpack.c.l.b16 %v9247_v56  ;;  %v13570_v42 = vrot.slane %v11768_v25, 6  ;;  %v6406_v46 = vsel %vm5596_vm3, %v6405_v63, %v6404_v45  ;;  %v6184_v41 = vrot.slane %v12284_v61, 5  ;;  %v12309_v25 = vpop.trf.xlu0 }
 0x6db   : > { %v6183_v50 = vsel %vm5590_vm6, %v6182_v58, %v6181_v0  ;;  %v6434_v36 = vpack.c.b16 %v12224_v3, %v12224_v3  ;;  %v12302_v33 = vunpack.c.l.b16 %v9248_v47  ;;  %v12304_v16 = vunpack.c.l.b16 %v9249_v17 }
 0x6dc   : > { %v6144_v55 = vsel %vm5590_vm6, %v13570_v42, %v6142_v48  ;;  %v6186_v52 = vrot.slane %v12290_v27, 4  ;;  %v13571_v48 = vrot.slane %v11779_v35, 5  ;;  %v6409_v45 = vrot.slane %v12248_v39, 3 }
 0x6dd   : > { %6245 = vrot.lane.b32.xlu0 %v12208_v34, %s9981_s15  ;;  %v6185_v28 = vsel %vm5593_vm12, %v6184_v41, %v6183_v50  ;;  %v6188_v54 = vrot.slane %v12292_v43, 3  ;;  %v13572_v4 = vrot.slane %v11771_v12, 5  ;;  %v6408_v44 = vsel %vm5599_vm5, %v6407_v19, %v6406_v46 }
 0x6de   : > { %v12315_v63 = vsel %vm5596_vm3, %v13571_v48, %v12229_v29  ;;  %v6411_v56 = vrot.slane %v12282_v13, 2  ;;  %v6187_v47 = vsel %vm5596_vm3, %v6186_v52, %v6185_v28  ;;  %v5672_v0 = vrot.slane %v12215_v22, 7 }
 0x6df   : > { %v6146_v21 = vsel %vm5593_vm12, %v13572_v4, %v6144_v55  ;;  %v5673_v29 = vrot.slane %v12198_v62, 6  ;;  %v13573_v58 = vrot.slane %v11883_v9, 3  ;;  %v4985_v12 = vcombine.high %v12309_v25, %v12309_v25 }
 0x6e0   : > { %v6190_v42 = vrot.slane %v12302_v33, 2  ;;  %v6192_v19 = vrot.slane %v12304_v16, 1  ;;  %v13574_v55 = vrot.slane %v11879_v6, 2  ;;  %v13575_v22 = vunpack.c.l.b16 %v11876_v26 }
 0x6e1   : > { %v6358_v17 = vsel %vm5602_vm7, %v13573_v58, %v11899_v49  ;;  %v6189_v62 = vsel %vm5599_vm5, %v6188_v54, %v6187_v47  ;;  %v4999_v9 = vrot.slane %v4985_v12, %v11520_v10  ;;  %v6410_v49 = vsel %vm5602_vm7, %v6409_v45, %v6408_v44 }
 0x6e2   : > { %v6360_v46 = vsel %vm5605_vm8, %v13574_v55, %v6358_v17  ;;  %v6361_v50 = vrot.slane %v13575_v22, 1  ;;  %v5675_v52 = vrot.slane %v12212_v40, 5  ;;  %v6412_v28 = vsel %vm5605_vm8, %v6411_v56, %v6410_v49 }
 0x6e3   : > { %v6431_v41 = vpack.c.b16 %v6360_v46, %v6360_v46  ;;  %v13576_v6 = vrot.slane %v12003_v2, 2  ;;  %v5674_v26 = vsel %vm5590_vm6, %v5673_v29, %v5672_v0  ;;  %v5677_v58 = vrot.slane %v12231_v57, 4 }
 0x6e4   : > { %v6432_v48 = vpack.c.b16 %v6361_v50, %v6361_v50  ;;  %v5000_v54 = vcombine.high %v4999_v9, %v4999_v9  ;;  %v9179_v47 = vpack.c.bf16 %v4999_v9, %v4999_v9  ;;  %v5579_v45 = vunpack.c.l.b16 %v12202_v7 }
 0x6e5   : > { %v6139_v4 = vsel %vm5602_vm7, %v13576_v6, %v12049_v23  ;;  %6451 = vrot.lane.b32.xlu1 %v6431_v41, %s9980_s9  ;;  %v5679_v40 = vrot.slane %v12242_v5, 3  ;;  %v6439_v44 = vpack.c.b16 %v6412_v28, %v6412_v28  ;;  %v6191_v56 = vsel %vm5602_vm7, %v6190_v42, %v6189_v62 }
 0x6e6   : > { %6453 = vrot.lane.b32.xlu0 %v6432_v48, %s9980_s9  ;;  %v9180_v17 = vpack.c.bf16 %v5000_v54, %v5000_v54  ;;  %v5580_v12 = vunpack.c.l.b16 %v9179_v47  ;;  %v13577_v23 = vrot.slane %v12008_v11, 1  ;;  %v6193_v57 = vsel %vm5605_vm8, %v6192_v19, %v6191_v56  ;;  %v13584_v54 = vld [vmem:[#allocation19_spill] sm:$0xff]  ;;  %v13586_v56 = vld [vmem:[#allocation20_spill] sm:$0xff] }
 0x6e7   : > { %v5676_v29 = vsel %vm5593_vm12, %v5675_v52, %v5674_v26  ;;  %v5681_v55 = vrot.slane %v12248_v39, 2  ;;  %v5683_v46 = vrot.slane %v12282_v13, 1  ;;  %v6621_v5 = vrot.slane %v12279_v37, 7  ;;  %v9850_v13 = vld [vmem:[%s13338_s3] sm:$0x3f]  }
 0x6e8   : > { %v6141_v0 = vsel %vm5605_vm8, %v13577_v23, %v6139_v4  ;;  %v5581_v22 = vunpack.c.l.b16 %v9180_v17  ;;  %v5685_v50 = vrot.slane %v5580_v12, 7  ;;  %v13578_v42 = vrot.slane %v12003_v2, 3  ;;  %9692 = vmatprep.subr.msk.bf16.mxu0 %vm6929_vm13, %v9850_v13 }
 0x6e9   : > { %6233 = vrot.lane.b32.xlu1 %v12032_v60, %s9981_s15  ;;  %v13579_v19 = vrot.slane %v11779_v35, 4  ;;  %v6623_v9 = vrot.slane %v12284_v61, 6  ;;  %v6211_v49 = vpack.c.b16 %v6141_v0, %v6141_v0  ;;  %v6219_v37 = vpack.c.b16 %v6193_v57, %v6193_v57  ;;  %v12386_v61 = vpop.permute.xlu1 %6443 }
 0x6ea   : > { %v6578_v62 = vsel %vm5602_vm7, %v13578_v42, %v12054_v59  ;;  %6467 = vrot.lane.b32.xlu0 %v6439_v44, %s9980_s9  ;;  %v13580_v52 = vrot.slane %v11781_v31, 3  ;;  %v5686_v60 = vrot.slane %v5581_v22, 6  ;;  %v6414_v28 = vrot.slane %v5581_v22, 7  ;;  %v13589_v22 = vld [vmem:[#allocation43_spill] sm:$0xff] }
 0x6eb   : > { %v6148_v41 = vsel %vm5596_vm3, %v13579_v19, %v6146_v21  ;;  %v13581_v2 = vrot.slane %v11836_v20, 2  ;;  %v13582_v35 = vrot.slane %v11963_v51, 3  ;;  %v6622_v6 = vsel %vm5590_vm6, %v6621_v5, %v12277_v38  ;;  %v13594_v19 = vld [vmem:[#allocation16_spill] sm:$0xff] }
 0x6ec   : > { %v6150_v48 = vsel %vm5599_vm5, %v13580_v52, %v6148_v41  ;;  %v13583_v4 = vrot.slane %v12008_v11, 2  ;;  %v13585_v47 = vrot.slane %v13584_v54, 1  ;;  %v13587_v17 = vrot.slane %v13586_v56, 2  ;;  %v13598_v52 = vld [vmem:[#allocation15_spill] sm:$0xff] }
 0x6ed   : > { %v6152_v59 = vsel %vm5602_vm7, %v13581_v2, %v6150_v48  ;;  %v6604_v21 = vsel %vm5602_vm7, %v13582_v35, %v11927_v32  ;;  %v4992_v32 = vrot.slane %v12309_v25, %v11520_v10  ;;  %v5687_v23 = vsel %vm5590_vm6, %v5686_v60, %v5685_v50  ;;  %6231 = vrot.lane.b32.xlu1 %v6211_v49, %s9981_s15  ;;  %v13599_v48 = vld [vmem:[#allocation37_spill] sm:$0xff] }
 0x6ee   : > { %v6580_v26 = vsel %vm5605_vm8, %v13583_v4, %v6578_v62  ;;  %v12396_v44 = vsel %vm5605_vm8, %v13585_v47, %v6152_v59  ;;  %v12401_v51 = vsel %vm5605_vm8, %v13587_v17, %v6604_v21  ;;  %v6415_v38 = vsel %vm5590_vm6, %v6414_v28, %v5580_v12  ;;  %6247 = vrot.lane.b32.xlu0 %v6219_v37, %s9981_s15  ;;  %v6238_v4 = vpop.permute.xlu0 %6237 }
 0x6ef   : > { %v13588_v11 = vrot.slane %v12099_v1, 4  ;;  %v5678_v57 = vsel %vm5596_vm3, %v5677_v58, %v5676_v29  ;;  %v6625_v5 = vrot.slane %v12290_v27, 5  ;;  %v13590_v42 = vrot.slane %v13589_v22, 5 }
 0x6f0   : > { %v13591_v25 = vrot.slane %v11781_v31, 4  ;;  %v6624_v50 = vsel %vm5593_vm12, %v6623_v9, %v6622_v6  ;;  %v13592_v1 = vrot.slane %v13589_v22, 6  ;;  %v6651_v58 = vpack.c.b16 %v6580_v26, %v6580_v26  ;;  %v6226_v6 = vpop.permute.xlu1 %6225  ;;  %v6278_v22 = vld [vmem:[#allocation3 + $0xc] sm:$0x1] }
 0x6f1   : > { %v6369_v0 = vsel %vm5599_vm5, %v13588_v11, %v12149_v8  ;;  %v5689_v62 = vsel %vm5593_vm12, %v13590_v42, %v5687_v23  ;;  %v13593_v27 = vrot.slane %v11836_v20, 3  ;;  %v13595_v41 = vrot.slane %v13594_v19, 4  ;;  %v13608_v23 = vld [vmem:[#allocation34_spill] sm:$0xff]  ;;  %v13614_v42 = vld [vmem:[#allocation32_spill] sm:$0xff] }
 0x6f2   : > { %v6589_v12 = vsel %vm5599_vm5, %v13591_v25, %v12315_v63  ;;  %v6417_v8 = vsel %vm5593_vm12, %v13592_v1, %v6415_v38  ;;  %v13596_v37 = vrot.slane %v12113_v24, 3  ;;  %v13597_v63 = vrot.slane %v13584_v54, 2  ;;  %6671 = vrot.lane.b32.xlu1 %v6651_v58, %s9982_s25  ;;  %v13601_v24 = vld [vmem:[#allocation14_spill] sm:$0xff]  ;;  %6457 = vrot.lane.b32.xlu0 %v6434_v36, %s9980_s9 }
 0x6f3   : > { %v6591_v29 = vsel %vm5602_vm7, %v13593_v27, %v6589_v12  ;;  %v5691_v49 = vsel %vm5596_vm3, %v13595_v41, %v5689_v62  ;;  %v13600_v60 = vrot.slane %v13599_v48, 3  ;;  %v5680_v28 = vsel %vm5599_vm5, %v5679_v40, %v5678_v57  ;;  %v13603_v40 = vld [vmem:[#allocation38_spill] sm:$0xff]  ;;  %v6296_v12 = vld [vmem:[#allocation3 + $0x24] sm:$0x1] }
 0x6f4   : > { %v6371_v31 = vsel %vm5602_vm7, %v13596_v37, %v6369_v0  ;;  %v12438_v9 = vsel %vm5605_vm8, %v13597_v63, %v6591_v29  ;;  %v6627_v2 = vrot.slane %v12292_v43, 4  ;;  %v12446_v59 = vpack.c.bf16 %v4992_v32, %v4992_v32  ;;  %v5209_v32 = vld [vmem:[#allocation3 + $0x8] sm:$0x1]  ;;  %v5224_v37 = vld [vmem:[#allocation3 + $0x30] sm:$0x1] }
 0x6f5   : > { %v6202_v20 = vsel %vm5599_vm5, %v13600_v60, %v13598_v52  ;;  %v13602_v35 = vrot.slane %v13601_v24, 2  ;;  %v6626_v26 = vsel %vm5596_vm3, %v6625_v5, %v6624_v50  ;;  %v13604_v54 = vrot.slane %v13603_v40, 1  ;;  %v13616_v50 = vld [vmem:[#allocation45_spill] sm:$0xff]  ;;  %v5221_v41 = vld [vmem:[#allocation3 + $0x28] sm:$0x1]  ;;  %v13619_v63 = vld [vmem:[#allocation35_spill] sm:$0xff] }
 0x6f6   : > { %v13605_v47 = vrot.slane %v13594_v19, 5  ;;  %v13609_v3 = vrot.slane %v13608_v23, 3  ;;  %v13610_v38 = vrot.slane %v12194_v30, 2  ;;  %v13611_v0 = vrot.slane %v13608_v23, 4  ;;  %6249 = vrot.lane.b32.xlu1 %v12446_v59, %s9981_s15 }
 0x6f7   : > { %v6204_v21 = vsel %vm5602_vm7, %v13602_v35, %v6202_v20  ;;  %v13615_v62 = vrot.slane %v13599_v48, 4  ;;  %v13617_v1 = vrot.slane %v13616_v50, 3  ;;  %v6279_v58 = vsel %vm12481_vm14, %v6226_v6, %v6278_v22 }
 0x6f8   : > { %v12460_v43 = vsel %vm5605_vm8, %v13604_v54, %v6204_v21  ;;  %v6419_v56 = vsel %vm5596_vm3, %v13605_v47, %v6417_v8  ;;  %v5693_v36 = vsel %vm5599_vm5, %v13609_v3, %v5691_v49  ;;  %v6373_v11 = vsel %vm5605_vm8, %v13610_v38, %v6371_v31  ;;  %v5212_v49 = vld [vmem:[#allocation3 + $0x10] sm:$0x1]  ;;  %6280 = vst [vmem:[#allocation3 + $0xc] sm:$0x1] %v6279_v58  ;;  %v5218_v47 = vld [vmem:[#allocation3 + $0x20] sm:$0x1] }
 0x6f9   : > { %v6421_v57 = vsel %vm5599_vm5, %v13611_v0, %v6419_v56  ;;  %v6641_v25 = vsel %vm5599_vm5, %v13615_v62, %v13614_v42  ;;  %v13618_v27 = vrot.slane %v13601_v24, 3  ;;  %v6297_v19 = vsel %vm12481_vm14, %v6238_v4, %v6296_v12  ;;  %v5215_v24 = vld [vmem:[#allocation3 + $0x18] sm:$0x1]  ;;  %v5230_v56 = vld [vmem:[#allocation3 + $0x40] sm:$0x1]  ;;  %v13628_v62 = vld [vmem:[#allocation22_spill] sm:$0xff] }
 0x6fa   : > { %v6423_v8 = vsel %vm5602_vm7, %v13617_v1, %v6421_v57  ;;  %v5682_v31 = vsel %vm5602_vm7, %v5681_v55, %v5680_v28  ;;  %v13620_v52 = vrot.slane %v13619_v63, 2  ;;  %v13621_v60 = vrot.slane %v13603_v40, 2  ;;  %6298 = vst [vmem:[#allocation3 + $0x24] sm:$0x1] %v6297_v19  ;;  %v5227_v55 = vld [vmem:[#allocation3 + $0x38] sm:$0x1]  ;;  %v6446_v1 = vpop.permute.xlu0 %6445 }
 0x6fb   : > { %v6643_v29 = vsel %vm5602_vm7, %v13618_v27, %v6641_v25  ;;  %v5210_v39 = vsel %vm12467_vm9, 0, %v5209_v32  ;;  %v6628_v28 = vsel %vm5599_vm5, %v6627_v2, %v6626_v26  ;;  %v6629_v35 = vrot.slane %v12302_v33, 3  ;;  %v13623_v40 = vld [vmem:[#allocation8_spill] sm:$0xff] }
 0x6fc   : > { %v12507_v48 = vsel %vm5605_vm8, %v13620_v52, %v6423_v8  ;;  %v12512_v20 = vsel %vm5605_vm8, %v13621_v60, %v6643_v29  ;;  %v13622_v21 = vrot.slane %v13616_v50, 2  ;;  %v6433_v4 = vpack.c.b16 %v6373_v11, %v6373_v11  ;;  %5211 = vst [vmem:[#allocation3 + $0x8] sm:$0x1] %v5210_v39  ;;  %v13639_v60 = vld [vmem:[#allocation21_spill] sm:$0xff] }
 0x6fd   : > { %v13624_v54 = vpack.c.b16 %v13623_v40, %v13623_v40  ;;  %v5222_v32 = vsel %vm12467_vm9, 0, %v5221_v41  ;;  %v5213_v33 = vsel %vm12467_vm9, 0, %v5212_v49  ;;  %v5225_v2 = vsel %vm12467_vm9, 0, %v5224_v37  ;;  %v13635_v41 = vld [vmem:[#allocation49_spill] sm:$0xff] }
 0x6fe   : > { %v5695_v6 = vsel %vm5602_vm7, %v13622_v21, %v5693_v36  ;;  %vm5731_vm6 = vcmask 19456   ;;  %5223 = vst [vmem:[#allocation3 + $0x28] sm:$0x1] %v5222_v32  ;;  %5214 = vst [vmem:[#allocation3 + $0x10] sm:$0x1] %v5213_v33  ;;  %v5216_v26 = vsel %vm12467_vm9, 0, %v5215_v24  ;;  %6455 = vrot.lane.b32.xlu1 %v6433_v4, %s9980_s9  ;;  %v5684_v42 = vsel %vm5605_vm8, %v5683_v46, %v5682_v31 }
 0x6ff   : > { %6665 = vrot.lane.b32.xlu0 %v13624_v54, %s9982_s25  ;;  %5226 = vst [vmem:[#allocation3 + $0x30] sm:$0x1] %v5225_v2  ;;  %v5228_v23 = vsel %vm12467_vm9, 0, %v5227_v55  ;;  %v6631_v3 = vrot.slane %v12304_v16, 2  ;;  %v13625_v36 = vmov 0   ;;  %v5219_v38 = vsel %vm12467_vm9, 0, %v5218_v47  ;;  %vm12578_vm15 = vmand %vm5731_vm6, %vm5236_vm0 }
 0x700   : > { %5197 = vst.msk [vmem:[#allocation3] sm:$0xf] %vm5196_vm11, %v13625_v36  ;;  %5201 = vst.msk [vmem:[#allocation3 + $0x48] sm:$0xf] %vm5196_vm11, %v13625_v36  ;;  %v5231_v11 = vsel %vm12467_vm9, 0, %v5230_v56  ;;  %v13626_v0 = vrot.slane %v13619_v63, 1  ;;  %v13629_v25 = vpack.c.b16 %v13628_v62, %v13628_v62  ;;  %v6630_v12 = vsel %vm5602_vm7, %v6629_v35, %v6628_v28 }
 0x701   : > { %5217 = vst [vmem:[#allocation3 + $0x18] sm:$0x1] %v5216_v26  ;;  %5229 = vst [vmem:[#allocation3 + $0x38] sm:$0x1] %v5228_v23  ;;  %v13627_v16 = vld [vmem:[#allocation36_spill] sm:$0xff]  ;;  %v6612_v46 = vrot.slane %v12142_v18, 5  ;;  %v6213_v27 = vpack.c.b16 %v12396_v44, %v12396_v44  ;;  %v5708_v18 = vpack.c.b16 %v12146_v53, %v12146_v53  ;;  %v6655_v44 = vpack.c.b16 %v12401_v51, %v12401_v51 }
 0x702   : > { %v12546_v57 = vsel %vm5605_vm8, %v13626_v0, %v5695_v6  ;;  %v5702_v22 = vpack.c.b16 %v13627_v16, %v13627_v16  ;;  %5220 = vst [vmem:[#allocation3 + $0x20] sm:$0x1] %v5219_v38  ;;  %5232 = vst [vmem:[#allocation3 + $0x40] sm:$0x1] %v5231_v11  ;;  %v13632_v8 = vrot.slane %v12194_v30, 1  ;;  %v6413_v29 = vrot.slane %v5579_v45, 1 }
 0x703   : > { %6673 = vrot.lane.b32.xlu0 %v13629_v25, %s9982_s25  ;;  %v13636_v30 = vrot.slane %v13635_v41, 6  ;;  %v6498_v49 = vld [vmem:[#allocation3 + $0xc] sm:$0x1]  ;;  %v7036_v7 = vsel %vm6929_vm13, %v9850_v13, 0  ;;  %v13637_v45 = vld [vmem:[#allocation40_spill] sm:$0xff]  ;;  %v5710_v63 = vpack.c.b16 %v5684_v42, %v5684_v42  ;;  %6235 = vrot.lane.b32.xlu1 %v6213_v27, %s9981_s15  ;;  %v6632_v53 = vsel %vm5605_vm8, %v6631_v3, %v6630_v12  ;;  %v13640_v24 = vld [vmem:[#allocation41_spill] sm:$0xff] }
 0x704   : > { %v5645_v58 = vsel %vm5605_vm8, %v13632_v8, %v12158_v15  ;;  %v13638_v37 = vunpack.c.l.b16 %v13637_v45  ;;  %v6499_v52 = vsel %vm12560_vm4, %v6446_v1, %v6498_v49  ;;  %9612 = vmatpush3.bf16.msra.mxu0 %v7036_v7  ;;  %v6614_v51 = vrot.slane %v13639_v60, 4  ;;  %v13642_v21 = vld [vmem:[#allocation33_spill] sm:$0xff]  ;;  %v13645_v3 = vld [vmem:[#allocation7_spill] sm:$0xff]  ;;  %v13647_v16 = vld [vmem:[#allocation42_spill] sm:$0xff] }
 0x705   : > { %v6611_v15 = vsel %vm5593_vm12, %v13636_v30, %v12190_v14  ;;  %v5733_v14 = vld [vmem:[#allocation3 + $0x8] sm:$0xf]  ;;  %v5704_v39 = vpack.c.b16 %v5645_v58, %v5645_v58  ;;  %6500 = vst [vmem:[#allocation3 + $0xc] sm:$0x1] %v6499_v52  ;;  %v13641_v55 = vpack.c.b16 %v13640_v24, %v13640_v24  ;;  %v5712_v35 = vpack.c.b16 %v12546_v57, %v12546_v57  ;;  %v5741_v56 = vld [vmem:[#allocation3 + $0x10] sm:$0xf] }
 0x706   : > { %v6607_v31 = vrot.slane %v13638_v37, 1  ;;  %v5052_v6 = vcombine.high %v13642_v21, %v13642_v21  ;;  %v6613_v4 = vsel %vm5596_vm3, %v6612_v46, %v6611_v15  ;;  %v6094_v40 = vunpack.c.l.b16 %v12446_v59  ;;  %v5759_v47 = vld [vmem:[#allocation3 + $0x28] sm:$0xf]  ;;  %v5765_v32 = vld [vmem:[#allocation3 + $0x30] sm:$0xf]  ;;  %v13643_v2 = vld [vmem:[#allocation17_spill] sm:$0xff] }
 0x707   : > { %6679 = vrot.lane.b32.xlu0 %v6655_v44, %s9982_s25  ;;  %v5734_v28 = vsel %vm12578_vm15, %v13641_v55, %v5733_v14  ;;  %v6440_v54 = vpack.c.b16 %v6413_v29, %v6413_v29  ;;  %v6659_v33 = vpack.c.b16 %v6632_v53, %v6632_v53  ;;  %v13644_v26 = vpack.c.b16 %v13643_v2, %v13643_v2  ;;  %v5206_v11 = vld [vmem:[#allocation3] sm:$0x1]  ;;  %v13648_v27 = vld [vmem:[#allocation39_spill] sm:$0xff]  ;;  %v13649_v30 = vld [vmem:[#allocation52_spill] sm:$0xff] }
 0x708   : > { %5735 = vst [vmem:[#allocation3 + $0x8] sm:$0xf] %v5734_v28  ;;  %v13646_v36 = vpack.c.b16 %v13645_v3, %v13645_v3  ;;  %v5766_v59 = vsel %vm12578_vm15, %v5708_v18, %v5765_v32  ;;  %v5747_v0 = vld [vmem:[#allocation3 + $0x18] sm:$0xf]  ;;  %v6616_v42 = vrot.slane %v13647_v16, 3  ;;  %v5207_v62 = vsel %vm12467_vm9, 0, %v5206_v11 }
 0x709   : > { %v5760_v23 = vsel %vm12578_vm15, %v13644_v26, %v5759_v47  ;;  %v5771_v57 = vld [vmem:[#allocation3 + $0x38] sm:$0xf]  ;;  %6469 = vrot.lane.b32.xlu1 %v6440_v54, %s9980_s9  ;;  %5767 = vst [vmem:[#allocation3 + $0x30] sm:$0xf] %v5766_v59  ;;  %v5748_v25 = vsel %vm12578_vm15, %v5702_v22, %v5747_v0  ;;  %v5753_v1 = vld [vmem:[#allocation3 + $0x20] sm:$0xf]  ;;  %v6615_v46 = vsel %vm5599_vm5, %v6614_v51, %v6613_v4  ;;  %v6086_v24 = vunpack.c.l.b16 %v12208_v34 }
 0x70a   : > { %v5742_v38 = vsel %vm12578_vm15, %v13646_v36, %v5741_v56  ;;  %5761 = vst [vmem:[#allocation3 + $0x28] sm:$0xf] %v5760_v23  ;;  %v5772_v12 = vsel %vm12578_vm15, %v5710_v63, %v5771_v57  ;;  %v5777_v13 = vld [vmem:[#allocation3 + $0x40] sm:$0xf]  ;;  %5208 = vst [vmem:[#allocation3] sm:$0x1] %v5207_v62  ;;  %v5754_v8 = vsel %vm12578_vm15, %v5704_v39, %v5753_v1 }
 0x70b   : > { %5743 = vst [vmem:[#allocation3 + $0x10] sm:$0xf] %v5742_v38  ;;  %6687 = vrot.lane.b32.xlu0 %v6659_v33, %s9982_s25  ;;  %5749 = vst [vmem:[#allocation3 + $0x18] sm:$0xf] %v5748_v25  ;;  %v5778_v58 = vsel %vm12578_vm15, %v5712_v35, %v5777_v13  ;;  %v5066_v22 = vrot.slane %v5052_v6, %v11520_v10  ;;  %v6650_v29 = vpack.c.b16 %v13648_v27, %v13648_v27  ;;  %v5238_v18 = vld [vmem:[#allocation3 + $0x4] sm:$0x1] }
 0x70c   : > { %5773 = vst [vmem:[#allocation3 + $0x38] sm:$0xf] %v5772_v12  ;;  %5755 = vst [vmem:[#allocation3 + $0x20] sm:$0xf] %v5754_v8  ;;  %v6656_v41 = vpack.c.b16 %v6607_v31, %v6607_v31  ;;  %v6618_v15 = vrot.slane %v13649_v30, 2  ;;  %v6633_v44 = vrot.slane %v6094_v40, 1  ;;  %v6617_v19 = vsel %vm5602_vm7, %v6616_v42, %v6615_v46  ;;  %v6460_v46 = vpop.permute.xlu0 %6459 }
 0x70d   : > { %5779 = vst [vmem:[#allocation3 + $0x40] sm:$0xf] %v5778_v58  ;;  %v5239_v7 = vsel %vm11500_vm2, 0, %v5238_v18  ;;  %6669 = vrot.lane.b32.xlu1 %v6650_v29, %s9982_s25  ;;  %v9852_v10 = vld [vmem:[%s13338_s3 + $0x8] sm:$0x3f]   ;;  %v13651_v45 = vld [vmem:[#allocation47_spill] sm:$0xff]  ;;  %v6653_v31 = vpack.c.b16 %v12438_v9, %v12438_v9  ;;  %v9258_v14 = vpack.c.bf16 %v5066_v22, %v5066_v22  ;;  %v6462_v9 = vpop.permute.xlu1 %6461  ;;  %v6221_v23 = vpack.c.b16 %v12460_v43, %v12460_v43 }
 0x70e   : > { %5240 = vst [vmem:[#allocation3 + $0x4] sm:$0x1] %v5239_v7  ;;  %v6070_v37 = vunpack.c.l.b16 %v13651_v45  ;;  %9691 = vmatprep.subr.msk.bf16.mxu1 %vm6929_vm13, %v9852_v10  ;;  %v6931_v63 = vsel %vm6929_vm13, %v9852_v10, 0  ;;  %v13652_v53 = vld [vmem:[#allocation31_spill] sm:$0xff]  ;;  %v6660_v60 = vpack.c.b16 %v6633_v44, %v6633_v44  ;;  %v6619_v51 = vsel %vm5605_vm8, %v6618_v15, %v6617_v19  ;;  %v12680_v26 = vld [vmem:[%s13338_s3 + $0x18] sm:$0x3f]  }
 0x70f   : > { %6681 = vrot.lane.b32.xlu0 %v6656_v41, %s9982_s25  ;;  %v5587_v52 = vunpack.c.l.b16 %v13652_v53  ;;  %9602 = vmatpush3.bf16.msra.mxu1 %v6931_v63  ;;  %v6657_v55 = vpack.c.b16 %v6619_v51, %v6619_v51  ;;  %v6102_v35 = vunpack.c.l.b16 %v9258_v14  ;;  %vm6271_vm12 = vcmask 44056   ;;  %v6273_v34 = vld [vmem:[#allocation3 + $0x8] sm:$0xf]  ;;  %v12675_v2 = vld [vmem:[%s13338_s3 + $0x10] sm:$0x3f]  }
 0x710   : > { %v6594_v39 = vrot.slane %v6070_v37, 1  ;;  %v6620_v6 = vrot.slane %v6086_v24, 1  ;;  %vm12662_vm3 = vmand %vm6271_vm12, %vm5236_vm0  ;;  %vm6491_vm5 = vcmask 68656   ;;  %9693 = vmatprep.subr.msk.bf16.mxu1 %vm6929_vm13, %v12675_v2  ;;  %9694 = vmatprep.subr.msk.bf16.mxu0 %vm6929_vm13, %v12680_v26  ;;  %v6441_v59 = vpack.c.b16 %v12507_v48, %v12507_v48  ;;  %v6302_v11 = vld [vmem:[#allocation3 + $0x2c] sm:$0x1] }
 0x711   : > { %6675 = vrot.lane.b32.xlu1 %v6653_v31, %s9982_s25  ;;  %v6426_v28 = vrot.slane %v5587_v52, 1  ;;  %v6646_v54 = vrot.slane %v6102_v35, 1  ;;  %v6224_v47 = vpop.permute.xlu1 %6223  ;;  %vm12685_vm7 = vmand %vm6491_vm5, %vm5236_vm0  ;;  %vm6711_vm8 = vcmask 93256   ;;  %v6661_v57 = vpack.c.b16 %v12512_v20, %v12512_v20  ;;  %v6284_v25 = vld [vmem:[#allocation3 + $0x14] sm:$0x1] }
 0x712   : > { %v6654_v21 = vpack.c.b16 %v6594_v39, %v6594_v39  ;;  %v6274_v56 = vsel %vm12662_vm3, %v6224_v47, %v6273_v34  ;;  %v6658_v32 = vpack.c.b16 %v6620_v6, %v6620_v6  ;;  %vm12706_vm6 = vmand %vm6711_vm8, %vm5236_vm0  ;;  %v12716_v8 = vld [vmem:[#allocation3] sm:$0xf]  ;;  %vm6916_vm0 = vcmask 97280   ;;  %v6299_v27 = vld [vmem:[#allocation3 + $0x28] sm:$0xf] }
 0x713   : > { %6689 = vrot.lane.b32.xlu0 %v6660_v60, %s9982_s25  ;;  %v6442_v40 = vpack.c.b16 %v6426_v28, %v6426_v28  ;;  %6275 = vst [vmem:[#allocation3 + $0x8] sm:$0xf] %v6274_v56  ;;  %v6662_v33 = vpack.c.b16 %v6646_v54, %v6646_v54  ;;  %v5233_v10 = vld [vmem:[#allocation3 + $0x48] sm:$0x1]  ;;  %v6281_v37 = vld [vmem:[#allocation3 + $0x10] sm:$0xf] }
 0x714   : > { %v5234_v45 = vsel %vm12467_vm9, 0, %v5233_v10  ;;  %v5265_v53 = vld [vmem:[#allocation3 + $0x4c] sm:$0x1]  ;;  %v6305_v51 = vld [vmem:[#allocation3 + $0x30] sm:$0xf]  ;;  %vm7127_vm12 = vcmask 1042432  }
 0x715   : > { %6683 = vrot.lane.b32.xlu1 %v6657_v55, %s9982_s25  ;;  %5235 = vst [vmem:[#allocation3 + $0x48] sm:$0x1] %v5234_v45  ;;  %vm6782_vm11 = vsmask.f32 7440  ;;  %vm7128_vm5 = vcmask 1046532  }
 0x717   : > { %6253 = vrot.lane.b32.xlu0 %v9258_v14, %s9981_s15  ;;  %v5266_v14 = vsel %vm11500_vm2, 0, %v5265_v53  ;;  %vm6716_vm2 = vcmask 90184  }
 0x718   : > { %v6664_v38 = vpop.permute.xlu1 %6663  ;;  %5267 = vst [vmem:[#allocation3 + $0x4c] sm:$0x1] %v5266_v14  ;;  %vm12762_vm9 = vmand %vm6716_vm2, %vm5204_vm1  ;;  %vm6781_vm1 = vsmask.f32 3328 }
 0x719   : > { %6677 = vrot.lane.b32.xlu1 %v6654_v21, %s9982_s25  ;;  %vm12783_vm15 = vmor %vm6781_vm1, %vm6782_vm11 }
 0x71a   : > { %v6493_v36 = vld [vmem:[#allocation3 + $0x8] sm:$0xf] }
 0x71b   : > { %6473 = vrot.lane.b32.xlu0 %v6442_v40, %s9980_s9  ;;  %v6494_v43 = vsel %vm12685_vm7, %v12386_v61, %v6493_v36 }
 0x71c   : > { %6495 = vst [vmem:[#allocation3 + $0x8] sm:$0xf] %v6494_v43  ;;  %v6242_v0 = vpop.permute.xlu1 %6241 }
 0x71d   : > { %6685 = vrot.lane.b32.xlu1 %v6658_v32, %s9982_s25  ;;  %v6303_v16 = vsel %vm12481_vm14, %v6242_v0, %v6302_v11  ;;  %v6290_v32 = vld [vmem:[#allocation3 + $0x1c] sm:$0x1]  ;;  %v6311_v11 = vld [vmem:[#allocation3 + $0x38] sm:$0xf] }
 0x71e   : > { %6304 = vst [vmem:[#allocation3 + $0x2c] sm:$0x1] %v6303_v16  ;;  %v6788_v16 = vshll.u32 %v12716_v8, 16 }
 0x71f   : > { %6693 = vrot.lane.b32.xlu0 %v6662_v33, %s9982_s25 }
 0x720   : > { %v6450_v61 = vpop.permute.xlu1 %6449 }
 0x721   : > { %6251 = vrot.lane.b32.xlu1 %v6221_v23, %s9981_s15  ;;  %s9908_s15 = sshll.u32 %s9983_s22, 4  ;;  %s9909_s15 = int_to_ptr.vmem [resolvable:$false] %s9908_s15 }
 0x722   : > { %p9911_p0 = scmp.lt.s32.totalorder %s13287_s11, %s9909_s15 }
 0x723   : > { %v6713_v42 = vld [vmem:[#allocation3 + $0x8] sm:$0xf] }
 0x724   : > { %v6714_v62 = vsel %vm12706_vm6, %v6664_v38, %v6713_v42  ;;  %v6230_v12 = vpop.permute.xlu1 %6229  ;;  %v6287_v38 = vld [vmem:[#allocation3 + $0x18] sm:$0xf] }
 0x725   : > { %6471 = vrot.lane.b32.xlu1 %v6441_v59, %s9980_s9  ;;  %6715 = vst [vmem:[#allocation3 + $0x8] sm:$0xf] %v6714_v62  ;;  %v6522_v20 = vld [vmem:[#allocation3 + $0x2c] sm:$0x1]  ;;  %v6285_v1 = vsel %vm12481_vm14, %v6230_v12, %v6284_v25  ;;  %v6516_v25 = vld [vmem:[#allocation3 + $0x24] sm:$0x1] }
 0x726   : > { %v6523_v13 = vsel %vm12560_vm4, %v6462_v9, %v6522_v20  ;;  %6286 = vst [vmem:[#allocation3 + $0x14] sm:$0x1] %v6285_v1  ;;  %v6308_v9 = vld [vmem:[#allocation3 + $0x34] sm:$0x1]  ;;  %v6790_v1 = vrot.slane %v6788_v16, 5  ;;  %s9904_s9 = scalar_lea.vmem %s13287_s11, 256 }
 0x727   : > { %6524 = vst [vmem:[#allocation3 + $0x2c] sm:$0x1] %v6523_v13  ;;  %p9905_p11 = scmp.ne.s32.totalorder %s13287_s11, %s9904_s9 }
 0x729   : > { %6691 = vrot.lane.b32.xlu1 %v6661_v57, %s9982_s25  ;;  %v6240_v29 = vpop.permute.xlu0 %6239  ;;  %v6785_v57 = vshrl.u32 %v12716_v8, 16  ;;  %p9906_p12 = pnand %p9905_p11, %p10054_p5  ;;  %s9910_s25 = scalar_lea.vmem %s9909_s15, 512 }
 0x72a   : > { %v6300_v18 = vsel %vm12662_vm3, %v6240_v29, %v6299_v27  ;;  %v6314_v27 = vld [vmem:[#allocation3 + $0x3c] sm:$0x1]  ;;  %p9912_p1 = scmp.lt.s32.totalorder %s9910_s25, %s9904_s9 }
 0x72b   : > { %6301 = vst [vmem:[#allocation3 + $0x28] sm:$0xf] %v6300_v18  ;;  %v6787_v20 = vrot.slane %v6785_v57, 4  ;;  %p9907_p13 = pneg %p9906_p12 }
 0x72c   : > { %v12718_v58 = vld [vmem:[#allocation3 + $0x8] sm:$0xf]  ;;  %p9913_p2 = por %p9912_p1, %p9911_p0 }
 0x72d   : > { %v8983_v22 = vcombine.low %v12716_v8, %v12718_v58  ;;  %v6504_v41 = vld [vmem:[#allocation3 + $0x14] sm:$0x1]  ;;  %v7394_v18 = vld [vmem:[#allocation3 + $0x8] sm:$0xf] }
 0x72e   : > { %v6505_v30 = vsel %vm12560_vm4, %v6450_v61, %v6504_v41  ;;  %v6799_v41 = vshrl.u32 %v12718_v58, 16  ;;  %v7411_v53 = vshrl.u32 %v7394_v18, 16  ;;  %p9914_p3 = pnand %p9913_p2, %p9907_p13 }
 0x72f   : > { %9613 = vmatprep.mubr.msk.bf16.mxu0 %vm6916_vm0, %v8983_v22  ;;  %6506 = vst [vmem:[#allocation3 + $0x14] sm:$0x1] %v6505_v30  ;;  %v12766_v22 = vld [vmem:[#allocation3 + $0x4] sm:$0x1]  ;;  %v6802_v30 = vshll.u32 %v12718_v58, 16 }
 0x730   : > { %v6448_v7 = vpop.permute.xlu0 %6447 }
 0x732   : > { %v6519_v15 = vld [vmem:[#allocation3 + $0x28] sm:$0xf] }
 0x733   : > { %v6520_v44 = vsel %vm12685_vm7, %v6460_v46, %v6519_v15 }
 0x734   : > { %6521 = vst [vmem:[#allocation3 + $0x28] sm:$0xf] %v6520_v44  ;;  %v6466_v19 = vpop.permute.xlu0 %6465 }
 0x744   : > { %v6228_v31 = vpop.permute.xlu0 %6227 }
 0x745   : > { %v6282_v63 = vsel %vm12662_vm3, %v6228_v31, %v6281_v37  ;;  %v6791_v31 = vor.u32 %v6790_v1, %v6787_v20  ;;  %v7132_v1 = vrot.slane %v12766_v22, 5 }
 0x746   : > { %6283 = vst [vmem:[#allocation3 + $0x10] sm:$0xf] %v6282_v63  ;;  %v6794_v63 = vshll.u32 %v12766_v22, 16 }
 0x747   : > { %v6464_v52 = vpop.permute.xlu1 %6463 }
 0x74b   : > { %v6668_v60 = vpop.permute.xlu0 %6667  ;;  %v6244_v39 = vpop.permute.xlu1 %6243 }
 0x74c   : > { %v6306_v17 = vsel %vm12662_vm3, %v6244_v39, %v6305_v51  ;;  %v6804_v51 = vrot.slane %v6802_v30, 5 }
 0x74d   : > { %v6501_v24 = vld [vmem:[#allocation3 + $0x10] sm:$0xf]  ;;  %6307 = vst [vmem:[#allocation3 + $0x30] sm:$0xf] %v6306_v17 }
 0x74e   : > { %v6502_v55 = vsel %vm12685_vm7, %v6448_v7, %v6501_v24  ;;  %v6792_v24 = vrot.slane %v6791_v31, 4 }
 0x74f   : > { %v6246_v28 = vpop.permute.xlu0 %6245  ;;  %6503 = vst [vmem:[#allocation3 + $0x10] sm:$0xf] %v6502_v55  ;;  %v6796_v55 = vrot.slane %v6794_v63, 5 }
 0x750   : > { %v6309_v35 = vsel %vm12481_vm14, %v6246_v28, %v6308_v9  ;;  %v6293_v9 = vld [vmem:[#allocation3 + $0x20] sm:$0xf] }
 0x751   : > { %6310 = vst [vmem:[#allocation3 + $0x34] sm:$0x1] %v6309_v35 }
 0x754   : > { %v6525_v49 = vld [vmem:[#allocation3 + $0x30] sm:$0xf] }
 0x755   : > { %v6526_v21 = vsel %vm12685_vm7, %v6464_v52, %v6525_v49  ;;  %v7414_v52 = vshll.u32 %v7394_v18, 16  ;;  %v7413_v49 = vrot.slane %v7411_v53, 4  ;;  %v6724_v53 = vld [vmem:[#allocation3 + $0x14] sm:$0x1] }
 0x756   : > { %v6721_v40 = vld [vmem:[#allocation3 + $0x10] sm:$0xf]  ;;  %6527 = vst [vmem:[#allocation3 + $0x30] sm:$0xf] %v6526_v21 }
 0x757   : > { %v6452_v6 = vpop.permute.xlu1 %6451  ;;  %v6722_v34 = vsel %vm12706_vm6, %v6668_v60, %v6721_v40  ;;  %v6801_v60 = vrot.slane %v6799_v41, 4  ;;  %v7416_v21 = vrot.slane %v7414_v52, 5  ;;  %v12789_v40 = vsel %vm6929_vm13, %v12675_v2, 0  ;;  %v12805_v2 = vld [vmem:[#allocation3 + $0x8] sm:$0xe] }
 0x758   : > { %v6454_v54 = vpop.permute.xlu0 %6453  ;;  %v6528_v47 = vld [vmem:[#allocation3 + $0x34] sm:$0x1]  ;;  %6723 = vst [vmem:[#allocation3 + $0x10] sm:$0xf] %v6722_v34  ;;  %v12799_v34 = vld [vmem:[%s13338_s3 + $0x28] sm:$0x3f]  }
 0x759   : > { %v6529_v56 = vsel %vm12560_vm4, %v6466_v19, %v6528_v47  ;;  %v6718_v19 = vld [vmem:[#allocation3 + $0xc] sm:$0x1]  ;;  %v8993_v30 = vrot.slane %v12805_v2, 9 }
 0x75a   : > { %6530 = vst [vmem:[#allocation3 + $0x34] sm:$0x1] %v6529_v56  ;;  %v6739_v56 = vld [vmem:[#allocation3 + $0x28] sm:$0xf] }
 0x75b   : > { %v6234_v33 = vpop.permute.xlu1 %6233 }
 0x75c   : > { %v6291_v23 = vsel %vm12481_vm14, %v6234_v33, %v6290_v32  ;;  %v6468_v36 = vpop.permute.xlu0 %6467  ;;  %v6805_v33 = vor.u32 %v6804_v51, %v6801_v60 }
 0x75d   : > { %6292 = vst [vmem:[#allocation3 + $0x1c] sm:$0x1] %v6291_v23  ;;  %v12803_v23 = vld [vmem:[#allocation3] sm:$0xe] }
 0x75e   : > { %v6806_v18 = vrot.slane %v6805_v33, 4 }
 0x75f   : > { %v6232_v59 = vpop.permute.xlu1 %6231  ;;  %v12819_v16 = vld [vmem:[#allocation3 + $0x10] sm:$0xf] }
 0x760   : > { %v6288_v43 = vsel %vm12662_vm3, %v6232_v59, %v6287_v38  ;;  %v6248_v0 = vpop.permute.xlu0 %6247  ;;  %v6816_v31 = vshll.u32 %v12819_v16, 16  ;;  %v7919_v51 = vld [vmem:[#allocation3 + $0x10] sm:$0xf] }
 0x761   : > { %6289 = vst [vmem:[#allocation3 + $0x18] sm:$0xf] %v6288_v43  ;;  %v6312_v61 = vsel %vm12662_vm3, %v6248_v0, %v6311_v11  ;;  %v6797_v43 = vsel %vm12783_vm15, %v6792_v24, %v6796_v55  ;;  %v12813_v11 = vld [vmem:[#allocation3 + $0x8] sm:$0xe] }
 0x762   : > { %6313 = vst [vmem:[#allocation3 + $0x38] sm:$0xf] %v6312_v61  ;;  %v12823_v61 = vsel %vm6929_vm13, %v12680_v26, 0  ;;  %v12838_v26 = vsel %vm6929_vm13, %v12799_v34, 0  ;;  %v6818_v33 = vrot.slane %v6816_v31, 5 }
 0x764   : > { %v12755_v42 = vpop.permute.xlu1 %6671  ;;  %v6510_v62 = vld [vmem:[#allocation3 + $0x1c] sm:$0x1]  ;;  %v6458_v12 = vpop.permute.xlu0 %6457 }
 0x765   : > { %v6511_v13 = vsel %vm12560_vm4, %v6454_v54, %v6510_v62  ;;  %v6517_v46 = vsel %vm12560_vm4, %v6458_v12, %v6516_v25  ;;  %v12794_v54 = vld [vmem:[%s13338_s3 + $0x20] sm:$0x3f]   ;;  %v7417_v62 = vor.u32 %v7416_v21, %v7413_v49  ;;  %v12828_v25 = vld [vmem:[%s13338_s3 + $0x30] sm:$0x3f]  }
 0x766   : > { %6512 = vst [vmem:[#allocation3 + $0x1c] sm:$0x1] %v6511_v13  ;;  %6518 = vst [vmem:[#allocation3 + $0x24] sm:$0x1] %v6517_v46  ;;  %v12834_v13 = vsel %vm6929_vm13, %v12794_v54, 0 }
 0x767   : > { %v12850_v63 = vrot.slane %v7417_v62, 4  ;;  %v7939_v62 = vshll.u32 %v7919_v51, 16 }
 0x768   : > { %v6250_v29 = vpop.permute.xlu1 %6249  ;;  %v6507_v15 = vld [vmem:[#allocation3 + $0x18] sm:$0xf] }
 0x769   : > { %v6315_v44 = vsel %vm12481_vm14, %v6250_v29, %v6314_v27  ;;  %v6508_v10 = vsel %vm12685_vm7, %v6452_v6, %v6507_v15  ;;  %v6531_v45 = vld [vmem:[#allocation3 + $0x38] sm:$0xf] }
 0x76a   : > { %6316 = vst [vmem:[#allocation3 + $0x3c] sm:$0x1] %v6315_v44  ;;  %6509 = vst [vmem:[#allocation3 + $0x18] sm:$0xf] %v6508_v10  ;;  %v6532_v58 = vsel %vm12685_vm7, %v6468_v36, %v6531_v45  ;;  %v6813_v44 = vshrl.u32 %v12819_v16, 16 }
 0x76b   : > { %6533 = vst [vmem:[#allocation3 + $0x38] sm:$0xf] %v6532_v58  ;;  %v7933_v10 = vld [vmem:[#allocation3 + $0x48] sm:$0xf]  ;;  %v6742_v45 = vld [vmem:[#allocation3 + $0x2c] sm:$0x1] }
 0x76c   : > { %v12854_v58 = vsel %vm6929_vm13, %v12828_v25, 0  ;;  %v8037_v49 = vshll.u32 %v7933_v10, 16 }
 0x76d   : > { %v6730_v17 = vld [vmem:[#allocation3 + $0x1c] sm:$0x1] }
 0x770   : > { %v12779_v14 = vpop.permute.xlu1 %6455 }
 0x771   : > { %v6666_v7 = vpop.permute.xlu0 %6665  ;;  %v6727_v36 = vld [vmem:[#allocation3 + $0x18] sm:$0xf]  ;;  %v6534_v12 = vld [vmem:[#allocation3 + $0x3c] sm:$0x1] }
 0x772   : > { %v6719_v37 = vsel %vm12762_vm9, %v6666_v7, %v6718_v19  ;;  %v6728_v0 = vsel %vm12706_vm6, %v12755_v42, %v6727_v36  ;;  %v8992_v42 = vrot.slane %v12803_v23, 9  ;;  %v6751_v27 = vld [vmem:[#allocation3 + $0x38] sm:$0xf]  ;;  %v7396_v7 = vld [vmem:[#allocation3 + $0x10] sm:$0xf]  ;;  %v9033_v19 = vrot.slane %v12813_v11, 9 }
 0x773   : > { %6720 = vst [vmem:[#allocation3 + $0xc] sm:$0x1] %v6719_v37  ;;  %6729 = vst [vmem:[#allocation3 + $0x18] sm:$0xf] %v6728_v0  ;;  %v7936_v36 = vshrl.u32 %v7919_v51, 16 }
 0x775   : > { %v6674_v39 = vpop.permute.xlu0 %6673  ;;  %v6236_v6 = vpop.permute.xlu1 %6235  ;;  %v7938_v51 = vrot.slane %v7936_v36, 4 }
 0x776   : > { %v6731_v28 = vsel %vm12762_vm9, %v6674_v39, %v6730_v17  ;;  %v6294_v47 = vsel %vm12662_vm3, %v6236_v6, %v6293_v9  ;;  %v12859_v39 = vld [vmem:[%s13338_s3 + $0x38] sm:$0x3f]   ;;  %v7425_v9 = vshrl.u32 %v7396_v7, 16 }
 0x777   : > { %6732 = vst [vmem:[#allocation3 + $0x1c] sm:$0x1] %v6731_v28  ;;  %6295 = vst [vmem:[#allocation3 + $0x20] sm:$0xf] %v6294_v47  ;;  %v8034_v28 = vshrl.u32 %v7933_v10, 16  ;;  %v6815_v47 = vrot.slane %v6813_v44, 4 }
 0x778   : > { %v6320_v44 = vld [vmem:[#allocation3 + $0x44] sm:$0x1] }
 0x779   : > { %v6680_v32 = vpop.permute.xlu0 %6679  ;;  %v12880_v10 = vrot.slane %v8034_v28, 4  ;;  %v12897_v28 = vld [vmem:[#allocation3 + $0x10] sm:$0xe] }
 0x77a   : > { %v6740_v38 = vsel %vm12706_vm6, %v6680_v32, %v6739_v56  ;;  %v12809_v59 = vld [vmem:[#allocation3 + $0xc] sm:$0x1]  ;;  %v7428_v56 = vshll.u32 %v7396_v7, 16  ;;  %v6766_v32 = vld [vmem:[#allocation3 + $0x18] sm:$0xf]  ;;  %v6819_v7 = vor.u32 %v6818_v33, %v6815_v47 }
 0x77b   : > { %6741 = vst [vmem:[#allocation3 + $0x28] sm:$0xf] %v6740_v38  ;;  %v6808_v57 = vshll.u32 %v12809_v59, 16  ;;  %v6470_v20 = vpop.permute.xlu1 %6469  ;;  %v6830_v0 = vshll.u32 %v6766_v32, 16  ;;  %v7632_v48 = vld [vmem:[#allocation3 + $0x18] sm:$0xe] }
 0x77c   : > { %v6535_v46 = vsel %vm12560_vm4, %v6470_v20, %v6534_v12  ;;  %v6820_v33 = vrot.slane %v6819_v7, 4 }
 0x77d   : > { %v6688_v29 = vpop.permute.xlu0 %6687  ;;  %v6810_v41 = vrot.slane %v6808_v57, 5  ;;  %6536 = vst [vmem:[#allocation3 + $0x3c] sm:$0x1] %v6535_v46  ;;  %v8984_v57 = vcombine.low %v12819_v16, %v6766_v32  ;;  %v7427_v46 = vrot.slane %v7425_v9, 4  ;;  %v7430_v16 = vrot.slane %v7428_v56, 5 }
 0x77e   : > { %v6752_v15 = vsel %vm12706_vm6, %v6688_v29, %v6751_v27  ;;  %v6513_v17 = vld [vmem:[#allocation3 + $0x20] sm:$0xf]  ;;  %v12870_v20 = vld [vmem:[#allocation3 + $0x1c] sm:$0x1]  ;;  %v12874_v27 = vsel %vm6929_vm13, %v12859_v39, 0 }
 0x77f   : > { %6753 = vst [vmem:[#allocation3 + $0x38] sm:$0xf] %v6752_v15  ;;  %v6811_v37 = vsel %vm12783_vm15, %v6806_v18, %v6810_v41  ;;  %v6670_v52 = vpop.permute.xlu1 %6669  ;;  %v6514_v21 = vsel %vm12685_vm7, %v12779_v14, %v6513_v17  ;;  %v6832_v18 = vrot.slane %v6830_v0, 5  ;;  %9614 = vmatmul.mubr.msk.bf16.vlgmr.msra.gmra.mxu0 %vm6916_vm0, %v8984_v57  ;;  %v6745_v15 = vld [vmem:[#allocation3 + $0x30] sm:$0xf]  ;;  %v7941_v17 = vrot.slane %v7939_v62, 5 }
 0x780   : > { %v8974_v60 = vcombine.low %v6797_v43, %v6811_v37  ;;  %v6725_v24 = vsel %vm12762_vm9, %v6670_v52, %v6724_v53  ;;  %6515 = vst [vmem:[#allocation3 + $0x20] sm:$0xf] %v6514_v21  ;;  %v6827_v43 = vshrl.u32 %v6766_v32, 16  ;;  %9632 = vmatpush3.bf16.msra.mxu0 %v12823_v61  ;;  %v6836_v53 = vshll.u32 %v12870_v20, 16  ;;  %v12895_v9 = vld [vmem:[#allocation3 + $0xc] sm:$0x1] }
 0x781   : > { %v6682_v55 = vpop.permute.xlu0 %6681  ;;  %6726 = vst [vmem:[#allocation3 + $0x14] sm:$0x1] %v6725_v24  ;;  %9696 = vmatprep.subr.msk.bf16.mxu0 %vm6929_vm13, %v12799_v34  ;;  %v7431_v56 = vor.u32 %v7430_v16, %v7427_v46  ;;  %v6736_v0 = vld [vmem:[#allocation3 + $0x24] sm:$0x1] }
 0x782   : > { %v6743_v6 = vsel %vm12762_vm9, %v6682_v55, %v6742_v45  ;;  %9603 = vmatprep.mubr.msk.bf16.mxu1 %vm6916_vm0, %v8974_v60  ;;  %v6829_v29 = vrot.slane %v6827_v43, 4  ;;  %v12882_v45 = vrot.slane %v8037_v49, 5  ;;  %v12885_v52 = vld [vmem:[#allocation3 + $0x28] sm:$0xf]  ;;  %v12887_v60 = vld [vmem:[#allocation3 + $0x10] sm:$0xe] }
 0x783   : > { %6744 = vst [vmem:[#allocation3 + $0x2c] sm:$0x1] %v6743_v6  ;;  %v6676_v38 = vpop.permute.xlu1 %6675  ;;  %v6855_v36 = vshrl.u32 %v12885_v52, 16  ;;  %v6858_v43 = vshll.u32 %v12885_v52, 16  ;;  %v6838_v62 = vrot.slane %v6836_v53, 5  ;;  %v12919_v7 = vrot.slane %v7431_v56, 4 }
 0x784   : > { %v6754_v12 = vld [vmem:[#allocation3 + $0x3c] sm:$0x1]  ;;  %v6833_v31 = vor.u32 %v6832_v18, %v6829_v29  ;;  %v9034_v18 = vrot.slane %v12897_v28, 9 }
 0x785   : > { %v6690_v14 = vpop.permute.xlu0 %6689  ;;  %v12923_v53 = vrot.slane %v6855_v36, 4 }
 0x786   : > { %v6755_v41 = vsel %vm12762_vm9, %v6690_v14, %v6754_v12  ;;  %v6834_v34 = vrot.slane %v6833_v31, 4  ;;  %v12902_v47 = vld [vmem:[#allocation3 + $0x38] sm:$0xf]  ;;  %v7420_v14 = vshll.u32 %v12895_v9, 16  ;;  %v7942_v12 = vor.u32 %v7941_v17, %v7938_v51 }
 0x787   : > { %6756 = vst [vmem:[#allocation3 + $0x3c] sm:$0x1] %v6755_v41  ;;  %v6684_v37 = vpop.permute.xlu1 %6683  ;;  %v6733_v49 = vld [vmem:[#allocation3 + $0x20] sm:$0xf]  ;;  %v6883_v29 = vshrl.u32 %v12902_v47, 16  ;;  %v12925_v51 = vrot.slane %v6858_v43, 5 }
 0x788   : > { %v6746_v61 = vsel %vm12706_vm6, %v6684_v37, %v6745_v15  ;;  %v12893_v55 = vld [vmem:[#allocation3 + $0x14] sm:$0x1]  ;;  %v6734_v32 = vsel %vm12706_vm6, %v6676_v38, %v6733_v49  ;;  %v8994_v38 = vrot.slane %v12887_v60, 9  ;;  %v6839_v15 = vsel %vm12783_vm15, %v6834_v34, %v6838_v62  ;;  %v12921_v37 = vld [vmem:[#allocation3 + $0x18] sm:$0xf] }
 0x789   : > { %v6254_v24 = vpop.permute.xlu0 %6253  ;;  %6747 = vst [vmem:[#allocation3 + $0x30] sm:$0xf] %v6746_v61  ;;  %v6822_v6 = vshll.u32 %v12893_v55, 16  ;;  %6735 = vst [vmem:[#allocation3 + $0x20] sm:$0xf] %v6734_v32  ;;  %v7136_v61 = vrot.slane %v12809_v59, 5 }
 0x78a   : > { %v6321_v21 = vsel %vm12481_vm14, %v6254_v24, %v6320_v44  ;;  %v6748_v41 = vld [vmem:[#allocation3 + $0x34] sm:$0x1]  ;;  %v6886_v44 = vshll.u32 %v12902_v47, 16  ;;  %v12927_v17 = vld [vmem:[#allocation3 + $0x2c] sm:$0x1]  ;;  %v7144_v49 = vrot.slane %v12870_v20, 5  ;;  %vm12933_vm14 = vmor %vm7127_vm12, %vm7128_vm5 }
 0x78b   : > { %6322 = vst [vmem:[#allocation3 + $0x44] sm:$0x1] %v6321_v21  ;;  %v6678_v57 = vpop.permute.xlu1 %6677  ;;  %v6824_v5 = vrot.slane %v6822_v6, 5  ;;  %v12937_v6 = vrot.slane %v7420_v14, 5  ;;  %v7656_v34 = vrot.slane %v12895_v9, 5  ;;  %v12940_v56 = vrot.slane %v7942_v12, 4 }
 0x78c   : > { %v6737_v46 = vsel %vm12762_vm9, %v6678_v57, %v6736_v0  ;;  %v7439_v36 = vshrl.u32 %v12921_v37, 16  ;;  %v6317_v57 = vld [vmem:[#allocation3 + $0x40] sm:$0xf]  ;;  %v6888_v14 = vrot.slane %v6886_v44, 5  ;;  %v6864_v12 = vshll.u32 %v12927_v17, 16 }
 0x78d   : > { %6738 = vst [vmem:[#allocation3 + $0x24] sm:$0x1] %v6737_v46  ;;  %v6825_v16 = vsel %vm12783_vm15, %v6820_v33, %v6824_v5  ;;  %v12945_v33 = vrot.slane %v6883_v29, 4  ;;  %v6474_v0 = vpop.permute.xlu0 %6473  ;;  %v12950_v46 = vld [vmem:[#allocation3 + $0x1c] sm:$0x1]  ;;  %v12970_v50 = vsel %vm12933_vm14, %v8993_v30, %v7136_v61  ;;  %v13023_v8 = vsel %vm12933_vm14, %v9033_v19, %v7656_v34 }
 0x78e   : > { %v8975_v31 = vcombine.low %v6825_v16, %v6839_v15  ;;  %v6861_v16 = vor.u32 %v12925_v51, %v12923_v53  ;;  %v12956_v15 = vld [vmem:[#allocation3 + $0x3c] sm:$0x1]  ;;  %v12982_v61 = vld [vmem:[#allocation3 + $0x18] sm:$0xe]  ;;  %v7423_v3 = vsel %vm12783_vm15, %v12850_v63, %v12937_v6 }
 0x78f   : > { %v6686_v24 = vpop.permute.xlu1 %6685  ;;  %v12975_v51 = vld [vmem:[#allocation3 + $0x1c] sm:$0x1]  ;;  %v6892_v4 = vshll.u32 %v12956_v15, 16 }
 0x790   : > { %v6749_v32 = vsel %vm12762_vm9, %v6686_v24, %v6748_v41  ;;  %9604 = vmatmul.mubr.msk.bf16.vlgmr.msra.gmra.mxu1 %vm6916_vm0, %v8975_v31  ;;  %v6769_v59 = vld [vmem:[#allocation3 + $0x30] sm:$0xf]  ;;  %v6767_v29 = vld [vmem:[#allocation3 + $0x20] sm:$0xf] }
 0x791   : > { %6750 = vst [vmem:[#allocation3 + $0x34] sm:$0x1] %v6749_v32  ;;  %v6869_v5 = vshrl.u32 %v6769_v59, 16  ;;  %v6872_v62 = vshll.u32 %v6769_v59, 16  ;;  %9622 = vmatpush3.bf16.msra.mxu1 %v12789_v40  ;;  %v12964_v40 = vsel %vm12933_vm14, %v8992_v42, %v7132_v1  ;;  %v6841_v31 = vshrl.u32 %v6767_v29, 16 }
 0x792   : > { %v6540_v43 = vld [vmem:[#allocation3 + $0x44] sm:$0x1]  ;;  %9695 = vmatprep.subr.msk.bf16.mxu1 %vm6929_vm13, %v12794_v54  ;;  %v6844_v53 = vshll.u32 %v6767_v29, 16  ;;  %v8985_v22 = vcombine.low %v6767_v29, %v12885_v52  ;;  %v8986_v1 = vcombine.low %v6769_v59, %v12902_v47  ;;  %v7442_v54 = vshll.u32 %v12921_v37, 16  ;;  %v9855_v52 = vld [vmem:[#allocation3 + $0x8] ss:$8 sps:$4 sm:$0xff]  }
 0x793   : > { %v6541_v41 = vsel %vm12560_vm4, %v6474_v0, %v6540_v43  ;;  %v6252_v44 = vpop.permute.xlu1 %6251  ;;  %v6871_v23 = vrot.slane %v6869_v5, 4  ;;  %v6874_v2 = vrot.slane %v6872_v62, 5  ;;  %v6843_v24 = vrot.slane %v6841_v31, 4  ;;  %v7402_v29 = vld [vmem:[#allocation3 + $0x28] sm:$0xf] }
 0x794   : > { %6542 = vst [vmem:[#allocation3 + $0x44] sm:$0x1] %v6541_v41  ;;  %v6318_v42 = vsel %vm12662_vm3, %v6252_v44, %v6317_v57  ;;  %v12980_v30 = vld [vmem:[#allocation3 + $0x24] sm:$0x1]  ;;  %v6846_v32 = vrot.slane %v6844_v53, 5  ;;  %9617 = vmatprep.mubr.msk.bf16.mxu0 %vm6916_vm0, %v8985_v22  ;;  %v6866_v0 = vrot.slane %v6864_v12, 5  ;;  %v6889_v47 = vor.u32 %v6888_v14, %v12945_v33 }
 0x795   : > { %6319 = vst [vmem:[#allocation3 + $0x40] sm:$0xf] %v6318_v42  ;;  %v6850_v43 = vshll.u32 %v12980_v30, 16  ;;  %9618 = vmatmul.mubr.msk.bf16.gmra.mxu0 %vm6916_vm0, %v8986_v1  ;;  %v6875_v5 = vor.u32 %v6874_v2, %v6871_v23  ;;  %v8995_v62 = vrot.slane %v12982_v61, 9  ;;  %v7400_v41 = vld [vmem:[#allocation3 + $0x20] sm:$0xf]  ;;  %v6694_v61 = vpop.permute.xlu0 %6693 }
 0x796   : > { %9633 = vmatprep.mubr.msk.bf16.mxu0 %vm6916_vm0, %v9855_v52  ;;  %v6847_v37 = vor.u32 %v6846_v32, %v6843_v24  ;;  %v7140_v44 = vrot.slane %v12893_v55, 5  ;;  %v6862_v31 = vrot.slane %v6861_v16, 4  ;;  %v12998_v12 = vrot.slane %v7439_v36, 4  ;;  %v13003_v23 = vld [vmem:[#allocation3 + $0x14] sm:$0x1] }
 0x797   : > { %v13000_v33 = vrot.slane %v7442_v54, 5  ;;  %v6852_v22 = vrot.slane %v6850_v43, 5  ;;  %v6894_v1 = vrot.slane %v6892_v4, 5  ;;  %v6890_v55 = vrot.slane %v6889_v47, 4  ;;  %v13007_v16 = vld [vmem:[#allocation3 + $0x28] sm:$0xe]  ;;  %v6472_v59 = vpop.permute.xlu1 %6471 }
 0x798   : > { %v12996_v53 = vld [vmem:[#allocation3 + $0x34] sm:$0x1]  ;;  %v6848_v14 = vrot.slane %v6847_v37, 4  ;;  %v6867_v24 = vsel %vm12783_vm15, %v6862_v31, %v6866_v0  ;;  %v13009_v32 = vld [vmem:[#allocation3 + $0x38] sm:$0xe]  ;;  %v7453_v36 = vshrl.u32 %v7400_v41, 16  ;;  %v9002_v31 = vcombine.low %v12964_v40, %v12970_v50 }
 0x799   : > { %v6878_v42 = vshll.u32 %v12996_v53, 16  ;;  %v7456_v54 = vshll.u32 %v7400_v41, 16  ;;  %v6876_v4 = vrot.slane %v6875_v5, 4  ;;  %v9858_v47 = vld [vmem:[#allocation3 + $0x18] ss:$8 sps:$4 sm:$0xff]   ;;  %v7434_v40 = vshll.u32 %v13003_v23, 16 }
 0x79a   : > { %v6853_v43 = vsel %vm12783_vm15, %v6848_v14, %v6852_v22  ;;  %v9859_v41 = vld [vmem:[#allocation3 + $0x28] ss:$8 sps:$4 sm:$0xff]   ;;  %v6895_v22 = vsel %vm12783_vm15, %v6890_v55, %v6894_v1  ;;  %v7455_v19 = vrot.slane %v7453_v36, 4  ;;  %v7145_v50 = vsel %vm12933_vm14, %v8995_v62, %v7144_v49 }
 0x79b   : > { %v6760_v2 = vld [vmem:[#allocation3 + $0x44] sm:$0x1]  ;;  %v6880_v37 = vrot.slane %v6878_v42, 5  ;;  %v8976_v0 = vcombine.low %v6853_v43, %v6867_v24  ;;  %v7458_v9 = vrot.slane %v7456_v54, 5  ;;  %v7404_v34 = vld [vmem:[#allocation3 + $0x30] sm:$0xf]  ;;  %v7141_v63 = vsel %vm12933_vm14, %v8994_v38, %v7140_v44  ;;  %v6692_v54 = vpop.permute.xlu1 %6691 }
 0x79c   : > { %v6761_v52 = vsel %vm12762_vm9, %v6694_v61, %v6760_v2  ;;  %v6537_v57 = vld [vmem:[#allocation3 + $0x40] sm:$0xf]  ;;  %v8999_v42 = vrot.slane %v13009_v32, 9  ;;  %v7660_v1 = vrot.slane %v13003_v23, 5  ;;  %v7148_v20 = vrot.slane %v12980_v30, 5 }
 0x79d   : > { %6762 = vst [vmem:[#allocation3 + $0x44] sm:$0x1] %v6761_v52  ;;  %v6538_v5 = vsel %vm12685_vm7, %v6472_v59, %v6537_v57  ;;  %v6881_v14 = vsel %vm12783_vm15, %v6876_v4, %v6880_v37  ;;  %9607 = vmatprep.mubr.msk.bf16.mxu1 %vm6916_vm0, %v8976_v0  ;;  %9634 = vmatmul.mubr.msk.bf16.vlgmr.msra.gmra.mxu0 %vm6916_vm0, %v9858_v47  ;;  %v7107_v59 = vld [vmem:[#allocation3 + $0x20] sm:$0xe]  ;;  %v8997_v57 = vrot.slane %v13007_v16, 9  ;;  %v7467_v49 = vshrl.u32 %v7402_v29, 16 }
 0x79e   : > { %6539 = vst [vmem:[#allocation3 + $0x40] sm:$0xf] %v6538_v5  ;;  %v8977_v11 = vcombine.low %v6881_v14, %v6895_v22  ;;  %9637 = vmatprep.mubr.msk.bf16.mxu0 %vm6916_vm0, %v9859_v41  ;;  %9652 = vmatpush3.bf16.msra.mxu0 %v12838_v26  ;;  %v7109_v6 = vld [vmem:[#allocation3 + $0x30] sm:$0xe]  ;;  %v7470_v62 = vshll.u32 %v7402_v29, 16  ;;  %v7436_v23 = vrot.slane %v7434_v40, 5  ;;  %v7445_v26 = vor.u32 %v13000_v33, %v12998_v12 }
 0x79f   : > { %9698 = vmatprep.subr.msk.bf16.mxu0 %vm6929_vm13, %v12859_v39  ;;  %v13056_v2 = vld [vmem:[#allocation3 + $0x24] sm:$0x1]  ;;  %v7481_v60 = vshrl.u32 %v7404_v34, 16  ;;  %v7484_v61 = vshll.u32 %v7404_v34, 16  ;;  %v8996_v24 = vrot.slane %v7107_v59, 9  ;;  %v7152_v38 = vrot.slane %v12927_v17, 5 }
 0x7a0   : > { %9608 = vmatmul.mubr.msk.bf16.gmra.mxu1 %vm6916_vm0, %v8977_v11  ;;  %v7156_v30 = vrot.slane %v12996_v53, 5  ;;  %v7459_v44 = vor.u32 %v7458_v9, %v7455_v19  ;;  %v9003_v29 = vcombine.low %v7141_v63, %v7145_v50  ;;  %v8998_v55 = vrot.slane %v7109_v6, 9  ;;  %v13072_v32 = vld [vmem:[#allocation3 + $0x2c] sm:$0x1]  ;;  %v7405_v47 = vld [vmem:[#allocation3 + $0x34] sm:$0x1] }
 0x7a1   : > { %9623 = vmatprep.mubr.msk.bf16.mxu1 %vm6916_vm0, %v9002_v31  ;;  %v7160_v39 = vrot.slane %v12956_v15, 5  ;;  %v13067_v16 = vsel %vm12933_vm14, %v9034_v18, %v7660_v1  ;;  %v7149_v12 = vsel %vm12933_vm14, %v8996_v24, %v7148_v20  ;;  %v7462_v33 = vshll.u32 %v13056_v2, 16  ;;  %v7633_v9 = vld [vmem:[#allocation3 + $0x20] sm:$0xe]  ;;  %v7406_v34 = vld [vmem:[#allocation3 + $0x38] sm:$0xf] }
 0x7a2   : > { %v7469_v17 = vrot.slane %v7467_v49, 4  ;;  %v7472_v53 = vrot.slane %v7470_v62, 5  ;;  %v7437_v15 = vsel %vm12783_vm15, %v12919_v7, %v7436_v23  ;;  %v7446_v28 = vrot.slane %v7445_v26, 4  ;;  %v7635_v1 = vld [vmem:[#allocation3 + $0x30] sm:$0xe] }
 0x7a3   : > { %v7483_v52 = vrot.slane %v7481_v60, 4  ;;  %v7486_v43 = vrot.slane %v7484_v61, 5  ;;  %v7153_v4 = vsel %vm12933_vm14, %v8997_v57, %v7152_v38  ;;  %v7157_v37 = vsel %vm12933_vm14, %v8998_v55, %v7156_v30  ;;  %v7921_v63 = vld [vmem:[#allocation3 + $0x18] sm:$0xf]  ;;  %v7634_v6 = vld [vmem:[#allocation3 + $0x28] sm:$0xe] }
 0x7a4   : > { %v7460_v0 = vrot.slane %v7459_v44, 4  ;;  %v9004_v31 = vcombine.low %v7149_v12, %v7153_v4  ;;  %v7161_v5 = vsel %vm12933_vm14, %v8999_v42, %v7160_v39  ;;  %v13665_v7 = vshll.u32 %v12950_v46, 16  ;;  %v13100_v24 = vld [vmem:[#allocation3 + $0x3c] sm:$0x1]  ;;  %v13102_v38 = vld [vmem:[#allocation3 + $0x14] sm:$0x1] }
 0x7a5   : > { %v6757_v36 = vld [vmem:[#allocation3 + $0x40] sm:$0xf]  ;;  %v7476_v14 = vshll.u32 %v13072_v32, 16  ;;  %v9024_v22 = vcombine.low %v7423_v3, %v7437_v15  ;;  %v9043_v40 = vcombine.low %v13023_v8, %v13067_v16  ;;  %v7464_v11 = vrot.slane %v7462_v33, 5  ;;  %v13115_v15 = vld [vmem:[#allocation3 + $0x44] sm:$0x1] }
 0x7a6   : > { %v6758_v18 = vsel %vm12706_vm6, %v6692_v54, %v6757_v36  ;;  %v7450_v41 = vrot.slane %v13665_v7, 5  ;;  %v7473_v19 = vor.u32 %v7472_v53, %v7469_v17  ;;  %v9005_v50 = vcombine.low %v7157_v37, %v7161_v5 }
 0x7a7   : > { %6759 = vst [vmem:[#allocation3 + $0x40] sm:$0xf] %v6758_v18  ;;  %v7487_v57 = vor.u32 %v7486_v43, %v7483_v52  ;;  %v7490_v42 = vshll.u32 %v7405_v47, 16  ;;  %v7465_v3 = vsel %vm12783_vm15, %v7460_v0, %v7464_v11  ;;  %v9035_v8 = vrot.slane %v7632_v48, 9  ;;  %v7636_v11 = vld [vmem:[#allocation3 + $0x38] sm:$0xe] }
 0x7a8   : > { %9624 = vmatmul.mubr.msk.bf16.vlgmr.msra.gmra.mxu1 %vm6916_vm0, %v9003_v29  ;;  %v7451_v59 = vsel %vm12783_vm15, %v7446_v28, %v7450_v41  ;;  %v7668_v20 = vrot.slane %v13056_v2, 5  ;;  %v7676_v49 = vrot.slane %v7405_v47, 5  ;;  %v9036_v62 = vrot.slane %v7633_v9, 9  ;;  %v7923_v2 = vld [vmem:[#allocation3 + $0x20] sm:$0xf] }
 0x7a9   : > { %9627 = vmatprep.mubr.msk.bf16.mxu1 %vm6916_vm0, %v9004_v31  ;;  %9642 = vmatpush3.bf16.msra.mxu1 %v12834_v13  ;;  %v7478_v13 = vrot.slane %v7476_v14, 5  ;;  %v7495_v23 = vshrl.u32 %v7406_v34, 16  ;;  %v7498_v26 = vshll.u32 %v7406_v34, 16  ;;  %v7474_v60 = vrot.slane %v7473_v19, 4 }
 0x7aa   : > { %9697 = vmatprep.subr.msk.bf16.mxu1 %vm6929_vm13, %v12828_v25  ;;  %v9038_v61 = vrot.slane %v7635_v1, 9  ;;  %v7950_v30 = vshrl.u32 %v7921_v63, 16  ;;  %v7953_v44 = vshll.u32 %v7921_v63, 16  ;;  %v7488_v29 = vrot.slane %v7487_v57, 4 }
 0x7ab   : > { %v7492_v55 = vrot.slane %v7490_v42, 5  ;;  %v9037_v25 = vrot.slane %v7634_v6, 9  ;;  %v7672_v39 = vrot.slane %v13072_v32, 5  ;;  %v9025_v12 = vcombine.low %v7451_v59, %v7465_v3  ;;  %v7927_v59 = vld [vmem:[#allocation3 + $0x30] sm:$0xf] }
 0x7ac   : > { %v13666_v33 = vrot.slane %v12950_v46, 5  ;;  %v7669_v53 = vsel %vm12933_vm14, %v9036_v62, %v7668_v20  ;;  %v13113_v36 = vsel %vm12933_vm14, %v9038_v61, %v7676_v49  ;;  %v7497_v28 = vrot.slane %v7495_v23, 4  ;;  %v7929_v23 = vld [vmem:[#allocation3 + $0x38] sm:$0xf] }
 0x7ad   : > { %v7500_v32 = vrot.slane %v7498_v26, 5  ;;  %v7952_v46 = vrot.slane %v7950_v30, 4  ;;  %v7955_v18 = vrot.slane %v7953_v44, 5  ;;  %v7964_v4 = vshrl.u32 %v7923_v2, 16 }
 0x7ae   : > { %v9861_v16 = vld [vmem:[#allocation3 + $0x38] ss:$8 sps:$4 sm:$0xff]   ;;  %v7665_v17 = vsel %vm12933_vm14, %v9035_v8, %v13666_v33  ;;  %v7967_v37 = vshll.u32 %v7923_v2, 16  ;;  %v7504_v0 = vshll.u32 %v13100_v24, 16  ;;  %v7945_v5 = vshll.u32 %v13102_v38, 16 }
 0x7af   : > { %v7408_v54 = vld [vmem:[#allocation3 + $0x40] sm:$0xf]  ;;  %9638 = vmatmul.mubr.msk.bf16.gmra.mxu0 %vm6916_vm0, %v9861_v16  ;;  %v7479_v7 = vsel %vm12783_vm15, %v7474_v60, %v7478_v13  ;;  %v7493_v41 = vsel %vm12783_vm15, %v7488_v29, %v7492_v55  ;;  %v9044_v14 = vcombine.low %v7665_v17, %v7669_v53  ;;  %v7673_v48 = vsel %vm12933_vm14, %v9037_v25, %v7672_v39  ;;  %v13142_v39 = vld [vmem:[#allocation3 + $0x24] sm:$0x1]  ;;  %v13151_v53 = vld [vmem:[#allocation3 + $0x2c] sm:$0x1] }
 0x7b0   : > { %v7509_v52 = vshrl.u32 %v7408_v54, 16  ;;  %v7512_v43 = vshll.u32 %v7408_v54, 16  ;;  %9628 = vmatmul.mubr.msk.bf16.gmra.mxu1 %vm6916_vm0, %v9005_v50  ;;  %9653 = vmatprep.mubr.msk.bf16.mxu0 %vm6916_vm0, %v9043_v40  ;;  %v9045_v40 = vcombine.low %v7673_v48, %v13113_v36  ;;  %v7501_v19 = vor.u32 %v7500_v32, %v7497_v28  ;;  %v7637_v50 = vld [vmem:[#allocation3 + $0x40] sm:$0xe]  ;;  %v13157_v32 = vld [vmem:[#allocation3 + $0x34] sm:$0x1] }
 0x7b1   : > { %9643 = vmatprep.mubr.msk.bf16.mxu1 %vm6916_vm0, %v9024_v22  ;;  %v7925_v22 = vld [vmem:[#allocation3 + $0x28] sm:$0xf]  ;;  %v7518_v34 = vshll.u32 %v13115_v15, 16  ;;  %v7680_v57 = vrot.slane %v13100_v24, 5  ;;  %v7956_v42 = vor.u32 %v7955_v18, %v7952_v46  ;;  %v7966_v1 = vrot.slane %v7964_v4, 4 }
 0x7b2   : > { %v7511_v47 = vrot.slane %v7509_v52, 4  ;;  %v7514_v31 = vrot.slane %v7512_v43, 5  ;;  %v7969_v63 = vrot.slane %v7967_v37, 5  ;;  %v9026_v3 = vcombine.low %v7479_v7, %v7493_v41  ;;  %v13136_v24 = vld [vmem:[%s13338_s3 + $0x40] sm:$0x3f]  }
 0x7b3   : > { %v7506_v8 = vrot.slane %v7504_v0, 5  ;;  %v9039_v20 = vrot.slane %v7636_v11, 9  ;;  %v7947_v6 = vrot.slane %v7945_v5, 5  ;;  %v9040_v49 = vrot.slane %v7637_v50, 9  ;;  %v7931_v16 = vld [vmem:[#allocation3 + $0x40] sm:$0xf] }
 0x7b4   : > { %v7515_v9 = vor.u32 %v7514_v31, %v7511_v47  ;;  %v7978_v13 = vshrl.u32 %v7925_v22, 16  ;;  %v7981_v62 = vshll.u32 %v7925_v22, 16  ;;  %v7992_v26 = vshrl.u32 %v7927_v59, 16  ;;  %v13168_v47 = vld [vmem:[#allocation3 + $0x3c] sm:$0x1] }
 0x7b5   : > { %v7520_v61 = vrot.slane %v7518_v34, 5  ;;  %v7684_v30 = vrot.slane %v13115_v15, 5  ;;  %v7995_v44 = vshll.u32 %v7927_v59, 16  ;;  %v7502_v29 = vrot.slane %v7501_v19, 4 }
 0x7b6   : > { %v7516_v60 = vrot.slane %v7515_v9, 4  ;;  %v7681_v55 = vsel %vm12933_vm14, %v9039_v20, %v7680_v57  ;;  %v7957_v25 = vrot.slane %v7956_v42, 4  ;;  %v7970_v2 = vor.u32 %v7969_v63, %v7966_v1  ;;  %v13177_v63 = vld [vmem:[#allocation3 + $0x4c] sm:$0x1] }
 0x7b7   : > { %9654 = vmatmul.mubr.msk.bf16.vlgmr.msra.gmra.mxu0 %vm6916_vm0, %v9044_v14  ;;  %v7948_v33 = vsel %vm12783_vm15, %v12940_v56, %v7947_v6  ;;  %v8006_v36 = vshrl.u32 %v7929_v23, 16  ;;  %v8009_v54 = vshll.u32 %v7929_v23, 16  ;;  %v7685_v15 = vsel %vm12933_vm14, %v9040_v49, %v7684_v30 }
 0x7b8   : > { %9644 = vmatmul.mubr.msk.bf16.vlgmr.msra.gmra.mxu1 %vm6916_vm0, %v9025_v12  ;;  %v13667_v12 = vshll.u32 %v12975_v51, 16  ;;  %9657 = vmatprep.mubr.msk.bf16.mxu0 %vm6916_vm0, %v9045_v40  ;;  %v7980_v28 = vrot.slane %v7978_v13, 4  ;;  %v7994_v52 = vrot.slane %v7992_v26, 4  ;;  %v7521_v56 = vsel %vm12783_vm15, %v7516_v60, %v7520_v61  ;;  %v9864_v40 = vld [vmem:[#allocation3 + $0x10] ss:$8 sps:$4 sm:$0xff]  }
 0x7b9   : > { %9647 = vmatprep.mubr.msk.bf16.mxu1 %vm6916_vm0, %v9026_v3  ;;  %9662 = vmatpush3.bf16.msra.mxu1 %v12854_v58  ;;  %v7983_v58 = vrot.slane %v7981_v62, 5  ;;  %v7997_v43 = vrot.slane %v7995_v44, 5  ;;  %v8020_v46 = vshrl.u32 %v7931_v16, 16  ;;  %v8023_v18 = vshll.u32 %v7931_v16, 16  ;;  %v9866_v44 = vld [vmem:[#allocation3 + $0x20] ss:$8 sps:$4 sm:$0xff]  }
 0x7ba   : > { %v7961_v17 = vrot.slane %v13667_v12, 5  ;;  %9672 = vmatpush3.bf16.msra.mxu0 %v12874_v27  ;;  %9699 = vmatprep.subr.msk.bf16.mxu1 %vm6929_vm13, %v13136_v24  ;;  %v7507_v4 = vsel %vm12783_vm15, %v7502_v29, %v7506_v8  ;;  %v7971_v37 = vrot.slane %v7970_v2, 4  ;;  %v7973_v0 = vshll.u32 %v13142_v39, 16  ;;  %v13181_v8 = vld [vmem:[#allocation3 + $0x44] sm:$0x1] }
 0x7bb   : > { %v7987_v31 = vshll.u32 %v13151_v53, 16  ;;  %v8001_v5 = vshll.u32 %v13157_v32, 16  ;;  %v8008_v7 = vrot.slane %v8006_v36, 4  ;;  %v8011_v41 = vrot.slane %v8009_v54, 5  ;;  %v8156_v12 = vld [vmem:[#allocation3 + $0x18] sm:$0xe] }
 0x7bc   : > { %v7962_v27 = vsel %vm12783_vm15, %v7957_v25, %v7961_v17  ;;  %v9027_v14 = vcombine.low %v7507_v4, %v7521_v56  ;;  %v9046_v48 = vcombine.low %v7681_v55, %v7685_v15  ;;  %v7984_v22 = vor.u32 %v7983_v58, %v7980_v28  ;;  %v8155_v55 = vld [vmem:[#allocation3 + $0x10] sm:$0xe] }
 0x7bd   : > { %v9065_v11 = vcombine.low %v7948_v33, %v7962_v27  ;;  %v7998_v19 = vor.u32 %v7997_v43, %v7994_v52  ;;  %v8015_v9 = vshll.u32 %v13168_v47, 16  ;;  %v8022_v34 = vrot.slane %v8020_v46, 4  ;;  %v9868_v25 = vld [vmem:[#allocation3 + $0x30] ss:$8 sps:$4 sm:$0xff]  }
 0x7be   : > { %v8025_v50 = vrot.slane %v8023_v18, 5  ;;  %v7975_v59 = vrot.slane %v7973_v0, 5  ;;  %v7989_v57 = vrot.slane %v7987_v31, 5  ;;  %v8003_v42 = vrot.slane %v8001_v5, 5  ;;  %v8157_v18 = vld [vmem:[#allocation3 + $0x20] sm:$0xe] }
 0x7bf   : > { %9658 = vmatmul.mubr.msk.bf16.gmra.mxu0 %vm6916_vm0, %v9046_v48  ;;  %v8012_v1 = vor.u32 %v8011_v41, %v8008_v7  ;;  %v8040_v20 = vor.u32 %v12882_v45, %v12880_v10  ;;  %v8043_v6 = vshll.u32 %v13177_v63, 16  ;;  %v7985_v49 = vrot.slane %v7984_v22, 4  ;;  %v8160_v5 = vld [vmem:[#allocation3 + $0x38] sm:$0xe]  ;;  %v8161_v22 = vld [vmem:[#allocation3 + $0x40] sm:$0xe] }
 0x7c0   : > { %9648 = vmatmul.mubr.msk.bf16.gmra.mxu1 %vm6916_vm0, %v9027_v14  ;;  %9673 = vmatprep.mubr.msk.bf16.mxu0 %vm6916_vm0, %v9065_v11  ;;  %v7976_v3 = vsel %vm12783_vm15, %v7971_v37, %v7975_v59  ;;  %v7999_v13 = vrot.slane %v7998_v19, 4  ;;  %v8017_v62 = vrot.slane %v8015_v9, 5  ;;  %v8026_v23 = vor.u32 %v8025_v50, %v8022_v34  ;;  %v8159_v37 = vld [vmem:[#allocation3 + $0x30] sm:$0xe] }
 0x7c1   : > { %9663 = vmatprep.mubr.msk.bf16.mxu1 %vm6916_vm0, %v9864_v40  ;;  %v7990_v26 = vsel %vm12783_vm15, %v7985_v49, %v7989_v57  ;;  %v8013_v61 = vrot.slane %v8012_v1, 4  ;;  %v8029_v30 = vshll.u32 %v13181_v8, 16  ;;  %v8244_v10 = vsel %vm6929_vm13, %v13136_v24, 0  ;;  %v8162_v40 = vld [vmem:[#allocation3 + $0x48] sm:$0xe] }
 0x7c2   : > { %v8004_v60 = vsel %vm12783_vm15, %v7999_v13, %v8003_v42  ;;  %v9066_v29 = vcombine.low %v7976_v3, %v7990_v26  ;;  %v8041_v45 = vrot.slane %v8040_v20, 4  ;;  %v8027_v16 = vrot.slane %v8026_v23, 4 }
 0x7c3   : > { %v8018_v2 = vsel %vm12783_vm15, %v8013_v61, %v8017_v62  ;;  %v8045_v33 = vrot.slane %v8043_v6, 5  ;;  %v8181_v36 = vrot.slane %v13102_v38, 5  ;;  %v8031_v24 = vrot.slane %v8029_v30, 5  ;;  %v9869_v38 = vld [vmem:[#allocation3 + $0x40] ss:$8 sps:$4 sm:$0xff]  }
 0x7c4   : > { %v9067_v17 = vcombine.low %v8004_v60, %v8018_v2  ;;  %v9074_v54 = vrot.slane %v8155_v55, 9  ;;  %v9075_v15 = vrot.slane %v8156_v12, 9  ;;  %v8185_v28 = vrot.slane %v12975_v51, 5  ;;  %v8158_v51 = vld [vmem:[#allocation3 + $0x28] sm:$0xe] }
 0x7c5   : > { %v8032_v58 = vsel %vm12783_vm15, %v8027_v16, %v8031_v24  ;;  %v8046_v52 = vsel %vm12783_vm15, %v8041_v45, %v8045_v33  ;;  %v8189_v27 = vrot.slane %v13142_v39, 5  ;;  %v8197_v35 = vrot.slane %v13157_v32, 5 }
 0x7c6   : > { %v8182_v56 = vsel %vm12933_vm14, %v9074_v54, %v8181_v36  ;;  %v9068_v43 = vcombine.low %v8032_v58, %v8046_v52  ;;  %v8186_v46 = vsel %vm12933_vm14, %v9075_v15, %v8185_v28  ;;  %v9076_v0 = vrot.slane %v8157_v18, 9 }
 0x7c7   : > { %9674 = vmatmul.mubr.msk.bf16.vlgmr.msra.gmra.mxu0 %vm6916_vm0, %v9066_v29  ;;  %v9084_v4 = vcombine.low %v8182_v56, %v8186_v46  ;;  %v8193_v31 = vrot.slane %v13151_v53, 5  ;;  %v9078_v7 = vrot.slane %v8159_v37, 9  ;;  %v8201_v41 = vrot.slane %v13168_v47, 5 }
 0x7c8   : > { %9664 = vmatmul.mubr.msk.bf16.vlgmr.msra.gmra.mxu1 %vm6916_vm0, %v9866_v44  ;;  %9677 = vmatprep.mubr.msk.bf16.mxu0 %vm6916_vm0, %v9067_v17  ;;  %v8190_v39 = vsel %vm12933_vm14, %v9076_v0, %v8189_v27  ;;  %v9077_v14 = vrot.slane %v8158_v51, 9  ;;  %v9079_v11 = vrot.slane %v8160_v5, 9  ;;  %v9080_v34 = vrot.slane %v8161_v22, 9 }
 0x7c9   : > { %9667 = vmatprep.mubr.msk.bf16.mxu1 %vm6916_vm0, %v9868_v25  ;;  %9682 = vmatpush3.bf16.msra.mxu1 %v8244_v10  ;;  %v8198_v48 = vsel %vm12933_vm14, %v9078_v7, %v8197_v35  ;;  %v9081_v47 = vrot.slane %v8162_v40, 9  ;;  %v8209_v50 = vrot.slane %v13177_v63, 5  ;;  %v8205_v59 = vrot.slane %v13181_v8, 5 }
 0x7ca   : > { %v8194_v32 = vsel %vm12933_vm14, %v9077_v14, %v8193_v31  ;;  %v8202_v53 = vsel %vm12933_vm14, %v9079_v11, %v8201_v41 }
 0x7cb   : > { %v9085_v19 = vcombine.low %v8190_v39, %v8194_v32  ;;  %v9086_v9 = vcombine.low %v8198_v48, %v8202_v53  ;;  %v8206_v57 = vsel %vm12933_vm14, %v9080_v34, %v8205_v59  ;;  %v8210_v42 = vsel %vm12933_vm14, %v9081_v47, %v8209_v50 }
 0x7cc   : > { %v9087_v1 = vcombine.low %v8206_v57, %v8210_v42 }
 0x7cf   : > { %9678 = vmatmul.mubr.msk.bf16.gmra.mxu0 %vm6916_vm0, %v9068_v43 }
 0x7d0   : > { %9668 = vmatmul.mubr.msk.bf16.gmra.mxu1 %vm6916_vm0, %v9869_v38 }
 0x7d1   : > { %9683 = vmatprep.mubr.msk.bf16.mxu1 %vm6916_vm0, %v9084_v4 }
 0x7d8   : > { %9684 = vmatmul.mubr.msk.bf16.vlgmr.msra.gmra.mxu1 %vm6916_vm0, %v9085_v19 }
 0x7d9   : > { %9687 = vmatprep.mubr.msk.bf16.mxu1 %vm6916_vm0, %v9086_v9 }
 0x7e0   : > { %9688 = vmatmul.mubr.msk.bf16.gmra.mxu1 %vm6916_vm0, %v9087_v1 }
 0x83f   : > { %v9615_v3 = vpop.f32.mrf.mxu0 }
 0x841   : > { %v7072_v20 = vpop.f32.mrf.mxu0 }
 0x843   : > { %v9616_v6 = vpop.f32.mrf.mxu0 }
 0x845   : > { %v7075_v63 = vpop.f32.mrf.mxu0 }
 0x850   : > { %v9605_v49 = vpop.f32.mrf.mxu1 }
 0x851   : > { %v7081_v41 = vadd.f32 %v9615_v3, %v9605_v49 }
 0x852   : > { %v6967_v13 = vpop.f32.mrf.mxu1 }
 0x853   : > { %v7073_v48 = vadd.f32 %v7072_v20, %v6967_v13 }
 0x854   : > { %v9606_v26 = vpop.f32.mrf.mxu1 }
 0x855   : > { %v13233_v62 = vpop.f32.mrf.mxu0  ;;  %v7084_v32 = vadd.f32 %v9616_v6, %v9606_v26 }
 0x856   : > { %v6970_v60 = vpop.f32.mrf.mxu1 }
 0x857   : > { %v7088_v23 = vpop.f32.mrf.mxu0  ;;  %v7076_v9 = vadd.f32 %v7075_v63, %v6970_v60 }
 0x859   : > { %v13235_v8 = vpop.f32.mrf.mxu0 }
 0x85b   : > { %v13237_v61 = vpop.f32.mrf.mxu0 }
 0x85d   : > { %v9635_v30 = vpop.f32.mrf.mxu0 }
 0x85f   : > { %v7355_v10 = vpop.f32.mrf.mxu0 }
 0x860   : > { %v9609_v21 = vpop.f32.mrf.mxu1 }
 0x861   : > { %v9636_v25 = vpop.f32.mrf.mxu0  ;;  %v7097_v26 = vadd.f32 %v13233_v62, %v9609_v21 }
 0x862   : > { %v6983_v44 = vpop.f32.mrf.mxu1 }
 0x863   : > { %v7358_v33 = vpop.f32.mrf.mxu0  ;;  %v7089_v3 = vadd.f32 %v7088_v23, %v6983_v44 }
 0x864   : > { %v13239_v29 = vpop.f32.mrf.mxu1 }
 0x866   : > { %v6986_v45 = vpop.f32.mrf.mxu1 }
 0x867   : > { %v7092_v63 = vadd.f32 %v13237_v61, %v6986_v45 }
 0x868   : > { %v9625_v55 = vpop.f32.mrf.mxu1 }
 0x869   : > { %v7264_v11 = vadd.f32 %v9625_v55, %v7081_v41 }
 0x86a   : > { %v7231_v2 = vpop.f32.mrf.mxu1 }
 0x86b   : > { %v7262_v19 = vadd.f32 %v7231_v2, %v7073_v48  ;;  %v7388_v47 = vadd.f32 %v9635_v30, %v7264_v11 }
 0x86c   : > { %v9626_v16 = vpop.f32.mrf.mxu1 }
 0x86d   : > { %v7265_v34 = vadd.f32 %v9626_v16, %v7084_v32  ;;  %v7386_v1 = vadd.f32 %v7355_v10, %v7262_v19 }
 0x86e   : > { %v7234_v12 = vpop.f32.mrf.mxu1 }
 0x86f   : > { %v13241_v36 = vpop.f32.mrf.mxu0  ;;  %v7263_v57 = vadd.f32 %v7234_v12, %v7076_v9 }
 0x870   : > { %v9629_v17 = vpop.f32.mrf.mxu1 }
 0x871   : > { %v7371_v54 = vpop.f32.mrf.mxu0  ;;  %v7387_v6 = vadd.f32 %v7358_v33, %v7263_v57  ;;  %v7268_v12 = vadd.f32 %v9629_v17, %v7097_v26 }
 0x872   : > { %v7247_v24 = vpop.f32.mrf.mxu1 }
 0x873   : > { %v13245_v28 = vpop.f32.mrf.mxu0  ;;  %v7266_v13 = vadd.f32 %v7247_v24, %v7089_v3  ;;  %v7100_v24 = vadd.f32 %v13235_v8, %v13239_v29  ;;  %v7392_v61 = vadd.f32 %v13241_v36, %v7268_v12 }
 0x874   : > { %v13243_v15 = vpop.f32.mrf.mxu1 }
 0x875   : > { %v13247_v52 = vpop.f32.mrf.mxu0  ;;  %v7390_v44 = vadd.f32 %v7371_v54, %v7266_v13  ;;  %v7269_v45 = vadd.f32 %v13243_v15, %v7100_v24  ;;  %v9093_v54 = vld [vmem:[%s13339_s4] ss:$0 sm:$0xff] }
 0x876   : > { %v7250_v58 = vpop.f32.mrf.mxu1 }
 0x877   : > { %v9655_v38 = vpop.f32.mrf.mxu0  ;;  %v7267_v10 = vadd.f32 %v7250_v58, %v7092_v63  ;;  %v7393_v15 = vadd.f32 %v13245_v28, %v7269_v45 }
 0x878   : > { %v9645_v56 = vpop.f32.mrf.mxu1 }
 0x879   : > { %v7755_v46 = vpop.f32.mrf.mxu0  ;;  %v7624_v42 = vadd.f32 %v9645_v56, %v7388_v47  ;;  %v7391_v17 = vadd.f32 %v13247_v52, %v7267_v10 }
 0x87a   : > { %v7591_v43 = vpop.f32.mrf.mxu1 }
 0x87b   : > { %v9656_v4 = vpop.f32.mrf.mxu0  ;;  %v7622_v49 = vadd.f32 %v7591_v43, %v7386_v1  ;;  %v7788_v55 = vadd.f32 %v9655_v38, %v7624_v42 }
 0x87c   : > { %v9646_v18 = vpop.f32.mrf.mxu1 }
 0x87d   : > { %v7758_v37 = vpop.f32.mrf.mxu0  ;;  %v7786_v30 = vadd.f32 %v7755_v46, %v7622_v49 }
 0x87e   : > { %v7594_v27 = vpop.f32.mrf.mxu1 }
 0x87f   : > { %v13249_v35 = vpop.f32.mrf.mxu0  ;;  %v7623_v2 = vadd.f32 %v7594_v27, %v7387_v6 }
 0x880   : > { %v9649_v51 = vpop.f32.mrf.mxu1 }
 0x881   : > { %v7771_v31 = vpop.f32.mrf.mxu0  ;;  %v7787_v33 = vadd.f32 %v7758_v37, %v7623_v2  ;;  %v7628_v29 = vadd.f32 %v9649_v51, %v7392_v61 }
 0x882   : > { %v7607_v0 = vpop.f32.mrf.mxu1 }
 0x883   : > { %v13253_v7 = vpop.f32.mrf.mxu0 }
 0x884   : > { %v13251_v5 = vpop.f32.mrf.mxu1  ;;  %13669 = vst [vmem:[#allocation10_spill] sm:$0xff] %v13253_v7 }
 0x885   : > { %13668 = vst [vmem:[#allocation9_spill] sm:$0xff] %v13251_v5  ;;  %v13255_v14 = vpop.f32.mrf.mxu0  ;;  %v7389_v5 = vadd.f32 %v9636_v25, %v7265_v34 }
 0x886   : > { %v7610_v39 = vpop.f32.mrf.mxu1  ;;  %13670 = vst [vmem:[#allocation44_spill] sm:$0xff] %v13255_v14 }
 0x887   : > { %v9675_v40 = vpop.f32.mrf.mxu0  ;;  %v7625_v41 = vadd.f32 %v9646_v18, %v7389_v5  ;;  %v7626_v18 = vadd.f32 %v7607_v0, %v7390_v44  ;;  %v7627_v37 = vadd.f32 %v7610_v39, %v7391_v17 }
 0x888   : > { %v9665_v22 = vpop.f32.mrf.mxu1 }
 0x889   : > { %v8116_v50 = vpop.f32.mrf.mxu0  ;;  %v7913_v16 = vadd.f32 %v9665_v22, %v7788_v55  ;;  %v7789_v25 = vadd.f32 %v9656_v4, %v7625_v41  ;;  %v7790_v5 = vadd.f32 %v7771_v31, %v7626_v18 }
 0x88a   : > { %v7880_v53 = vpop.f32.mrf.mxu1 }
 0x88b   : > { %v9676_v14 = vpop.f32.mrf.mxu0  ;;  %v7911_v43 = vadd.f32 %v7880_v53, %v7786_v30  ;;  %v8149_v62 = vadd.f32 %v9675_v40, %v7913_v16 }
 0x88c   : > { %v9666_v59 = vpop.f32.mrf.mxu1  ;;  %v13671_v9 = vld [vmem:[#allocation9_spill] sm:$0xff] }
 0x88d   : > { %v8119_v56 = vpop.f32.mrf.mxu0  ;;  %v7914_v21 = vadd.f32 %v9666_v59, %v7789_v25  ;;  %v8147_v4 = vadd.f32 %v8116_v50, %v7911_v43  ;;  %v7629_v51 = vadd.f32 %v13671_v9, %v7393_v15  ;;  %v13672_v39 = vld [vmem:[#allocation44_spill] sm:$0xff] }
 0x88e   : > { %v7883_v7 = vpop.f32.mrf.mxu1  ;;  %v7791_v34 = vadd.f32 %v13672_v39, %v7627_v37 }
 0x88f   : > { %v9679_v58 = vpop.f32.mrf.mxu0  ;;  %v7912_v27 = vadd.f32 %v7883_v7, %v7787_v33  ;;  %v8150_v48 = vadd.f32 %v9676_v14, %v7914_v21  ;;  %v7792_v7 = vadd.f32 %v13249_v35, %v7628_v29  ;;  %v13673_v35 = vld [vmem:[#allocation10_spill] sm:$0xff] }
 0x890   : > { %v9669_v20 = vpop.f32.mrf.mxu1  ;;  %v7793_v13 = vadd.f32 %v13673_v35, %v7629_v51 }
 0x891   : > { %v8132_v52 = vpop.f32.mrf.mxu0  ;;  %v8148_v40 = vadd.f32 %v8119_v56, %v7912_v27  ;;  %v7917_v59 = vadd.f32 %v9669_v20, %v7792_v7 }
 0x892   : > { %v7896_v60 = vpop.f32.mrf.mxu1 }
 0x893   : > { %v7915_v32 = vadd.f32 %v7896_v60, %v7790_v5  ;;  %v9680_v57 = vpop.f32.mrf.mxu0  ;;  %v8153_v2 = vadd.f32 %v9679_v58, %v7917_v59 }
 0x894   : > { %v9670_v23 = vpop.f32.mrf.mxu1 }
 0x895   : > { %v8151_v1 = vadd.f32 %v8132_v52, %v7915_v32  ;;  %v7918_v63 = vadd.f32 %v9670_v23, %v7793_v13  ;;  %v8135_v60 = vpop.f32.mrf.mxu0 }
 0x896   : > { %v7899_v38 = vpop.f32.mrf.mxu1 }
 0x897   : > { %v7916_v3 = vadd.f32 %v7899_v38, %v7791_v34  ;;  %v8154_v25 = vadd.f32 %v9680_v57, %v7918_v63 }
 0x898   : > { %v9685_v46 = vpop.f32.mrf.mxu1 }
 0x899   : > { %v8313_v8 = vadd.f32 %v9685_v46, %v8149_v62  ;;  %v8152_v16 = vadd.f32 %v8135_v60, %v7916_v3 }
 0x89a   : > { %v8280_v0 = vpop.f32.mrf.mxu1 }
 0x89b   : > { %v13267_v11 = vadd.f32 %v9093_v54, %v8313_v8  ;;  %v8311_v36 = vadd.f32 %v8280_v0, %v8147_v4 }
 0x89c   : > { %v9686_v22 = vpop.f32.mrf.mxu1 }
 0x89d   : > { %v13270_v19 = vadd.f32 %v9093_v54, %v8311_v36  ;;  %v8314_v53 = vadd.f32 %v9686_v22, %v8150_v48  ;;  %v9096_v14 = vmul.f32 -1.442695, %v13267_v11 }
 0x89e   : > { %v8283_v31 = vpop.f32.mrf.mxu1 }
 0x89f   : > { %v9094_v47 = vmul.f32 -1.442695, %v13270_v19  ;;  %v13277_v50 = vadd.f32 %v9093_v54, %v8314_v53  ;;  %v8312_v28 = vadd.f32 %v8283_v31, %v8148_v40 }
 0x8a0   : > { %v9689_v42 = vpop.f32.mrf.mxu1 }
 0x8a1   : > { %9870 = vpow2.f32 %v9094_v47  ;;  %v8327_v49 = vadd.f32 %v9093_v54, %v8312_v28  ;;  %v9097_v41 = vmul.f32 -1.442695, %v13277_v50  ;;  %v8317_v10 = vadd.f32 %v9689_v42, %v8153_v2 }
 0x8a2   : > { %v8296_v55 = vpop.f32.mrf.mxu1  ;;  %9872 = vpow2.f32 %v9096_v14 }
 0x8a3   : > { %v9095_v6 = vmul.f32 -1.442695, %v8327_v49  ;;  %v8315_v26 = vadd.f32 %v8296_v55, %v8151_v1  ;;  %v8332_v38 = vadd.f32 %v9093_v54, %v8317_v10 }
 0x8a4   : > { %v9690_v30 = vpop.f32.mrf.mxu1 }
 0x8a5   : > { %9874 = vpow2.f32 %v9095_v6  ;;  %v8330_v20 = vadd.f32 %v9093_v54, %v8315_v26  ;;  %v8318_v24 = vadd.f32 %v9690_v30, %v8154_v25  ;;  %v9100_v21 = vmul.f32 -1.442695, %v8332_v38 }
 0x8a6   : > { %v8299_v12 = vpop.f32.mrf.mxu1  ;;  %9876 = vpow2.f32 %v9097_v41 }
 0x8a7   : > { %v9098_v56 = vmul.f32 -1.442695, %v8330_v20  ;;  %v8316_v44 = vadd.f32 %v8299_v12, %v8152_v16  ;;  %v8333_v62 = vadd.f32 %v9093_v54, %v8318_v24 }
 0x8a9   : > { %v8331_v43 = vadd.f32 %v9093_v54, %v8316_v44  ;;  %9878 = vpow2.f32 %v9098_v56  ;;  %v9101_v17 = vmul.f32 -1.442695, %v8333_v62 }
 0x8ab   : > { %v9099_v33 = vmul.f32 -1.442695, %v8331_v43 }
 0x8ad   : > { %9880 = vpow2.f32 %v9099_v33 }
 0x8ae   : > { %v9871_v18 = vpop.eup %9870 }
 0x8af   : > { %v8358_v23 = vadd.f32 1.0, %v9871_v18  ;;  %v9873_v61 = vpop.eup %9872 }
 0x8b0   : > { %v8360_v58 = vadd.f32 1.0, %v9873_v61 }
 0x8b1   : > { %9882 = vrcp.f32 %v8358_v23 }
 0x8b2   : > { %v9875_v45 = vpop.eup %9874  ;;  %9884 = vpow2.f32 %v9100_v21 }
 0x8b3   : > { %v8359_v46 = vadd.f32 1.0, %v9875_v45  ;;  %v9877_v4 = vpop.eup %9876 }
 0x8b4   : > { %v8361_v27 = vadd.f32 1.0, %v9877_v4 }
 0x8b5   : > { %9886 = vrcp.f32 %v8359_v46 }
 0x8b6   : > { %9888 = vpow2.f32 %v9101_v17  ;;  %v9879_v8 = vpop.eup %9878 }
 0x8b7   : > { %9890 = vrcp.f32 %v8360_v58  ;;  %v8362_v29 = vadd.f32 1.0, %v9879_v8 }
 0x8b8   : > { %9892 = vrcp.f32 %v8361_v27 }
 0x8b9   : > { %9894 = vrcp.f32 %v8362_v29 }
 0x8ba   : > { %v9881_v37 = vpop.eup %9880 }
 0x8bb   : > { %v8363_v5 = vadd.f32 1.0, %v9881_v37 }
 0x8bd   : > { %9896 = vrcp.f32 %v8363_v5 }
 0x8be   : > { %v9883_v54 = vpop.eup %9882 }
 0x8bf   : > { %v8382_v0 = vmul.f32 %v9883_v54, %v13270_v19  ;;  %v9885_v48 = vpop.eup %9884 }
 0x8c0   : > { %v8364_v22 = vadd.f32 1.0, %v9885_v48 }
 0x8c1   : > { %8390 = vxpose.xlu1.b32.start [1/8] (short) (narrow) %v8382_v0, 16 }
 0x8c2   : > { %v9887_v36 = vpop.eup %9886  ;;  %9898 = vrcp.f32 %v8364_v22 }
 0x8c3   : > { %v9889_v15 = vpop.eup %9888  ;;  %v8383_v52 = vmul.f32 %v9887_v36, %v8327_v49 }
 0x8c4   : > { %v9891_v40 = vpop.eup %9890  ;;  %v8365_v53 = vadd.f32 1.0, %v9889_v15 }
 0x8c5   : > { %8391 = vxpose.xlu1.b32.cont [2/8] (short) (narrow) %v8383_v52, 16  ;;  %v8384_v32 = vmul.f32 %v9891_v40, %v13267_v11  ;;  %v9893_v7 = vpop.eup %9892 }
 0x8c6   : > { %v8385_v19 = vmul.f32 %v9893_v7, %v13277_v50  ;;  %9900 = vrcp.f32 %v8365_v53  ;;  %v9895_v9 = vpop.eup %9894 }
 0x8c7   : > { %v8386_v51 = vmul.f32 %v9895_v9, %v8330_v20 }
 0x8c9   : > { %8392 = vxpose.xlu1.b32.cont [3/8] (short) (narrow) %v8384_v32, 16 }
 0x8ca   : > { %v9897_v39 = vpop.eup %9896 }
 0x8cb   : > { %v8387_v34 = vmul.f32 %v9897_v39, %v8331_v43 }
 0x8cd   : > { %8393 = vxpose.xlu1.b32.cont [4/8] (short) (narrow) %v8385_v19, 16 }
 0x8cf   : > { %v9899_v31 = vpop.eup %9898 }
 0x8d0   : > { %v8388_v14 = vmul.f32 %v9899_v31, %v8332_v38 }
 0x8d1   : > { %8394 = vxpose.xlu1.b32.cont [5/8] (short) (narrow) %v8386_v51, 16 }
 0x8d3   : > { %v9901_v47 = vpop.eup %9900 }
 0x8d4   : > { %v8389_v11 = vmul.f32 %v9901_v47, %v8333_v62 }
 0x8d5   : > { %8395 = vxpose.xlu1.b32.cont [6/8] (short) (narrow) %v8387_v34, 16 }
 0x8d9   : > { %8396 = vxpose.xlu1.b32.cont [7/8] (short) (narrow) %v8388_v14, 16 }
 0x8dd   : > { %8397 = vxpose.xlu1.b32.end [8/8] (short) (narrow) %v8389_v11, 16 }
 0x93d   : > { %v8406_v50 = vpop.trf.xlu1 }
 0x93e   : > { %8422 = vst.msk [vmem:[%s217_s10] sm:$0xff] %vm2512_vm10, %v8406_v50 }
 0x941   : > { %v8407_v28 = vpop.trf.xlu1 }
 0x942   : > { %8423 = vst.msk [vmem:[%s217_s10 + $0x8] sm:$0xff] %vm2512_vm10, %v8407_v28 }
 0x943   : > { %9917 = shalt.err (!%p9914_p3)
}
 0x944   : > { %s9918_s17 = scalar_lea.hbm %s13292_s14, 256  ;;  %s9922_s6 = scalar_lea.hbm %s13340_s5, 512 }
 0x945   : > { %p9919_p4 = scmp.ne.s32.totalorder %s13292_s14, %s9918_s17  ;;  %p9923_p9 = scmp.lt.s32.totalorder %s13292_s14, %s13340_s5 }
 0x946   : > { %p9924_p10 = scmp.lt.s32.totalorder %s9922_s6, %s9918_s17 }
 0x947   : > { %p9920_p7 = pnand %p9919_p4, %p10054_p5 }
 0x948   : > { %p9925_p11 = por %p9924_p10, %p9923_p9 }
 0x949   : > { %p9921_p8 = pneg %p9920_p7 }
 0x94b   : > { %p9926_p12 = pnand %p9925_p11, %p9921_p8 }
 0x94d   : > { %9929 = shalt.err (!%p9926_p12)
}
 0x94e   : > { %s9984_s10 = smov 128   ;;  %s9985_s26 = smov 8  }
 0x94f   : > { %9707 = dma.vmem_to_hbm [thread:$0]  (%p10054_p5), %s13287_s11, 256, %s13292_s14, %s13295_s16, %s9984_s10, %s9984_s10, %s9985_s26  }
 0x950 PF: > { %p9713_p13 = scmp.ge.s32.totalorder %s9964_s21, 2  ;;  %s8453_s12 = sand.u32 1, %s9952_s18  }
 0x951   : > { %s8454_s13 = scalar_lea.sflag [#allocation5], %s8453_s12 }
 0x952   : > { %p9710_p0 = pnand %p9713_p13, %p10058_p6 }
 0x954   : > { %p9711_p1 = pneg %p9710_p0 }
 0x956   : > { %9947 = dma.done.wait (%p9711_p1), %s8454_s13, 256  }
 0x957   : > { %9949 = vsyncadd (%p9711_p1), %s8454_s13, 4294967040  ;;  %p15_p2 = scmp.ge.s32.totalorder %s10041_s24, 4   ;;  %s13674_s18 = smov %s9956_s19 }
 0x958   : > { %s13675_s19 = smov %s9960_s20  ;;  %s13676_s20 = smov %s10052_s27 }
 0x959   : > { %s13677_s21 = smov %s10041_s24  ;;  %17 = sbr.rel (!%p15_p2) target bundleno = 3 (0x3), region = 102 }
 0x95e   :  { %8459 = vsyncpa [#allocation5], 1 }
 0x95f   :  { %8461 = vsyncpa [#allocation5 + $0x1], 1 }

</bundles_post_ra>
